<compile_context>
chip_gen: v7x
topology: tpu7x:2x2x1
jax: 0.10.0
libtpu: 0.0.40
codegen_flags: <defaults>
</compile_context>

<pallas_src>
import numpy as np

import jax
import jax.numpy as jnp
from jax import lax
from jax.experimental import pallas as pl
from jax.experimental.pallas import tpu as pltpu

# ----------------------------- model constants -----------------------------
CONV1_C, CONV1_K = 16, 3
CONV2_C, CONV2_K = 32, 5
CONV3_C, CONV3_K = 32, 5
FC1_OUT = 24
INPUT_HW = 50
OUTPUT = 9
NEG_SLOPE = 0.01  # F.leaky_relu default

# spatial sizes implied by the module
H1 = INPUT_HW - CONV1_K + 1      # 48  conv1 output H/W
P1 = H1 // 2                     # 24  pool1 output H/W
H2 = P1 - CONV2_K + 1            # 20  conv2 output H/W
P2 = H2 // 2                     # 10  pool2 output H/W
H3 = P2 - CONV3_K + 1            # 6   conv3 output H/W
FLAT = H3 * H3 * CONV3_C         # 1152 (== fc1.in_features)

# derived in-kernel layout constants
C1_HALF = P1 * CONV1_C           # 384 : one W-parity half of a conv1 row
C2_BLKS_HALF = 12                # 10 real pooled-W blocks + 2 pad (lane align)
C2_HALF = C2_BLKS_HALF * CONV2_C  # 384 : one W-parity half of a conv2 row
C3_COLS = H3 * CONV3_C           # 192 : conv3 output row (wo*32 + co)

# conv1 LHS packing (built in the wrapper): 4 row-residue blocks of 16 rows
# each (12 valid) stacked along M, the 3 vertical taps folded along K.
# Residue-block order (0,2,1,3) makes the fused 2x2 H-pool a max of two
# contiguous 32-row slabs inside the kernel.
C1_BLOCK_ORDER = (0, 2, 1, 3)
C1_ROWS = 64
C1_K = CONV1_K * INPUT_HW        # 150

_C1_ROW_IDX = np.minimum(
    np.asarray(C1_BLOCK_ORDER, np.int32)[:, None, None]
    + 4 * np.arange(16, dtype=np.int32)[None, :, None]
    + np.arange(CONV1_K, dtype=np.int32)[None, None, :],
    INPUT_HW - 1)                # (4, 16, 3): image row feeding (block, j, tap)


# ------------------------------ Pallas kernel -------------------------------
def _lrelu(x):
    return jnp.where(x >= 0, x, NEG_SLOPE * x)


def _net_kernel(xk_ref, m1_ref, m2_ref, m3_ref, w1_ref, w2_ref,
                b1_ref, b2_ref, b3_ref, bf1_ref, bf2_ref, out_ref):
    """One image per grid step; whole network resident in VMEM.

    xk_ref : (1, 64, 150) bf16  conv1 LHS (4 residue blocks x 16 rows, taps in K)
    m1_ref : (150, 768)   bf16  conv1 banded weights, taps folded along K
    m2_ref : (5, 384, 768) bf16 conv2 per-tap banded weights (parity columns)
    m3_ref : (5, 384, 192) bf16 conv3 per-tap banded weights
    w1_ref : (6, 192, 24)  bf16 fc1 weights permuted to conv3 layout
    w2_ref : (24, 9)       bf16 fc2 weights (transposed)
    b*_ref : f32 bias rows tiled to the corresponding column layouts
    out_ref: (1, 1, 9)     f32
    """
    f32, bf16 = jnp.float32, jnp.bfloat16

    def mm(a, b):  # bf16 MXU matmul with f32 accumulation
        return jnp.dot(a.astype(bf16), b, preferred_element_type=f32)

    # ---- conv1 (3x3, 1->16): a single GEMM, taps pre-folded along K --------
    o1 = mm(xk_ref[0], m1_ref[...])                       # (64, 768) f32
    # fused 2x2 max-pool: W via parity column halves, H via residue slabs,
    # then bias + leaky_relu (max commutes with both).
    h1w = jnp.maximum(o1[:, :C1_HALF], o1[:, C1_HALF:])   # (64, 384)
    p1 = jnp.maximum(h1w[0:32, :], h1w[32:64, :])         # (32, 384)
    p1 = _lrelu(p1 + b1_ref[...])                         # rows 0:16 even, 16:32 odd

    # ---- conv2 (5x5, 16->32): even/odd output rows stacked per push --------
    # Even taps (kh=0,2,4): one M=30 GEMM covers both row parities
    # (output rows 0..9 = even conv2 rows, rows 16..25 = odd conv2 rows).
    o2m = mm(p1[0:30, :], m2_ref[0])
    o2m = o2m + mm(p1[1:31, :], m2_ref[2])
    o2m = o2m + mm(p1[2:32, :], m2_ref[4])                # (30, 768) f32
    # Odd taps (kh=1,3): sources swap row parity, two M=15 GEMMs each.
    o2e = mm(p1[16:31, :], m2_ref[1]) + mm(p1[17:32, :], m2_ref[3])  # even rows
    o2o = mm(p1[1:16, :], m2_ref[1]) + mm(p1[2:17, :], m2_ref[3])    # odd rows
    c2e = o2m[0:P2, :] + o2e[0:P2, :]                     # (10, 768) even rows
    c2o = o2m[16:16 + P2, :] + o2o[0:P2, :]               # (10, 768) odd rows
    # fused 2x2 max-pool + bias + leaky_relu
    p2 = jnp.maximum(jnp.maximum(c2e[:, :C2_HALF], c2e[:, C2_HALF:]),
                     jnp.maximum(c2o[:, :C2_HALF], c2o[:, C2_HALF:]))  # (10, 384)
    p2 = _lrelu(p2 + b2_ref[...])

    # ---- conv3 (5x5, 32->32) + bias, no activation --------------------------
    o3 = mm(p2[0:H3, :], m3_ref[0])
    for kh in range(1, CONV3_K):
        o3 = o3 + mm(p2[kh:kh + H3, :], m3_ref[kh])
    o3 = o3 + b3_ref[...]                                 # (6, 192) f32

    # ---- fc1 (1152 -> 24) + leaky_relu (contract conv3 rows one by one) ----
    acc = mm(o3[0:1, :], w1_ref[0])
    for h in range(1, H3):
        acc = acc + mm(o3[h:h + 1, :], w1_ref[h])
    h1 = _lrelu(acc + bf1_ref[...])                       # (1, 24)

    # ---- fc2 (24 -> 9) + sigmoid --------------------------------------------
    logits = mm(h1, w2_ref[...]) + bf2_ref[...]           # (1, 9)
    out_ref[0] = (1.0 / (1.0 + jnp.exp(-logits))).astype(out_ref.dtype)


# ----------------------- weight preparation (one-time) ----------------------
def _toeplitz(w, win_blocks, wo_count, cpos, cblk):
    """Per-tap banded GEMM weights.

    w: (cout, cin, k, k).  Returns (k, win_blocks*cin, cblk*cout) f32 with
       M[kh, w_in*cin + ci, cpos(wo)*cout + co] = w[co, ci, kh, w_in - wo]
    for 0 <= w_in - wo < k, zero elsewhere.
    """
    cout, cin, k, _ = w.shape
    mats = []
    for kh in range(k):
        acc = jnp.zeros((win_blocks, cin, cblk, cout), jnp.float32)
        for kw in range(k):
            place = np.zeros((win_blocks, cblk), np.float32)
            for wo in range(wo_count):
                place[wo + kw, cpos(wo)] = 1.0
            acc = acc + jnp.einsum('wb,cf->wcbf', place, w[:, :, kh, kw].T)
        mats.append(acc.reshape(win_blocks * cin, cblk * cout))
    return jnp.stack(mats, axis=0)


def prepare_params(params):
    """One-time repacking of the PyTorch-layout weights into the kernel's
    banded GEMM layouts.  Call once and cache the result (NOT per forward)."""
    bf16, f32 = jnp.bfloat16, jnp.float32
    # conv1: per-tap banded weights (W-parity columns), taps folded along K.
    m1 = _toeplitz(params["w1"], INPUT_HW, H1,
                   lambda wo: (wo % 2) * (H1 // 2) + wo // 2, H1)
    m1s = m1.reshape(C1_K, H1 * CONV1_C)                  # (150, 768)
    # conv2: input rows = 24 blocks of 16; output halves padded to 12 blocks.
    m2 = _toeplitz(params["w2"], P1, H2,
                   lambda wo: (wo % 2) * C2_BLKS_HALF + wo // 2,
                   2 * C2_BLKS_HALF)
    # conv3: input rows = 12 blocks of 32 (last 2 are pool2 padding -> zero
    # weight rows, so the pad garbage never contaminates conv3's output).
    m3 = _toeplitz(params["w3"], C2_BLKS_HALF, H3, lambda wo: wo, H3)
    # fc1 weight permuted to the conv3 output layout (row ho, col wo*32+co);
    # this reproduces PyTorch's NCHW flatten exactly, no in-kernel transpose.
    w1r = jnp.transpose(params["wfc1"].reshape(FC1_OUT, CONV3_C, H3, H3),
                        (2, 3, 1, 0)).reshape(H3, H3 * CONV3_C, FC1_OUT)
    return {
        "m1s": m1s.astype(bf16),
        "m2": m2.astype(bf16),
        "m3": m3.astype(bf16),
        "w1r": w1r.astype(bf16),
        "w2r": params["wfc2"].T.astype(bf16),
        "b1": jnp.tile(params["b1"], P1).reshape(1, C1_HALF).astype(f32),
        "b2": jnp.tile(params["b2"], C2_BLKS_HALF).reshape(1, C2_HALF).astype(f32),
        "b3": jnp.tile(params["b3"], H3).reshape(1, C3_COLS).astype(f32),
        "bf1": params["bfc1"].reshape(1, FC1_OUT).astype(f32),
        "bf2": params["bfc2"].reshape(1, OUTPUT).astype(f32),
    }


# --------------------------------- forward ----------------------------------
def net_forward(x_nchw, prep):
    n = x_nchw.shape[0]
    assert x_nchw.shape[1:] == (1, INPUT_HW, INPUT_HW)

    # Pack the conv1 LHS: gather image rows into 4 residue blocks of 16 rows
    # each and fold the 3 vertical taps along K.  Shipped in bf16 (MXU-native,
    # halves the per-image input DMA).  Pad rows are clamped (finite, unused).
    x2 = x_nchw[:, 0, :, :].astype(jnp.float32)                    # (N, 50, 50)
    xk = x2[:, _C1_ROW_IDX, :].reshape(n, C1_ROWS, C1_K).astype(jnp.bfloat16)

    full2 = lambda i: (0, 0)
    full3 = lambda i: (0, 0, 0)
    out = pl.pallas_call(
        _net_kernel,
        grid=(n,),
        in_specs=[
            pl.BlockSpec((1, C1_ROWS, C1_K), lambda i: (i, 0, 0)),          # xk
            pl.BlockSpec((C1_K, H1 * CONV1_C), full2),                      # m1s
            pl.BlockSpec((CONV2_K, P1 * CONV1_C, 2 * C2_HALF), full3),      # m2
            pl.BlockSpec((CONV3_K, C2_BLKS_HALF * CONV2_C, C3_COLS), full3),  # m3
            pl.BlockSpec((H3, C3_COLS, FC1_OUT), full3),                    # w1r
            pl.BlockSpec((FC1_OUT, OUTPUT), full2),                         # w2r
            pl.BlockSpec((1, C1_HALF), full2),                              # b1
            pl.BlockSpec((1, C2_HALF), full2),                              # b2
            pl.BlockSpec((1, C3_COLS), full2),                              # b3
            pl.BlockSpec((1, FC1_OUT), full2),                              # bf1
            pl.BlockSpec((1, OUTPUT), full2),                               # bf2
        ],
        out_specs=pl.BlockSpec((1, 1, OUTPUT), lambda i: (i, 0, 0)),
        out_shape=jax.ShapeDtypeStruct((n, 1, OUTPUT), jnp.float32),
        compiler_params=pltpu.CompilerParams(
            dimension_semantics=("parallel",)),  # shards batch across TCs on v7x
    )(xk, prep["m1s"], prep["m2"], prep["m3"], prep["w1r"], prep["w2r"],
      prep["b1"], prep["b2"], prep["b3"], prep["bf1"], prep["bf2"])
    return out.reshape(n, OUTPUT)


# ------------------------------- params init --------------------------------
def init_params(key):
    ks = jax.random.split(key, 10)

    def conv_w(k, cout, cin, ksz):
        std = 1.0 / jnp.sqrt(cin * ksz * ksz)
        return std * jax.random.normal(k, (cout, cin, ksz, ksz), jnp.float32)

    def lin_w(k, out_f, in_f):
        std = 1.0 / jnp.sqrt(in_f)
        return std * jax.random.normal(k, (out_f, in_f), jnp.float32)

    return {
        "w1": conv_w(ks[0], CONV1_C, 1, CONV1_K),
        "b1": 0.01 * jax.random.normal(ks[1], (CONV1_C,), jnp.float32),
        "w2": conv_w(ks[2], CONV2_C, CONV1_C, CONV2_K),
        "b2": 0.01 * jax.random.normal(ks[3], (CONV2_C,), jnp.float32),
        "w3": conv_w(ks[4], CONV3_C, CONV2_C, CONV3_K),
        "b3": 0.01 * jax.random.normal(ks[5], (CONV3_C,), jnp.float32),
        "wfc1": lin_w(ks[6], FC1_OUT, FLAT),
        "bfc1": 0.01 * jax.random.normal(ks[7], (FC1_OUT,), jnp.float32),
        "wfc2": lin_w(ks[8], OUTPUT, FC1_OUT),
        "bfc2": 0.01 * jax.random.normal(ks[9], (OUTPUT,), jnp.float32),
    }


# ------------------------------ pure-JAX reference ---------------------------
def reference_forward(x_nchw, params):
    prec = lax.Precision.HIGHEST

    def conv(x, w, b):
        y = lax.conv_general_dilated(
            x, w, (1, 1), "VALID",
            dimension_numbers=("NCHW", "OIHW", "NCHW"), precision=prec)
        return y + b.reshape(1, -1, 1, 1)

    def lrelu(x):
        return jnp.where(x >= 0, x, NEG_SLOPE * x)

    def pool(x):
        return lax.reduce_window(x, -jnp.inf, lax.max,
                                 (1, 1, 2, 2), (1, 1, 2, 2), "VALID")

    y = pool(lrelu(conv(x_nchw, params["w1"], params["b1"])))
    y = pool(lrelu(conv(y, params["w2"], params["b2"])))
    y = conv(y, params["w3"], params["b3"])
    y = y.reshape(y.shape[0], -1)
    y = lrelu(jnp.dot(y, params["wfc1"].T, precision=prec) + params["bfc1"])
    y = jnp.dot(y, params["wfc2"].T, precision=prec) + params["bfc2"]
    return 1.0 / (1.0 + jnp.exp(-y))


# ----------------------------------- main ------------------------------------
if __name__ == "__main__":
    key = jax.random.PRNGKey(0)
    pkey, xkey = jax.random.split(key)
    params = init_params(pkey)
    prep = prepare_params(params)        # one-time repacking, outside the jit

    # batch=2, 1 channel, 50x50 (spatial size fixed by fc1's in_features)
    x = jax.random.normal(xkey, (2, 1, INPUT_HW, INPUT_HW), jnp.float32)

    fwd = jax.jit(net_forward)
    out = jax.block_until_ready(fwd(x, prep))
    ref = jax.block_until_ready(reference_forward(x, params))

    assert out.shape == (2, OUTPUT), out.shape
    assert bool(jnp.all(jnp.isfinite(out)))
    # bf16 MXU inputs with f32 accumulation: comfortably within 2e-2.
    if not jnp.allclose(out, ref, rtol=2e-2, atol=2e-2):
        raise AssertionError("Pallas result does not match JAX reference")

    print("KERNEL_OK")
</pallas_src>

<mosaic_0001>
module attributes {stable_mosaic.version = 11 : i64} {
  func.func @_net_kernel(%arg0: i32, %arg1: memref<1x64x150xbf16, #tpu.memory_space<vmem>>, %arg2: memref<150x768xbf16, #tpu.memory_space<vmem>>, %arg3: memref<5x384x768xbf16, #tpu.memory_space<vmem>>, %arg4: memref<5x384x192xbf16, #tpu.memory_space<vmem>>, %arg5: memref<6x192x24xbf16, #tpu.memory_space<vmem>>, %arg6: memref<24x9xbf16, #tpu.memory_space<vmem>>, %arg7: memref<1x384xf32, #tpu.memory_space<vmem>>, %arg8: memref<1x384xf32, #tpu.memory_space<vmem>>, %arg9: memref<1x192xf32, #tpu.memory_space<vmem>>, %arg10: memref<1x24xf32, #tpu.memory_space<vmem>>, %arg11: memref<1x9xf32, #tpu.memory_space<vmem>>, %arg12: memref<1x1x9xf32, #tpu.memory_space<vmem>>) attributes {dimension_semantics = [#tpu.dimension_semantics<parallel>], iteration_bounds = array<i64: 2>, scalar_prefetch = 0 : i64, scratch_operands = 0 : i64, tpu.core_type = #tpu.core_type<tc>, window_params = [{transform_indices = @transform_0, window_bounds = array<i64: 1, 64, 150>}, {pipeline_mode = #tpu.pipeline_mode<synchronous>, transform_indices = @transform_1, window_bounds = array<i64: 150, 768>}, {pipeline_mode = #tpu.pipeline_mode<synchronous>, transform_indices = @transform_2, window_bounds = array<i64: 5, 384, 768>}, {pipeline_mode = #tpu.pipeline_mode<synchronous>, transform_indices = @transform_3, window_bounds = array<i64: 5, 384, 192>}, {pipeline_mode = #tpu.pipeline_mode<synchronous>, transform_indices = @transform_4, window_bounds = array<i64: 6, 192, 24>}, {pipeline_mode = #tpu.pipeline_mode<synchronous>, transform_indices = @transform_5, window_bounds = array<i64: 24, 9>}, {pipeline_mode = #tpu.pipeline_mode<synchronous>, transform_indices = @transform_6, window_bounds = array<i64: 1, 384>}, {pipeline_mode = #tpu.pipeline_mode<synchronous>, transform_indices = @transform_7, window_bounds = array<i64: 1, 384>}, {pipeline_mode = #tpu.pipeline_mode<synchronous>, transform_indices = @transform_8, window_bounds = array<i64: 1, 192>}, {pipeline_mode = #tpu.pipeline_mode<synchronous>, transform_indices = @transform_9, window_bounds = array<i64: 1, 24>}, {pipeline_mode = #tpu.pipeline_mode<synchronous>, transform_indices = @transform_10, window_bounds = array<i64: 1, 9>}, {transform_indices = @transform_11, window_bounds = array<i64: 1, 1, 9>}]} {
    %c0 = arith.constant 0 : index
    %c0_0 = arith.constant 0 : index
    %c0_1 = arith.constant 0 : index
    %0 = vector.load %arg1[%c0, %c0_0, %c0_1] : memref<1x64x150xbf16, #tpu.memory_space<vmem>>, vector<1x64x150xbf16>
    %1 = vector.shape_cast %0 : vector<1x64x150xbf16> to vector<64x150xbf16>
    %c0_2 = arith.constant 0 : index
    %c0_3 = arith.constant 0 : index
    %2 = vector.load %arg2[%c0_2, %c0_3] : memref<150x768xbf16, #tpu.memory_space<vmem>>, vector<150x768xbf16>
    %cst = arith.constant dense<0.000000e+00> : vector<64x768xf32>
    %3 = tpu.matmul %1, %2, %cst {dimension_numbers = #tpu.dot_dimension_numbers<[1], [0], [0], [1], [0, 0, 1, 1], [], []>} : vector<64x150xbf16>, vector<150x768xbf16>, vector<64x768xf32> -> vector<64x768xf32>
    %4 = vector.extract_strided_slice %3 {offsets = [0, 0], sizes = [64, 384], strides = [1, 1]} : vector<64x768xf32> to vector<64x384xf32>
    %5 = vector.extract_strided_slice %3 {offsets = [0, 384], sizes = [64, 384], strides = [1, 1]} : vector<64x768xf32> to vector<64x384xf32>
    %6 = arith.maximumf %4, %5 : vector<64x384xf32>
    %7 = vector.extract_strided_slice %6 {offsets = [0, 0], sizes = [32, 384], strides = [1, 1]} : vector<64x384xf32> to vector<32x384xf32>
    %8 = vector.extract_strided_slice %6 {offsets = [32, 0], sizes = [32, 384], strides = [1, 1]} : vector<64x384xf32> to vector<32x384xf32>
    %9 = arith.maximumf %7, %8 : vector<32x384xf32>
    %c0_4 = arith.constant 0 : index
    %c0_5 = arith.constant 0 : index
    %10 = vector.load %arg7[%c0_4, %c0_5] : memref<1x384xf32, #tpu.memory_space<vmem>>, vector<1x384xf32>
    %11 = vector.broadcast %10 : vector<1x384xf32> to vector<32x384xf32>
    %12 = arith.addf %9, %11 : vector<32x384xf32>
    %cst_6 = arith.constant 0.000000e+00 : f32
    %13 = vector.broadcast %cst_6 : f32 to vector<32x384xf32>
    %14 = arith.cmpf oge, %12, %13 : vector<32x384xf32>
    %cst_7 = arith.constant 0.00999999977 : f32
    %15 = vector.broadcast %cst_7 : f32 to vector<32x384xf32>
    %16 = arith.mulf %15, %12 : vector<32x384xf32>
    %17 = arith.select %14, %12, %16 : vector<32x384xi1>, vector<32x384xf32>
    %18 = vector.extract_strided_slice %17 {offsets = [0, 0], sizes = [30, 384], strides = [1, 1]} : vector<32x384xf32> to vector<30x384xf32>
    %c0_8 = arith.constant 0 : index
    %c0_9 = arith.constant 0 : index
    %c0_10 = arith.constant 0 : index
    %19 = vector.load %arg3[%c0_8, %c0_9, %c0_10] : memref<5x384x768xbf16, #tpu.memory_space<vmem>>, vector<1x384x768xbf16>
    %20 = vector.shape_cast %19 : vector<1x384x768xbf16> to vector<384x768xbf16>
    %21 = arith.truncf %18 : vector<30x384xf32> to vector<30x384xbf16>
    %cst_11 = arith.constant dense<0.000000e+00> : vector<30x768xf32>
    %22 = tpu.matmul %21, %20, %cst_11 {dimension_numbers = #tpu.dot_dimension_numbers<[1], [0], [0], [1], [0, 0, 1, 1], [], []>} : vector<30x384xbf16>, vector<384x768xbf16>, vector<30x768xf32> -> vector<30x768xf32>
    %23 = vector.extract_strided_slice %17 {offsets = [1, 0], sizes = [30, 384], strides = [1, 1]} : vector<32x384xf32> to vector<30x384xf32>
    %c2 = arith.constant 2 : index
    %c0_12 = arith.constant 0 : index
    %c0_13 = arith.constant 0 : index
    %24 = vector.load %arg3[%c2, %c0_12, %c0_13] : memref<5x384x768xbf16, #tpu.memory_space<vmem>>, vector<1x384x768xbf16>
    %25 = vector.shape_cast %24 : vector<1x384x768xbf16> to vector<384x768xbf16>
    %26 = arith.truncf %23 : vector<30x384xf32> to vector<30x384xbf16>
    %cst_14 = arith.constant dense<0.000000e+00> : vector<30x768xf32>
    %27 = tpu.matmul %26, %25, %cst_14 {dimension_numbers = #tpu.dot_dimension_numbers<[1], [0], [0], [1], [0, 0, 1, 1], [], []>} : vector<30x384xbf16>, vector<384x768xbf16>, vector<30x768xf32> -> vector<30x768xf32>
    %28 = arith.addf %22, %27 : vector<30x768xf32>
    %29 = vector.extract_strided_slice %17 {offsets = [2, 0], sizes = [30, 384], strides = [1, 1]} : vector<32x384xf32> to vector<30x384xf32>
    %c4 = arith.constant 4 : index
    %c0_15 = arith.constant 0 : index
    %c0_16 = arith.constant 0 : index
    %30 = vector.load %arg3[%c4, %c0_15, %c0_16] : memref<5x384x768xbf16, #tpu.memory_space<vmem>>, vector<1x384x768xbf16>
    %31 = vector.shape_cast %30 : vector<1x384x768xbf16> to vector<384x768xbf16>
    %32 = arith.truncf %29 : vector<30x384xf32> to vector<30x384xbf16>
    %cst_17 = arith.constant dense<0.000000e+00> : vector<30x768xf32>
    %33 = tpu.matmul %32, %31, %cst_17 {dimension_numbers = #tpu.dot_dimension_numbers<[1], [0], [0], [1], [0, 0, 1, 1], [], []>} : vector<30x384xbf16>, vector<384x768xbf16>, vector<30x768xf32> -> vector<30x768xf32>
    %34 = arith.addf %28, %33 : vector<30x768xf32>
    %35 = vector.extract_strided_slice %17 {offsets = [16, 0], sizes = [15, 384], strides = [1, 1]} : vector<32x384xf32> to vector<15x384xf32>
    %c1 = arith.constant 1 : index
    %c0_18 = arith.constant 0 : index
    %c0_19 = arith.constant 0 : index
    %36 = vector.load %arg3[%c1, %c0_18, %c0_19] : memref<5x384x768xbf16, #tpu.memory_space<vmem>>, vector<1x384x768xbf16>
    %37 = vector.shape_cast %36 : vector<1x384x768xbf16> to vector<384x768xbf16>
    %38 = arith.truncf %35 : vector<15x384xf32> to vector<15x384xbf16>
    %cst_20 = arith.constant dense<0.000000e+00> : vector<15x768xf32>
    %39 = tpu.matmul %38, %37, %cst_20 {dimension_numbers = #tpu.dot_dimension_numbers<[1], [0], [0], [1], [0, 0, 1, 1], [], []>} : vector<15x384xbf16>, vector<384x768xbf16>, vector<15x768xf32> -> vector<15x768xf32>
    %40 = vector.extract_strided_slice %17 {offsets = [17, 0], sizes = [15, 384], strides = [1, 1]} : vector<32x384xf32> to vector<15x384xf32>
    %c3 = arith.constant 3 : index
    %c0_21 = arith.constant 0 : index
    %c0_22 = arith.constant 0 : index
    %41 = vector.load %arg3[%c3, %c0_21, %c0_22] : memref<5x384x768xbf16, #tpu.memory_space<vmem>>, vector<1x384x768xbf16>
    %42 = vector.shape_cast %41 : vector<1x384x768xbf16> to vector<384x768xbf16>
    %43 = arith.truncf %40 : vector<15x384xf32> to vector<15x384xbf16>
    %cst_23 = arith.constant dense<0.000000e+00> : vector<15x768xf32>
    %44 = tpu.matmul %43, %42, %cst_23 {dimension_numbers = #tpu.dot_dimension_numbers<[1], [0], [0], [1], [0, 0, 1, 1], [], []>} : vector<15x384xbf16>, vector<384x768xbf16>, vector<15x768xf32> -> vector<15x768xf32>
    %45 = arith.addf %39, %44 : vector<15x768xf32>
    %46 = vector.extract_strided_slice %17 {offsets = [1, 0], sizes = [15, 384], strides = [1, 1]} : vector<32x384xf32> to vector<15x384xf32>
    %c1_24 = arith.constant 1 : index
    %c0_25 = arith.constant 0 : index
    %c0_26 = arith.constant 0 : index
    %47 = vector.load %arg3[%c1_24, %c0_25, %c0_26] : memref<5x384x768xbf16, #tpu.memory_space<vmem>>, vector<1x384x768xbf16>
    %48 = vector.shape_cast %47 : vector<1x384x768xbf16> to vector<384x768xbf16>
    %49 = arith.truncf %46 : vector<15x384xf32> to vector<15x384xbf16>
    %cst_27 = arith.constant dense<0.000000e+00> : vector<15x768xf32>
    %50 = tpu.matmul %49, %48, %cst_27 {dimension_numbers = #tpu.dot_dimension_numbers<[1], [0], [0], [1], [0, 0, 1, 1], [], []>} : vector<15x384xbf16>, vector<384x768xbf16>, vector<15x768xf32> -> vector<15x768xf32>
    %51 = vector.extract_strided_slice %17 {offsets = [2, 0], sizes = [15, 384], strides = [1, 1]} : vector<32x384xf32> to vector<15x384xf32>
    %c3_28 = arith.constant 3 : index
    %c0_29 = arith.constant 0 : index
    %c0_30 = arith.constant 0 : index
    %52 = vector.load %arg3[%c3_28, %c0_29, %c0_30] : memref<5x384x768xbf16, #tpu.memory_space<vmem>>, vector<1x384x768xbf16>
    %53 = vector.shape_cast %52 : vector<1x384x768xbf16> to vector<384x768xbf16>
    %54 = arith.truncf %51 : vector<15x384xf32> to vector<15x384xbf16>
    %cst_31 = arith.constant dense<0.000000e+00> : vector<15x768xf32>
    %55 = tpu.matmul %54, %53, %cst_31 {dimension_numbers = #tpu.dot_dimension_numbers<[1], [0], [0], [1], [0, 0, 1, 1], [], []>} : vector<15x384xbf16>, vector<384x768xbf16>, vector<15x768xf32> -> vector<15x768xf32>
    %56 = arith.addf %50, %55 : vector<15x768xf32>
    %57 = vector.extract_strided_slice %34 {offsets = [0, 0], sizes = [10, 768], strides = [1, 1]} : vector<30x768xf32> to vector<10x768xf32>
    %58 = vector.extract_strided_slice %45 {offsets = [0, 0], sizes = [10, 768], strides = [1, 1]} : vector<15x768xf32> to vector<10x768xf32>
    %59 = arith.addf %57, %58 : vector<10x768xf32>
    %60 = vector.extract_strided_slice %34 {offsets = [16, 0], sizes = [10, 768], strides = [1, 1]} : vector<30x768xf32> to vector<10x768xf32>
    %61 = vector.extract_strided_slice %56 {offsets = [0, 0], sizes = [10, 768], strides = [1, 1]} : vector<15x768xf32> to vector<10x768xf32>
    %62 = arith.addf %60, %61 : vector<10x768xf32>
    %63 = vector.extract_strided_slice %59 {offsets = [0, 0], sizes = [10, 384], strides = [1, 1]} : vector<10x768xf32> to vector<10x384xf32>
    %64 = vector.extract_strided_slice %59 {offsets = [0, 384], sizes = [10, 384], strides = [1, 1]} : vector<10x768xf32> to vector<10x384xf32>
    %65 = arith.maximumf %63, %64 : vector<10x384xf32>
    %66 = vector.extract_strided_slice %62 {offsets = [0, 0], sizes = [10, 384], strides = [1, 1]} : vector<10x768xf32> to vector<10x384xf32>
    %67 = vector.extract_strided_slice %62 {offsets = [0, 384], sizes = [10, 384], strides = [1, 1]} : vector<10x768xf32> to vector<10x384xf32>
    %68 = arith.maximumf %66, %67 : vector<10x384xf32>
    %69 = arith.maximumf %65, %68 : vector<10x384xf32>
    %c0_32 = arith.constant 0 : index
    %c0_33 = arith.constant 0 : index
    %70 = vector.load %arg8[%c0_32, %c0_33] : memref<1x384xf32, #tpu.memory_space<vmem>>, vector<1x384xf32>
    %71 = vector.broadcast %70 : vector<1x384xf32> to vector<10x384xf32>
    %72 = arith.addf %69, %71 : vector<10x384xf32>
    %cst_34 = arith.constant 0.000000e+00 : f32
    %73 = vector.broadcast %cst_34 : f32 to vector<10x384xf32>
    %74 = arith.cmpf oge, %72, %73 : vector<10x384xf32>
    %cst_35 = arith.constant 0.00999999977 : f32
    %75 = vector.broadcast %cst_35 : f32 to vector<10x384xf32>
    %76 = arith.mulf %75, %72 : vector<10x384xf32>
    %77 = arith.select %74, %72, %76 : vector<10x384xi1>, vector<10x384xf32>
    %78 = vector.extract_strided_slice %77 {offsets = [0, 0], sizes = [6, 384], strides = [1, 1]} : vector<10x384xf32> to vector<6x384xf32>
    %c0_36 = arith.constant 0 : index
    %c0_37 = arith.constant 0 : index
    %c0_38 = arith.constant 0 : index
    %79 = vector.load %arg4[%c0_36, %c0_37, %c0_38] : memref<5x384x192xbf16, #tpu.memory_space<vmem>>, vector<1x384x192xbf16>
    %80 = vector.shape_cast %79 : vector<1x384x192xbf16> to vector<384x192xbf16>
    %81 = arith.truncf %78 : vector<6x384xf32> to vector<6x384xbf16>
    %cst_39 = arith.constant dense<0.000000e+00> : vector<6x192xf32>
    %82 = tpu.matmul %81, %80, %cst_39 {dimension_numbers = #tpu.dot_dimension_numbers<[1], [0], [0], [1], [0, 0, 1, 1], [], []>} : vector<6x384xbf16>, vector<384x192xbf16>, vector<6x192xf32> -> vector<6x192xf32>
    %83 = vector.extract_strided_slice %77 {offsets = [1, 0], sizes = [6, 384], strides = [1, 1]} : vector<10x384xf32> to vector<6x384xf32>
    %c1_40 = arith.constant 1 : index
    %c0_41 = arith.constant 0 : index
    %c0_42 = arith.constant 0 : index
    %84 = vector.load %arg4[%c1_40, %c0_41, %c0_42] : memref<5x384x192xbf16, #tpu.memory_space<vmem>>, vector<1x384x192xbf16>
    %85 = vector.shape_cast %84 : vector<1x384x192xbf16> to vector<384x192xbf16>
    %86 = arith.truncf %83 : vector<6x384xf32> to vector<6x384xbf16>
    %cst_43 = arith.constant dense<0.000000e+00> : vector<6x192xf32>
    %87 = tpu.matmul %86, %85, %cst_43 {dimension_numbers = #tpu.dot_dimension_numbers<[1], [0], [0], [1], [0, 0, 1, 1], [], []>} : vector<6x384xbf16>, vector<384x192xbf16>, vector<6x192xf32> -> vector<6x192xf32>
    %88 = arith.addf %82, %87 : vector<6x192xf32>
    %89 = vector.extract_strided_slice %77 {offsets = [2, 0], sizes = [6, 384], strides = [1, 1]} : vector<10x384xf32> to vector<6x384xf32>
    %c2_44 = arith.constant 2 : index
    %c0_45 = arith.constant 0 : index
    %c0_46 = arith.constant 0 : index
    %90 = vector.load %arg4[%c2_44, %c0_45, %c0_46] : memref<5x384x192xbf16, #tpu.memory_space<vmem>>, vector<1x384x192xbf16>
    %91 = vector.shape_cast %90 : vector<1x384x192xbf16> to vector<384x192xbf16>
    %92 = arith.truncf %89 : vector<6x384xf32> to vector<6x384xbf16>
    %cst_47 = arith.constant dense<0.000000e+00> : vector<6x192xf32>
    %93 = tpu.matmul %92, %91, %cst_47 {dimension_numbers = #tpu.dot_dimension_numbers<[1], [0], [0], [1], [0, 0, 1, 1], [], []>} : vector<6x384xbf16>, vector<384x192xbf16>, vector<6x192xf32> -> vector<6x192xf32>
    %94 = arith.addf %88, %93 : vector<6x192xf32>
    %95 = vector.extract_strided_slice %77 {offsets = [3, 0], sizes = [6, 384], strides = [1, 1]} : vector<10x384xf32> to vector<6x384xf32>
    %c3_48 = arith.constant 3 : index
    %c0_49 = arith.constant 0 : index
    %c0_50 = arith.constant 0 : index
    %96 = vector.load %arg4[%c3_48, %c0_49, %c0_50] : memref<5x384x192xbf16, #tpu.memory_space<vmem>>, vector<1x384x192xbf16>
    %97 = vector.shape_cast %96 : vector<1x384x192xbf16> to vector<384x192xbf16>
    %98 = arith.truncf %95 : vector<6x384xf32> to vector<6x384xbf16>
    %cst_51 = arith.constant dense<0.000000e+00> : vector<6x192xf32>
    %99 = tpu.matmul %98, %97, %cst_51 {dimension_numbers = #tpu.dot_dimension_numbers<[1], [0], [0], [1], [0, 0, 1, 1], [], []>} : vector<6x384xbf16>, vector<384x192xbf16>, vector<6x192xf32> -> vector<6x192xf32>
    %100 = arith.addf %94, %99 : vector<6x192xf32>
    %101 = vector.extract_strided_slice %77 {offsets = [4, 0], sizes = [6, 384], strides = [1, 1]} : vector<10x384xf32> to vector<6x384xf32>
    %c4_52 = arith.constant 4 : index
    %c0_53 = arith.constant 0 : index
    %c0_54 = arith.constant 0 : index
    %102 = vector.load %arg4[%c4_52, %c0_53, %c0_54] : memref<5x384x192xbf16, #tpu.memory_space<vmem>>, vector<1x384x192xbf16>
    %103 = vector.shape_cast %102 : vector<1x384x192xbf16> to vector<384x192xbf16>
    %104 = arith.truncf %101 : vector<6x384xf32> to vector<6x384xbf16>
    %cst_55 = arith.constant dense<0.000000e+00> : vector<6x192xf32>
    %105 = tpu.matmul %104, %103, %cst_55 {dimension_numbers = #tpu.dot_dimension_numbers<[1], [0], [0], [1], [0, 0, 1, 1], [], []>} : vector<6x384xbf16>, vector<384x192xbf16>, vector<6x192xf32> -> vector<6x192xf32>
    %106 = arith.addf %100, %105 : vector<6x192xf32>
    %c0_56 = arith.constant 0 : index
    %c0_57 = arith.constant 0 : index
    %107 = vector.load %arg9[%c0_56, %c0_57] : memref<1x192xf32, #tpu.memory_space<vmem>>, vector<1x192xf32>
    %108 = vector.broadcast %107 : vector<1x192xf32> to vector<6x192xf32>
    %109 = arith.addf %106, %108 : vector<6x192xf32>
    %110 = vector.extract_strided_slice %109 {offsets = [0, 0], sizes = [1, 192], strides = [1, 1]} : vector<6x192xf32> to vector<1x192xf32>
    %c0_58 = arith.constant 0 : index
    %c0_59 = arith.constant 0 : index
    %c0_60 = arith.constant 0 : index
    %111 = vector.load %arg5[%c0_58, %c0_59, %c0_60] : memref<6x192x24xbf16, #tpu.memory_space<vmem>>, vector<1x192x24xbf16>
    %112 = vector.shape_cast %111 : vector<1x192x24xbf16> to vector<192x24xbf16>
    %113 = arith.truncf %110 : vector<1x192xf32> to vector<1x192xbf16>
    %cst_61 = arith.constant dense<0.000000e+00> : vector<1x24xf32>
    %114 = tpu.matmul %113, %112, %cst_61 {dimension_numbers = #tpu.dot_dimension_numbers<[1], [0], [0], [1], [0, 0, 1, 1], [], []>} : vector<1x192xbf16>, vector<192x24xbf16>, vector<1x24xf32> -> vector<1x24xf32>
    %115 = vector.extract_strided_slice %109 {offsets = [1, 0], sizes = [1, 192], strides = [1, 1]} : vector<6x192xf32> to vector<1x192xf32>
    %c1_62 = arith.constant 1 : index
    %c0_63 = arith.constant 0 : index
    %c0_64 = arith.constant 0 : index
    %116 = vector.load %arg5[%c1_62, %c0_63, %c0_64] : memref<6x192x24xbf16, #tpu.memory_space<vmem>>, vector<1x192x24xbf16>
    %117 = vector.shape_cast %116 : vector<1x192x24xbf16> to vector<192x24xbf16>
    %118 = arith.truncf %115 : vector<1x192xf32> to vector<1x192xbf16>
    %cst_65 = arith.constant dense<0.000000e+00> : vector<1x24xf32>
    %119 = tpu.matmul %118, %117, %cst_65 {dimension_numbers = #tpu.dot_dimension_numbers<[1], [0], [0], [1], [0, 0, 1, 1], [], []>} : vector<1x192xbf16>, vector<192x24xbf16>, vector<1x24xf32> -> vector<1x24xf32>
    %120 = arith.addf %114, %119 : vector<1x24xf32>
    %121 = vector.extract_strided_slice %109 {offsets = [2, 0], sizes = [1, 192], strides = [1, 1]} : vector<6x192xf32> to vector<1x192xf32>
    %c2_66 = arith.constant 2 : index
    %c0_67 = arith.constant 0 : index
    %c0_68 = arith.constant 0 : index
    %122 = vector.load %arg5[%c2_66, %c0_67, %c0_68] : memref<6x192x24xbf16, #tpu.memory_space<vmem>>, vector<1x192x24xbf16>
    %123 = vector.shape_cast %122 : vector<1x192x24xbf16> to vector<192x24xbf16>
    %124 = arith.truncf %121 : vector<1x192xf32> to vector<1x192xbf16>
    %cst_69 = arith.constant dense<0.000000e+00> : vector<1x24xf32>
    %125 = tpu.matmul %124, %123, %cst_69 {dimension_numbers = #tpu.dot_dimension_numbers<[1], [0], [0], [1], [0, 0, 1, 1], [], []>} : vector<1x192xbf16>, vector<192x24xbf16>, vector<1x24xf32> -> vector<1x24xf32>
    %126 = arith.addf %120, %125 : vector<1x24xf32>
    %127 = vector.extract_strided_slice %109 {offsets = [3, 0], sizes = [1, 192], strides = [1, 1]} : vector<6x192xf32> to vector<1x192xf32>
    %c3_70 = arith.constant 3 : index
    %c0_71 = arith.constant 0 : index
    %c0_72 = arith.constant 0 : index
    %128 = vector.load %arg5[%c3_70, %c0_71, %c0_72] : memref<6x192x24xbf16, #tpu.memory_space<vmem>>, vector<1x192x24xbf16>
    %129 = vector.shape_cast %128 : vector<1x192x24xbf16> to vector<192x24xbf16>
    %130 = arith.truncf %127 : vector<1x192xf32> to vector<1x192xbf16>
    %cst_73 = arith.constant dense<0.000000e+00> : vector<1x24xf32>
    %131 = tpu.matmul %130, %129, %cst_73 {dimension_numbers = #tpu.dot_dimension_numbers<[1], [0], [0], [1], [0, 0, 1, 1], [], []>} : vector<1x192xbf16>, vector<192x24xbf16>, vector<1x24xf32> -> vector<1x24xf32>
    %132 = arith.addf %126, %131 : vector<1x24xf32>
    %133 = vector.extract_strided_slice %109 {offsets = [4, 0], sizes = [1, 192], strides = [1, 1]} : vector<6x192xf32> to vector<1x192xf32>
    %c4_74 = arith.constant 4 : index
    %c0_75 = arith.constant 0 : index
    %c0_76 = arith.constant 0 : index
    %134 = vector.load %arg5[%c4_74, %c0_75, %c0_76] : memref<6x192x24xbf16, #tpu.memory_space<vmem>>, vector<1x192x24xbf16>
    %135 = vector.shape_cast %134 : vector<1x192x24xbf16> to vector<192x24xbf16>
    %136 = arith.truncf %133 : vector<1x192xf32> to vector<1x192xbf16>
    %cst_77 = arith.constant dense<0.000000e+00> : vector<1x24xf32>
    %137 = tpu.matmul %136, %135, %cst_77 {dimension_numbers = #tpu.dot_dimension_numbers<[1], [0], [0], [1], [0, 0, 1, 1], [], []>} : vector<1x192xbf16>, vector<192x24xbf16>, vector<1x24xf32> -> vector<1x24xf32>
    %138 = arith.addf %132, %137 : vector<1x24xf32>
    %139 = vector.extract_strided_slice %109 {offsets = [5, 0], sizes = [1, 192], strides = [1, 1]} : vector<6x192xf32> to vector<1x192xf32>
    %c5 = arith.constant 5 : index
    %c0_78 = arith.constant 0 : index
    %c0_79 = arith.constant 0 : index
    %140 = vector.load %arg5[%c5, %c0_78, %c0_79] : memref<6x192x24xbf16, #tpu.memory_space<vmem>>, vector<1x192x24xbf16>
    %141 = vector.shape_cast %140 : vector<1x192x24xbf16> to vector<192x24xbf16>
    %142 = arith.truncf %139 : vector<1x192xf32> to vector<1x192xbf16>
    %cst_80 = arith.constant dense<0.000000e+00> : vector<1x24xf32>
    %143 = tpu.matmul %142, %141, %cst_80 {dimension_numbers = #tpu.dot_dimension_numbers<[1], [0], [0], [1], [0, 0, 1, 1], [], []>} : vector<1x192xbf16>, vector<192x24xbf16>, vector<1x24xf32> -> vector<1x24xf32>
    %144 = arith.addf %138, %143 : vector<1x24xf32>
    %c0_81 = arith.constant 0 : index
    %c0_82 = arith.constant 0 : index
    %145 = vector.load %arg10[%c0_81, %c0_82] : memref<1x24xf32, #tpu.memory_space<vmem>>, vector<1x24xf32>
    %146 = arith.addf %144, %145 : vector<1x24xf32>
    %cst_83 = arith.constant 0.000000e+00 : f32
    %147 = vector.broadcast %cst_83 : f32 to vector<1x24xf32>
    %148 = arith.cmpf oge, %146, %147 : vector<1x24xf32>
    %cst_84 = arith.constant 0.00999999977 : f32
    %149 = vector.broadcast %cst_84 : f32 to vector<1x24xf32>
    %150 = arith.mulf %149, %146 : vector<1x24xf32>
    %151 = arith.select %148, %146, %150 : vector<1x24xi1>, vector<1x24xf32>
    %c0_85 = arith.constant 0 : index
    %c0_86 = arith.constant 0 : index
    %152 = vector.load %arg6[%c0_85, %c0_86] : memref<24x9xbf16, #tpu.memory_space<vmem>>, vector<24x9xbf16>
    %153 = arith.truncf %151 : vector<1x24xf32> to vector<1x24xbf16>
    %cst_87 = arith.constant dense<0.000000e+00> : vector<1x9xf32>
    %154 = tpu.matmul %153, %152, %cst_87 {dimension_numbers = #tpu.dot_dimension_numbers<[1], [0], [0], [1], [0, 0, 1, 1], [], []>} : vector<1x24xbf16>, vector<24x9xbf16>, vector<1x9xf32> -> vector<1x9xf32>
    %c0_88 = arith.constant 0 : index
    %c0_89 = arith.constant 0 : index
    %155 = vector.load %arg11[%c0_88, %c0_89] : memref<1x9xf32, #tpu.memory_space<vmem>>, vector<1x9xf32>
    %156 = arith.addf %154, %155 : vector<1x9xf32>
    %cst_90 = arith.constant 0.000000e+00 : f32
    %157 = vector.broadcast %cst_90 : f32 to vector<1x9xf32>
    %158 = arith.subf %157, %156 : vector<1x9xf32>
    %159 = math.exp %158 : vector<1x9xf32>
    %cst_91 = arith.constant 1.000000e+00 : f32
    %160 = vector.broadcast %cst_91 : f32 to vector<1x9xf32>
    %161 = arith.addf %160, %159 : vector<1x9xf32>
    %cst_92 = arith.constant 1.000000e+00 : f32
    %162 = vector.broadcast %cst_92 : f32 to vector<1x9xf32>
    %163 = arith.divf %162, %161 : vector<1x9xf32>
    %c0_93 = arith.constant 0 : index
    %c0_94 = arith.constant 0 : index
    %c0_95 = arith.constant 0 : index
    %164 = vector.load %arg12[%c0_93, %c0_94, %c0_95] : memref<1x1x9xf32, #tpu.memory_space<vmem>>, vector<1x1x9xf32>
    %165 = vector.shape_cast %164 : vector<1x1x9xf32> to vector<1x9xf32>
    %166 = vector.shape_cast %163 : vector<1x9xf32> to vector<1x1x9xf32>
    tpu.vector_store %arg12[%c0_93, %c0_94, %c0_95], %166 {strides = array<i32>} : memref<1x1x9xf32, #tpu.memory_space<vmem>>, vector<1x1x9xf32>,
    return
  }
  func.func @transform_0(%arg0: i32) -> (i32, i32, i32) {
    %c0_i32 = arith.constant 0 : i32
    %c0_i32_0 = arith.constant 0 : i32
    %c0_i32_1 = arith.constant 0 : i32
    return %arg0, %c0_i32, %c0_i32_0 : i32, i32, i32
  }
  func.func @transform_1(%arg0: i32) -> (i32, i32) {
    %c0_i32 = arith.constant 0 : i32
    %c0_i32_0 = arith.constant 0 : i32
    %c0_i32_1 = arith.constant 0 : i32
    return %c0_i32, %c0_i32_0 : i32, i32
  }
  func.func @transform_2(%arg0: i32) -> (i32, i32, i32) {
    %c0_i32 = arith.constant 0 : i32
    %c0_i32_0 = arith.constant 0 : i32
    %c0_i32_1 = arith.constant 0 : i32
    %c0_i32_2 = arith.constant 0 : i32
    return %c0_i32, %c0_i32_0, %c0_i32_1 : i32, i32, i32
  }
  func.func @transform_3(%arg0: i32) -> (i32, i32, i32) {
    %c0_i32 = arith.constant 0 : i32
    %c0_i32_0 = arith.constant 0 : i32
    %c0_i32_1 = arith.constant 0 : i32
    %c0_i32_2 = arith.constant 0 : i32
    return %c0_i32, %c0_i32_0, %c0_i32_1 : i32, i32, i32
  }
  func.func @transform_4(%arg0: i32) -> (i32, i32, i32) {
    %c0_i32 = arith.constant 0 : i32
    %c0_i32_0 = arith.constant 0 : i32
    %c0_i32_1 = arith.constant 0 : i32
    %c0_i32_2 = arith.constant 0 : i32
    return %c0_i32, %c0_i32_0, %c0_i32_1 : i32, i32, i32
  }
  func.func @transform_5(%arg0: i32) -> (i32, i32) {
    %c0_i32 = arith.constant 0 : i32
    %c0_i32_0 = arith.constant 0 : i32
    %c0_i32_1 = arith.constant 0 : i32
    return %c0_i32, %c0_i32_0 : i32, i32
  }
  func.func @transform_6(%arg0: i32) -> (i32, i32) {
    %c0_i32 = arith.constant 0 : i32
    %c0_i32_0 = arith.constant 0 : i32
    %c0_i32_1 = arith.constant 0 : i32
    return %c0_i32, %c0_i32_0 : i32, i32
  }
  func.func @transform_7(%arg0: i32) -> (i32, i32) {
    %c0_i32 = arith.constant 0 : i32
    %c0_i32_0 = arith.constant 0 : i32
    %c0_i32_1 = arith.constant 0 : i32
    return %c0_i32, %c0_i32_0 : i32, i32
  }
  func.func @transform_8(%arg0: i32) -> (i32, i32) {
    %c0_i32 = arith.constant 0 : i32
    %c0_i32_0 = arith.constant 0 : i32
    %c0_i32_1 = arith.constant 0 : i32
    return %c0_i32, %c0_i32_0 : i32, i32
  }
  func.func @transform_9(%arg0: i32) -> (i32, i32) {
    %c0_i32 = arith.constant 0 : i32
    %c0_i32_0 = arith.constant 0 : i32
    %c0_i32_1 = arith.constant 0 : i32
    return %c0_i32, %c0_i32_0 : i32, i32
  }
  func.func @transform_10(%arg0: i32) -> (i32, i32) {
    %c0_i32 = arith.constant 0 : i32
    %c0_i32_0 = arith.constant 0 : i32
    %c0_i32_1 = arith.constant 0 : i32
    return %c0_i32, %c0_i32_0 : i32, i32
  }
  func.func @transform_11(%arg0: i32) -> (i32, i32, i32) {
    %c0_i32 = arith.constant 0 : i32
    %c0_i32_0 = arith.constant 0 : i32
    %c0_i32_1 = arith.constant 0 : i32
    return %arg0, %c0_i32, %c0_i32_0 : i32, i32, i32
  }
}

</mosaic_0001>

<bundles_post_ra>
// kernel: net_forward.1
= control target key start
LH: loop header
LB: loop body
LE: loop exit
PB: predicated region body
PF: predicated region fallthrough
CT: control target
= control target key end

     0   :  { %s17524_s0 = inlined_call_operand.vmem [shape: bf16[2,64,150], index: 0, kind: input, shape index: {}]   ;;  %s17525_s1 = inlined_call_operand.vmem [shape: bf16[150,768], index: 1, kind: input, shape index: {}]   ;;  %s17526_s2 = inlined_call_operand.hbm [shape: bf16[5,384,768], index: 2, kind: input, shape index: {}]   ;;  %s17527_s3 = inlined_call_operand.vmem [shape: bf16[5,384,192], index: 3, kind: input, shape index: {}]   ;;  %s17528_s4 = inlined_call_operand.vmem [shape: bf16[6,192,24], index: 4, kind: input, shape index: {}]   ;;  %s17529_s5 = inlined_call_operand.vmem [shape: bf16[24,9], index: 5, kind: input, shape index: {}]   ;;  %s17530_s6 = inlined_call_operand.hbm [shape: f32[1,384], index: 6, kind: input, shape index: {}]   ;;  %s17531_s7 = inlined_call_operand.hbm [shape: f32[1,384], index: 7, kind: input, shape index: {}]   ;;  %s17532_s8 = inlined_call_operand.hbm [shape: f32[1,192], index: 8, kind: input, shape index: {}]   ;;  %s17533_s9 = inlined_call_operand.hbm [shape: f32[1,24], index: 9, kind: input, shape index: {}]   ;;  %s17534_s10 = inlined_call_operand.hbm [shape: f32[1,9], index: 10, kind: input, shape index: {}]   ;;  %s17535_s11 = inlined_call_operand.hbm [shape: f32[2,1,9], index: 11, kind: output, shape index: {}]  }
   0x1   :  { %17755 = sst [smem:[#allocation172_spill]] %s17530_s6 }
   0x2   :  { %17756 = sst [smem:[#allocation173_spill]] %s17532_s8 }
   0x3   :  { %17757 = sst [smem:[#allocation174_spill]] %s17535_s11 }
   0x4   :  { %16 = vsyncpa [#allocation3], 0 }
   0x5   :  { %17 = vsyncpa [#allocation6], 0 }
   0x6   :  { %18 = vsyncpa [#allocation9], 0 }
   0x7   :  { %19 = vsyncpa [#allocation12], 0 }
   0x8   :  { %20 = vsyncpa [#allocation4], 0 }
   0x9   :  { %22 = vsyncpa [#allocation4 + $0x1], 0  ;;  %s14461_s17 = smov 0   ;;  %s14463_s18 = smov 0  }
   0xa   :  { %s14465_s19 = smov 0   ;;  %s14467_s20 = smov 0  }
   0xb LB: > { %17758 = sst [smem:[#allocation19_spill]] %s14375_s17  ;;  %s14482_s21 = sadd.s32 4294967295, %s14387_s20   ;;  %s14387_s20 = sphi %s14467_s20, %s18192_s20   ;;  %s14383_s19 = sphi %s14465_s19, %s18194_s19   ;;  %s14379_s18 = sphi %s14463_s18, %s18196_s18   ;;  %s14375_s17 = sphi %s14461_s17, %s18195_s17  }
   0xc   : > { %17759 = sst [smem:[#allocation20_spill]] %s14383_s19  ;;  %s10734_s22 = sadd.s32 4294967294, %s14387_s20  }
   0xd   : > { %17760 = sst [smem:[#allocation21_spill]] %s14387_s20  ;;  %s14486_s23 = sadd.s32 1, %s14387_s20  }
   0xe   : > { %17761 = sst [smem:[#allocation22_spill]] %s14486_s23  ;;  %s271_s24 = sadd.s32 1, %s14383_s19 }
   0xf   : > { %s268_s25 = ssub.s32 %s14387_s20, %s14486_s23  ;;  %p281_p0 = scmp.ne.s32.totalorder %s14383_s19, %s14379_s18 }
  0x10   : > { %p269_p1 = scmp.eq.s32.totalorder %s268_s25, 0  ;;  %p282_p2 = scmp.eq.s32.totalorder %s14482_s21, 1 }
  0x11   : > { %p287_p3 = scmp.ne.s32.totalorder %s14379_s18, %s14375_s17  ;;  %p288_p4 = scmp.eq.s32.totalorder %s10734_s22, 1 }
  0x12   : > { %s14497_s26 = scalar_select %p269_p1, %s14383_s19, %s271_s24  }
  0x13   : > { %p14499_p5 = por %p282_p2, %p281_p0  ;;  %p14503_p6 = por %p288_p4, %p287_p3 }
  0x14   : > { %17762 = sst [smem:[#allocation23_spill]] %s14497_s26  ;;  %p10735_p7 = scmp.ge.s32.totalorder %s14387_s20, 1 }
  0x15   : > { %s17763_s27 = scalar_select %p14499_p5, 1, 0 }
  0x16   : > { %s17764_s28 = scalar_select %p14503_p6, 1, 0 }
  0x17   : > { %p295_p8 = scmp.lt.s32.totalorder %s14387_s20, 3  ;;  %p17539_p9 = scmp.eq.s32.totalorder %s14482_s21, 0 }
  0x18   : > { %17765 = sst [smem:[#allocation24_spill]] %s17764_s28  ;;  %s14389_s30 = smov [#allocation5]  }
  0x19   : > { %p14510_p10 = pnand %p10735_p7, %p295_p8  ;;  %s333_s12 = sshll.u32 %s14389_s30, 4  ;;  %s334_s12 = int_to_ptr.vmem [resolvable:$true] %s333_s12 }
  0x1a   : > { %s14390_s13 = smov [#allocation8]   ;;  %s14391_s16 = smov [#allocation2]  }
  0x1b   : > { %s17766_s29 = scalar_select %p14510_p10, 1, 0 }
  0x1c   : > { %p12445_p11 = pneg %p14510_p10  ;;  %s355_s14 = sshll.u32 %s14390_s13, 4  ;;  %s14522_s14 = int_to_ptr.vmem [resolvable:$true] %s355_s14 }
  0x1d   : > { %s310_s22 = sshll.u32 %s14391_s16, 4  ;;  %s17768_s6 = sld [smem:[#allocation172_spill]]  ;;  %s14524_s22 = int_to_ptr.vmem [resolvable:$true] %s310_s22 }
  0x1e   : > { %p14518_p12 = pnand %p17539_p9, %p12445_p11 }
  0x20   : > { %p14534_p0 = pneg %p14518_p12 }
  0x23   : > { %s14141_s30 = scalar_lea.hbm %s17768_s6, 48 }
  0x24   : > { %p14142_p13 = scmp.ne.s32.totalorder %s17768_s6, %s14141_s30  ;;  %p14148_p3 = scmp.lt.u32.totalorder %s14141_s30, %s17768_s6 }
  0x26   : > { %p14144_p1 = pnand %p14534_p0, %p14142_p13 }
  0x28   : > { %p14145_p2 = pneg %p14144_p1 }
  0x2a   : > { %p14150_p4 = pnand %p14148_p3, %p14145_p2 }
  0x2c   : > { %14153 = shalt.err (!%p14150_p4)
}
  0x2d   : > { %s14154_s24 = scalar_lea.vmem %s334_s12, 48  ;;  %s14161_s19 = scalar_lea.vmem %s334_s12, 64 }
  0x2e   : > { %p14155_p7 = scmp.ne.s32.totalorder %s334_s12, %s14154_s24  ;;  %p14162_p9 = scmp.lt.s32.totalorder %s334_s12, %s334_s12 }
  0x2f   : > { %p14163_p6 = scmp.lt.s32.totalorder %s14161_s19, %s14154_s24 }
  0x30   : > { %p14157_p8 = pnand %p14155_p7, %p14534_p0 }
  0x31   : > { %p14164_p5 = por %p14163_p6, %p14162_p9 }
  0x32   : > { %p14158_p11 = pneg %p14157_p8 }
  0x34   : > { %p14165_p10 = pnand %p14164_p5, %p14158_p11 }
  0x36   : > { %14168 = shalt.err (!%p14165_p10)
}
  0x37   : > { %12451 = dma.hbm_to_vmem [thread:$0]  (!%p14518_p12), %s17768_s6, 48, %s334_s12, [#allocation6]  }
  0x38   : > { %s17770_s8 = sld [smem:[#allocation173_spill]] }
  0x3e   : > { %s14169_s16 = scalar_lea.hbm %s17770_s8, 32 }
  0x3f   : > { %p14170_p13 = scmp.ne.s32.totalorder %s17770_s8, %s14169_s16  ;;  %p14176_p5 = scmp.lt.u32.totalorder %s14169_s16, %s17770_s8 }
  0x41   : > { %p14172_p1 = pnand %p14170_p13, %p14534_p0 }
  0x43   : > { %p14173_p6 = pneg %p14172_p1 }
  0x45   : > { %p14178_p9 = pnand %p14176_p5, %p14173_p6 }
  0x47   : > { %14181 = shalt.err (!%p14178_p9)
}
  0x48   : > { %s14182_s12 = scalar_lea.vmem %s14522_s14, 32  ;;  %p14190_p4 = scmp.lt.s32.totalorder %s14522_s14, %s14522_s14 }
  0x49   : > { %p14183_p10 = scmp.ne.s32.totalorder %s14522_s14, %s14182_s12  ;;  %p14191_p7 = scmp.lt.s32.totalorder %s14182_s12, %s14182_s12 }
  0x4b   : > { %p14185_p2 = pnand %p14183_p10, %p14534_p0  ;;  %p14192_p8 = por %p14191_p7, %p14190_p4 }
  0x4d   : > { %p14186_p3 = pneg %p14185_p2 }
  0x4f   : > { %p14193_p11 = pnand %p14192_p8, %p14186_p3 }
  0x51   : > { %14196 = shalt.err (!%p14193_p11)
}
  0x52   : > { %12457 = dma.hbm_to_vmem [thread:$0]  (!%p14518_p12), %s17770_s8, 32, %s14522_s14, [#allocation9]  }
  0x53   : > { %s14197_s23 = scalar_lea.hbm %s17526_s2, 92160 }
  0x54   : > { %p14198_p13 = scmp.ne.s32.totalorder %s17526_s2, %s14197_s23  ;;  %p14204_p5 = scmp.lt.u32.totalorder %s14197_s23, %s17526_s2 }
  0x56   : > { %p14200_p1 = pnand %p14198_p13, %p14534_p0 }
  0x58   : > { %p14201_p6 = pneg %p14200_p1 }
  0x5a   : > { %p14206_p9 = pnand %p14204_p5, %p14201_p6 }
  0x5c   : > { %14209 = shalt.err (!%p14206_p9)
}
  0x5d   : > { %s14210_s14 = scalar_lea.vmem %s14524_s22, 92160  ;;  %p14218_p4 = scmp.lt.s32.totalorder %s14524_s22, %s14524_s22 }
  0x5e   : > { %p14211_p10 = scmp.ne.s32.totalorder %s14524_s22, %s14210_s14  ;;  %p14219_p7 = scmp.lt.s32.totalorder %s14210_s14, %s14210_s14 }
  0x60   : > { %p14213_p2 = pnand %p14211_p10, %p14534_p0  ;;  %p14220_p8 = por %p14219_p7, %p14218_p4 }
  0x62   : > { %p14214_p3 = pneg %p14213_p2 }
  0x64   : > { %p14221_p11 = pnand %p14220_p8, %p14214_p3 }
  0x66   : > { %14224 = shalt.err (!%p14221_p11)
}
  0x67   : > { %s14392_s12 = smov 384   ;;  %s14393_s17 = smov 24  }
  0x68   : > { %12448 = dma.hbm_to_vmem [thread:$0]  (!%p14518_p12), %s17526_s2, 92160, %s14524_s22, [#allocation3], %s14392_s12, %s14392_s12, %s14393_s17  }
  0x69   : > { %s14394_s25 = smov [#allocation7]   ;;  %s14395_s30 = smov [#allocation10]  }
  0x6a   : > { %s344_s23 = sshll.u32 %s14394_s25, 4  ;;  %s366_s16 = sshll.u32 %s14395_s30, 4  ;;  %s345_s23 = int_to_ptr.vmem [resolvable:$true] %s344_s23  ;;  %s367_s16 = int_to_ptr.vmem [resolvable:$true] %s366_s16 }
  0x6b   : > { %s14225_s14 = scalar_lea.hbm %s17531_s7, 48 }
  0x6c   : > { %p14226_p13 = scmp.ne.s32.totalorder %s17531_s7, %s14225_s14  ;;  %p14232_p5 = scmp.lt.u32.totalorder %s14225_s14, %s17531_s7 }
  0x6e   : > { %p14228_p1 = pnand %p14226_p13, %p14534_p0 }
  0x70   : > { %p14229_p6 = pneg %p14228_p1 }
  0x72   : > { %p14234_p9 = pnand %p14232_p5, %p14229_p6 }
  0x74   : > { %14237 = shalt.err (!%p14234_p9)
}
  0x75   : > { %s14238_s22 = scalar_lea.vmem %s345_s23, 48  ;;  %s14245_s12 = scalar_lea.vmem %s345_s23, 64 }
  0x76   : > { %p14239_p10 = scmp.ne.s32.totalorder %s345_s23, %s14238_s22  ;;  %p14246_p4 = scmp.lt.s32.totalorder %s345_s23, %s345_s23 }
  0x77   : > { %p14247_p7 = scmp.lt.s32.totalorder %s14245_s12, %s14238_s22 }
  0x78   : > { %p14241_p2 = pnand %p14239_p10, %p14534_p0 }
  0x79   : > { %p14248_p8 = por %p14247_p7, %p14246_p4 }
  0x7a   : > { %p14242_p3 = pneg %p14241_p2 }
  0x7c   : > { %p14249_p11 = pnand %p14248_p8, %p14242_p3 }
  0x7e   : > { %14252 = shalt.err (!%p14249_p11)
}
  0x7f   : > { %12454 = dma.hbm_to_vmem [thread:$0]  (!%p14518_p12), %s17531_s7, 48, %s345_s23, [#allocation6]  }
  0x80   : > { %s14253_s17 = scalar_lea.hbm %s17533_s9, 16 }
  0x81   : > { %p14254_p13 = scmp.ne.s32.totalorder %s17533_s9, %s14253_s17  ;;  %p14260_p5 = scmp.lt.u32.totalorder %s14253_s17, %s17533_s9 }
  0x83   : > { %p14256_p1 = pnand %p14254_p13, %p14534_p0 }
  0x85   : > { %p14257_p6 = pneg %p14256_p1 }
  0x87   : > { %p14262_p9 = pnand %p14260_p5, %p14257_p6 }
  0x89   : > { %14265 = shalt.err (!%p14262_p9)
}
  0x8a   : > { %s14266_s24 = scalar_lea.vmem %s367_s16, 16  ;;  %s14273_s23 = scalar_lea.vmem %s367_s16, 32 }
  0x8b   : > { %p14267_p10 = scmp.ne.s32.totalorder %s367_s16, %s14266_s24  ;;  %p14274_p4 = scmp.lt.s32.totalorder %s367_s16, %s367_s16 }
  0x8c   : > { %p14275_p7 = scmp.lt.s32.totalorder %s14273_s23, %s14266_s24 }
  0x8d   : > { %p14269_p2 = pnand %p14267_p10, %p14534_p0 }
  0x8e   : > { %p14276_p8 = por %p14275_p7, %p14274_p4 }
  0x8f   : > { %p14270_p3 = pneg %p14269_p2 }
  0x91   : > { %p14277_p11 = pnand %p14276_p8, %p14270_p3 }
  0x93   : > { %14280 = shalt.err (!%p14277_p11)
}
  0x94   : > { %12460 = dma.hbm_to_vmem [thread:$0]  (!%p14518_p12), %s17533_s9, 16, %s367_s16, [#allocation9]  }
  0x95   : > { %s14396_s22 = smov [#allocation11]   ;;  %s14281_s11 = scalar_lea.hbm %s17534_s10, 16 }
  0x96   : > { %s377_s12 = sshll.u32 %s14396_s22, 4  ;;  %p14282_p13 = scmp.ne.s32.totalorder %s17534_s10, %s14281_s11  ;;  %s378_s12 = int_to_ptr.vmem [resolvable:$true] %s377_s12 }
  0x97   : > { %p14288_p5 = scmp.lt.u32.totalorder %s14281_s11, %s17534_s10 }
  0x98   : > { %p14284_p1 = pnand %p14282_p13, %p14534_p0 }
  0x9a   : > { %p14285_p6 = pneg %p14284_p1 }
  0x9c   : > { %p14290_p9 = pnand %p14288_p5, %p14285_p6 }
  0x9e   : > { %14293 = shalt.err (!%p14290_p9)
}
  0x9f   : > { %s14294_s16 = scalar_lea.vmem %s378_s12, 16  ;;  %s14301_s25 = scalar_lea.vmem %s378_s12, 32 }
  0xa0   : > { %p14295_p10 = scmp.ne.s32.totalorder %s378_s12, %s14294_s16  ;;  %p14302_p4 = scmp.lt.s32.totalorder %s378_s12, %s378_s12 }
  0xa1   : > { %p14303_p7 = scmp.lt.s32.totalorder %s14301_s25, %s14294_s16 }
  0xa2   : > { %p14297_p2 = pnand %p14295_p10, %p14534_p0 }
  0xa3   : > { %p14304_p8 = por %p14303_p7, %p14302_p4 }
  0xa4   : > { %p14298_p3 = pneg %p14297_p2 }
  0xa6   : > { %p14305_p11 = pnand %p14304_p8, %p14298_p3 }
  0xa8   : > { %14308 = shalt.err (!%p14305_p11)
}
  0xa9   : > { %12463 = dma.hbm_to_vmem [thread:$0]  (!%p14518_p12), %s17534_s10, 16, %s378_s12, [#allocation12]  }
  0xaa   : > { %p17771_p13 = scmp.ne.s32.totalorder %s17766_s29, 0 }
  0xac   : > { %398 = sbr.rel (%p17771_p13) target bundleno = 3352 (0xd18), region = 64 }
  0xb3   : > { %p17772_p1 = scmp.eq.s32.totalorder %s14482_s21, 0 }
  0xb5   : > { %14354 = dma.done.wait (%p17772_p1), [#allocation3], 92160   ;;  %p17773_p0 = pmov %p17772_p1 }
  0xb7   : > { %14356 = vsyncadd (%p17773_p0), [#allocation3], 4294875136  ;;  %p17774_p6 = pmov %p17773_p0 }
  0xb8   : > { %p17775_p5 = pmov %p17773_p0 }
  0xb9   : > { %14358 = dma.done.wait (%p17774_p6), [#allocation6], 96  }
  0xba   : > { %14360 = vsyncadd (%p17775_p5), [#allocation6], 4294967200  ;;  %p17776_p9 = pmov %p17773_p0 }
  0xbb   : > { %p17777_p12 = pmov %p17773_p0 }
  0xbc   : > { %14362 = dma.done.wait (%p17776_p9), [#allocation9], 48  }
  0xbd   : > { %14364 = vsyncadd (%p17777_p12), [#allocation9], 4294967248  ;;  %p17778_p10 = pmov %p17773_p0 }
  0xbe   : > { %p17779_p2 = pmov %p17773_p0 }
  0xbf   : > { %14366 = dma.done.wait (%p17778_p10), [#allocation12], 16  }
  0xc0   : > { %14368 = vsyncadd (%p17779_p2), [#allocation12], 4294967280  ;;  %v12524_v0 = vld [vmem:[%s17525_s1 + $0x4] ss:$24 sps:$4 sm:$0xff]   ;;  %v12528_v2 = vld [vmem:[%s17525_s1] ss:$24 sps:$4 sm:$0xff]  }
  0xc1   : > { %v12526_v1 = vld [vmem:[%s17525_s1 + $0xc] ss:$24 sps:$4 sm:$0xff]   ;;  %881 = vmatprep.subr.bf16.mxu0 %v12524_v0  ;;  %v12529_v3 = vld [vmem:[%s17525_s1 + $0x8] ss:$24 sps:$4 sm:$0xff]   ;;  %v12532_v5 = vld [vmem:[%s17525_s1 + $0x3c] ss:$24 sps:$4 sm:$0xff]  }
  0xc2   : > { %954 = vmatprep.subr.bf16.mxu1 %v12526_v1  ;;  %v12530_v4 = vld [vmem:[%s17525_s1 + $0x34] ss:$24 sps:$4 sm:$0xff]   ;;  %882 = vmatpush1.bf16.msra.mxu0 %v12528_v2  ;;  %v12534_v6 = vld [vmem:[%s17525_s1 + $0x30] ss:$24 sps:$4 sm:$0xff]   ;;  %v12536_v8 = vld [vmem:[%s17525_s1 + $0x64] ss:$24 sps:$4 sm:$0xff]  }
  0xc3   : > { %955 = vmatpush1.bf16.msra.mxu1 %v12529_v3  ;;  %883 = vmatprep.subr.bf16.mxu0 %v12530_v4  ;;  %v12535_v7 = vld [vmem:[%s17525_s1 + $0x38] ss:$24 sps:$4 sm:$0xff]   ;;  %v12538_v9 = vld [vmem:[%s17525_s1 + $0x6c] ss:$24 sps:$4 sm:$0xff]   ;;  %v12541_v11 = vld [vmem:[%s17525_s1 + $0x68] ss:$24 sps:$4 sm:$0xff]  }
  0xc4   : > { %956 = vmatprep.subr.bf16.mxu1 %v12532_v5  ;;  %v12540_v10 = vld [vmem:[%s17525_s1 + $0x60] ss:$24 sps:$4 sm:$0xff]   ;;  %v12542_v12 = vld [vmem:[%s17525_s1 + $0x94] ss:$24 sps:$4 sm:$0xff]   ;;  %v12546_v14 = vld [vmem:[%s17525_s1 + $0x90] ss:$24 sps:$4 sm:$0xff]  }
  0xc5   : > { %v12544_v13 = vld [vmem:[%s17525_s1 + $0x9c] ss:$24 sps:$4 sm:$0xff]   ;;  %p457_p3 = scmp.lt.s32.totalorder %s14482_s21, 1  ;;  %v12547_v15 = vld [vmem:[%s17525_s1 + $0x98] ss:$24 sps:$4 sm:$0xff]   ;;  %vm849_vm0 = vcmask 179200  }
  0xc6   : > { %884 = vmatpush1.bf16.msra.mxu0 %v12534_v6  ;;  %v12548_v16 = vld [vmem:[%s17525_s1 + $0xc4] ss:$24 sps:$4 sm:$0xff]   ;;  %v12552_v18 = vld [vmem:[%s17525_s1 + $0xc0] ss:$24 sps:$4 sm:$0xff]   ;;  %v12554_v20 = vld [vmem:[%s17525_s1 + $0xf4] ss:$24 sps:$4 sm:$0xff]  }
  0xc7   : > { %957 = vmatpush1.bf16.msra.mxu1 %v12535_v7  ;;  %885 = vmatprep.subr.bf16.mxu0 %v12536_v8  ;;  %v12550_v17 = vld [vmem:[%s17525_s1 + $0xcc] ss:$24 sps:$4 sm:$0xff]   ;;  %v12553_v19 = vld [vmem:[%s17525_s1 + $0xc8] ss:$24 sps:$4 sm:$0xff]   ;;  %s458_s13 = scalar_select %p457_p3, %s14482_s21, 1  ;;  %vm862_vm1 = vcmask 1042432  }
  0xc8   : > { %958 = vmatprep.subr.bf16.mxu1 %v12538_v9  ;;  %v12556_v21 = vld [vmem:[%s17525_s1 + $0xfc] ss:$24 sps:$4 sm:$0xff]   ;;  %v12558_v22 = vld [vmem:[%s17525_s1 + $0xf0] ss:$24 sps:$4 sm:$0xff]   ;;  %v12562_v25 = vld [vmem:[%s17525_s1 + $0x12c] ss:$24 sps:$4 sm:$0xff]  }
  0xc9   : > { %s12191_s8 = sshll.u32 %s458_s13, 6  ;;  %v12559_v23 = vld [vmem:[%s17525_s1 + $0xf8] ss:$24 sps:$4 sm:$0xff]   ;;  %v12560_v24 = vld [vmem:[%s17525_s1 + $0x124] ss:$24 sps:$4 sm:$0xff]   ;;  %vm3775_vm6 = vcmask 1046528  }
  0xca   : > { %886 = vmatpush1.bf16.msra.mxu0 %v12540_v10  ;;  %s14751_s24 = scalar_lea.vmem %s17524_s0, %s12191_s8  ;;  %v12564_v26 = vld [vmem:[%s17525_s1 + $0x120] ss:$24 sps:$4 sm:$0xff]   ;;  %v12566_v28 = vld [vmem:[%s17525_s1 + $0x154] ss:$24 sps:$4 sm:$0xff]   ;;  %v12570_v31 = vld [vmem:[%s17525_s1 + $0x150] ss:$24 sps:$4 sm:$0xff]  }
  0xcb   : > { %959 = vmatpush1.bf16.msra.mxu1 %v12541_v11  ;;  %887 = vmatprep.subr.bf16.mxu0 %v12542_v12  ;;  %v12565_v27 = vld [vmem:[%s17525_s1 + $0x128] ss:$24 sps:$4 sm:$0xff]   ;;  %v12568_v29 = vld [vmem:[%s17525_s1 + $0x15c] ss:$24 sps:$4 sm:$0xff]   ;;  %v14766_v30 = vld [vmem:[%s14751_s24 + $0x4] ss:$8 sps:$4 sm:$0xff]  }
  0xcc   : > { %960 = vmatprep.subr.bf16.mxu1 %v12544_v13  ;;  %10821 = vmatprep.mubr.msk.bf16.mxu0 %vm849_vm0, %v14766_v30  ;;  %v12571_v32 = vld [vmem:[%s17525_s1 + $0x158] ss:$24 sps:$4 sm:$0xff]   ;;  %v12572_v33 = vld [vmem:[%s17525_s1 + $0x184] ss:$24 sps:$4 sm:$0xff]   ;;  %v12577_v38 = vld [vmem:[%s17525_s1 + $0x188] ss:$24 sps:$4 sm:$0xff]  }
  0xcd   : > { %10826 = vmatprep.mubr.msk.bf16.mxu1 %vm849_vm0, %v14766_v30  ;;  %v12574_v34 = vld [vmem:[%s17525_s1 + $0x18c] ss:$24 sps:$4 sm:$0xff]   ;;  %v525_v35 = vld [vmem:[%s17525_s1 + $0x1b0] sm:$0x77]  ;;  %v526_v36 = vld [vmem:[%s17525_s1 + $0x1b8] sm:$0x77] }
  0xce   : > { %888 = vmatpush1.bf16.msra.mxu0 %v12546_v14  ;;  %v12576_v37 = vld [vmem:[%s17525_s1 + $0x180] ss:$24 sps:$4 sm:$0xff]   ;;  %v10815_v39 = vcombine.high %v525_v35, %v525_v35  ;;  %v10817_v40 = vcombine.high %v526_v36, %v526_v36  ;;  %v10814_v41 = vcombine.low %v525_v35, %v525_v35  ;;  %v10816_v42 = vcombine.low %v526_v36, %v526_v36  ;;  %v12587_v45 = vld [vmem:[%s17525_s1 + $0x14] ss:$24 sps:$4 sm:$0xff]   ;;  %v12585_v47 = vld [vmem:[%s17525_s1 + $0x10] ss:$24 sps:$4 sm:$0xff]  }
  0xcf   : > { %961 = vmatpush1.bf16.msra.mxu1 %v12547_v15  ;;  %889 = vmatprep.subr.bf16.mxu0 %v12548_v16  ;;  %v14804_v46 = vld [vmem:[%s14751_s24] ss:$8 sps:$4 sm:$0xff]   ;;  %v12591_v48 = vld [vmem:[%s14751_s24 + $0x14] ss:$8 sps:$4 sm:$0xff]   ;;  %v12593_v52 = vld [vmem:[%s14751_s24 + $0x10] ss:$8 sps:$4 sm:$0xff]  }
  0xd0   : > { %962 = vmatprep.subr.bf16.mxu1 %v12550_v17  ;;  %v864_v43 = vsel %vm862_vm1, %v10814_v41, 0  ;;  %v870_v44 = vsel %vm862_vm1, %v10816_v42, 0  ;;  %v12590_v49 = vld [vmem:[%s17525_s1 + $0x44] ss:$24 sps:$4 sm:$0xff]   ;;  %v12588_v50 = vld [vmem:[%s17525_s1 + $0x40] ss:$24 sps:$4 sm:$0xff]  }
  0xd1   : > { %v12596_v51 = vld [vmem:[%s17525_s1 + $0x74] ss:$24 sps:$4 sm:$0xff]   ;;  %v12594_v53 = vld [vmem:[%s17525_s1 + $0x70] ss:$24 sps:$4 sm:$0xff]   ;;  %v12599_v55 = vld [vmem:[%s17525_s1 + $0xa4] ss:$24 sps:$4 sm:$0xff]  }
  0xd2   : > { %890 = vmatpush1.bf16.msra.mxu0 %v12552_v18  ;;  %v12600_v54 = vld [vmem:[%s14751_s24 + $0x24] ss:$8 sps:$4 sm:$0xff]   ;;  %v12597_v56 = vld [vmem:[%s17525_s1 + $0xa0] ss:$24 sps:$4 sm:$0xff]   ;;  %v12603_v59 = vld [vmem:[%s17525_s1 + $0xd0] ss:$24 sps:$4 sm:$0xff]  }
  0xd3   : > { %963 = vmatpush1.bf16.msra.mxu1 %v12553_v19  ;;  %891 = vmatprep.subr.bf16.mxu0 %v12554_v20  ;;  %v12605_v57 = vld [vmem:[%s17525_s1 + $0xd4] ss:$24 sps:$4 sm:$0xff]   ;;  %v12602_v58 = vld [vmem:[%s14751_s24 + $0x20] ss:$8 sps:$4 sm:$0xff]   ;;  %v12608_v61 = vld [vmem:[%s17525_s1 + $0x104] ss:$24 sps:$4 sm:$0xff]  }
  0xd4   : > { %964 = vmatprep.subr.bf16.mxu1 %v12556_v21  ;;  %v12609_v60 = vld [vmem:[%s14751_s24 + $0x34] ss:$8 sps:$4 sm:$0xff]   ;;  %v12606_v62 = vld [vmem:[%s17525_s1 + $0x100] ss:$24 sps:$4 sm:$0xff]   ;;  %v12612_v1 = vld [vmem:[%s17525_s1 + $0x130] ss:$24 sps:$4 sm:$0xff]  }
  0xd5   : > { %v12614_v63 = vld [vmem:[%s17525_s1 + $0x134] ss:$24 sps:$4 sm:$0xff]   ;;  %v12611_v0 = vld [vmem:[%s14751_s24 + $0x30] ss:$8 sps:$4 sm:$0xff]   ;;  %v12617_v2 = vld [vmem:[%s17525_s1 + $0x164] ss:$24 sps:$4 sm:$0xff]  }
  0xd6   : > { %892 = vmatpush1.bf16.msra.mxu0 %v12558_v22  ;;  %v12615_v3 = vld [vmem:[%s17525_s1 + $0x160] ss:$24 sps:$4 sm:$0xff]   ;;  %v12620_v4 = vld [vmem:[%s17525_s1 + $0x194] ss:$24 sps:$4 sm:$0xff]   ;;  %v12618_v6 = vld [vmem:[%s17525_s1 + $0x190] ss:$24 sps:$4 sm:$0xff]  }
  0xd7   : > { %965 = vmatpush1.bf16.msra.mxu1 %v12559_v23  ;;  %893 = vmatprep.subr.bf16.mxu0 %v12560_v24  ;;  %v527_v5 = vld [vmem:[%s17525_s1 + $0x1c0] sm:$0x77]  ;;  %v12631_v14 = vld [vmem:[#allocation2 + $0x934] ss:$24 sps:$4 sm:$0xff]   ;;  %v12629_v16 = vld [vmem:[#allocation2 + $0x930] ss:$24 sps:$4 sm:$0xff]  }
  0xd8   : > { %966 = vmatprep.subr.bf16.mxu1 %v12562_v25  ;;  %v10819_v7 = vcombine.high %v527_v5, %v527_v5  ;;  %v10818_v8 = vcombine.low %v527_v5, %v527_v5  ;;  %v12625_v10 = vld [vmem:[#allocation2 + $0x904] ss:$24 sps:$4 sm:$0xff]   ;;  %v12623_v12 = vld [vmem:[#allocation2 + $0x900] ss:$24 sps:$4 sm:$0xff]   ;;  %v12643_v22 = vld [vmem:[#allocation2 + $0x994] ss:$24 sps:$4 sm:$0xff]  }
  0xd9   : > { %v12628_v11 = vld [vmem:[#allocation2 + $0x90c] ss:$24 sps:$4 sm:$0xff]   ;;  %v12626_v13 = vld [vmem:[#allocation2 + $0x908] ss:$24 sps:$4 sm:$0xff]   ;;  %v12634_v15 = vld [vmem:[#allocation2 + $0x93c] ss:$24 sps:$4 sm:$0xff]  }
  0xda   : > { %894 = vmatpush1.bf16.msra.mxu0 %v12564_v26  ;;  %v876_v9 = vsel %vm862_vm1, %v10818_v8, 0  ;;  %v12632_v17 = vld [vmem:[#allocation2 + $0x938] ss:$24 sps:$4 sm:$0xff]   ;;  %v12637_v18 = vld [vmem:[#allocation2 + $0x964] ss:$24 sps:$4 sm:$0xff]   ;;  %s455_s6 = sand.u32 1, %s14379_s18  }
  0xdb   : > { %967 = vmatpush1.bf16.msra.mxu1 %v12565_v27  ;;  %895 = vmatprep.subr.bf16.mxu0 %v12566_v28  ;;  %v12640_v19 = vld [vmem:[#allocation2 + $0x96c] ss:$24 sps:$4 sm:$0xff]   ;;  %v12635_v20 = vld [vmem:[#allocation2 + $0x960] ss:$24 sps:$4 sm:$0xff]   ;;  %v12646_v23 = vld [vmem:[#allocation2 + $0x99c] ss:$24 sps:$4 sm:$0xff]  }
  0xdc   : > { %968 = vmatprep.subr.bf16.mxu1 %v12568_v29  ;;  %v12638_v21 = vld [vmem:[#allocation2 + $0x968] ss:$24 sps:$4 sm:$0xff]   ;;  %v12644_v25 = vld [vmem:[#allocation2 + $0x998] ss:$24 sps:$4 sm:$0xff]   ;;  %v12649_v26 = vld [vmem:[#allocation2 + $0x9c4] ss:$24 sps:$4 sm:$0xff]  }
  0xdd   : > { %v12641_v24 = vld [vmem:[#allocation2 + $0x990] ss:$24 sps:$4 sm:$0xff]   ;;  %v12652_v27 = vld [vmem:[#allocation2 + $0x9cc] ss:$24 sps:$4 sm:$0xff]   ;;  %v12647_v28 = vld [vmem:[#allocation2 + $0x9c0] ss:$24 sps:$4 sm:$0xff]  }
  0xde   : > { %896 = vmatpush1.bf16.msra.mxu0 %v12570_v31  ;;  %v12650_v29 = vld [vmem:[#allocation2 + $0x9c8] ss:$24 sps:$4 sm:$0xff]   ;;  %v12655_v31 = vld [vmem:[#allocation2 + $0x9f4] ss:$24 sps:$4 sm:$0xff]   ;;  %v12673_v42 = vld [vmem:[#allocation2 + $0xa84] ss:$24 sps:$4 sm:$0xff]  }
  0xdf   : > { %969 = vmatpush1.bf16.msra.mxu1 %v12571_v32  ;;  %897 = vmatprep.subr.bf16.mxu0 %v12572_v33  ;;  %v12656_v32 = vld [vmem:[#allocation2 + $0x9f8] ss:$24 sps:$4 sm:$0xff]   ;;  %v12658_v33 = vld [vmem:[#allocation2 + $0x9fc] ss:$24 sps:$4 sm:$0xff]   ;;  %v12664_v35 = vld [vmem:[#allocation2 + $0xa2c] ss:$24 sps:$4 sm:$0xff]  }
  0xe0   : > { %970 = vmatprep.subr.bf16.mxu1 %v12574_v34  ;;  %v12661_v34 = vld [vmem:[#allocation2 + $0xa24] ss:$24 sps:$4 sm:$0xff]   ;;  %v12659_v36 = vld [vmem:[#allocation2 + $0xa20] ss:$24 sps:$4 sm:$0xff]   ;;  %vm1496_vm15 = vsmask.f32 7424 }
  0xe1   : > { %v12670_v41 = vld [vmem:[#allocation2 + $0xa5c] ss:$24 sps:$4 sm:$0xff]   ;;  %v12710_v5 = vld [vmem:[#allocation2 + $0xba8] ss:$24 sps:$4 sm:$0xff]   ;;  %v12716_v8 = vld [vmem:[#allocation2 + $0xbd8] ss:$24 sps:$4 sm:$0xff]  }
  0xe2   : > { %898 = vmatpush1.bf16.msra.mxu0 %v12576_v37  ;;  %v12662_v37 = vld [vmem:[#allocation2 + $0xa28] ss:$24 sps:$4 sm:$0xff]   ;;  %s12188_s8 = sshll.u32 %s14482_s21, 4  ;;  %s456_s11 = scalar_lea.vmem [#allocation13], %s455_s6 }
  0xe3   : > { %971 = vmatpush1.bf16.msra.mxu1 %v12577_v38  ;;  %10820 = vmatprep.subr.msk.bf16.mxu0 %vm862_vm1, %v10815_v39  ;;  %v12665_v38 = vld [vmem:[#allocation2 + $0xa50] ss:$24 sps:$4 sm:$0xff]   ;;  %v12667_v39 = vld [vmem:[#allocation2 + $0xa54] ss:$24 sps:$4 sm:$0xff]   ;;  %s10619_s20 = sshll.u32 %s456_s11, 4  ;;  %s18186_s26 = sld [smem:[#allocation174_spill]]  ;;  %s17484_s20 = int_to_ptr.vmem [resolvable:$true] %s10619_s20 }
  0xe4   : > { %10825 = vmatprep.subr.msk.bf16.mxu1 %vm862_vm1, %v10817_v40  ;;  %v12668_v40 = vld [vmem:[#allocation2 + $0xa58] ss:$24 sps:$4 sm:$0xff]   ;;  %s10607_s25 = scalar_lea.sflag [#allocation4], %s455_s6  ;;  %s14309_s30 = scalar_lea.vmem %s17484_s20, 16 }
  0xe5   : > { %p14310_p4 = scmp.ne.s32.totalorder %s17484_s20, %s14309_s30  ;;  %p18187_p7 = scmp.ne.s32.totalorder %s17763_s27, 0 }
  0xe6   : > { %900 = vmatpush1.bf16.msra.mxu0 %v864_v43  ;;  %v12676_v43 = vld [vmem:[#allocation2 + $0xa8c] ss:$24 sps:$4 sm:$0xff]   ;;  %s14400_s21 = smov [#allocation13]  }
  0xe7   : > { %973 = vmatpush1.bf16.msra.mxu1 %v870_v44  ;;  %1027 = vmatprep.subr.bf16.mxu0 %v12587_v45  ;;  %v12671_v44 = vld [vmem:[#allocation2 + $0xa80] ss:$24 sps:$4 sm:$0xff]   ;;  %p14311_p8 = pnand %p14310_p4, %p18187_p7  ;;  %s14313_s29 = sshll.u32 %s14400_s21, 4  ;;  %s14314_s29 = int_to_ptr.vmem [resolvable:$false] %s14313_s29 }
  0xe8   : > { %2268 = vmatprep.subr.bf16.mxu1 %v12625_v10  ;;  %v12674_v45 = vld [vmem:[#allocation2 + $0xa88] ss:$24 sps:$4 sm:$0xff]   ;;  %v12721_v10 = vld [vmem:[#allocation2 + $0xc04] ss:$24 sps:$4 sm:$0xff]   ;;  %s14315_s15 = scalar_lea.vmem %s14314_s29, 32  ;;  %p14316_p13 = scmp.lt.s32.totalorder %s17484_s20, %s14314_s29 }
  0xe9   : > { %914 = vmatmul.mubr.bf16.vlgmr.msra.gmra.mrb[0].mxu0 %v14804_v46  ;;  %s17482_s16 = scalar_lea.hbm %s18186_s26, %s12188_s8  ;;  %p14312_p11 = pneg %p14311_p8 }
  0xea   : > { %987 = vmatmul.mubr.bf16.vlgmr.msra.gmra.mrb[0].mxu1 %v14804_v46  ;;  %1028 = vmatpush1.bf16.msra.mxu0 %v12585_v47  ;;  %v12679_v47 = vld [vmem:[#allocation2 + $0xab4] ss:$24 sps:$4 sm:$0xff]   ;;  %p14317_p1 = scmp.lt.s32.totalorder %s14315_s15, %s14309_s30 }
  0xeb   : > { %10827 = vmatprep.mubr.msk.bf16.mxu1 %vm849_vm0, %v12591_v48  ;;  %1029 = vmatprep.subr.bf16.mxu0 %v12590_v49  ;;  %v12682_v49 = vld [vmem:[#allocation2 + $0xabc] ss:$24 sps:$4 sm:$0xff]  }
  0xec   : > { %10822 = vmatprep.mubr.msk.bf16.mxu0 %vm849_vm0, %v12591_v48  ;;  %2269 = vmatpush1.bf16.msra.mxu1 %v12623_v12  ;;  %p14318_p0 = por %p14317_p1, %p14316_p13 }
  0xed   : > { %2270 = vmatprep.subr.bf16.mxu1 %v12631_v14 }
  0xee   : > { %1030 = vmatpush1.bf16.msra.mxu0 %v12588_v50  ;;  %v12685_v50 = vld [vmem:[#allocation2 + $0xae4] ss:$24 sps:$4 sm:$0xff]   ;;  %p14319_p6 = pnand %p14318_p0, %p14312_p11 }
  0xef   : > { %1031 = vmatprep.subr.bf16.mxu0 %v12596_v51  ;;  %v12688_v51 = vld [vmem:[#allocation2 + $0xaec] ss:$24 sps:$4 sm:$0xff]  }
  0xf0   : > { %2271 = vmatpush1.bf16.msra.mxu1 %v12629_v16 }
  0xf1   : > { %924 = vmatmul.mubr.bf16.gmra.mrb[4].mxu0 %v12593_v52  ;;  %2272 = vmatprep.subr.bf16.mxu1 %v12637_v18 }
  0xf2   : > { %997 = vmatmul.mubr.bf16.gmra.mrb[4].mxu1 %v12593_v52  ;;  %1032 = vmatpush1.bf16.msra.mxu0 %v12594_v53  ;;  %v12686_v53 = vld [vmem:[#allocation2 + $0xae8] ss:$24 sps:$4 sm:$0xff]  }
  0xf3   : > { %10828 = vmatprep.mubr.msk.bf16.mxu1 %vm849_vm0, %v12600_v54  ;;  %1033 = vmatprep.subr.bf16.mxu0 %v12599_v55  ;;  %v12694_v55 = vld [vmem:[#allocation2 + $0xb1c] ss:$24 sps:$4 sm:$0xff]  }
  0xf4   : > { %10823 = vmatprep.mubr.msk.bf16.mxu0 %vm849_vm0, %v12600_v54  ;;  %2273 = vmatpush1.bf16.msra.mxu1 %v12635_v20 }
  0xf5   : > { %2274 = vmatprep.subr.bf16.mxu1 %v12643_v22  ;;  %v1138_v22 = vlaneseq }
  0xf6   : > { %1034 = vmatpush1.bf16.msra.mxu0 %v12597_v56  ;;  %v12689_v56 = vld [vmem:[#allocation2 + $0xb10] ss:$24 sps:$4 sm:$0xff]  }
  0xf7   : > { %1035 = vmatprep.subr.bf16.mxu0 %v12605_v57  ;;  %v12692_v57 = vld [vmem:[#allocation2 + $0xb18] ss:$24 sps:$4 sm:$0xff]  }
  0xf8   : > { %2275 = vmatpush1.bf16.msra.mxu1 %v12641_v24 }
  0xf9   : > { %934 = vmatmul.mubr.bf16.gmra.mrb[8].mxu0 %v12602_v58  ;;  %2276 = vmatprep.subr.bf16.mxu1 %v12649_v26 }
  0xfa   : > { %1007 = vmatmul.mubr.bf16.gmra.mrb[8].mxu1 %v12602_v58  ;;  %1036 = vmatpush1.bf16.msra.mxu0 %v12603_v59  ;;  %v12700_v59 = vld [vmem:[#allocation2 + $0xb4c] ss:$24 sps:$4 sm:$0xff]  }
  0xfb   : > { %10829 = vmatprep.mubr.msk.bf16.mxu1 %vm849_vm0, %v12609_v60  ;;  %1037 = vmatprep.subr.bf16.mxu0 %v12608_v61  ;;  %v12698_v61 = vld [vmem:[#allocation2 + $0xb48] ss:$24 sps:$4 sm:$0xff]  }
  0xfc   : > { %10824 = vmatprep.mubr.msk.bf16.mxu0 %vm849_vm0, %v12609_v60  ;;  %2277 = vmatpush1.bf16.msra.mxu1 %v12647_v28 }
  0xfd   : > { %2278 = vmatprep.subr.bf16.mxu1 %v12655_v31 }
  0xfe   : > { %1038 = vmatpush1.bf16.msra.mxu0 %v12606_v62  ;;  %v12703_v62 = vld [vmem:[#allocation2 + $0xb74] ss:$24 sps:$4 sm:$0xff]  }
  0xff   : > { %1039 = vmatprep.subr.bf16.mxu0 %v12614_v63  ;;  %v12706_v63 = vld [vmem:[#allocation2 + $0xb7c] ss:$24 sps:$4 sm:$0xff]  }
 0x101   : > { %944 = vmatmul.mubr.bf16.gmra.mrb[12].mxu0 %v12611_v0 }
 0x102   : > { %1017 = vmatmul.mubr.bf16.gmra.mrb[12].mxu1 %v12611_v0  ;;  %1040 = vmatpush1.bf16.msra.mxu0 %v12612_v1  ;;  %v12704_v1 = vld [vmem:[#allocation2 + $0xb78] ss:$24 sps:$4 sm:$0xff]  }
 0x103   : > { %10831 = vmatprep.mubr.msk.bf16.mxu0 %vm849_vm0, %v14766_v30  ;;  %1041 = vmatprep.subr.bf16.mxu0 %v12617_v2  ;;  %v12653_v30 = vld [vmem:[#allocation2 + $0x9f0] ss:$24 sps:$4 sm:$0xff]   ;;  %v12709_v2 = vld [vmem:[#allocation2 + $0xba4] ss:$24 sps:$4 sm:$0xff]  }
 0x104   : > { %2279 = vmatpush1.bf16.msra.mxu1 %v12653_v30  ;;  %v14896_v30 = vshrl.u32 %v1138_v22, 7 }
 0x105   : > { %2280 = vmatprep.subr.bf16.mxu1 %v12661_v34 }
 0x106   : > { %1042 = vmatpush1.bf16.msra.mxu0 %v12615_v3  ;;  %v12712_v3 = vld [vmem:[#allocation2 + $0xbac] ss:$24 sps:$4 sm:$0xff]   ;;  %17780 = vst [vmem:[#allocation25_spill] sm:$0xff] %v14896_v30  ;;  %v14901_v34 = vsub.s32 0, %v14896_v30 }
 0x107   : > { %1043 = vmatprep.subr.bf16.mxu0 %v12620_v4  ;;  %v12707_v4 = vld [vmem:[#allocation2 + $0xba0] ss:$24 sps:$4 sm:$0xff]  }
 0x108   : > { %2281 = vmatpush1.bf16.msra.mxu1 %v12659_v36  ;;  %17781 = vst [vmem:[#allocation26_spill] sm:$0xff] %v14901_v34 }
 0x109   : > { %2282 = vmatprep.subr.bf16.mxu1 %v12667_v39 }
 0x10a   : > { %1044 = vmatpush1.bf16.msra.mxu0 %v12618_v6  ;;  %v12713_v6 = vld [vmem:[#allocation2 + $0xbd0] ss:$24 sps:$4 sm:$0xff]  }
 0x10b   : > { %10830 = vmatprep.subr.msk.bf16.mxu0 %vm862_vm1, %v10819_v7  ;;  %v12715_v7 = vld [vmem:[#allocation2 + $0xbd4] ss:$24 sps:$4 sm:$0xff]  }
 0x10c   : > { %2283 = vmatpush1.bf16.msra.mxu1 %v12665_v38 }
 0x10d   : > { %2284 = vmatprep.subr.bf16.mxu1 %v12673_v42 }
 0x10e   : > { %1046 = vmatpush1.bf16.msra.mxu0 %v876_v9  ;;  %v12718_v9 = vld [vmem:[#allocation2 + $0xbdc] ss:$24 sps:$4 sm:$0xff]  }
 0x10f   : > { %2374 = vmatprep.subr.bf16.mxu0 %v12628_v11  ;;  %v12724_v11 = vld [vmem:[#allocation2 + $0xc0c] ss:$24 sps:$4 sm:$0xff]  }
 0x110   : > { %2285 = vmatpush1.bf16.msra.mxu1 %v12671_v44 }
 0x111   : > { %1060 = vmatmul.mubr.bf16.vlgmr.msra.gmra.mrb[16].mxu0 %v14804_v46  ;;  %v12677_v46 = vld [vmem:[#allocation2 + $0xab0] ss:$24 sps:$4 sm:$0xff]   ;;  %2286 = vmatprep.subr.bf16.mxu1 %v12679_v47 }
 0x112   : > { %10832 = vmatprep.mubr.msk.bf16.mxu0 %vm849_vm0, %v12591_v48  ;;  %2375 = vmatpush1.bf16.msra.mxu0 %v12626_v13  ;;  %v12680_v48 = vld [vmem:[#allocation2 + $0xab8] ss:$24 sps:$4 sm:$0xff]  }
 0x113   : > { %2376 = vmatprep.subr.bf16.mxu0 %v12634_v15 }
 0x114   : > { %2287 = vmatpush1.bf16.msra.mxu1 %v12677_v46 }
 0x115   : > { %2288 = vmatprep.subr.bf16.mxu1 %v12685_v50 }
 0x116   : > { %2377 = vmatpush1.bf16.msra.mxu0 %v12632_v17 }
 0x117   : > { %2378 = vmatprep.subr.bf16.mxu0 %v12640_v19 }
 0x119   : > { %1070 = vmatmul.mubr.bf16.gmra.mrb[20].mxu0 %v12593_v52  ;;  %v12683_v52 = vld [vmem:[#allocation2 + $0xae0] ss:$24 sps:$4 sm:$0xff]  }
 0x11a   : > { %10833 = vmatprep.mubr.msk.bf16.mxu0 %vm849_vm0, %v12600_v54  ;;  %2379 = vmatpush1.bf16.msra.mxu0 %v12638_v21  ;;  %v12691_v54 = vld [vmem:[#allocation2 + $0xb14] ss:$24 sps:$4 sm:$0xff]  }
 0x11b   : > { %2380 = vmatprep.subr.bf16.mxu0 %v12646_v23  ;;  %2289 = vmatpush1.bf16.msra.mxu1 %v12683_v52 }
 0x11c   : > { %2290 = vmatprep.subr.bf16.mxu1 %v12691_v54 }
 0x11e   : > { %2381 = vmatpush1.bf16.msra.mxu0 %v12644_v25 }
 0x11f   : > { %2382 = vmatprep.subr.bf16.mxu0 %v12652_v27  ;;  %2291 = vmatpush1.bf16.msra.mxu1 %v12689_v56 }
 0x121   : > { %1080 = vmatmul.mubr.bf16.gmra.mrb[24].mxu0 %v12602_v58  ;;  %v12697_v58 = vld [vmem:[#allocation2 + $0xb44] ss:$24 sps:$4 sm:$0xff]  }
 0x122   : > { %10834 = vmatprep.mubr.msk.bf16.mxu0 %vm849_vm0, %v12609_v60  ;;  %2383 = vmatpush1.bf16.msra.mxu0 %v12650_v29  ;;  %v12695_v60 = vld [vmem:[#allocation2 + $0xb40] ss:$24 sps:$4 sm:$0xff]  }
 0x123   : > { %2384 = vmatprep.subr.bf16.mxu0 %v12658_v33  ;;  %2292 = vmatprep.subr.bf16.mxu1 %v12697_v58 }
 0x124   : > { %2293 = vmatpush1.bf16.msra.mxu1 %v12695_v60 }
 0x125   : > { %2294 = vmatprep.subr.bf16.mxu1 %v12703_v62 }
 0x126   : > { %2385 = vmatpush1.bf16.msra.mxu0 %v12656_v32 }
 0x127   : > { %2386 = vmatprep.subr.bf16.mxu0 %v12664_v35  ;;  %v14903_v35 = vld [vmem:[#allocation5] sm:$0x7] }
 0x129   : > { %1090 = vmatmul.mubr.bf16.gmra.mrb[28].mxu0 %v12611_v0  ;;  %v12701_v0 = vld [vmem:[#allocation2 + $0xb70] ss:$24 sps:$4 sm:$0xff]  }
 0x12a   : > { %2387 = vmatpush1.bf16.msra.mxu0 %v12662_v37  ;;  %2295 = vmatpush1.bf16.msra.mxu1 %v12701_v0 }
 0x12b   : > { %2388 = vmatprep.subr.bf16.mxu0 %v12670_v41  ;;  %2296 = vmatprep.subr.bf16.mxu1 %v12709_v2  ;;  %v1141_v41 = vrot.slane %v14903_v35, %v14901_v34  ;;  %v15208_v34 = vld [vmem:[#allocation2 + $0x111c] ss:$24 sps:$4 sm:$0xff]  }
 0x12e   : > { %2389 = vmatpush1.bf16.msra.mxu0 %v12668_v40  ;;  %2297 = vmatpush1.bf16.msra.mxu1 %v12707_v4 }
 0x12f   : > { %2390 = vmatprep.subr.bf16.mxu0 %v12676_v43  ;;  %2298 = vmatprep.subr.bf16.mxu1 %v12715_v7 }
 0x132   : > { %2391 = vmatpush1.bf16.msra.mxu0 %v12674_v45  ;;  %2299 = vmatpush1.bf16.msra.mxu1 %v12713_v6 }
 0x133   : > { %2392 = vmatprep.subr.bf16.mxu0 %v12682_v49  ;;  %2321 = vmatprep.subr.bf16.mxu1 %v12721_v10 }
 0x136   : > { %2393 = vmatpush1.bf16.msra.mxu0 %v12680_v48 }
 0x137   : > { %2394 = vmatprep.subr.bf16.mxu0 %v12688_v51 }
 0x13a   : > { %2395 = vmatpush1.bf16.msra.mxu0 %v12686_v53 }
 0x13b   : > { %2396 = vmatprep.subr.bf16.mxu0 %v12694_v55 }
 0x13e   : > { %2397 = vmatpush1.bf16.msra.mxu0 %v12692_v57 }
 0x13f   : > { %2398 = vmatprep.subr.bf16.mxu0 %v12700_v59 }
 0x142   : > { %2399 = vmatpush1.bf16.msra.mxu0 %v12698_v61 }
 0x143   : > { %2400 = vmatprep.subr.bf16.mxu0 %v12706_v63 }
 0x146   : > { %2401 = vmatpush1.bf16.msra.mxu0 %v12704_v1 }
 0x147   : > { %2402 = vmatprep.subr.bf16.mxu0 %v12712_v3 }
 0x14a   : > { %2403 = vmatpush1.bf16.msra.mxu0 %v12710_v5 }
 0x14b   : > { %2404 = vmatprep.subr.bf16.mxu0 %v12718_v9 }
 0x14e   : > { %2405 = vmatpush1.bf16.msra.mxu0 %v12716_v8 }
 0x14f   : > { %2427 = vmatprep.subr.bf16.mxu0 %v12724_v11 }
 0x1bc   : > { %v915_v12 = vpop.f32.mrb[0].mxu0 }
 0x1bd   : > { %v14882_v13 = vpop.f32.mrb[0].mxu1  ;;  %v14884_v14 = vpop.f32.mrb[1].mxu0 }
 0x1be   : > { %v990_v15 = vpop.f32.mrb[1].mxu1  ;;  %v919_v17 = vpop.f32.mrb[2].mxu0 }
 0x1bf   : > { %v1100_v16 = vmax.f32 %v915_v12, %v990_v15  ;;  %v14886_v18 = vpop.f32.mrb[2].mxu1  ;;  %v14888_v19 = vpop.f32.mrb[3].mxu0 }
 0x1c0   : > { %v994_v20 = vpop.f32.mrb[3].mxu1 }
 0x1c1   : > { %v1103_v21 = vmax.f32 %v919_v17, %v994_v20 }
 0x1c4   : > { %v925_v24 = vpop.f32.mrb[4].mxu0 }
 0x1c5   : > { %v14890_v23 = vpop.f32.mrb[4].mxu1  ;;  %v14892_v26 = vpop.f32.mrb[5].mxu0 }
 0x1c6   : > { %v1000_v25 = vpop.f32.mrb[5].mxu1  ;;  %v929_v29 = vpop.f32.mrb[6].mxu0 }
 0x1c7   : > { %v1106_v27 = vmax.f32 %v925_v24, %v1000_v25  ;;  %v14894_v28 = vpop.f32.mrb[6].mxu1  ;;  %v14898_v32 = vpop.f32.mrb[7].mxu0 }
 0x1c8   : > { %v1004_v31 = vpop.f32.mrb[7].mxu1 }
 0x1c9   : > { %v1109_v33 = vmax.f32 %v929_v29, %v1004_v31 }
 0x1cc   : > { %v935_v37 = vpop.f32.mrb[8].mxu0 }
 0x1cd   : > { %v14905_v36 = vpop.f32.mrb[8].mxu1  ;;  %v14907_v39 = vpop.f32.mrb[9].mxu0 }
 0x1ce   : > { %v1010_v38 = vpop.f32.mrb[9].mxu1  ;;  %v939_v43 = vpop.f32.mrb[10].mxu0 }
 0x1cf   : > { %v1112_v40 = vmax.f32 %v935_v37, %v1010_v38  ;;  %v14911_v42 = vpop.f32.mrb[10].mxu1  ;;  %v14913_v45 = vpop.f32.mrb[11].mxu0 }
 0x1d0   : > { %v1014_v44 = vpop.f32.mrb[11].mxu1 }
 0x1d1   : > { %v1124_v46 = vmax.f32 %v1100_v16, %v1112_v40  ;;  %v1115_v47 = vmax.f32 %v939_v43, %v1014_v44 }
 0x1d3   : > { %v1153_v48 = vadd.f32 %v1141_v41, %v1124_v46  ;;  %v1127_v49 = vmax.f32 %v1103_v21, %v1115_v47 }
 0x1d4   : > { %v945_v53 = vpop.f32.mrb[12].mxu0 }
 0x1d5   : > { %v1177_v50 = vmul.f32 0.01, %v1153_v48  ;;  %v1156_v51 = vadd.f32 %v1141_v41, %v1127_v49  ;;  %v14915_v52 = vpop.f32.mrb[12].mxu1  ;;  %vm1165_vm2 = vcmp.ge.f32.partialorder %v1153_v48, 0.0  ;;  %v14917_v55 = vpop.f32.mrb[13].mxu0 }
 0x1d6   : > { %v1020_v54 = vpop.f32.mrb[13].mxu1  ;;  %v949_v59 = vpop.f32.mrb[14].mxu0 }
 0x1d7   : > { %vm1168_vm3 = vcmp.ge.f32.partialorder %v1156_v51, 0.0  ;;  %v1180_v56 = vmul.f32 0.01, %v1156_v51  ;;  %v1118_v57 = vmax.f32 %v945_v53, %v1020_v54  ;;  %v14919_v58 = vpop.f32.mrb[14].mxu1  ;;  %v14921_v61 = vpop.f32.mrb[15].mxu0  ;;  %v1189_v62 = vsel %vm1165_vm2, %v1153_v48, %v1177_v50 }
 0x1d8   : > { %v1024_v60 = vpop.f32.mrb[15].mxu1 }
 0x1d9   : > { %v1192_v63 = vsel %vm1168_vm3, %v1156_v51, %v1180_v56  ;;  %v1130_v0 = vmax.f32 %v1106_v27, %v1118_v57  ;;  %v1121_v1 = vmax.f32 %v949_v59, %v1024_v60 }
 0x1da   : > { %v14923_v2 = vpack.c.bf16 %v1192_v63, %v1189_v62 }
 0x1db   : > { %v1159_v3 = vadd.f32 %v1141_v41, %v1130_v0  ;;  %v1133_v4 = vmax.f32 %v1109_v33, %v1121_v1 }
 0x1dc   : > { %v3776_v12 = vrot.slane %v14923_v2, 1 }
 0x1dd   : > { %vm1171_vm4 = vcmp.ge.f32.partialorder %v1159_v3, 0.0  ;;  %v1183_v5 = vmul.f32 0.01, %v1159_v3  ;;  %v1162_v6 = vadd.f32 %v1141_v41, %v1133_v4 }
 0x1df   : > { %v1195_v7 = vsel %vm1171_vm4, %v1159_v3, %v1183_v5  ;;  %vm1174_vm5 = vcmp.ge.f32.partialorder %v1162_v6, 0.0  ;;  %v1186_v8 = vmul.f32 0.01, %v1162_v6 }
 0x1e0   : > { %v7099_v9 = vpack.c.bf16 %v1195_v7, %v1195_v7 }
 0x1e1   : > { %v1198_v10 = vsel %vm1174_vm5, %v1162_v6, %v1186_v8 }
 0x1e2   : > { %v14925_v11 = vpack.c.bf16 %v1198_v10, %v1195_v7  ;;  %v7105_v15 = vrot.slane %v7099_v9, 1 }
 0x1e4   : > { %17782 = vst [vmem:[#allocation27_spill] sm:$0xff] %v14925_v11  ;;  %v14931_v16 = vsel %vm3775_vm6, %v3776_v12, %v7105_v15  ;;  %v1061_v17 = vpop.f32.mrb[16].mxu0 }
 0x1e5   : > { %v1101_v20 = vmax.f32 %v14884_v14, %v1061_v17  ;;  %v1063_v21 = vpop.f32.mrb[17].mxu0 }
 0x1e6   : > { %v1102_v22 = vmax.f32 %v14882_v13, %v1063_v21  ;;  %v1065_v24 = vpop.f32.mrb[18].mxu0  ;;  %v14942_v13 = vsub.s32 1, %v14896_v30 }
 0x1e7   : > { %v1104_v25 = vmax.f32 %v14888_v19, %v1065_v24  ;;  %v1067_v27 = vpop.f32.mrb[19].mxu0  ;;  %v17546_v19 = vsub.s32 2, %v14896_v30  ;;  %v17792_v30 = vmov 0  }
 0x1e8   : > { %v1105_v29 = vmax.f32 %v14886_v18, %v1067_v27  ;;  %17783 = vst [vmem:[#allocation28_spill] sm:$0xff] %v14942_v13 }
 0x1ec   : > { %v1071_v31 = vpop.f32.mrb[20].mxu0 }
 0x1ed   : > { %v1107_v33 = vmax.f32 %v14892_v26, %v1071_v31  ;;  %v1073_v37 = vpop.f32.mrb[21].mxu0  ;;  %v1145_v26 = vrot.slane %v14903_v35, %v14942_v13  ;;  %v15205_v13 = vld [vmem:[#allocation2 + $0x10e8] ss:$24 sps:$4 sm:$0xff]  }
 0x1ee   : > { %v1108_v38 = vmax.f32 %v14890_v23, %v1073_v37  ;;  %v1075_v40 = vpop.f32.mrb[22].mxu0  ;;  %v1500_v37 = vshll.u32 %v14923_v2, 16 }
 0x1ef   : > { %v1110_v41 = vmax.f32 %v14898_v32, %v1075_v40  ;;  %v1077_v43 = vpop.f32.mrb[23].mxu0  ;;  %v1149_v32 = vrot.slane %v14903_v35, %v17546_v19  ;;  %v15192_v19 = vld [vmem:[#allocation2 + $0x10bc] ss:$24 sps:$4 sm:$0xff]  }
 0x1f0   : > { %v1111_v14 = vmax.f32 %v14894_v28, %v1077_v43 }
 0x1f4   : > { %v1081_v44 = vpop.f32.mrb[24].mxu0 }
 0x1f5   : > { %v1113_v18 = vmax.f32 %v14907_v39, %v1081_v44  ;;  %v1083_v46 = vpop.f32.mrb[25].mxu0 }
 0x1f6   : > { %v1114_v23 = vmax.f32 %v14905_v36, %v1083_v46  ;;  %v1085_v47 = vpop.f32.mrb[26].mxu0 }
 0x1f7   : > { %v1125_v28 = vmax.f32 %v1101_v20, %v1113_v18  ;;  %v1116_v48 = vmax.f32 %v14913_v45, %v1085_v47  ;;  %v1087_v49 = vpop.f32.mrb[27].mxu0 }
 0x1f8   : > { %v1126_v50 = vmax.f32 %v1102_v22, %v1114_v23  ;;  %v1117_v51 = vmax.f32 %v14911_v42, %v1087_v49  ;;  %v1502_v23 = vrot.slane %v1500_v37, 1  ;;  %v12757_v37 = vld [vmem:[#allocation2 + $0xd24] ss:$24 sps:$4 sm:$0xff]  }
 0x1f9   : > { %v1154_v53 = vadd.f32 %v1145_v26, %v1125_v28  ;;  %v1128_v39 = vmax.f32 %v1104_v25, %v1116_v48 }
 0x1fa   : > { %v1155_v54 = vadd.f32 %v1149_v32, %v1126_v50  ;;  %v1129_v56 = vmax.f32 %v1105_v29, %v1117_v51  ;;  %v1498_v51 = vshrl.u32 %v14923_v2, 16 }
 0x1fb   : > { %vm1166_vm7 = vcmp.ge.f32.partialorder %v1154_v53, 0.0  ;;  %v1178_v57 = vmul.f32 0.01, %v1154_v53  ;;  %v1157_v59 = vadd.f32 %v1145_v26, %v1128_v39 }
 0x1fc   : > { %vm1167_vm8 = vcmp.ge.f32.partialorder %v1155_v54, 0.0  ;;  %v1179_v36 = vmul.f32 0.01, %v1155_v54  ;;  %v1158_v60 = vadd.f32 %v1149_v32, %v1129_v56  ;;  %v1091_v62 = vpop.f32.mrb[28].mxu0 }
 0x1fd   : > { %vm1169_vm9 = vcmp.ge.f32.partialorder %v1157_v59, 0.0  ;;  %v1181_v35 = vmul.f32 0.01, %v1157_v59  ;;  %v1119_v63 = vmax.f32 %v14917_v55, %v1091_v62  ;;  %v1093_v45 = vpop.f32.mrb[29].mxu0  ;;  %v1190_v0 = vsel %vm1166_vm7, %v1154_v53, %v1178_v57 }
 0x1fe   : > { %vm1170_vm10 = vcmp.ge.f32.partialorder %v1158_v60, 0.0  ;;  %v1182_v1 = vmul.f32 0.01, %v1158_v60  ;;  %v1120_v42 = vmax.f32 %v14915_v52, %v1093_v45  ;;  %v1095_v3 = vpop.f32.mrb[30].mxu0  ;;  %v1191_v4 = vsel %vm1167_vm8, %v1155_v54, %v1179_v36  ;;  %v12722_v36 = vld [vmem:[#allocation2 + $0xc08] ss:$24 sps:$4 sm:$0xff]  }
 0x1ff   : > { %v1193_v5 = vsel %vm1169_vm9, %v1157_v59, %v1181_v35  ;;  %v1131_v6 = vmax.f32 %v1107_v33, %v1119_v63  ;;  %v1122_v7 = vmax.f32 %v14921_v61, %v1095_v3  ;;  %v1097_v8 = vpop.f32.mrb[31].mxu0  ;;  %v12719_v59 = vld [vmem:[#allocation2 + $0xc00] ss:$24 sps:$4 sm:$0xff]   ;;  %v14987_v62 = vor.u32 %v1502_v23, %v1498_v51  ;;  %v12727_v35 = vld [vmem:[#allocation2 + $0xc34] ss:$24 sps:$4 sm:$0xff]  }
 0x200   : > { %v14957_v9 = vpack.c.bf16 %v1193_v5, %v1190_v0  ;;  %v1194_v10 = vsel %vm1170_vm10, %v1158_v60, %v1182_v1  ;;  %v1132_v15 = vmax.f32 %v1108_v38, %v1120_v42  ;;  %v1123_v17 = vmax.f32 %v14919_v58, %v1097_v8  ;;  %v12730_v63 = vld [vmem:[#allocation2 + $0xc3c] ss:$24 sps:$4 sm:$0xff]   ;;  %v12725_v42 = vld [vmem:[#allocation2 + $0xc30] ss:$24 sps:$4 sm:$0xff]   ;;  %v12736_v5 = vld [vmem:[#allocation2 + $0xc6c] ss:$24 sps:$4 sm:$0xff]  }
 0x201   : > { %v14960_v55 = vpack.c.bf16 %v1194_v10, %v1191_v4  ;;  %v1160_v20 = vadd.f32 %v1145_v26, %v1131_v6  ;;  %v1134_v21 = vmax.f32 %v1110_v41, %v1122_v7  ;;  %v1505_v41 = vshll.u32 %v14925_v11, 16  ;;  %17787 = vst [vmem:[#allocation32_spill] sm:$0xff] %v14987_v62  ;;  %v12728_v3 = vld [vmem:[#allocation2 + $0xc38] ss:$24 sps:$4 sm:$0xff]   ;;  %v12733_v4 = vld [vmem:[#allocation2 + $0xc64] ss:$24 sps:$4 sm:$0xff]  }
 0x202   : > { %v1161_v22 = vadd.f32 %v1149_v32, %v1132_v15  ;;  %v1135_v24 = vmax.f32 %v1111_v14, %v1123_v17  ;;  %v1512_v61 = vshll.u32 %v14957_v9, 16  ;;  %v1510_v28 = vshrl.u32 %v14957_v9, 16  ;;  %v12731_v6 = vld [vmem:[#allocation2 + $0xc60] ss:$24 sps:$4 sm:$0xff]   ;;  %v12739_v10 = vld [vmem:[#allocation2 + $0xc94] ss:$24 sps:$4 sm:$0xff]  }
 0x203   : > { %vm1172_vm11 = vcmp.ge.f32.partialorder %v1160_v20, 0.0  ;;  %v1184_v52 = vmul.f32 0.01, %v1160_v20  ;;  %v1163_v25 = vadd.f32 %v1145_v26, %v1134_v21  ;;  %v3782_v49 = vrot.slane %v14960_v55, 1  ;;  %v12734_v7 = vld [vmem:[#allocation2 + $0xc68] ss:$24 sps:$4 sm:$0xff]  }
 0x204   : > { %vm1173_vm12 = vcmp.ge.f32.partialorder %v1161_v22, 0.0  ;;  %v1185_v27 = vmul.f32 0.01, %v1161_v22  ;;  %v1164_v29 = vadd.f32 %v1149_v32, %v1135_v24  ;;  %v1514_v18 = vrot.slane %v1512_v61, 1  ;;  %v12742_v15 = vld [vmem:[#allocation2 + $0xc9c] ss:$24 sps:$4 sm:$0xff]  }
 0x205   : > { %v1196_v31 = vsel %vm1172_vm11, %v1160_v20, %v1184_v52  ;;  %vm1175_vm13 = vcmp.ge.f32.partialorder %v1163_v25, 0.0  ;;  %v1187_v33 = vmul.f32 0.01, %v1163_v25  ;;  %v3779_v32 = vrot.slane %v14957_v9, 1  ;;  %v12737_v20 = vld [vmem:[#allocation2 + $0xc90] ss:$24 sps:$4 sm:$0xff]  }
 0x206   : > { %v1197_v58 = vsel %vm1173_vm12, %v1161_v22, %v1185_v27  ;;  %vm1176_vm14 = vcmp.ge.f32.partialorder %v1164_v29, 0.0  ;;  %v1188_v38 = vmul.f32 0.01, %v1164_v29  ;;  %v7100_v43 = vpack.c.bf16 %v1196_v31, %v1196_v31  ;;  %v12740_v21 = vld [vmem:[#allocation2 + $0xc98] ss:$24 sps:$4 sm:$0xff]  }
 0x207   : > { %v1199_v40 = vsel %vm1175_vm13, %v1163_v25, %v1187_v33  ;;  %v7101_v26 = vpack.c.bf16 %v1197_v58, %v1197_v58  ;;  %v1507_v53 = vrot.slane %v1505_v41, 1  ;;  %v14979_v54 = vor.u32 %v1514_v18, %v1510_v28  ;;  %v12745_v22 = vld [vmem:[#allocation2 + $0xcc4] ss:$24 sps:$4 sm:$0xff]   ;;  %v12743_v25 = vld [vmem:[#allocation2 + $0xcc0] ss:$24 sps:$4 sm:$0xff]  }
 0x208   : > { %v14965_v14 = vpack.c.bf16 %v1199_v40, %v1196_v31  ;;  %v1200_v44 = vsel %vm1176_vm14, %v1164_v29, %v1188_v38  ;;  %v7107_v47 = vrot.slane %v7100_v43, 1  ;;  %v1533_v8 = vshrl.u32 %v14925_v11, 16  ;;  %v12748_v24 = vld [vmem:[#allocation2 + $0xccc] ss:$24 sps:$4 sm:$0xff]   ;;  %v12746_v27 = vld [vmem:[#allocation2 + $0xcc8] ss:$24 sps:$4 sm:$0xff]  }
 0x209   : > { %v14967_v46 = vpack.c.bf16 %v1200_v44, %v1197_v58  ;;  %v7109_v50 = vrot.slane %v7101_v26, 1  ;;  %17785 = vst [vmem:[#allocation30_spill] sm:$0xff] %v14979_v54  ;;  %v14999_v1 = vsel %vm1496_vm15, %v14987_v62, %v1507_v53  ;;  %v17547_v52 = vmov 0   ;;  %v12751_v29 = vld [vmem:[#allocation2 + $0xcf4] ss:$24 sps:$4 sm:$0xff]  }
 0x20a   : > { %17784 = vst [vmem:[#allocation29_spill] sm:$0xff] %v14965_v14  ;;  %v1517_v48 = vshll.u32 %v14965_v14, 16  ;;  %v14977_v39 = vsel %vm3775_vm6, %v3779_v32, %v7107_v47  ;;  %v1536_v57 = vshrl.u32 %v14965_v14, 16  ;;  %v15006_v17 = vor.u32 %v1533_v8, %v1507_v53  ;;  %v12754_v61 = vld [vmem:[#allocation2 + $0xcfc] ss:$24 sps:$4 sm:$0xff]  }
 0x20b   : > { %v14985_v60 = vsel %vm3775_vm6, %v3782_v49, %v7109_v50  ;;  %v12749_v31 = vld [vmem:[#allocation2 + $0xcf0] ss:$24 sps:$4 sm:$0xff]   ;;  %v12760_v58 = vld [vmem:[#allocation2 + $0xd2c] ss:$24 sps:$4 sm:$0xff]   ;;  %v12755_v38 = vld [vmem:[#allocation2 + $0xd20] ss:$24 sps:$4 sm:$0xff]  }
 0x20c   : > { %v1519_v56 = vrot.slane %v1517_v48, 1  ;;  %17786 = vst [vmem:[#allocation31_spill] sm:$0xff] %v14985_v60  ;;  %17789 = vst [vmem:[#allocation34_spill] sm:$0xff] %v15006_v17  ;;  %v12752_v33 = vld [vmem:[#allocation2 + $0xcf8] ss:$24 sps:$4 sm:$0xff]   ;;  %v1524_v44 = vshll.u32 %v14960_v55, 16 }
 0x20d   : > { %v12758_v40 = vld [vmem:[#allocation2 + $0xd28] ss:$24 sps:$4 sm:$0xff]   ;;  %v12763_v41 = vld [vmem:[#allocation2 + $0xd54] ss:$24 sps:$4 sm:$0xff]   ;;  %v12764_v26 = vld [vmem:[#allocation2 + $0xd58] ss:$24 sps:$4 sm:$0xff]  }
 0x20e   : > { %v14991_v45 = vsel %vm1496_vm15, %v14979_v54, %v1519_v56  ;;  %v14993_v0 = vor.u32 %v1536_v57, %v1519_v56  ;;  %v12766_v43 = vld [vmem:[#allocation2 + $0xd5c] ss:$24 sps:$4 sm:$0xff]   ;;  %v12761_v18 = vld [vmem:[#allocation2 + $0xd50] ss:$24 sps:$4 sm:$0xff]   ;;  %v1529_v23 = vshll.u32 %v14967_v46, 16  ;;  %v1526_v48 = vrot.slane %v1524_v44, 1 }
 0x20f   : > { %2300 = vmatprep.mubr.bf16.mxu1 %v14991_v45  ;;  %2406 = vmatprep.mubr.bf16.mxu0 %v14991_v45  ;;  %v12769_v47 = vld [vmem:[#allocation2 + $0x914] ss:$24 sps:$4 sm:$0xff]   ;;  %v1522_v50 = vshrl.u32 %v14960_v55, 16  ;;  %v12767_v53 = vld [vmem:[#allocation2 + $0x910] ss:$24 sps:$4 sm:$0xff]   ;;  %vm10554_vm7 = vcmask 1043456  }
 0x210   : > { %17788 = vst [vmem:[#allocation33_spill] sm:$0xff] %v14993_v0  ;;  %2301 = vmatmul.mubr.bf16.vlgmr.msra.gmra.mrb[16].mxu1 %v14999_v1  ;;  %2407 = vmatmul.mubr.bf16.vlgmr.msra.gmra.mrb[32].mxu0 %v14999_v1  ;;  %v12772_v28 = vld [vmem:[#allocation2 + $0xc] ss:$24 sps:$4 sm:$0xff]   ;;  %v1531_v51 = vrot.slane %v1529_v23, 1  ;;  %v12770_v56 = vld [vmem:[#allocation2 + $0x8] ss:$24 sps:$4 sm:$0xff]  }
 0x211   : > { %2322 = vmatpush1.bf16.msra.mxu1 %v12719_v59  ;;  %2428 = vmatpush1.bf16.msra.mxu0 %v12722_v36  ;;  %v12775_v57 = vld [vmem:[#allocation2 + $0x944] ss:$24 sps:$4 sm:$0xff]   ;;  %v15015_v36 = vor.u32 %v1526_v48, %v1522_v50  ;;  %v12812_v44 = vld [vmem:[#allocation2 + $0x158] ss:$24 sps:$4 sm:$0xff]   ;;  %vm14399_vm8 = vmmov 0   ;;  %vm10550_vm10 = vcmask 195584  }
 0x212   : > { %2310 = vmatprep.mubr.bf16.mxu1 %v14993_v0  ;;  %2416 = vmatprep.mubr.bf16.mxu0 %v14993_v0  ;;  %v12778_v59 = vld [vmem:[#allocation2 + $0x3c] ss:$24 sps:$4 sm:$0xff]   ;;  %v12820_v23 = vld [vmem:[#allocation2 + $0x18c] ss:$24 sps:$4 sm:$0xff]   ;;  %v12821_v50 = vld [vmem:[#allocation2 + $0xac0] ss:$24 sps:$4 sm:$0xff]  }
 0x213   : > { %2323 = vmatprep.subr.bf16.mxu1 %v12727_v35  ;;  %2429 = vmatprep.subr.bf16.mxu0 %v12730_v63  ;;  %17790 = vst [vmem:[#allocation35_spill] sm:$0xff] %v15015_v36  ;;  %v15019_v35 = vsel %vm1496_vm15, %v15015_v36, %v1531_v51  ;;  %v12773_v63 = vld [vmem:[#allocation2 + $0x940] ss:$24 sps:$4 sm:$0xff]   ;;  %v12826_v48 = vld [vmem:[#allocation2 + $0x1bc] ss:$24 sps:$4 sm:$0xff]   ;;  %vm10604_vm11 = vcmask 65536  }
 0x214   : > { %v13177_v36 = vld [vmem:[#allocation2 + $0x3d4] ss:$24 sps:$4 sm:$0xff]   ;;  %v13175_v62 = vld [vmem:[#allocation2 + $0x3d0] ss:$24 sps:$4 sm:$0xff]  }
 0x215   : > { %2324 = vmatpush1.bf16.msra.mxu1 %v12725_v42  ;;  %2430 = vmatpush1.bf16.msra.mxu0 %v12728_v3  ;;  %v12776_v42 = vld [vmem:[#allocation2 + $0x38] ss:$24 sps:$4 sm:$0xff]   ;;  %v12781_v3 = vld [vmem:[#allocation2 + $0x974] ss:$24 sps:$4 sm:$0xff]  }
 0x216   : > { %2325 = vmatprep.subr.bf16.mxu1 %v12733_v4  ;;  %2431 = vmatprep.subr.bf16.mxu0 %v12736_v5  ;;  %v12784_v4 = vld [vmem:[#allocation2 + $0x6c] ss:$24 sps:$4 sm:$0xff]   ;;  %v12779_v5 = vld [vmem:[#allocation2 + $0x970] ss:$24 sps:$4 sm:$0xff]  }
 0x217   : > { %v15225_v54 = vld [vmem:[#allocation2 + $0x1178] ss:$24 sps:$4 sm:$0xff]   ;;  %v15228_v60 = vld [vmem:[#allocation2 + $0x11ac] ss:$24 sps:$4 sm:$0xff]  }
 0x218   : > { %2311 = vmatmul.mubr.bf16.gmra.mrb[20].mxu1 %v15006_v17  ;;  %2417 = vmatmul.mubr.bf16.gmra.mrb[36].mxu0 %v15006_v17  ;;  %17796 = vst [vmem:[#allocation40_spill] sm:$0xff] %v15225_v54  ;;  %17797 = vst [vmem:[#allocation41_spill] sm:$0xff] %v15228_v60 }
 0x219   : > { %2326 = vmatpush1.bf16.msra.mxu1 %v12731_v6  ;;  %2432 = vmatpush1.bf16.msra.mxu0 %v12734_v7  ;;  %v1539_v6 = vshrl.u32 %v14967_v46, 16  ;;  %v12782_v7 = vld [vmem:[#allocation2 + $0x68] ss:$24 sps:$4 sm:$0xff]  }
 0x21a   : > { %2327 = vmatprep.subr.bf16.mxu1 %v12739_v10  ;;  %2433 = vmatprep.subr.bf16.mxu0 %v12742_v15  ;;  %v12785_v10 = vld [vmem:[#allocation2 + $0x9a0] ss:$24 sps:$4 sm:$0xff]   ;;  %v12787_v15 = vld [vmem:[#allocation2 + $0x9a4] ss:$24 sps:$4 sm:$0xff]  }
 0x21b   : > { %2353 = vmatprep.mubr.bf16.mxu1 %v17547_v52  ;;  %2459 = vmatprep.mubr.bf16.mxu0 %v17547_v52  ;;  %v15026_v8 = vor.u32 %v1539_v6, %v1531_v51  ;;  %v12824_v51 = vld [vmem:[#allocation2 + $0x1b8] ss:$24 sps:$4 sm:$0xff]   ;;  %v12844_v6 = vld [vmem:[#allocation2 + $0x24c] ss:$24 sps:$4 sm:$0xff]  }
 0x21d   : > { %2328 = vmatpush1.bf16.msra.mxu1 %v12737_v20  ;;  %2434 = vmatpush1.bf16.msra.mxu0 %v12740_v21  ;;  %17791 = vst [vmem:[#allocation36_spill] sm:$0xff] %v15026_v8  ;;  %v12790_v20 = vld [vmem:[#allocation2 + $0x9c] ss:$24 sps:$4 sm:$0xff]   ;;  %v12788_v21 = vld [vmem:[#allocation2 + $0x98] ss:$24 sps:$4 sm:$0xff]  }
 0x21e   : > { %2329 = vmatprep.subr.bf16.mxu1 %v12745_v22  ;;  %2435 = vmatprep.subr.bf16.mxu0 %v12748_v24  ;;  %v12793_v22 = vld [vmem:[#allocation2 + $0x9d4] ss:$24 sps:$4 sm:$0xff]   ;;  %v12791_v24 = vld [vmem:[#allocation2 + $0x9d0] ss:$24 sps:$4 sm:$0xff]  }
 0x221   : > { %2330 = vmatpush1.bf16.msra.mxu1 %v12743_v25  ;;  %2436 = vmatpush1.bf16.msra.mxu0 %v12746_v27  ;;  %v12796_v25 = vld [vmem:[#allocation2 + $0xcc] ss:$24 sps:$4 sm:$0xff]   ;;  %v12794_v27 = vld [vmem:[#allocation2 + $0xc8] ss:$24 sps:$4 sm:$0xff]  }
 0x222   : > { %2331 = vmatprep.subr.bf16.mxu1 %v12751_v29  ;;  %2437 = vmatprep.subr.bf16.mxu0 %v12754_v61  ;;  %v12799_v29 = vld [vmem:[#allocation2 + $0xa04] ss:$24 sps:$4 sm:$0xff]   ;;  %v12797_v61 = vld [vmem:[#allocation2 + $0xa00] ss:$24 sps:$4 sm:$0xff]  }
 0x225   : > { %2332 = vmatpush1.bf16.msra.mxu1 %v12749_v31  ;;  %2438 = vmatpush1.bf16.msra.mxu0 %v12752_v33  ;;  %v12802_v31 = vld [vmem:[#allocation2 + $0xfc] ss:$24 sps:$4 sm:$0xff]   ;;  %v12800_v33 = vld [vmem:[#allocation2 + $0xf8] ss:$24 sps:$4 sm:$0xff]  }
 0x226   : > { %2333 = vmatprep.subr.bf16.mxu1 %v12757_v37  ;;  %2439 = vmatprep.subr.bf16.mxu0 %v12760_v58  ;;  %v12805_v37 = vld [vmem:[#allocation2 + $0xa34] ss:$24 sps:$4 sm:$0xff]  }
 0x227   : > { %v12808_v58 = vld [vmem:[#allocation2 + $0x12c] ss:$24 sps:$4 sm:$0xff]  }
 0x229   : > { %2334 = vmatpush1.bf16.msra.mxu1 %v12755_v38  ;;  %2440 = vmatpush1.bf16.msra.mxu0 %v12758_v40  ;;  %v12806_v38 = vld [vmem:[#allocation2 + $0x128] ss:$24 sps:$4 sm:$0xff]   ;;  %v12811_v40 = vld [vmem:[#allocation2 + $0xa64] ss:$24 sps:$4 sm:$0xff]  }
 0x22a   : > { %2335 = vmatprep.subr.bf16.mxu1 %v12763_v41  ;;  %2441 = vmatprep.subr.bf16.mxu0 %v12766_v43  ;;  %v12809_v41 = vld [vmem:[#allocation2 + $0xa60] ss:$24 sps:$4 sm:$0xff]   ;;  %v12814_v43 = vld [vmem:[#allocation2 + $0x15c] ss:$24 sps:$4 sm:$0xff]  }
 0x22d   : > { %2336 = vmatpush1.bf16.msra.mxu1 %v12761_v18  ;;  %2442 = vmatpush1.bf16.msra.mxu0 %v12764_v26  ;;  %v12817_v18 = vld [vmem:[#allocation2 + $0xa94] ss:$24 sps:$4 sm:$0xff]   ;;  %v12815_v26 = vld [vmem:[#allocation2 + $0xa90] ss:$24 sps:$4 sm:$0xff]  }
 0x22e   : > { %2480 = vmatprep.subr.bf16.mxu1 %v12769_v47  ;;  %3412 = vmatprep.subr.bf16.mxu0 %v12772_v28  ;;  %v12818_v47 = vld [vmem:[#allocation2 + $0x188] ss:$24 sps:$4 sm:$0xff]   ;;  %v12823_v28 = vld [vmem:[#allocation2 + $0xac4] ss:$24 sps:$4 sm:$0xff]  }
 0x230   : > { %2354 = vmatmul.mubr.bf16.vlgmr.msra.gmra.mrb[16].mxu1 %v15019_v35  ;;  %2460 = vmatmul.mubr.bf16.vlgmr.msra.gmra.mrb[32].mxu0 %v15019_v35 }
 0x231   : > { %2481 = vmatpush1.bf16.msra.mxu1 %v12767_v53  ;;  %3413 = vmatpush1.bf16.msra.mxu0 %v12770_v56  ;;  %v12829_v53 = vld [vmem:[#allocation2 + $0xaf4] ss:$24 sps:$4 sm:$0xff]  }
 0x232   : > { %2482 = vmatprep.subr.bf16.mxu1 %v12775_v57  ;;  %3414 = vmatprep.subr.bf16.mxu0 %v12778_v59  ;;  %v12832_v56 = vld [vmem:[#allocation2 + $0x1ec] ss:$24 sps:$4 sm:$0xff]   ;;  %v12827_v57 = vld [vmem:[#allocation2 + $0xaf0] ss:$24 sps:$4 sm:$0xff]  }
 0x233   : > { %2363 = vmatprep.mubr.bf16.mxu1 %v17547_v52  ;;  %2469 = vmatprep.mubr.bf16.mxu0 %v17547_v52  ;;  %v12830_v59 = vld [vmem:[#allocation2 + $0x1e8] ss:$24 sps:$4 sm:$0xff]  }
 0x235   : > { %2483 = vmatpush1.bf16.msra.mxu1 %v12773_v63  ;;  %3415 = vmatpush1.bf16.msra.mxu0 %v12776_v42  ;;  %v12835_v63 = vld [vmem:[#allocation2 + $0xb24] ss:$24 sps:$4 sm:$0xff]  }
 0x236   : > { %2484 = vmatprep.subr.bf16.mxu1 %v12781_v3  ;;  %3416 = vmatprep.subr.bf16.mxu0 %v12784_v4  ;;  %v12838_v42 = vld [vmem:[#allocation2 + $0x21c] ss:$24 sps:$4 sm:$0xff]   ;;  %v12833_v3 = vld [vmem:[#allocation2 + $0xb20] ss:$24 sps:$4 sm:$0xff]  }
 0x237   : > { %v12836_v4 = vld [vmem:[#allocation2 + $0x218] ss:$24 sps:$4 sm:$0xff]  }
 0x238   : > { %2364 = vmatmul.mubr.bf16.gmra.mrb[20].mxu1 %v15026_v8  ;;  %2470 = vmatmul.mubr.bf16.gmra.mrb[36].mxu0 %v15026_v8 }
 0x239   : > { %2485 = vmatpush1.bf16.msra.mxu1 %v12779_v5  ;;  %2512 = vmatprep.mubr.bf16.mxu1 %v14991_v45  ;;  %v12803_v45 = vld [vmem:[#allocation2 + $0xa30] ss:$24 sps:$4 sm:$0xff]   ;;  %v12841_v5 = vld [vmem:[#allocation2 + $0xb54] ss:$24 sps:$4 sm:$0xff]  }
 0x23a   : > { %3417 = vmatpush1.bf16.msra.mxu0 %v12782_v7  ;;  %3444 = vmatprep.mubr.bf16.mxu0 %v14957_v9  ;;  %v12839_v7 = vld [vmem:[#allocation2 + $0xb50] ss:$24 sps:$4 sm:$0xff]  }
 0x23b   : > { %2486 = vmatprep.subr.bf16.mxu1 %v12787_v15  ;;  %3418 = vmatprep.subr.bf16.mxu0 %v12790_v20  ;;  %v12847_v15 = vld [vmem:[#allocation2 + $0xb84] ss:$24 sps:$4 sm:$0xff]  }
 0x23c   : > { %v12850_v20 = vld [vmem:[#allocation2 + $0x27c] ss:$24 sps:$4 sm:$0xff]  }
 0x23d   : > { %2487 = vmatpush1.bf16.msra.mxu1 %v12785_v10  ;;  %v12842_v10 = vld [vmem:[#allocation2 + $0x248] ss:$24 sps:$4 sm:$0xff]  }
 0x23e   : > { %3419 = vmatpush1.bf16.msra.mxu0 %v12788_v21  ;;  %2488 = vmatprep.subr.bf16.mxu1 %v12793_v22  ;;  %v12845_v21 = vld [vmem:[#allocation2 + $0xb80] ss:$24 sps:$4 sm:$0xff]  }
 0x23f   : > { %3420 = vmatprep.subr.bf16.mxu0 %v12796_v25  ;;  %v12848_v22 = vld [vmem:[#allocation2 + $0x278] ss:$24 sps:$4 sm:$0xff]   ;;  %v12856_v25 = vld [vmem:[#allocation2 + $0x2ac] ss:$24 sps:$4 sm:$0xff]  }
 0x241   : > { %2489 = vmatpush1.bf16.msra.mxu1 %v12791_v24  ;;  %v12853_v24 = vld [vmem:[#allocation2 + $0xbb4] ss:$24 sps:$4 sm:$0xff]  }
 0x242   : > { %3421 = vmatpush1.bf16.msra.mxu0 %v12794_v27  ;;  %2490 = vmatprep.subr.bf16.mxu1 %v12799_v29  ;;  %v12851_v27 = vld [vmem:[#allocation2 + $0xbb0] ss:$24 sps:$4 sm:$0xff]  }
 0x243   : > { %3422 = vmatprep.subr.bf16.mxu0 %v12802_v31  ;;  %v12854_v29 = vld [vmem:[#allocation2 + $0x2a8] ss:$24 sps:$4 sm:$0xff]   ;;  %v12862_v31 = vld [vmem:[#allocation2 + $0x2dc] ss:$24 sps:$4 sm:$0xff]  }
 0x245   : > { %2491 = vmatpush1.bf16.msra.mxu1 %v12797_v61  ;;  %v12859_v61 = vld [vmem:[#allocation2 + $0xbe4] ss:$24 sps:$4 sm:$0xff]  }
 0x246   : > { %3423 = vmatpush1.bf16.msra.mxu0 %v12800_v33  ;;  %2492 = vmatprep.subr.bf16.mxu1 %v12805_v37  ;;  %v12857_v33 = vld [vmem:[#allocation2 + $0xbe0] ss:$24 sps:$4 sm:$0xff]  }
 0x247   : > { %3424 = vmatprep.subr.bf16.mxu0 %v12808_v58  ;;  %v12860_v37 = vld [vmem:[#allocation2 + $0x2d8] ss:$24 sps:$4 sm:$0xff]   ;;  %v12868_v58 = vld [vmem:[#allocation2 + $0x30c] ss:$24 sps:$4 sm:$0xff]  }
 0x249   : > { %2493 = vmatpush1.bf16.msra.mxu1 %v12803_v45  ;;  %v12865_v45 = vld [vmem:[#allocation2 + $0xc14] ss:$24 sps:$4 sm:$0xff]  }
 0x24a   : > { %3425 = vmatpush1.bf16.msra.mxu0 %v12806_v38  ;;  %2494 = vmatprep.subr.bf16.mxu1 %v12811_v40  ;;  %v12863_v38 = vld [vmem:[#allocation2 + $0xc10] ss:$24 sps:$4 sm:$0xff]  }
 0x24b   : > { %3426 = vmatprep.subr.bf16.mxu0 %v12814_v43  ;;  %v12866_v40 = vld [vmem:[#allocation2 + $0x308] ss:$24 sps:$4 sm:$0xff]   ;;  %v12874_v43 = vld [vmem:[#allocation2 + $0x33c] ss:$24 sps:$4 sm:$0xff]  }
 0x24d   : > { %2495 = vmatpush1.bf16.msra.mxu1 %v12809_v41  ;;  %v12871_v41 = vld [vmem:[#allocation2 + $0xc44] ss:$24 sps:$4 sm:$0xff]  }
 0x24e   : > { %3427 = vmatpush1.bf16.msra.mxu0 %v12812_v44  ;;  %2496 = vmatprep.subr.bf16.mxu1 %v12817_v18  ;;  %v12869_v44 = vld [vmem:[#allocation2 + $0xc40] ss:$24 sps:$4 sm:$0xff]  }
 0x24f   : > { %3428 = vmatprep.subr.bf16.mxu0 %v12820_v23  ;;  %v12872_v18 = vld [vmem:[#allocation2 + $0x338] ss:$24 sps:$4 sm:$0xff]  }
 0x250   : > { %v12875_v23 = vld [vmem:[#allocation2 + $0xc70] ss:$24 sps:$4 sm:$0xff]  }
 0x251   : > { %2497 = vmatpush1.bf16.msra.mxu1 %v12815_v26  ;;  %v12877_v26 = vld [vmem:[#allocation2 + $0xc74] ss:$24 sps:$4 sm:$0xff]  }
 0x252   : > { %3429 = vmatpush1.bf16.msra.mxu0 %v12818_v47  ;;  %2498 = vmatprep.subr.bf16.mxu1 %v12823_v28  ;;  %v12880_v47 = vld [vmem:[#allocation2 + $0x36c] ss:$24 sps:$4 sm:$0xff]   ;;  %v12878_v28 = vld [vmem:[#allocation2 + $0x368] ss:$24 sps:$4 sm:$0xff]  }
 0x253   : > { %3430 = vmatprep.subr.bf16.mxu0 %v12826_v48  ;;  %v12883_v48 = vld [vmem:[#allocation2 + $0xca4] ss:$24 sps:$4 sm:$0xff]  }
 0x255   : > { %2499 = vmatpush1.bf16.msra.mxu1 %v12821_v50  ;;  %v12886_v50 = vld [vmem:[#allocation2 + $0x39c] ss:$24 sps:$4 sm:$0xff]  }
 0x256   : > { %3431 = vmatpush1.bf16.msra.mxu0 %v12824_v51  ;;  %2500 = vmatprep.subr.bf16.mxu1 %v12829_v53  ;;  %v12884_v51 = vld [vmem:[#allocation2 + $0x398] ss:$24 sps:$4 sm:$0xff]   ;;  %v12889_v53 = vld [vmem:[#allocation2 + $0xcd4] ss:$24 sps:$4 sm:$0xff]  }
 0x257   : > { %3432 = vmatprep.subr.bf16.mxu0 %v12832_v56  ;;  %v12892_v56 = vld [vmem:[#allocation2 + $0x3cc] ss:$24 sps:$4 sm:$0xff]  }
 0x259   : > { %2501 = vmatpush1.bf16.msra.mxu1 %v12827_v57  ;;  %v12887_v57 = vld [vmem:[#allocation2 + $0xcd0] ss:$24 sps:$4 sm:$0xff]  }
 0x25a   : > { %3433 = vmatpush1.bf16.msra.mxu0 %v12830_v59  ;;  %2502 = vmatprep.subr.bf16.mxu1 %v12835_v63  ;;  %v12890_v59 = vld [vmem:[#allocation2 + $0x3c8] ss:$24 sps:$4 sm:$0xff]   ;;  %v12895_v63 = vld [vmem:[#allocation2 + $0xd04] ss:$24 sps:$4 sm:$0xff]  }
 0x25b   : > { %3434 = vmatprep.subr.bf16.mxu0 %v12838_v42  ;;  %v12893_v42 = vld [vmem:[#allocation2 + $0xd00] ss:$24 sps:$4 sm:$0xff]  }
 0x25d   : > { %2503 = vmatpush1.bf16.msra.mxu1 %v12833_v3  ;;  %v12898_v3 = vld [vmem:[#allocation2 + $0x3fc] ss:$24 sps:$4 sm:$0xff]  }
 0x25e   : > { %3435 = vmatpush1.bf16.msra.mxu0 %v12836_v4  ;;  %2504 = vmatprep.subr.bf16.mxu1 %v12841_v5  ;;  %v12896_v4 = vld [vmem:[#allocation2 + $0x3f8] ss:$24 sps:$4 sm:$0xff]   ;;  %v12901_v5 = vld [vmem:[#allocation2 + $0xd34] ss:$24 sps:$4 sm:$0xff]  }
 0x25f   : > { %3436 = vmatprep.subr.bf16.mxu0 %v12844_v6  ;;  %v12899_v6 = vld [vmem:[#allocation2 + $0xd30] ss:$24 sps:$4 sm:$0xff]  }
 0x261   : > { %2505 = vmatpush1.bf16.msra.mxu1 %v12839_v7  ;;  %v12904_v7 = vld [vmem:[#allocation2 + $0x42c] ss:$24 sps:$4 sm:$0xff]  }
 0x262   : > { %3437 = vmatpush1.bf16.msra.mxu0 %v12842_v10  ;;  %2506 = vmatprep.subr.bf16.mxu1 %v12847_v15  ;;  %v12902_v10 = vld [vmem:[#allocation2 + $0x428] ss:$24 sps:$4 sm:$0xff]   ;;  %v12907_v15 = vld [vmem:[#allocation2 + $0xd64] ss:$24 sps:$4 sm:$0xff]  }
 0x263   : > { %3438 = vmatprep.subr.bf16.mxu0 %v12850_v20  ;;  %v12905_v20 = vld [vmem:[#allocation2 + $0xd60] ss:$24 sps:$4 sm:$0xff]  }
 0x265   : > { %2507 = vmatpush1.bf16.msra.mxu1 %v12845_v21  ;;  %v12910_v21 = vld [vmem:[#allocation2 + $0x45c] ss:$24 sps:$4 sm:$0xff]  }
 0x266   : > { %3439 = vmatpush1.bf16.msra.mxu0 %v12848_v22  ;;  %2508 = vmatprep.subr.bf16.mxu1 %v12853_v24  ;;  %v12908_v22 = vld [vmem:[#allocation2 + $0x458] ss:$24 sps:$4 sm:$0xff]   ;;  %v12913_v24 = vld [vmem:[#allocation2 + $0x4] ss:$24 sps:$4 sm:$0xff]  }
 0x267   : > { %3440 = vmatprep.subr.bf16.mxu0 %v12856_v25  ;;  %v12911_v25 = vld [vmem:[#allocation2] ss:$24 sps:$4 sm:$0xff]  }
 0x269   : > { %2509 = vmatpush1.bf16.msra.mxu1 %v12851_v27  ;;  %v12916_v27 = vld [vmem:[#allocation2 + $0x120c] ss:$24 sps:$4 sm:$0xff]  }
 0x26a   : > { %3441 = vmatpush1.bf16.msra.mxu0 %v12854_v29  ;;  %2510 = vmatprep.subr.bf16.mxu1 %v12859_v61  ;;  %v12914_v29 = vld [vmem:[#allocation2 + $0x1208] ss:$24 sps:$4 sm:$0xff]   ;;  %v12919_v61 = vld [vmem:[#allocation2 + $0x34] ss:$24 sps:$4 sm:$0xff]  }
 0x26b   : > { %3442 = vmatprep.subr.bf16.mxu0 %v12862_v31  ;;  %v12917_v31 = vld [vmem:[#allocation2 + $0x30] ss:$24 sps:$4 sm:$0xff]  }
 0x26d   : > { %2511 = vmatpush1.bf16.msra.mxu1 %v12857_v33  ;;  %v12922_v33 = vld [vmem:[#allocation2 + $0x123c] ss:$24 sps:$4 sm:$0xff]  }
 0x26e   : > { %3443 = vmatpush1.bf16.msra.mxu0 %v12860_v37  ;;  %2533 = vmatprep.subr.bf16.mxu1 %v12865_v45  ;;  %v12920_v37 = vld [vmem:[#allocation2 + $0x1238] ss:$24 sps:$4 sm:$0xff]   ;;  %v12925_v45 = vld [vmem:[#allocation2 + $0x64] ss:$24 sps:$4 sm:$0xff]  }
 0x26f   : > { %3465 = vmatprep.subr.bf16.mxu0 %v12868_v58  ;;  %v12923_v58 = vld [vmem:[#allocation2 + $0x60] ss:$24 sps:$4 sm:$0xff]  }
 0x270   : > { %2513 = vmatmul.mubr.bf16.vlgmr.msra.gmra.mrb[24].mxu1 %v14999_v1  ;;  %v12881_v1 = vld [vmem:[#allocation2 + $0xca0] ss:$24 sps:$4 sm:$0xff]  }
 0x271   : > { %3445 = vmatmul.mubr.bf16.vlgmr.msra.gmra.mrb[32].mxu0 %v14923_v2  ;;  %2522 = vmatprep.mubr.bf16.mxu1 %v14993_v0 }
 0x272   : > { %2534 = vmatpush1.bf16.msra.mxu1 %v12863_v38  ;;  %3454 = vmatprep.mubr.bf16.mxu0 %v14965_v14  ;;  %v12928_v38 = vld [vmem:[#allocation2 + $0x126c] ss:$24 sps:$4 sm:$0xff]  }
 0x273   : > { %3466 = vmatpush1.bf16.msra.mxu0 %v12866_v40  ;;  %2535 = vmatprep.subr.bf16.mxu1 %v12871_v41  ;;  %v12926_v40 = vld [vmem:[#allocation2 + $0x1268] ss:$24 sps:$4 sm:$0xff]  }
 0x274   : > { %3467 = vmatprep.subr.bf16.mxu0 %v12874_v43  ;;  %v12929_v41 = vld [vmem:[#allocation2 + $0x90] ss:$24 sps:$4 sm:$0xff]   ;;  %v12931_v43 = vld [vmem:[#allocation2 + $0x94] ss:$24 sps:$4 sm:$0xff]  }
 0x276   : > { %2536 = vmatpush1.bf16.msra.mxu1 %v12869_v44  ;;  %v12934_v44 = vld [vmem:[#allocation2 + $0x129c] ss:$24 sps:$4 sm:$0xff]  }
 0x277   : > { %3468 = vmatpush1.bf16.msra.mxu0 %v12872_v18  ;;  %2537 = vmatprep.subr.bf16.mxu1 %v12877_v26  ;;  %v12932_v18 = vld [vmem:[#allocation2 + $0x1298] ss:$24 sps:$4 sm:$0xff]   ;;  %v12937_v26 = vld [vmem:[#allocation2 + $0xc4] ss:$24 sps:$4 sm:$0xff]  }
 0x278   : > { %2523 = vmatmul.mubr.bf16.gmra.mrb[28].mxu1 %v15006_v17  ;;  %3469 = vmatprep.subr.bf16.mxu0 %v12880_v47  ;;  %v12935_v47 = vld [vmem:[#allocation2 + $0xc0] ss:$24 sps:$4 sm:$0xff]  }
 0x279   : > { %3455 = vmatmul.mubr.bf16.gmra.mrb[36].mxu0 %v14925_v11  ;;  %2565 = vmatprep.mubr.bf16.mxu1 %v17547_v52 }
 0x27a   : > { %2538 = vmatpush1.bf16.msra.mxu1 %v12875_v23  ;;  %3497 = vmatprep.mubr.bf16.mxu0 %v17547_v52 }
 0x27b   : > { %3470 = vmatpush1.bf16.msra.mxu0 %v12878_v28  ;;  %2539 = vmatprep.subr.bf16.mxu1 %v12883_v48  ;;  %v12940_v28 = vld [vmem:[#allocation2 + $0x12cc] ss:$24 sps:$4 sm:$0xff]   ;;  %v12938_v48 = vld [vmem:[#allocation2 + $0x12c8] ss:$24 sps:$4 sm:$0xff]  }
 0x27c   : > { %3471 = vmatprep.subr.bf16.mxu0 %v12886_v50  ;;  %v12943_v50 = vld [vmem:[#allocation2 + $0xf4] ss:$24 sps:$4 sm:$0xff]  }
 0x27e   : > { %2540 = vmatpush1.bf16.msra.mxu1 %v12881_v1  ;;  %v12941_v1 = vld [vmem:[#allocation2 + $0xf0] ss:$24 sps:$4 sm:$0xff]  }
 0x27f   : > { %3472 = vmatpush1.bf16.msra.mxu0 %v12884_v51  ;;  %2541 = vmatprep.subr.bf16.mxu1 %v12889_v53  ;;  %v12946_v51 = vld [vmem:[#allocation2 + $0x12fc] ss:$24 sps:$4 sm:$0xff]   ;;  %v12944_v53 = vld [vmem:[#allocation2 + $0x12f8] ss:$24 sps:$4 sm:$0xff]  }
 0x280   : > { %3473 = vmatprep.subr.bf16.mxu0 %v12892_v56  ;;  %v12949_v56 = vld [vmem:[#allocation2 + $0x124] ss:$24 sps:$4 sm:$0xff]  }
 0x282   : > { %2542 = vmatpush1.bf16.msra.mxu1 %v12887_v57  ;;  %v12952_v57 = vld [vmem:[#allocation2 + $0x132c] ss:$24 sps:$4 sm:$0xff]  }
 0x283   : > { %3474 = vmatpush1.bf16.msra.mxu0 %v12890_v59  ;;  %2543 = vmatprep.subr.bf16.mxu1 %v12895_v63  ;;  %v12950_v59 = vld [vmem:[#allocation2 + $0x1328] ss:$24 sps:$4 sm:$0xff]   ;;  %v12955_v63 = vld [vmem:[#allocation2 + $0x154] ss:$24 sps:$4 sm:$0xff]  }
 0x284   : > { %3475 = vmatprep.subr.bf16.mxu0 %v12898_v3  ;;  %v12958_v3 = vld [vmem:[#allocation2 + $0x135c] ss:$24 sps:$4 sm:$0xff]  }
 0x286   : > { %2544 = vmatpush1.bf16.msra.mxu1 %v12893_v42  ;;  %v12953_v42 = vld [vmem:[#allocation2 + $0x150] ss:$24 sps:$4 sm:$0xff]  }
 0x287   : > { %3476 = vmatpush1.bf16.msra.mxu0 %v12896_v4  ;;  %2545 = vmatprep.subr.bf16.mxu1 %v12901_v5  ;;  %v12956_v4 = vld [vmem:[#allocation2 + $0x1358] ss:$24 sps:$4 sm:$0xff]   ;;  %v12961_v5 = vld [vmem:[#allocation2 + $0x184] ss:$24 sps:$4 sm:$0xff]  }
 0x288   : > { %3477 = vmatprep.subr.bf16.mxu0 %v12904_v7  ;;  %v12964_v7 = vld [vmem:[#allocation2 + $0x138c] ss:$24 sps:$4 sm:$0xff]  }
 0x28a   : > { %2546 = vmatpush1.bf16.msra.mxu1 %v12899_v6  ;;  %v12959_v6 = vld [vmem:[#allocation2 + $0x180] ss:$24 sps:$4 sm:$0xff]  }
 0x28b   : > { %3478 = vmatpush1.bf16.msra.mxu0 %v12902_v10  ;;  %2547 = vmatprep.subr.bf16.mxu1 %v12907_v15  ;;  %v12962_v10 = vld [vmem:[#allocation2 + $0x1388] ss:$24 sps:$4 sm:$0xff]   ;;  %v12967_v15 = vld [vmem:[#allocation2 + $0x1b4] ss:$24 sps:$4 sm:$0xff]  }
 0x28c   : > { %3479 = vmatprep.subr.bf16.mxu0 %v12910_v21  ;;  %v12965_v21 = vld [vmem:[#allocation2 + $0x1b0] ss:$24 sps:$4 sm:$0xff]  }
 0x28e   : > { %2548 = vmatpush1.bf16.msra.mxu1 %v12905_v20  ;;  %v12970_v20 = vld [vmem:[#allocation2 + $0x13bc] ss:$24 sps:$4 sm:$0xff]  }
 0x28f   : > { %3480 = vmatpush1.bf16.msra.mxu0 %v12908_v22  ;;  %3306 = vmatprep.subr.bf16.mxu1 %v12913_v24  ;;  %v12968_v22 = vld [vmem:[#allocation2 + $0x13b8] ss:$24 sps:$4 sm:$0xff]   ;;  %v12973_v24 = vld [vmem:[#allocation2 + $0x1e4] ss:$24 sps:$4 sm:$0xff]  }
 0x290   : > { %4617 = vmatprep.subr.bf16.mxu0 %v12916_v27  ;;  %v12976_v27 = vld [vmem:[#allocation2 + $0x13ec] ss:$24 sps:$4 sm:$0xff]  }
 0x291   : > { %2566 = vmatmul.mubr.bf16.vlgmr.msra.gmra.mrb[24].mxu1 %v15019_v35  ;;  %v15045_v35 = vrot.slane %v14965_v14, 1 }
 0x292   : > { %3498 = vmatmul.mubr.bf16.vlgmr.msra.gmra.mrb[32].mxu0 %v14960_v55  ;;  %3307 = vmatpush1.bf16.msra.mxu1 %v12911_v25  ;;  %v12971_v25 = vld [vmem:[#allocation2 + $0x1e0] ss:$24 sps:$4 sm:$0xff]  }
 0x293   : > { %4618 = vmatpush1.bf16.msra.mxu0 %v12914_v29  ;;  %3308 = vmatprep.subr.bf16.mxu1 %v12919_v61  ;;  %v15054_v23 = vsel %vm3775_vm6, %v3779_v32, %v15045_v35  ;;  %v12947_v32 = vld [vmem:[#allocation2 + $0x120] ss:$24 sps:$4 sm:$0xff]   ;;  %v12979_v61 = vld [vmem:[#allocation2 + $0x214] ss:$24 sps:$4 sm:$0xff]  }
 0x294   : > { %4619 = vmatprep.subr.bf16.mxu0 %v12922_v33  ;;  %2575 = vmatprep.mubr.bf16.mxu1 %v17547_v52  ;;  %v12974_v29 = vld [vmem:[#allocation2 + $0x13e8] ss:$24 sps:$4 sm:$0xff]  }
 0x295   : > { %3507 = vmatprep.mubr.bf16.mxu0 %v17547_v52  ;;  %v12977_v33 = vld [vmem:[#allocation2 + $0x210] ss:$24 sps:$4 sm:$0xff]  }
 0x296   : > { %3309 = vmatpush1.bf16.msra.mxu1 %v12917_v31  ;;  %v12982_v31 = vld [vmem:[#allocation2 + $0x141c] ss:$24 sps:$4 sm:$0xff]  }
 0x297   : > { %4620 = vmatpush1.bf16.msra.mxu0 %v12920_v37  ;;  %3310 = vmatprep.subr.bf16.mxu1 %v12925_v45  ;;  %v12980_v37 = vld [vmem:[#allocation2 + $0x1418] ss:$24 sps:$4 sm:$0xff]   ;;  %v12985_v45 = vld [vmem:[#allocation2 + $0x244] ss:$24 sps:$4 sm:$0xff]  }
 0x298   : > { %4621 = vmatprep.subr.bf16.mxu0 %v12928_v38  ;;  %v12988_v38 = vld [vmem:[#allocation2 + $0x144c] ss:$24 sps:$4 sm:$0xff]  }
 0x299   : > { %2576 = vmatmul.mubr.bf16.gmra.mrb[28].mxu1 %v15026_v8 }
 0x29a   : > { %3508 = vmatmul.mubr.bf16.gmra.mrb[36].mxu0 %v14967_v46  ;;  %3311 = vmatpush1.bf16.msra.mxu1 %v12923_v58  ;;  %v12983_v58 = vld [vmem:[#allocation2 + $0x240] ss:$24 sps:$4 sm:$0xff]  }
 0x29b   : > { %3338 = vmatprep.mubr.bf16.mxu1 %v14957_v9  ;;  %4622 = vmatpush1.bf16.msra.mxu0 %v12926_v40  ;;  %v12986_v40 = vld [vmem:[#allocation2 + $0x1448] ss:$24 sps:$4 sm:$0xff]  }
 0x29c   : > { %4649 = vmatprep.mubr.bf16.mxu0 %v15054_v23  ;;  %3312 = vmatprep.subr.bf16.mxu1 %v12931_v43  ;;  %v12989_v43 = vld [vmem:[#allocation2 + $0x270] ss:$24 sps:$4 sm:$0xff]  }
 0x29d   : > { %4623 = vmatprep.subr.bf16.mxu0 %v12934_v44  ;;  %v12994_v44 = vld [vmem:[#allocation2 + $0x147c] ss:$24 sps:$4 sm:$0xff]  }
 0x29e   : > { %3313 = vmatpush1.bf16.msra.mxu1 %v12929_v41  ;;  %v12991_v41 = vld [vmem:[#allocation2 + $0x274] ss:$24 sps:$4 sm:$0xff]  }
 0x29f   : > { %4624 = vmatpush1.bf16.msra.mxu0 %v12932_v18  ;;  %3314 = vmatprep.subr.bf16.mxu1 %v12937_v26  ;;  %v12992_v18 = vld [vmem:[#allocation2 + $0x1478] ss:$24 sps:$4 sm:$0xff]   ;;  %v12997_v26 = vld [vmem:[#allocation2 + $0x2a4] ss:$24 sps:$4 sm:$0xff]  }
 0x2a0   : > { %4625 = vmatprep.subr.bf16.mxu0 %v12940_v28  ;;  %v13000_v28 = vld [vmem:[#allocation2 + $0x14ac] ss:$24 sps:$4 sm:$0xff]  }
 0x2a2   : > { %3315 = vmatpush1.bf16.msra.mxu1 %v12935_v47  ;;  %v12995_v47 = vld [vmem:[#allocation2 + $0x2a0] ss:$24 sps:$4 sm:$0xff]  }
 0x2a3   : > { %4626 = vmatpush1.bf16.msra.mxu0 %v12938_v48  ;;  %3316 = vmatprep.subr.bf16.mxu1 %v12943_v50  ;;  %v12998_v48 = vld [vmem:[#allocation2 + $0x14a8] ss:$24 sps:$4 sm:$0xff]   ;;  %v13003_v50 = vld [vmem:[#allocation2 + $0x2d4] ss:$24 sps:$4 sm:$0xff]  }
 0x2a4   : > { %4627 = vmatprep.subr.bf16.mxu0 %v12946_v51  ;;  %v13006_v51 = vld [vmem:[#allocation2 + $0x14dc] ss:$24 sps:$4 sm:$0xff]  }
 0x2a6   : > { %3317 = vmatpush1.bf16.msra.mxu1 %v12941_v1  ;;  %v13001_v1 = vld [vmem:[#allocation2 + $0x2d0] ss:$24 sps:$4 sm:$0xff]  }
 0x2a7   : > { %4628 = vmatpush1.bf16.msra.mxu0 %v12944_v53  ;;  %3318 = vmatprep.subr.bf16.mxu1 %v12949_v56  ;;  %v13004_v53 = vld [vmem:[#allocation2 + $0x14d8] ss:$24 sps:$4 sm:$0xff]   ;;  %v13009_v56 = vld [vmem:[#allocation2 + $0x304] ss:$24 sps:$4 sm:$0xff]  }
 0x2a8   : > { %4629 = vmatprep.subr.bf16.mxu0 %v12952_v57  ;;  %v13007_v57 = vld [vmem:[#allocation2 + $0x300] ss:$24 sps:$4 sm:$0xff]  }
 0x2aa   : > { %3319 = vmatpush1.bf16.msra.mxu1 %v12947_v32  ;;  %v13012_v32 = vld [vmem:[#allocation2 + $0x150c] ss:$24 sps:$4 sm:$0xff]  }
 0x2ab   : > { %4630 = vmatpush1.bf16.msra.mxu0 %v12950_v59  ;;  %3320 = vmatprep.subr.bf16.mxu1 %v12955_v63  ;;  %v15058_v59 = vrot.slane %v14925_v11, 1  ;;  %v13010_v63 = vld [vmem:[#allocation2 + $0x1508] ss:$24 sps:$4 sm:$0xff]  }
 0x2ac   : > { %4631 = vmatprep.subr.bf16.mxu0 %v12958_v3  ;;  %v13018_v3 = vld [vmem:[#allocation2 + $0x153c] ss:$24 sps:$4 sm:$0xff]  }
 0x2ae   : > { %3321 = vmatpush1.bf16.msra.mxu1 %v12953_v42  ;;  %v13015_v42 = vld [vmem:[#allocation2 + $0x334] ss:$24 sps:$4 sm:$0xff]  }
 0x2af   : > { %4632 = vmatpush1.bf16.msra.mxu0 %v12956_v4  ;;  %3322 = vmatprep.subr.bf16.mxu1 %v12961_v5  ;;  %v15065_v4 = vsel %vm3775_vm6, %v3776_v12, %v15058_v59  ;;  %v13013_v5 = vld [vmem:[#allocation2 + $0x330] ss:$24 sps:$4 sm:$0xff]   ;;  %v13030_v12 = vld [vmem:[#allocation2 + $0x159c] ss:$24 sps:$4 sm:$0xff]  }
 0x2b0   : > { %4633 = vmatprep.subr.bf16.mxu0 %v12964_v7  ;;  %v13021_v7 = vld [vmem:[#allocation2 + $0x364] ss:$24 sps:$4 sm:$0xff]  }
 0x2b2   : > { %3323 = vmatpush1.bf16.msra.mxu1 %v12959_v6  ;;  %v13016_v6 = vld [vmem:[#allocation2 + $0x1538] ss:$24 sps:$4 sm:$0xff]  }
 0x2b3   : > { %4634 = vmatpush1.bf16.msra.mxu0 %v12962_v10  ;;  %3324 = vmatprep.subr.bf16.mxu1 %v12967_v15  ;;  %v13019_v10 = vld [vmem:[#allocation2 + $0x360] ss:$24 sps:$4 sm:$0xff]   ;;  %v13024_v15 = vld [vmem:[#allocation2 + $0x156c] ss:$24 sps:$4 sm:$0xff]  }
 0x2b4   : > { %4635 = vmatprep.subr.bf16.mxu0 %v12970_v20  ;;  %v13022_v20 = vld [vmem:[#allocation2 + $0x1568] ss:$24 sps:$4 sm:$0xff]  }
 0x2b6   : > { %3325 = vmatpush1.bf16.msra.mxu1 %v12965_v21  ;;  %v13027_v21 = vld [vmem:[#allocation2 + $0x394] ss:$24 sps:$4 sm:$0xff]  }
 0x2b7   : > { %4636 = vmatpush1.bf16.msra.mxu0 %v12968_v22  ;;  %3326 = vmatprep.subr.bf16.mxu1 %v12973_v24  ;;  %v13025_v22 = vld [vmem:[#allocation2 + $0x390] ss:$24 sps:$4 sm:$0xff]  }
 0x2b8   : > { %4637 = vmatprep.subr.bf16.mxu0 %v12976_v27  ;;  %v13028_v24 = vld [vmem:[#allocation2 + $0x1598] ss:$24 sps:$4 sm:$0xff]  }
 0x2b9   : > { %v13031_v27 = vld [vmem:[#allocation2 + $0x3c0] ss:$24 sps:$4 sm:$0xff]  }
 0x2ba   : > { %3327 = vmatpush1.bf16.msra.mxu1 %v12971_v25  ;;  %v13033_v25 = vld [vmem:[#allocation2 + $0x3c4] ss:$24 sps:$4 sm:$0xff]  }
 0x2bb   : > { %4638 = vmatpush1.bf16.msra.mxu0 %v12974_v29  ;;  %3328 = vmatprep.subr.bf16.mxu1 %v12979_v61  ;;  %v13036_v29 = vld [vmem:[#allocation2 + $0x15cc] ss:$24 sps:$4 sm:$0xff]   ;;  %v13034_v61 = vld [vmem:[#allocation2 + $0x15c8] ss:$24 sps:$4 sm:$0xff]  }
 0x2bc   : > { %4639 = vmatprep.subr.bf16.mxu0 %v12982_v31  ;;  %v13039_v31 = vld [vmem:[#allocation2 + $0x3f4] ss:$24 sps:$4 sm:$0xff]  }
 0x2be   : > { %3329 = vmatpush1.bf16.msra.mxu1 %v12977_v33  ;;  %v13037_v33 = vld [vmem:[#allocation2 + $0x3f0] ss:$24 sps:$4 sm:$0xff]  }
 0x2bf   : > { %4640 = vmatpush1.bf16.msra.mxu0 %v12980_v37  ;;  %3330 = vmatprep.subr.bf16.mxu1 %v12985_v45  ;;  %v13042_v37 = vld [vmem:[#allocation2 + $0x15fc] ss:$24 sps:$4 sm:$0xff]   ;;  %v13040_v45 = vld [vmem:[#allocation2 + $0x15f8] ss:$24 sps:$4 sm:$0xff]  }
 0x2c0   : > { %4641 = vmatprep.subr.bf16.mxu0 %v12988_v38  ;;  %v13043_v38 = vld [vmem:[#allocation2 + $0x420] ss:$24 sps:$4 sm:$0xff]  }
 0x2c2   : > { %3331 = vmatpush1.bf16.msra.mxu1 %v12983_v58  ;;  %v13045_v58 = vld [vmem:[#allocation2 + $0x424] ss:$24 sps:$4 sm:$0xff]  }
 0x2c3   : > { %4642 = vmatpush1.bf16.msra.mxu0 %v12986_v40  ;;  %3332 = vmatprep.subr.bf16.mxu1 %v12991_v41  ;;  %v13048_v40 = vld [vmem:[#allocation2 + $0x162c] ss:$24 sps:$4 sm:$0xff]   ;;  %v13046_v41 = vld [vmem:[#allocation2 + $0x1628] ss:$24 sps:$4 sm:$0xff]  }
 0x2c4   : > { %4643 = vmatprep.subr.bf16.mxu0 %v12994_v44  ;;  %v13049_v44 = vld [vmem:[#allocation2 + $0x450] ss:$24 sps:$4 sm:$0xff]  }
 0x2c6   : > { %3333 = vmatpush1.bf16.msra.mxu1 %v12989_v43  ;;  %v13051_v43 = vld [vmem:[#allocation2 + $0x454] ss:$24 sps:$4 sm:$0xff]  }
 0x2c7   : > { %4644 = vmatpush1.bf16.msra.mxu0 %v12992_v18  ;;  %3334 = vmatprep.subr.bf16.mxu1 %v12997_v26  ;;  %v13054_v18 = vld [vmem:[#allocation2 + $0x165c] ss:$24 sps:$4 sm:$0xff]   ;;  %v13052_v26 = vld [vmem:[#allocation2 + $0x1658] ss:$24 sps:$4 sm:$0xff]  }
 0x2c8   : > { %4645 = vmatprep.subr.bf16.mxu0 %v13000_v28  ;;  %v15074_v28 = vld [vmem:[#allocation2 + $0xd8c] ss:$24 sps:$4 sm:$0xff]  }
 0x2ca   : > { %3335 = vmatpush1.bf16.msra.mxu1 %v12995_v47  ;;  %v13057_v47 = vld [vmem:[#allocation2 + $0x14] ss:$24 sps:$4 sm:$0xff]  }
 0x2cb   : > { %4646 = vmatpush1.bf16.msra.mxu0 %v12998_v48  ;;  %3336 = vmatprep.subr.bf16.mxu1 %v13003_v50  ;;  %v15077_v48 = vrot.slane %v14967_v46, 1  ;;  %v13055_v50 = vld [vmem:[#allocation2 + $0x10] ss:$24 sps:$4 sm:$0xff]  }
 0x2cc   : > { %4647 = vmatprep.subr.bf16.mxu0 %v13006_v51  ;;  %v13063_v51 = vld [vmem:[#allocation2 + $0x44] ss:$24 sps:$4 sm:$0xff]  }
 0x2ce   : > { %3337 = vmatpush1.bf16.msra.mxu1 %v13001_v1  ;;  %v15079_v1 = vld [vmem:[#allocation2 + $0xd88] ss:$24 sps:$4 sm:$0xff]  }
 0x2cf   : > { %4648 = vmatpush1.bf16.msra.mxu0 %v13004_v53  ;;  %3359 = vmatprep.subr.bf16.mxu1 %v13009_v56  ;;  %v15082_v53 = vld [vmem:[#allocation2 + $0xdbc] ss:$24 sps:$4 sm:$0xff]   ;;  %v15089_v56 = vsel %vm3775_vm6, %v3782_v49, %v15077_v48  ;;  %v13067_v49 = vld [vmem:[#allocation2 + $0x70] ss:$24 sps:$4 sm:$0xff]   ;;  %vm9795_vm6 = vcmask 523264  }
 0x2d0   : > { %4670 = vmatprep.subr.bf16.mxu0 %v13012_v32  ;;  %v13061_v32 = vld [vmem:[#allocation2 + $0x40] ss:$24 sps:$4 sm:$0xff]  }
 0x2d1   : > { %3339 = vmatmul.mubr.bf16.vlgmr.msra.gmra.mrb[16].mxu1 %v14923_v2 }
 0x2d2   : > { %4650 = vmatmul.mubr.bf16.vlgmr.msra.gmra.mrb[32].mxu0 %v15065_v4  ;;  %3348 = vmatprep.mubr.bf16.mxu1 %v14965_v14 }
 0x2d3   : > { %3360 = vmatpush1.bf16.msra.mxu1 %v13007_v57  ;;  %4659 = vmatprep.mubr.bf16.mxu0 %v15045_v35  ;;  %v15093_v57 = vld [vmem:[#allocation2 + $0xdb8] ss:$24 sps:$4 sm:$0xff]  }
 0x2d4   : > { %4671 = vmatpush1.bf16.msra.mxu0 %v13010_v63  ;;  %3361 = vmatprep.subr.bf16.mxu1 %v13015_v42  ;;  %v13069_v63 = vld [vmem:[#allocation2 + $0x74] ss:$24 sps:$4 sm:$0xff]  }
 0x2d5   : > { %4672 = vmatprep.subr.bf16.mxu0 %v13018_v3  ;;  %v15097_v42 = vld [vmem:[#allocation2 + $0xdec] ss:$24 sps:$4 sm:$0xff]   ;;  %v15101_v3 = vld [vmem:[#allocation2 + $0xde8] ss:$24 sps:$4 sm:$0xff]  }
 0x2d7   : > { %3362 = vmatpush1.bf16.msra.mxu1 %v13013_v5  ;;  %v13075_v5 = vld [vmem:[#allocation2 + $0xa4] ss:$24 sps:$4 sm:$0xff]  }
 0x2d8   : > { %4673 = vmatpush1.bf16.msra.mxu0 %v13016_v6  ;;  %3363 = vmatprep.subr.bf16.mxu1 %v13021_v7  ;;  %v15105_v6 = vld [vmem:[#allocation2 + $0xe1c] ss:$24 sps:$4 sm:$0xff]   ;;  %v13073_v7 = vld [vmem:[#allocation2 + $0xa0] ss:$24 sps:$4 sm:$0xff]  }
 0x2d9   : > { %3349 = vmatmul.mubr.bf16.gmra.mrb[20].mxu1 %v14925_v11  ;;  %4674 = vmatprep.subr.bf16.mxu0 %v13024_v15  ;;  %v13081_v15 = vld [vmem:[#allocation2 + $0xd4] ss:$24 sps:$4 sm:$0xff]  }
 0x2da   : > { %4660 = vmatmul.mubr.bf16.gmra.mrb[36].mxu0 %v15058_v59  ;;  %3391 = vmatprep.mubr.bf16.mxu1 %v17547_v52 }
 0x2db   : > { %3364 = vmatpush1.bf16.msra.mxu1 %v13019_v10  ;;  %4702 = vmatprep.mubr.bf16.mxu0 %v17547_v52  ;;  %v15110_v10 = vld [vmem:[#allocation2 + $0xe18] ss:$24 sps:$4 sm:$0xff]  }
 0x2dc   : > { %4675 = vmatpush1.bf16.msra.mxu0 %v13022_v20  ;;  %3365 = vmatprep.subr.bf16.mxu1 %v13027_v21  ;;  %v15113_v20 = vld [vmem:[#allocation2 + $0xe4c] ss:$24 sps:$4 sm:$0xff]   ;;  %v13079_v21 = vld [vmem:[#allocation2 + $0xd0] ss:$24 sps:$4 sm:$0xff]  }
 0x2dd   : > { %4676 = vmatprep.subr.bf16.mxu0 %v13030_v12  ;;  %v15117_v12 = vld [vmem:[#allocation2 + $0xe48] ss:$24 sps:$4 sm:$0xff]  }
 0x2df   : > { %3366 = vmatpush1.bf16.msra.mxu1 %v13025_v22  ;;  %v15120_v22 = vld [vmem:[#allocation2 + $0xe7c] ss:$24 sps:$4 sm:$0xff]  }
 0x2e0   : > { %4677 = vmatpush1.bf16.msra.mxu0 %v13028_v24  ;;  %3367 = vmatprep.subr.bf16.mxu1 %v13033_v25  ;;  %v13085_v24 = vld [vmem:[#allocation2 + $0x100] ss:$24 sps:$4 sm:$0xff]  }
 0x2e1   : > { %4678 = vmatprep.subr.bf16.mxu0 %v13036_v29  ;;  %v15123_v25 = vld [vmem:[#allocation2 + $0xe78] ss:$24 sps:$4 sm:$0xff]   ;;  %v15126_v29 = vld [vmem:[#allocation2 + $0xeac] ss:$24 sps:$4 sm:$0xff]  }
 0x2e3   : > { %3368 = vmatpush1.bf16.msra.mxu1 %v13031_v27  ;;  %v13093_v27 = vld [vmem:[#allocation2 + $0x134] ss:$24 sps:$4 sm:$0xff]  }
 0x2e4   : > { %4679 = vmatpush1.bf16.msra.mxu0 %v13034_v61  ;;  %3369 = vmatprep.subr.bf16.mxu1 %v13039_v31  ;;  %v13091_v61 = vld [vmem:[#allocation2 + $0x130] ss:$24 sps:$4 sm:$0xff]  }
 0x2e5   : > { %4680 = vmatprep.subr.bf16.mxu0 %v13042_v37  ;;  %v15129_v31 = vld [vmem:[#allocation2 + $0xea8] ss:$24 sps:$4 sm:$0xff]   ;;  %v15132_v37 = vld [vmem:[#allocation2 + $0xedc] ss:$24 sps:$4 sm:$0xff]  }
 0x2e7   : > { %3370 = vmatpush1.bf16.msra.mxu1 %v13037_v33  ;;  %v13099_v33 = vld [vmem:[#allocation2 + $0x164] ss:$24 sps:$4 sm:$0xff]  }
 0x2e8   : > { %4681 = vmatpush1.bf16.msra.mxu0 %v13040_v45  ;;  %3371 = vmatprep.subr.bf16.mxu1 %v13045_v58  ;;  %v13097_v45 = vld [vmem:[#allocation2 + $0x160] ss:$24 sps:$4 sm:$0xff]  }
 0x2e9   : > { %4682 = vmatprep.subr.bf16.mxu0 %v13048_v40  ;;  %v15135_v58 = vld [vmem:[#allocation2 + $0xed8] ss:$24 sps:$4 sm:$0xff]   ;;  %v15138_v40 = vld [vmem:[#allocation2 + $0xf0c] ss:$24 sps:$4 sm:$0xff]  }
 0x2eb   : > { %3372 = vmatpush1.bf16.msra.mxu1 %v13043_v38  ;;  %v13105_v38 = vld [vmem:[#allocation2 + $0x194] ss:$24 sps:$4 sm:$0xff]  }
 0x2ec   : > { %4683 = vmatpush1.bf16.msra.mxu0 %v13046_v41  ;;  %3373 = vmatprep.subr.bf16.mxu1 %v13051_v43  ;;  %v13103_v41 = vld [vmem:[#allocation2 + $0x190] ss:$24 sps:$4 sm:$0xff]  }
 0x2ed   : > { %4684 = vmatprep.subr.bf16.mxu0 %v13054_v18  ;;  %v15141_v43 = vld [vmem:[#allocation2 + $0xf08] ss:$24 sps:$4 sm:$0xff]   ;;  %v15144_v18 = vld [vmem:[#allocation2 + $0xf3c] ss:$24 sps:$4 sm:$0xff]  }
 0x2ef   : > { %3374 = vmatpush1.bf16.msra.mxu1 %v13049_v44  ;;  %v13111_v44 = vld [vmem:[#allocation2 + $0x1c4] ss:$24 sps:$4 sm:$0xff]  }
 0x2f0   : > { %4685 = vmatpush1.bf16.msra.mxu0 %v13052_v26  ;;  %3518 = vmatprep.subr.bf16.mxu1 %v13057_v47  ;;  %v13109_v26 = vld [vmem:[#allocation2 + $0x1c0] ss:$24 sps:$4 sm:$0xff]  }
 0x2f1   : > { %5949 = vmatprep.subr.bf16.mxu0 %v15074_v28  ;;  %v15147_v47 = vld [vmem:[#allocation2 + $0xf38] ss:$24 sps:$4 sm:$0xff]  }
 0x2f2   : > { %3392 = vmatmul.mubr.bf16.vlgmr.msra.gmra.mrb[16].mxu1 %v14960_v55 }
 0x2f3   : > { %4703 = vmatmul.mubr.bf16.vlgmr.msra.gmra.mrb[32].mxu0 %v15089_v56  ;;  %3519 = vmatpush1.bf16.msra.mxu1 %v13055_v50  ;;  %v13117_v50 = vld [vmem:[#allocation2 + $0x1f4] ss:$24 sps:$4 sm:$0xff]  }
 0x2f4   : > { %5950 = vmatpush1.bf16.msra.mxu0 %v15079_v1  ;;  %3520 = vmatprep.subr.bf16.mxu1 %v13063_v51  ;;  %v15150_v51 = vld [vmem:[#allocation2 + $0xf6c] ss:$24 sps:$4 sm:$0xff]  }
 0x2f5   : > { %5951 = vmatprep.subr.bf16.mxu0 %v15082_v53  ;;  %3401 = vmatprep.mubr.bf16.mxu1 %v17547_v52 }
 0x2f6   : > { %4712 = vmatprep.mubr.bf16.mxu0 %v17547_v52  ;;  %v15201_v52 = vld [vmem:[#allocation2 + $0x10ec] ss:$24 sps:$4 sm:$0xff]  }
 0x2f7   : > { %3521 = vmatpush1.bf16.msra.mxu1 %v13061_v32  ;;  %v13115_v32 = vld [vmem:[#allocation2 + $0x1f0] ss:$24 sps:$4 sm:$0xff]  }
 0x2f8   : > { %5952 = vmatpush1.bf16.msra.mxu0 %v15093_v57  ;;  %3522 = vmatprep.subr.bf16.mxu1 %v13069_v63  ;;  %v15153_v63 = vld [vmem:[#allocation2 + $0xf68] ss:$24 sps:$4 sm:$0xff]  }
 0x2f9   : > { %5953 = vmatprep.subr.bf16.mxu0 %v15097_v42 }
 0x2fa   : > { %3402 = vmatmul.mubr.bf16.gmra.mrb[20].mxu1 %v14967_v46 }
 0x2fb   : > { %4713 = vmatmul.mubr.bf16.gmra.mrb[36].mxu0 %v15077_v48  ;;  %3523 = vmatpush1.bf16.msra.mxu1 %v13067_v49  ;;  %v13123_v49 = vld [vmem:[#allocation2 + $0x224] ss:$24 sps:$4 sm:$0xff]  }
 0x2fc   : > { %3550 = vmatprep.mubr.bf16.mxu1 %v14957_v9  ;;  %5954 = vmatpush1.bf16.msra.mxu0 %v15101_v3  ;;  %v13087_v9 = vld [vmem:[#allocation2 + $0x104] ss:$24 sps:$4 sm:$0xff]  }
 0x2fd   : > { %5981 = vmatprep.mubr.bf16.mxu0 %v14993_v0  ;;  %3524 = vmatprep.subr.bf16.mxu1 %v13075_v5  ;;  %v15156_v5 = vld [vmem:[#allocation2 + $0xf9c] ss:$24 sps:$4 sm:$0xff]  }
 0x2fe   : > { %5955 = vmatprep.subr.bf16.mxu0 %v15105_v6  ;;  %v15222_v0 = vld [vmem:[#allocation2 + $0x117c] ss:$24 sps:$4 sm:$0xff]  }
 0x2ff   : > { %3525 = vmatpush1.bf16.msra.mxu1 %v13073_v7  ;;  %v13121_v7 = vld [vmem:[#allocation2 + $0x220] ss:$24 sps:$4 sm:$0xff]   ;;  %17795 = vst [vmem:[#allocation39_spill] sm:$0xff] %v15222_v0 }
 0x300   : > { %5956 = vmatpush1.bf16.msra.mxu0 %v15110_v10  ;;  %3526 = vmatprep.subr.bf16.mxu1 %v13081_v15  ;;  %v15159_v15 = vld [vmem:[#allocation2 + $0xf98] ss:$24 sps:$4 sm:$0xff]  }
 0x301   : > { %5957 = vmatprep.subr.bf16.mxu0 %v15113_v20 }
 0x303   : > { %3527 = vmatpush1.bf16.msra.mxu1 %v13079_v21  ;;  %v13129_v21 = vld [vmem:[#allocation2 + $0x254] ss:$24 sps:$4 sm:$0xff]  }
 0x304   : > { %5958 = vmatpush1.bf16.msra.mxu0 %v15117_v12  ;;  %3528 = vmatprep.subr.bf16.mxu1 %v13087_v9  ;;  %v15162_v9 = vld [vmem:[#allocation2 + $0xfcc] ss:$24 sps:$4 sm:$0xff]  }
 0x305   : > { %5959 = vmatprep.subr.bf16.mxu0 %v15120_v22 }
 0x307   : > { %3529 = vmatpush1.bf16.msra.mxu1 %v13085_v24  ;;  %v13127_v24 = vld [vmem:[#allocation2 + $0x250] ss:$24 sps:$4 sm:$0xff]  }
 0x308   : > { %5960 = vmatpush1.bf16.msra.mxu0 %v15123_v25  ;;  %3530 = vmatprep.subr.bf16.mxu1 %v13093_v27  ;;  %v15165_v27 = vld [vmem:[#allocation2 + $0xfc8] ss:$24 sps:$4 sm:$0xff]  }
 0x309   : > { %5961 = vmatprep.subr.bf16.mxu0 %v15126_v29 }
 0x30b   : > { %3531 = vmatpush1.bf16.msra.mxu1 %v13091_v61  ;;  %v13135_v61 = vld [vmem:[#allocation2 + $0x284] ss:$24 sps:$4 sm:$0xff]  }
 0x30c   : > { %5962 = vmatpush1.bf16.msra.mxu0 %v15129_v31  ;;  %3532 = vmatprep.subr.bf16.mxu1 %v13099_v33  ;;  %v15168_v33 = vld [vmem:[#allocation2 + $0xffc] ss:$24 sps:$4 sm:$0xff]  }
 0x30d   : > { %5963 = vmatprep.subr.bf16.mxu0 %v15132_v37 }
 0x30f   : > { %3533 = vmatpush1.bf16.msra.mxu1 %v13097_v45  ;;  %v13133_v45 = vld [vmem:[#allocation2 + $0x280] ss:$24 sps:$4 sm:$0xff]  }
 0x310   : > { %5964 = vmatpush1.bf16.msra.mxu0 %v15135_v58  ;;  %3534 = vmatprep.subr.bf16.mxu1 %v13105_v38  ;;  %v15171_v38 = vld [vmem:[#allocation2 + $0xff8] ss:$24 sps:$4 sm:$0xff]  }
 0x311   : > { %5965 = vmatprep.subr.bf16.mxu0 %v15138_v40 }
 0x313   : > { %3535 = vmatpush1.bf16.msra.mxu1 %v13103_v41  ;;  %v13141_v41 = vld [vmem:[#allocation2 + $0x2b4] ss:$24 sps:$4 sm:$0xff]  }
 0x314   : > { %5966 = vmatpush1.bf16.msra.mxu0 %v15141_v43  ;;  %3536 = vmatprep.subr.bf16.mxu1 %v13111_v44  ;;  %v15174_v44 = vld [vmem:[#allocation2 + $0x102c] ss:$24 sps:$4 sm:$0xff]  }
 0x315   : > { %5967 = vmatprep.subr.bf16.mxu0 %v15144_v18 }
 0x317   : > { %3537 = vmatpush1.bf16.msra.mxu1 %v13109_v26  ;;  %v13139_v26 = vld [vmem:[#allocation2 + $0x2b0] ss:$24 sps:$4 sm:$0xff]  }
 0x318   : > { %5968 = vmatpush1.bf16.msra.mxu0 %v15147_v47  ;;  %3538 = vmatprep.subr.bf16.mxu1 %v13117_v50  ;;  %v15177_v50 = vld [vmem:[#allocation2 + $0x1028] ss:$24 sps:$4 sm:$0xff]  }
 0x319   : > { %5969 = vmatprep.subr.bf16.mxu0 %v15150_v51 }
 0x31b   : > { %3539 = vmatpush1.bf16.msra.mxu1 %v13115_v32  ;;  %v13147_v32 = vld [vmem:[#allocation2 + $0x2e4] ss:$24 sps:$4 sm:$0xff]  }
 0x31c   : > { %5970 = vmatpush1.bf16.msra.mxu0 %v15153_v63  ;;  %3540 = vmatprep.subr.bf16.mxu1 %v13123_v49  ;;  %v15180_v49 = vld [vmem:[#allocation2 + $0x105c] ss:$24 sps:$4 sm:$0xff]  }
 0x31d   : > { %5971 = vmatprep.subr.bf16.mxu0 %v15156_v5 }
 0x31f   : > { %3541 = vmatpush1.bf16.msra.mxu1 %v13121_v7  ;;  %v13145_v7 = vld [vmem:[#allocation2 + $0x2e0] ss:$24 sps:$4 sm:$0xff]  }
 0x320   : > { %5972 = vmatpush1.bf16.msra.mxu0 %v15159_v15  ;;  %3542 = vmatprep.subr.bf16.mxu1 %v13129_v21  ;;  %v15183_v21 = vld [vmem:[#allocation2 + $0x1058] ss:$24 sps:$4 sm:$0xff]  }
 0x321   : > { %5973 = vmatprep.subr.bf16.mxu0 %v15162_v9 }
 0x323   : > { %3543 = vmatpush1.bf16.msra.mxu1 %v13127_v24  ;;  %v13153_v24 = vld [vmem:[#allocation2 + $0x314] ss:$24 sps:$4 sm:$0xff]  }
 0x324   : > { %5974 = vmatpush1.bf16.msra.mxu0 %v15165_v27  ;;  %3544 = vmatprep.subr.bf16.mxu1 %v13135_v61  ;;  %v15186_v61 = vld [vmem:[#allocation2 + $0x108c] ss:$24 sps:$4 sm:$0xff]  }
 0x325   : > { %5975 = vmatprep.subr.bf16.mxu0 %v15168_v33 }
 0x327   : > { %3545 = vmatpush1.bf16.msra.mxu1 %v13133_v45  ;;  %v13151_v45 = vld [vmem:[#allocation2 + $0x310] ss:$24 sps:$4 sm:$0xff]  }
 0x328   : > { %5976 = vmatpush1.bf16.msra.mxu0 %v15171_v38  ;;  %3546 = vmatprep.subr.bf16.mxu1 %v13141_v41  ;;  %v15189_v41 = vld [vmem:[#allocation2 + $0x1088] ss:$24 sps:$4 sm:$0xff]  }
 0x329   : > { %5977 = vmatprep.subr.bf16.mxu0 %v15174_v44 }
 0x32b   : > { %3547 = vmatpush1.bf16.msra.mxu1 %v13139_v26  ;;  %v13159_v26 = vld [vmem:[#allocation2 + $0x344] ss:$24 sps:$4 sm:$0xff]  }
 0x32c   : > { %5978 = vmatpush1.bf16.msra.mxu0 %v15177_v50  ;;  %3548 = vmatprep.subr.bf16.mxu1 %v13147_v32  ;;  %v13157_v32 = vld [vmem:[#allocation2 + $0x340] ss:$24 sps:$4 sm:$0xff]  }
 0x32d   : > { %5979 = vmatprep.subr.bf16.mxu0 %v15180_v49 }
 0x32f   : > { %3549 = vmatpush1.bf16.msra.mxu1 %v13145_v7  ;;  %v15198_v7 = vld [vmem:[#allocation2 + $0x10b8] ss:$24 sps:$4 sm:$0xff]  }
 0x330   : > { %5980 = vmatpush1.bf16.msra.mxu0 %v15183_v21  ;;  %3571 = vmatprep.subr.bf16.mxu1 %v13153_v24  ;;  %v13165_v24 = vld [vmem:[#allocation2 + $0x374] ss:$24 sps:$4 sm:$0xff]  }
 0x331   : > { %5992 = vmatprep.subr.bf16.mxu0 %v15186_v61 }
 0x332   : > { %3551 = vmatmul.mubr.bf16.vlgmr.msra.gmra.mrb[24].mxu1 %v14923_v2  ;;  %v13163_v2 = vld [vmem:[#allocation2 + $0x370] ss:$24 sps:$4 sm:$0xff]  }
 0x333   : > { %5982 = vmatmul.mubr.bf16.vlgmr.msra.gmra.mrb[32].mxu0 %v15006_v17  ;;  %3560 = vmatprep.mubr.bf16.mxu1 %v14965_v14  ;;  %v15219_v17 = vld [vmem:[#allocation2 + $0x1148] ss:$24 sps:$4 sm:$0xff]  }
 0x334   : > { %3572 = vmatpush1.bf16.msra.mxu1 %v13151_v45  ;;  %5993 = vmatpush1.bf16.msra.mxu0 %v15189_v41  ;;  %v13171_v45 = vld [vmem:[#allocation2 + $0x3a4] ss:$24 sps:$4 sm:$0xff]   ;;  %17794 = vst [vmem:[#allocation38_spill] sm:$0xff] %v15219_v17 }
 0x335   : > { %3573 = vmatprep.subr.bf16.mxu1 %v13159_v26  ;;  %5994 = vmatprep.subr.bf16.mxu0 %v15192_v19  ;;  %v13169_v26 = vld [vmem:[#allocation2 + $0x3a0] ss:$24 sps:$4 sm:$0xff]  }
 0x336   : > { %6024 = vmatprep.mubr.bf16.mxu0 %v17792_v30 }
 0x338   : > { %3574 = vmatpush1.bf16.msra.mxu1 %v13157_v32  ;;  %5995 = vmatpush1.bf16.msra.mxu0 %v15198_v7  ;;  %v15213_v32 = vld [vmem:[#allocation2 + $0x1118] ss:$24 sps:$4 sm:$0xff]  }
 0x339   : > { %3575 = vmatprep.subr.bf16.mxu1 %v13165_v24  ;;  %5996 = vmatprep.subr.bf16.mxu0 %v15201_v52  ;;  %v15216_v24 = vld [vmem:[#allocation2 + $0x114c] ss:$24 sps:$4 sm:$0xff]  }
 0x33a   : > { %3561 = vmatmul.mubr.bf16.gmra.mrb[28].mxu1 %v14925_v11  ;;  %17793 = vst [vmem:[#allocation37_spill] sm:$0xff] %v15216_v24 }
 0x33b   : > { %3603 = vmatprep.mubr.bf16.mxu1 %v17792_v30 }
 0x33c   : > { %3576 = vmatpush1.bf16.msra.mxu1 %v13163_v2  ;;  %5997 = vmatpush1.bf16.msra.mxu0 %v15205_v13  ;;  %v13183_v2 = vld [vmem:[#allocation2 + $0x404] ss:$24 sps:$4 sm:$0xff]  }
 0x33d   : > { %3577 = vmatprep.subr.bf16.mxu1 %v13171_v45  ;;  %5998 = vmatprep.subr.bf16.mxu0 %v15208_v34  ;;  %v13181_v45 = vld [vmem:[#allocation2 + $0x400] ss:$24 sps:$4 sm:$0xff]  }
 0x340   : > { %3578 = vmatpush1.bf16.msra.mxu1 %v13169_v26  ;;  %5999 = vmatpush1.bf16.msra.mxu0 %v15213_v32  ;;  %v13189_v26 = vld [vmem:[#allocation2 + $0x434] ss:$24 sps:$4 sm:$0xff]  }
 0x341   : > { %3579 = vmatprep.subr.bf16.mxu1 %v13177_v36  ;;  %6000 = vmatprep.subr.bf16.mxu0 %v15216_v24  ;;  %v13187_v36 = vld [vmem:[#allocation2 + $0x430] ss:$24 sps:$4 sm:$0xff]  }
 0x342   : > { %v15231_v24 = vld [vmem:[#allocation2 + $0x11a8] ss:$24 sps:$4 sm:$0xff]  }
 0x343   : > { %17798 = vst [vmem:[#allocation42_spill] sm:$0xff] %v15231_v24 }
 0x344   : > { %3580 = vmatpush1.bf16.msra.mxu1 %v13175_v62  ;;  %6001 = vmatpush1.bf16.msra.mxu0 %v15219_v17  ;;  %v13195_v62 = vld [vmem:[#allocation2 + $0x464] ss:$24 sps:$4 sm:$0xff]  }
 0x345   : > { %3581 = vmatprep.subr.bf16.mxu1 %v13183_v2  ;;  %6002 = vmatprep.subr.bf16.mxu0 %v15222_v0  ;;  %v15234_v17 = vld [vmem:[#allocation2 + $0x11dc] ss:$24 sps:$4 sm:$0xff]   ;;  %v13193_v2 = vld [vmem:[#allocation2 + $0x460] ss:$24 sps:$4 sm:$0xff]  }
 0x346   : > { %v15237_v0 = vld [vmem:[#allocation2 + $0x11d8] ss:$24 sps:$4 sm:$0xff]  }
 0x347   : > { %17799 = vst [vmem:[#allocation43_spill] sm:$0xff] %v15237_v0 }
 0x348   : > { %3582 = vmatpush1.bf16.msra.mxu1 %v13181_v45  ;;  %6003 = vmatpush1.bf16.msra.mxu0 %v15225_v54  ;;  %v13201_v45 = vld [vmem:[#allocation2 + $0x1204] ss:$24 sps:$4 sm:$0xff]  }
 0x349   : > { %3583 = vmatprep.subr.bf16.mxu1 %v13189_v26  ;;  %6004 = vmatprep.subr.bf16.mxu0 %v15228_v60  ;;  %v15240_v54 = vld [vmem:[#allocation2 + $0x48c] ss:$24 sps:$4 sm:$0xff]   ;;  %v13199_v26 = vld [vmem:[#allocation2 + $0x1200] ss:$24 sps:$4 sm:$0xff]  }
 0x34a   : > { %v15243_v60 = vld [vmem:[#allocation2 + $0x488] ss:$24 sps:$4 sm:$0xff]  }
 0x34b   : > { %17800 = vst [vmem:[#allocation44_spill] sm:$0xff] %v15243_v60 }
 0x34c   : > { %3584 = vmatpush1.bf16.msra.mxu1 %v13187_v36  ;;  %6005 = vmatpush1.bf16.msra.mxu0 %v15231_v24  ;;  %v13207_v36 = vld [vmem:[#allocation2 + $0x1234] ss:$24 sps:$4 sm:$0xff]  }
 0x34d   : > { %3585 = vmatprep.subr.bf16.mxu1 %v13195_v62  ;;  %6006 = vmatprep.subr.bf16.mxu0 %v15234_v17  ;;  %v15246_v24 = vld [vmem:[#allocation2 + $0x4bc] ss:$24 sps:$4 sm:$0xff]   ;;  %v13205_v62 = vld [vmem:[#allocation2 + $0x1230] ss:$24 sps:$4 sm:$0xff]  }
 0x34e   : > { %17801 = vst [vmem:[#allocation45_spill] sm:$0xff] %v15246_v24 }
 0x350   : > { %3586 = vmatpush1.bf16.msra.mxu1 %v13193_v2  ;;  %6007 = vmatpush1.bf16.msra.mxu0 %v15237_v0  ;;  %v15251_v2 = vld [vmem:[#allocation2 + $0x4b8] ss:$24 sps:$4 sm:$0xff]   ;;  %v13213_v0 = vld [vmem:[#allocation2 + $0x1264] ss:$24 sps:$4 sm:$0xff]  }
 0x351   : > { %4511 = vmatprep.subr.bf16.mxu1 %v13201_v45  ;;  %6927 = vmatprep.subr.bf16.mxu0 %v15240_v54  ;;  %17802 = vst [vmem:[#allocation46_spill] sm:$0xff] %v15251_v2  ;;  %v15254_v45 = vld [vmem:[#allocation2 + $0x4ec] ss:$24 sps:$4 sm:$0xff]  }
 0x352   : > { %17803 = vst [vmem:[#allocation47_spill] sm:$0xff] %v15254_v45 }
 0x353   : > { %3604 = vmatmul.mubr.bf16.vlgmr.msra.gmra.mrb[24].mxu1 %v14960_v55  ;;  %6025 = vmatmul.mubr.bf16.vlgmr.msra.gmra.mrb[32].mxu0 %v15026_v8  ;;  %v13211_v55 = vld [vmem:[#allocation2 + $0x1260] ss:$24 sps:$4 sm:$0xff]   ;;  %v13219_v8 = vld [vmem:[#allocation2 + $0x1294] ss:$24 sps:$4 sm:$0xff]  }
 0x354   : > { %4512 = vmatpush1.bf16.msra.mxu1 %v13199_v26  ;;  %6928 = vmatpush1.bf16.msra.mxu0 %v15243_v60  ;;  %v15259_v26 = vld [vmem:[#allocation2 + $0x4e8] ss:$24 sps:$4 sm:$0xff]   ;;  %v15262_v60 = vld [vmem:[#allocation2 + $0x51c] ss:$24 sps:$4 sm:$0xff]  }
 0x355   : > { %6959 = vmatprep.mubr.bf16.mxu0 %v14965_v14  ;;  %4513 = vmatprep.subr.bf16.mxu1 %v13207_v36  ;;  %17804 = vst [vmem:[#allocation48_spill] sm:$0xff] %v15259_v26  ;;  %17805 = vst [vmem:[#allocation49_spill] sm:$0xff] %v15262_v60  ;;  %v13217_v36 = vld [vmem:[#allocation2 + $0x1290] ss:$24 sps:$4 sm:$0xff]   ;;  %v13225_v14 = vld [vmem:[#allocation2 + $0x12c4] ss:$24 sps:$4 sm:$0xff]  }
 0x356   : > { %6929 = vmatprep.subr.bf16.mxu0 %v15246_v24  ;;  %3613 = vmatprep.mubr.bf16.mxu1 %v17792_v30  ;;  %v15276_v24 = vld [vmem:[#allocation2 + $0x57c] ss:$24 sps:$4 sm:$0xff]  }
 0x357   : > { %17809 = vst [vmem:[#allocation53_spill] sm:$0xff] %v15276_v24 }
 0x358   : > { %4514 = vmatpush1.bf16.msra.mxu1 %v13205_v62  ;;  %6930 = vmatpush1.bf16.msra.mxu0 %v15251_v2  ;;  %v15267_v62 = vld [vmem:[#allocation2 + $0x518] ss:$24 sps:$4 sm:$0xff]   ;;  %v15273_v2 = vld [vmem:[#allocation2 + $0x548] ss:$24 sps:$4 sm:$0xff]  }
 0x359   : > { %4515 = vmatprep.subr.bf16.mxu1 %v13213_v0  ;;  %6931 = vmatprep.subr.bf16.mxu0 %v15254_v45  ;;  %17806 = vst [vmem:[#allocation50_spill] sm:$0xff] %v15267_v62  ;;  %v15270_v0 = vld [vmem:[#allocation2 + $0x54c] ss:$24 sps:$4 sm:$0xff]   ;;  %v13223_v45 = vld [vmem:[#allocation2 + $0x12c0] ss:$24 sps:$4 sm:$0xff]   ;;  %17808 = vst [vmem:[#allocation52_spill] sm:$0xff] %v15273_v2 }
 0x35a   : > { %17807 = vst [vmem:[#allocation51_spill] sm:$0xff] %v15270_v0 }
 0x35b   : > { %3614 = vmatmul.mubr.bf16.gmra.mrb[28].mxu1 %v14967_v46 }
 0x35c   : > { %4516 = vmatpush1.bf16.msra.mxu1 %v13211_v55  ;;  %4543 = vmatprep.mubr.bf16.mxu1 %v15054_v23  ;;  %v13231_v55 = vld [vmem:[#allocation2 + $0x12f4] ss:$24 sps:$4 sm:$0xff]  }
 0x35d   : > { %6932 = vmatpush1.bf16.msra.mxu0 %v15259_v26  ;;  %4517 = vmatprep.subr.bf16.mxu1 %v13219_v8  ;;  %v13229_v8 = vld [vmem:[#allocation2 + $0x12f0] ss:$24 sps:$4 sm:$0xff]   ;;  %v13237_v26 = vld [vmem:[#allocation2 + $0x1324] ss:$24 sps:$4 sm:$0xff]  }
 0x35e   : > { %6933 = vmatprep.subr.bf16.mxu0 %v15262_v60  ;;  %v15279_v60 = vld [vmem:[#allocation2 + $0x578] ss:$24 sps:$4 sm:$0xff]  }
 0x35f   : > { %17810 = vst [vmem:[#allocation54_spill] sm:$0xff] %v15279_v60 }
 0x360   : > { %4518 = vmatpush1.bf16.msra.mxu1 %v13217_v36  ;;  %v15282_v36 = vld [vmem:[#allocation2 + $0x5ac] ss:$24 sps:$4 sm:$0xff]  }
 0x361   : > { %6934 = vmatpush1.bf16.msra.mxu0 %v15267_v62  ;;  %4519 = vmatprep.subr.bf16.mxu1 %v13225_v14  ;;  %17811 = vst [vmem:[#allocation55_spill] sm:$0xff] %v15282_v36  ;;  %v13235_v14 = vld [vmem:[#allocation2 + $0x1320] ss:$24 sps:$4 sm:$0xff]   ;;  %v13243_v62 = vld [vmem:[#allocation2 + $0x1354] ss:$24 sps:$4 sm:$0xff]  }
 0x362   : > { %6935 = vmatprep.subr.bf16.mxu0 %v15270_v0  ;;  %v15285_v0 = vld [vmem:[#allocation2 + $0x5a8] ss:$24 sps:$4 sm:$0xff]  }
 0x363   : > { %17812 = vst [vmem:[#allocation56_spill] sm:$0xff] %v15285_v0 }
 0x364   : > { %4520 = vmatpush1.bf16.msra.mxu1 %v13223_v45  ;;  %v15288_v45 = vld [vmem:[#allocation2 + $0x5dc] ss:$24 sps:$4 sm:$0xff]  }
 0x365   : > { %6936 = vmatpush1.bf16.msra.mxu0 %v15273_v2  ;;  %4521 = vmatprep.subr.bf16.mxu1 %v13231_v55  ;;  %17813 = vst [vmem:[#allocation57_spill] sm:$0xff] %v15288_v45  ;;  %v13241_v55 = vld [vmem:[#allocation2 + $0x1350] ss:$24 sps:$4 sm:$0xff]   ;;  %v13249_v2 = vld [vmem:[#allocation2 + $0x1384] ss:$24 sps:$4 sm:$0xff]  }
 0x366   : > { %6937 = vmatprep.subr.bf16.mxu0 %v15276_v24  ;;  %v15291_v24 = vld [vmem:[#allocation2 + $0x5d8] ss:$24 sps:$4 sm:$0xff]  }
 0x367   : > { %17814 = vst [vmem:[#allocation58_spill] sm:$0xff] %v15291_v24 }
 0x368   : > { %4522 = vmatpush1.bf16.msra.mxu1 %v13229_v8  ;;  %v15294_v8 = vld [vmem:[#allocation2 + $0x60c] ss:$24 sps:$4 sm:$0xff]  }
 0x369   : > { %6938 = vmatpush1.bf16.msra.mxu0 %v15279_v60  ;;  %4523 = vmatprep.subr.bf16.mxu1 %v13237_v26  ;;  %17815 = vst [vmem:[#allocation59_spill] sm:$0xff] %v15294_v8  ;;  %v13247_v26 = vld [vmem:[#allocation2 + $0x1380] ss:$24 sps:$4 sm:$0xff]   ;;  %v13255_v60 = vld [vmem:[#allocation2 + $0x13b4] ss:$24 sps:$4 sm:$0xff]  }
 0x36a   : > { %6939 = vmatprep.subr.bf16.mxu0 %v15282_v36  ;;  %v15297_v36 = vld [vmem:[#allocation2 + $0x608] ss:$24 sps:$4 sm:$0xff]  }
 0x36b   : > { %17816 = vst [vmem:[#allocation60_spill] sm:$0xff] %v15297_v36 }
 0x36c   : > { %4524 = vmatpush1.bf16.msra.mxu1 %v13235_v14  ;;  %v15300_v14 = vld [vmem:[#allocation2 + $0x63c] ss:$24 sps:$4 sm:$0xff]  }
 0x36d   : > { %6940 = vmatpush1.bf16.msra.mxu0 %v15285_v0  ;;  %4525 = vmatprep.subr.bf16.mxu1 %v13243_v62  ;;  %17817 = vst [vmem:[#allocation61_spill] sm:$0xff] %v15300_v14  ;;  %v13253_v62 = vld [vmem:[#allocation2 + $0x13b0] ss:$24 sps:$4 sm:$0xff]   ;;  %v13261_v0 = vld [vmem:[#allocation2 + $0x13e4] ss:$24 sps:$4 sm:$0xff]  }
 0x36e   : > { %6941 = vmatprep.subr.bf16.mxu0 %v15288_v45  ;;  %v15303_v45 = vld [vmem:[#allocation2 + $0x638] ss:$24 sps:$4 sm:$0xff]  }
 0x36f   : > { %17818 = vst [vmem:[#allocation62_spill] sm:$0xff] %v15303_v45 }
 0x370   : > { %4526 = vmatpush1.bf16.msra.mxu1 %v13241_v55  ;;  %v15306_v55 = vld [vmem:[#allocation2 + $0x66c] ss:$24 sps:$4 sm:$0xff]  }
 0x371   : > { %6942 = vmatpush1.bf16.msra.mxu0 %v15291_v24  ;;  %4527 = vmatprep.subr.bf16.mxu1 %v13249_v2  ;;  %17819 = vst [vmem:[#allocation63_spill] sm:$0xff] %v15306_v55  ;;  %v13259_v2 = vld [vmem:[#allocation2 + $0x13e0] ss:$24 sps:$4 sm:$0xff]   ;;  %v13267_v24 = vld [vmem:[#allocation2 + $0x1414] ss:$24 sps:$4 sm:$0xff]  }
 0x372   : > { %6943 = vmatprep.subr.bf16.mxu0 %v15294_v8  ;;  %v15309_v8 = vld [vmem:[#allocation2 + $0x668] ss:$24 sps:$4 sm:$0xff]  }
 0x373   : > { %17820 = vst [vmem:[#allocation64_spill] sm:$0xff] %v15309_v8 }
 0x374   : > { %4528 = vmatpush1.bf16.msra.mxu1 %v13247_v26  ;;  %v15312_v26 = vld [vmem:[#allocation2 + $0x69c] ss:$24 sps:$4 sm:$0xff]  }
 0x375   : > { %6944 = vmatpush1.bf16.msra.mxu0 %v15297_v36  ;;  %4529 = vmatprep.subr.bf16.mxu1 %v13255_v60  ;;  %17821 = vst [vmem:[#allocation65_spill] sm:$0xff] %v15312_v26  ;;  %v13265_v60 = vld [vmem:[#allocation2 + $0x1410] ss:$24 sps:$4 sm:$0xff]   ;;  %v13273_v36 = vld [vmem:[#allocation2 + $0x1444] ss:$24 sps:$4 sm:$0xff]  }
 0x376   : > { %6945 = vmatprep.subr.bf16.mxu0 %v15300_v14  ;;  %v15315_v14 = vld [vmem:[#allocation2 + $0x698] ss:$24 sps:$4 sm:$0xff]  }
 0x377   : > { %17822 = vst [vmem:[#allocation66_spill] sm:$0xff] %v15315_v14 }
 0x378   : > { %4530 = vmatpush1.bf16.msra.mxu1 %v13253_v62  ;;  %v15318_v62 = vld [vmem:[#allocation2 + $0x6cc] ss:$24 sps:$4 sm:$0xff]  }
 0x379   : > { %6946 = vmatpush1.bf16.msra.mxu0 %v15303_v45  ;;  %4531 = vmatprep.subr.bf16.mxu1 %v13261_v0  ;;  %17823 = vst [vmem:[#allocation67_spill] sm:$0xff] %v15318_v62  ;;  %v13271_v0 = vld [vmem:[#allocation2 + $0x1440] ss:$24 sps:$4 sm:$0xff]   ;;  %v13279_v45 = vld [vmem:[#allocation2 + $0x1474] ss:$24 sps:$4 sm:$0xff]  }
 0x37a   : > { %6947 = vmatprep.subr.bf16.mxu0 %v15306_v55  ;;  %v15321_v55 = vld [vmem:[#allocation2 + $0x6c8] ss:$24 sps:$4 sm:$0xff]  }
 0x37b   : > { %17824 = vst [vmem:[#allocation68_spill] sm:$0xff] %v15321_v55 }
 0x37c   : > { %4532 = vmatpush1.bf16.msra.mxu1 %v13259_v2  ;;  %v15324_v2 = vld [vmem:[#allocation2 + $0x6fc] ss:$24 sps:$4 sm:$0xff]  }
 0x37d   : > { %6948 = vmatpush1.bf16.msra.mxu0 %v15309_v8  ;;  %4533 = vmatprep.subr.bf16.mxu1 %v13267_v24  ;;  %17825 = vst [vmem:[#allocation69_spill] sm:$0xff] %v15324_v2  ;;  %v13277_v24 = vld [vmem:[#allocation2 + $0x1470] ss:$24 sps:$4 sm:$0xff]   ;;  %v13285_v8 = vld [vmem:[#allocation2 + $0x14a4] ss:$24 sps:$4 sm:$0xff]  }
 0x37e   : > { %6949 = vmatprep.subr.bf16.mxu0 %v15312_v26  ;;  %v15327_v26 = vld [vmem:[#allocation2 + $0x6f8] ss:$24 sps:$4 sm:$0xff]  }
 0x37f   : > { %17826 = vst [vmem:[#allocation70_spill] sm:$0xff] %v15327_v26 }
 0x380   : > { %4534 = vmatpush1.bf16.msra.mxu1 %v13265_v60  ;;  %v15330_v60 = vld [vmem:[#allocation2 + $0x72c] ss:$24 sps:$4 sm:$0xff]  }
 0x381   : > { %6950 = vmatpush1.bf16.msra.mxu0 %v15315_v14  ;;  %4535 = vmatprep.subr.bf16.mxu1 %v13273_v36  ;;  %17827 = vst [vmem:[#allocation71_spill] sm:$0xff] %v15330_v60  ;;  %v13283_v36 = vld [vmem:[#allocation2 + $0x14a0] ss:$24 sps:$4 sm:$0xff]   ;;  %v13291_v14 = vld [vmem:[#allocation2 + $0x14d4] ss:$24 sps:$4 sm:$0xff]  }
 0x382   : > { %6951 = vmatprep.subr.bf16.mxu0 %v15318_v62  ;;  %v15333_v62 = vld [vmem:[#allocation2 + $0x728] ss:$24 sps:$4 sm:$0xff]  }
 0x384   : > { %4536 = vmatpush1.bf16.msra.mxu1 %v13271_v0  ;;  %v15336_v0 = vld [vmem:[#allocation2 + $0x75c] ss:$24 sps:$4 sm:$0xff]  }
 0x385   : > { %6952 = vmatpush1.bf16.msra.mxu0 %v15321_v55  ;;  %4537 = vmatprep.subr.bf16.mxu1 %v13279_v45  ;;  %v13289_v45 = vld [vmem:[#allocation2 + $0x14d0] ss:$24 sps:$4 sm:$0xff]   ;;  %v13297_v55 = vld [vmem:[#allocation2 + $0x1504] ss:$24 sps:$4 sm:$0xff]  }
 0x386   : > { %6953 = vmatprep.subr.bf16.mxu0 %v15324_v2  ;;  %v15339_v2 = vld [vmem:[#allocation2 + $0x758] ss:$24 sps:$4 sm:$0xff]  }
 0x387   : > { %17828 = vst [vmem:[#allocation72_spill] sm:$0xff] %v15339_v2 }
 0x388   : > { %4538 = vmatpush1.bf16.msra.mxu1 %v13277_v24  ;;  %v15342_v24 = vld [vmem:[#allocation2 + $0x78c] ss:$24 sps:$4 sm:$0xff]  }
 0x389   : > { %6954 = vmatpush1.bf16.msra.mxu0 %v15327_v26  ;;  %4539 = vmatprep.subr.bf16.mxu1 %v13285_v8  ;;  %17829 = vst [vmem:[#allocation73_spill] sm:$0xff] %v15342_v24  ;;  %v13295_v8 = vld [vmem:[#allocation2 + $0x1500] ss:$24 sps:$4 sm:$0xff]   ;;  %v15348_v26 = vld [vmem:[#allocation2 + $0x7bc] ss:$24 sps:$4 sm:$0xff]  }
 0x38a   : > { %6955 = vmatprep.subr.bf16.mxu0 %v15330_v60  ;;  %v15345_v60 = vld [vmem:[#allocation2 + $0x788] ss:$24 sps:$4 sm:$0xff]   ;;  %17831 = vst [vmem:[#allocation75_spill] sm:$0xff] %v15348_v26 }
 0x38b   : > { %17830 = vst [vmem:[#allocation74_spill] sm:$0xff] %v15345_v60 }
 0x38c   : > { %4540 = vmatpush1.bf16.msra.mxu1 %v13283_v36  ;;  %v13303_v36 = vld [vmem:[#allocation2 + $0x1534] ss:$24 sps:$4 sm:$0xff]  }
 0x38d   : > { %6956 = vmatpush1.bf16.msra.mxu0 %v15333_v62  ;;  %4541 = vmatprep.subr.bf16.mxu1 %v13291_v14  ;;  %v13301_v14 = vld [vmem:[#allocation2 + $0x1530] ss:$24 sps:$4 sm:$0xff]  }
 0x38e   : > { %6957 = vmatprep.subr.bf16.mxu0 %v15336_v0 }
 0x390   : > { %4542 = vmatpush1.bf16.msra.mxu1 %v13289_v45  ;;  %v15354_v45 = vld [vmem:[#allocation2 + $0x7b8] ss:$24 sps:$4 sm:$0xff]  }
 0x391   : > { %6958 = vmatpush1.bf16.msra.mxu0 %v15339_v2  ;;  %4564 = vmatprep.subr.bf16.mxu1 %v13297_v55  ;;  %17832 = vst [vmem:[#allocation76_spill] sm:$0xff] %v15354_v45  ;;  %v13309_v55 = vld [vmem:[#allocation2 + $0x1564] ss:$24 sps:$4 sm:$0xff]   ;;  %v15361_v2 = vld [vmem:[#allocation2 + $0x7e8] ss:$24 sps:$4 sm:$0xff]  }
 0x392   : > { %6970 = vmatprep.subr.bf16.mxu0 %v15342_v24  ;;  %v15357_v24 = vld [vmem:[#allocation2 + $0x7ec] ss:$24 sps:$4 sm:$0xff]   ;;  %17834 = vst [vmem:[#allocation78_spill] sm:$0xff] %v15361_v2 }
 0x393   : > { %4544 = vmatmul.mubr.bf16.vlgmr.msra.gmra.mrb[16].mxu1 %v15065_v4  ;;  %17833 = vst [vmem:[#allocation77_spill] sm:$0xff] %v15357_v24 }
 0x394   : > { %6960 = vmatmul.mubr.bf16.vlgmr.msra.gmra.mrb[32].mxu0 %v14925_v11  ;;  %4553 = vmatprep.mubr.bf16.mxu1 %v15045_v35  ;;  %v13307_v11 = vld [vmem:[#allocation2 + $0x1560] ss:$24 sps:$4 sm:$0xff]  }
 0x395   : > { %4565 = vmatpush1.bf16.msra.mxu1 %v13295_v8  ;;  %6971 = vmatpush1.bf16.msra.mxu0 %v15345_v60  ;;  %v13315_v8 = vld [vmem:[#allocation2 + $0x1594] ss:$24 sps:$4 sm:$0xff]  }
 0x396   : > { %4566 = vmatprep.subr.bf16.mxu1 %v13303_v36  ;;  %6972 = vmatprep.subr.bf16.mxu0 %v15348_v26  ;;  %v15364_v60 = vld [vmem:[#allocation2 + $0x81c] ss:$24 sps:$4 sm:$0xff]   ;;  %v13313_v36 = vld [vmem:[#allocation2 + $0x1590] ss:$24 sps:$4 sm:$0xff]  }
 0x397   : > { %7002 = vmatprep.mubr.bf16.mxu0 %v17792_v30  ;;  %17835 = vst [vmem:[#allocation79_spill] sm:$0xff] %v15364_v60  ;;  %v15375_v26 = vld [vmem:[#allocation2 + $0x848] ss:$24 sps:$4 sm:$0xff]  }
 0x398   : > { %17838 = vst [vmem:[#allocation82_spill] sm:$0xff] %v15375_v26 }
 0x399   : > { %4567 = vmatpush1.bf16.msra.mxu1 %v13301_v14  ;;  %6973 = vmatpush1.bf16.msra.mxu0 %v15354_v45  ;;  %v15369_v14 = vld [vmem:[#allocation2 + $0x818] ss:$24 sps:$4 sm:$0xff]   ;;  %v13321_v45 = vld [vmem:[#allocation2 + $0x15c4] ss:$24 sps:$4 sm:$0xff]  }
 0x39a   : > { %4568 = vmatprep.subr.bf16.mxu1 %v13309_v55  ;;  %6974 = vmatprep.subr.bf16.mxu0 %v15357_v24  ;;  %17836 = vst [vmem:[#allocation80_spill] sm:$0xff] %v15369_v14  ;;  %v15372_v55 = vld [vmem:[#allocation2 + $0x84c] ss:$24 sps:$4 sm:$0xff]   ;;  %v13319_v24 = vld [vmem:[#allocation2 + $0x15c0] ss:$24 sps:$4 sm:$0xff]  }
 0x39b   : > { %4554 = vmatmul.mubr.bf16.gmra.mrb[20].mxu1 %v15058_v59  ;;  %17837 = vst [vmem:[#allocation81_spill] sm:$0xff] %v15372_v55 }
 0x39c   : > { %4596 = vmatprep.mubr.bf16.mxu1 %v17792_v30 }
 0x39d   : > { %4569 = vmatpush1.bf16.msra.mxu1 %v13307_v11  ;;  %6975 = vmatpush1.bf16.msra.mxu0 %v15361_v2  ;;  %v13327_v11 = vld [vmem:[#allocation2 + $0x15f4] ss:$24 sps:$4 sm:$0xff]  }
 0x39e   : > { %4570 = vmatprep.subr.bf16.mxu1 %v13315_v8  ;;  %6976 = vmatprep.subr.bf16.mxu0 %v15364_v60  ;;  %v15378_v2 = vld [vmem:[#allocation2 + $0x87c] ss:$24 sps:$4 sm:$0xff]   ;;  %v13325_v8 = vld [vmem:[#allocation2 + $0x15f0] ss:$24 sps:$4 sm:$0xff]  }
 0x39f   : > { %17839 = vst [vmem:[#allocation83_spill] sm:$0xff] %v15378_v2  ;;  %v15381_v60 = vld [vmem:[#allocation2 + $0x878] ss:$24 sps:$4 sm:$0xff]  }
 0x3a0   : > { %17840 = vst [vmem:[#allocation84_spill] sm:$0xff] %v15381_v60 }
 0x3a1   : > { %4571 = vmatpush1.bf16.msra.mxu1 %v13313_v36  ;;  %6977 = vmatpush1.bf16.msra.mxu0 %v15369_v14  ;;  %v13333_v36 = vld [vmem:[#allocation2 + $0x1624] ss:$24 sps:$4 sm:$0xff]  }
 0x3a2   : > { %4572 = vmatprep.subr.bf16.mxu1 %v13321_v45  ;;  %6978 = vmatprep.subr.bf16.mxu0 %v15372_v55  ;;  %v15384_v14 = vld [vmem:[#allocation2 + $0x8ac] ss:$24 sps:$4 sm:$0xff]   ;;  %v13331_v45 = vld [vmem:[#allocation2 + $0x1620] ss:$24 sps:$4 sm:$0xff]  }
 0x3a3   : > { %v15387_v55 = vld [vmem:[#allocation2 + $0x8a8] ss:$24 sps:$4 sm:$0xff]  }
 0x3a5   : > { %4573 = vmatpush1.bf16.msra.mxu1 %v13319_v24  ;;  %6979 = vmatpush1.bf16.msra.mxu0 %v15375_v26  ;;  %v13339_v24 = vld [vmem:[#allocation2 + $0x1654] ss:$24 sps:$4 sm:$0xff]  }
 0x3a6   : > { %4574 = vmatprep.subr.bf16.mxu1 %v13327_v11  ;;  %6980 = vmatprep.subr.bf16.mxu0 %v15378_v2  ;;  %v15390_v26 = vld [vmem:[#allocation2 + $0x8dc] ss:$24 sps:$4 sm:$0xff]   ;;  %v13337_v11 = vld [vmem:[#allocation2 + $0x1650] ss:$24 sps:$4 sm:$0xff]  }
 0x3a7   : > { %v15393_v2 = vld [vmem:[#allocation2 + $0x8d8] ss:$24 sps:$4 sm:$0xff]  }
 0x3a9   : > { %4575 = vmatpush1.bf16.msra.mxu1 %v13325_v8  ;;  %6981 = vmatpush1.bf16.msra.mxu0 %v15381_v60  ;;  %v13345_v8 = vld [vmem:[#allocation2 + $0x1214] ss:$24 sps:$4 sm:$0xff]   ;;  %v13343_v60 = vld [vmem:[#allocation2 + $0x1210] ss:$24 sps:$4 sm:$0xff]  }
 0x3aa   : > { %4576 = vmatprep.subr.bf16.mxu1 %v13333_v36  ;;  %6982 = vmatprep.subr.bf16.mxu0 %v15384_v14  ;;  %v13348_v36 = vld [vmem:[#allocation2 + $0x1244] ss:$24 sps:$4 sm:$0xff]  }
 0x3ad   : > { %4577 = vmatpush1.bf16.msra.mxu1 %v13331_v45  ;;  %6983 = vmatpush1.bf16.msra.mxu0 %v15387_v55  ;;  %v13346_v45 = vld [vmem:[#allocation2 + $0x1240] ss:$24 sps:$4 sm:$0xff]  }
 0x3ae   : > { %4578 = vmatprep.subr.bf16.mxu1 %v13339_v24  ;;  %6984 = vmatprep.subr.bf16.mxu0 %v15390_v26  ;;  %v13351_v24 = vld [vmem:[#allocation2 + $0x1274] ss:$24 sps:$4 sm:$0xff]  }
 0x3b1   : > { %4579 = vmatpush1.bf16.msra.mxu1 %v13337_v11  ;;  %6985 = vmatpush1.bf16.msra.mxu0 %v15393_v2  ;;  %v13354_v11 = vld [vmem:[#allocation2 + $0x12a4] ss:$24 sps:$4 sm:$0xff]  }
 0x3b2   : > { %4723 = vmatprep.subr.bf16.mxu1 %v13345_v8  ;;  %7200 = vmatprep.subr.bf16.mxu0 %v15074_v28  ;;  %v13349_v28 = vld [vmem:[#allocation2 + $0x1270] ss:$24 sps:$4 sm:$0xff]  }
 0x3b3   : > { %v17845_v8 = vld [vmem:[#allocation41_spill] sm:$0xff] }
 0x3b4   : > { %4597 = vmatmul.mubr.bf16.vlgmr.msra.gmra.mrb[16].mxu1 %v15089_v56  ;;  %7003 = vmatmul.mubr.bf16.vlgmr.msra.gmra.mrb[32].mxu0 %v14967_v46 }
 0x3b5   : > { %4724 = vmatpush1.bf16.msra.mxu1 %v13343_v60  ;;  %7201 = vmatpush1.bf16.msra.mxu0 %v15079_v1  ;;  %v13352_v1 = vld [vmem:[#allocation2 + $0x12a0] ss:$24 sps:$4 sm:$0xff]   ;;  %v13355_v60 = vld [vmem:[#allocation2 + $0x12d0] ss:$24 sps:$4 sm:$0xff]  }
 0x3b6   : > { %7232 = vmatprep.mubr.bf16.mxu0 %v14977_v39  ;;  %4725 = vmatprep.subr.bf16.mxu1 %v13348_v36  ;;  %v17846_v36 = vld [vmem:[#allocation42_spill] sm:$0xff] }
 0x3b7   : > { %7202 = vmatprep.subr.bf16.mxu0 %v15082_v53  ;;  %4606 = vmatprep.mubr.bf16.mxu1 %v17792_v30  ;;  %v13357_v53 = vld [vmem:[#allocation2 + $0x12d4] ss:$24 sps:$4 sm:$0xff]  }
 0x3b9   : > { %4726 = vmatpush1.bf16.msra.mxu1 %v13346_v45  ;;  %7203 = vmatpush1.bf16.msra.mxu0 %v15093_v57  ;;  %v13360_v57 = vld [vmem:[#allocation2 + $0x1304] ss:$24 sps:$4 sm:$0xff]   ;;  %v13412_v45 = vld [vmem:[#allocation2 + $0x1660] ss:$24 sps:$4 sm:$0xff]  }
 0x3ba   : > { %4727 = vmatprep.subr.bf16.mxu1 %v13351_v24  ;;  %7204 = vmatprep.subr.bf16.mxu0 %v15097_v42  ;;  %v13358_v42 = vld [vmem:[#allocation2 + $0x1300] ss:$24 sps:$4 sm:$0xff]   ;;  %v15456_v24 = vld [vmem:[#allocation2 + $0xd84] ss:$24 sps:$4 sm:$0xff]  }
 0x3bc   : > { %4607 = vmatmul.mubr.bf16.gmra.mrb[20].mxu1 %v15077_v48 }
 0x3bd   : > { %4728 = vmatpush1.bf16.msra.mxu1 %v13349_v28  ;;  %4755 = vmatprep.mubr.bf16.mxu1 %v15054_v23  ;;  %v13363_v23 = vld [vmem:[#allocation2 + $0x1334] ss:$24 sps:$4 sm:$0xff]   ;;  %v17847_v28 = vld [vmem:[#allocation43_spill] sm:$0xff] }
 0x3be   : > { %7205 = vmatpush1.bf16.msra.mxu0 %v15101_v3  ;;  %4729 = vmatprep.subr.bf16.mxu1 %v13354_v11  ;;  %v13361_v3 = vld [vmem:[#allocation2 + $0x1330] ss:$24 sps:$4 sm:$0xff]   ;;  %v15459_v11 = vld [vmem:[#allocation2 + $0xd80] ss:$24 sps:$4 sm:$0xff]  }
 0x3bf   : > { %7206 = vmatprep.subr.bf16.mxu0 %v15105_v6  ;;  %v13366_v6 = vld [vmem:[#allocation2 + $0x1364] ss:$24 sps:$4 sm:$0xff]  }
 0x3c1   : > { %4730 = vmatpush1.bf16.msra.mxu1 %v13352_v1  ;;  %v15463_v1 = vld [vmem:[#allocation2 + $0xdb4] ss:$24 sps:$4 sm:$0xff]  }
 0x3c2   : > { %7207 = vmatpush1.bf16.msra.mxu0 %v15110_v10  ;;  %4731 = vmatprep.subr.bf16.mxu1 %v13357_v53  ;;  %v13364_v10 = vld [vmem:[#allocation2 + $0x1360] ss:$24 sps:$4 sm:$0xff]  }
 0x3c3   : > { %7208 = vmatprep.subr.bf16.mxu0 %v15113_v20  ;;  %v13369_v20 = vld [vmem:[#allocation2 + $0x1394] ss:$24 sps:$4 sm:$0xff]   ;;  %v17848_v53 = vld [vmem:[#allocation31_spill] sm:$0xff] }
 0x3c5   : > { %4732 = vmatpush1.bf16.msra.mxu1 %v13355_v60  ;;  %v15469_v60 = vld [vmem:[#allocation2 + $0xdb0] ss:$24 sps:$4 sm:$0xff]  }
 0x3c6   : > { %7209 = vmatpush1.bf16.msra.mxu0 %v15117_v12  ;;  %4733 = vmatprep.subr.bf16.mxu1 %v13360_v57  ;;  %v13367_v12 = vld [vmem:[#allocation2 + $0x1390] ss:$24 sps:$4 sm:$0xff]   ;;  %v17850_v57 = vld [vmem:[#allocation30_spill] sm:$0xff] }
 0x3c7   : > { %7210 = vmatprep.subr.bf16.mxu0 %v15120_v22  ;;  %v13372_v22 = vld [vmem:[#allocation2 + $0x13c4] ss:$24 sps:$4 sm:$0xff]  }
 0x3c9   : > { %4734 = vmatpush1.bf16.msra.mxu1 %v13358_v42  ;;  %v15473_v42 = vld [vmem:[#allocation2 + $0xde4] ss:$24 sps:$4 sm:$0xff]  }
 0x3ca   : > { %7211 = vmatpush1.bf16.msra.mxu0 %v15123_v25  ;;  %4735 = vmatprep.subr.bf16.mxu1 %v13363_v23  ;;  %v13370_v25 = vld [vmem:[#allocation2 + $0x13c0] ss:$24 sps:$4 sm:$0xff]   ;;  %v17851_v23 = vld [vmem:[#allocation45_spill] sm:$0xff] }
 0x3cb   : > { %7212 = vmatprep.subr.bf16.mxu0 %v15126_v29  ;;  %v13375_v29 = vld [vmem:[#allocation2 + $0x13f4] ss:$24 sps:$4 sm:$0xff]  }
 0x3cd   : > { %4736 = vmatpush1.bf16.msra.mxu1 %v13361_v3  ;;  %v17853_v3 = vld [vmem:[#allocation47_spill] sm:$0xff] }
 0x3ce   : > { %7213 = vmatpush1.bf16.msra.mxu0 %v15129_v31  ;;  %4737 = vmatprep.subr.bf16.mxu1 %v13366_v6  ;;  %v13373_v31 = vld [vmem:[#allocation2 + $0x13f0] ss:$24 sps:$4 sm:$0xff]   ;;  %v15483_v6 = vld [vmem:[#allocation2 + $0xe14] ss:$24 sps:$4 sm:$0xff]  }
 0x3cf   : > { %7214 = vmatprep.subr.bf16.mxu0 %v15132_v37  ;;  %v13378_v37 = vld [vmem:[#allocation2 + $0x1424] ss:$24 sps:$4 sm:$0xff]  }
 0x3d1   : > { %4738 = vmatpush1.bf16.msra.mxu1 %v13364_v10  ;;  %v17854_v10 = vld [vmem:[#allocation33_spill] sm:$0xff] }
 0x3d2   : > { %7215 = vmatpush1.bf16.msra.mxu0 %v15135_v58  ;;  %4739 = vmatprep.subr.bf16.mxu1 %v13369_v20  ;;  %v13376_v58 = vld [vmem:[#allocation2 + $0x1420] ss:$24 sps:$4 sm:$0xff]   ;;  %v15488_v20 = vld [vmem:[#allocation2 + $0xe10] ss:$24 sps:$4 sm:$0xff]  }
 0x3d3   : > { %7216 = vmatprep.subr.bf16.mxu0 %v15138_v40  ;;  %v13381_v40 = vld [vmem:[#allocation2 + $0x1454] ss:$24 sps:$4 sm:$0xff]  }
 0x3d5   : > { %4740 = vmatpush1.bf16.msra.mxu1 %v13367_v12  ;;  %v17855_v12 = vld [vmem:[#allocation48_spill] sm:$0xff] }
 0x3d6   : > { %7217 = vmatpush1.bf16.msra.mxu0 %v15141_v43  ;;  %4741 = vmatprep.subr.bf16.mxu1 %v13372_v22  ;;  %v13379_v43 = vld [vmem:[#allocation2 + $0x1450] ss:$24 sps:$4 sm:$0xff]   ;;  %v15492_v22 = vld [vmem:[#allocation2 + $0xe44] ss:$24 sps:$4 sm:$0xff]  }
 0x3d7   : > { %7218 = vmatprep.subr.bf16.mxu0 %v15144_v18  ;;  %v13384_v18 = vld [vmem:[#allocation2 + $0x1484] ss:$24 sps:$4 sm:$0xff]  }
 0x3d9   : > { %4742 = vmatpush1.bf16.msra.mxu1 %v13370_v25  ;;  %v17856_v25 = vld [vmem:[#allocation49_spill] sm:$0xff] }
 0x3da   : > { %7219 = vmatpush1.bf16.msra.mxu0 %v15147_v47  ;;  %4743 = vmatprep.subr.bf16.mxu1 %v13375_v29  ;;  %v13382_v47 = vld [vmem:[#allocation2 + $0x1480] ss:$24 sps:$4 sm:$0xff]  }
 0x3db   : > { %7220 = vmatprep.subr.bf16.mxu0 %v15150_v51  ;;  %v13387_v51 = vld [vmem:[#allocation2 + $0x14b4] ss:$24 sps:$4 sm:$0xff]   ;;  %v15496_v29 = vld [vmem:[#allocation2 + $0xe40] ss:$24 sps:$4 sm:$0xff]  }
 0x3dd   : > { %4744 = vmatpush1.bf16.msra.mxu1 %v13373_v31  ;;  %v17857_v31 = vld [vmem:[#allocation50_spill] sm:$0xff] }
 0x3de   : > { %7221 = vmatpush1.bf16.msra.mxu0 %v15153_v63  ;;  %4745 = vmatprep.subr.bf16.mxu1 %v13378_v37  ;;  %v13385_v63 = vld [vmem:[#allocation2 + $0x14b0] ss:$24 sps:$4 sm:$0xff]   ;;  %v17858_v37 = vld [vmem:[#allocation51_spill] sm:$0xff] }
 0x3df   : > { %7222 = vmatprep.subr.bf16.mxu0 %v15156_v5  ;;  %v13390_v5 = vld [vmem:[#allocation2 + $0x14e4] ss:$24 sps:$4 sm:$0xff]  }
 0x3e1   : > { %4746 = vmatpush1.bf16.msra.mxu1 %v13376_v58  ;;  %v15504_v58 = vld [vmem:[#allocation2 + $0xe70] ss:$24 sps:$4 sm:$0xff]  }
 0x3e2   : > { %7223 = vmatpush1.bf16.msra.mxu0 %v15159_v15  ;;  %4747 = vmatprep.subr.bf16.mxu1 %v13381_v40  ;;  %v13388_v15 = vld [vmem:[#allocation2 + $0x14e0] ss:$24 sps:$4 sm:$0xff]   ;;  %v17859_v40 = vld [vmem:[#allocation52_spill] sm:$0xff] }
 0x3e3   : > { %7224 = vmatprep.subr.bf16.mxu0 %v15162_v9  ;;  %v13393_v9 = vld [vmem:[#allocation2 + $0x1514] ss:$24 sps:$4 sm:$0xff]  }
 0x3e5   : > { %4748 = vmatpush1.bf16.msra.mxu1 %v13379_v43  ;;  %v15508_v43 = vld [vmem:[#allocation2 + $0xea4] ss:$24 sps:$4 sm:$0xff]  }
 0x3e6   : > { %7225 = vmatpush1.bf16.msra.mxu0 %v15165_v27  ;;  %4749 = vmatprep.subr.bf16.mxu1 %v13384_v18  ;;  %v13391_v27 = vld [vmem:[#allocation2 + $0x1510] ss:$24 sps:$4 sm:$0xff]  }
 0x3e7   : > { %7226 = vmatprep.subr.bf16.mxu0 %v15168_v33  ;;  %v13396_v33 = vld [vmem:[#allocation2 + $0x1544] ss:$24 sps:$4 sm:$0xff]   ;;  %v17860_v18 = vld [vmem:[#allocation53_spill] sm:$0xff] }
 0x3e9   : > { %4750 = vmatpush1.bf16.msra.mxu1 %v13382_v47  ;;  %v15512_v47 = vld [vmem:[#allocation2 + $0xea0] ss:$24 sps:$4 sm:$0xff]  }
 0x3ea   : > { %7227 = vmatpush1.bf16.msra.mxu0 %v15171_v38  ;;  %4751 = vmatprep.subr.bf16.mxu1 %v13387_v51  ;;  %v13394_v38 = vld [vmem:[#allocation2 + $0x1540] ss:$24 sps:$4 sm:$0xff]  }
 0x3eb   : > { %7228 = vmatprep.subr.bf16.mxu0 %v15174_v44  ;;  %v13399_v44 = vld [vmem:[#allocation2 + $0x1574] ss:$24 sps:$4 sm:$0xff]   ;;  %v17861_v51 = vld [vmem:[#allocation54_spill] sm:$0xff] }
 0x3ed   : > { %4752 = vmatpush1.bf16.msra.mxu1 %v13385_v63  ;;  %v15516_v63 = vld [vmem:[#allocation2 + $0xed4] ss:$24 sps:$4 sm:$0xff]  }
 0x3ee   : > { %7229 = vmatpush1.bf16.msra.mxu0 %v15177_v50  ;;  %4753 = vmatprep.subr.bf16.mxu1 %v13390_v5  ;;  %v13397_v50 = vld [vmem:[#allocation2 + $0x1570] ss:$24 sps:$4 sm:$0xff]   ;;  %v17862_v5 = vld [vmem:[#allocation55_spill] sm:$0xff] }
 0x3ef   : > { %7230 = vmatprep.subr.bf16.mxu0 %v15180_v49  ;;  %v13403_v49 = vld [vmem:[#allocation2 + $0x15d0] ss:$24 sps:$4 sm:$0xff]  }
 0x3f1   : > { %4754 = vmatpush1.bf16.msra.mxu1 %v13388_v15  ;;  %v15520_v15 = vld [vmem:[#allocation2 + $0xed0] ss:$24 sps:$4 sm:$0xff]  }
 0x3f2   : > { %7231 = vmatpush1.bf16.msra.mxu0 %v15183_v21  ;;  %4776 = vmatprep.subr.bf16.mxu1 %v13393_v9  ;;  %v17841_v21 = vld [vmem:[#allocation37_spill] sm:$0xff]  ;;  %v17863_v9 = vld [vmem:[#allocation56_spill] sm:$0xff] }
 0x3f3   : > { %7243 = vmatprep.subr.bf16.mxu0 %v15186_v61  ;;  %v13406_v61 = vld [vmem:[#allocation2 + $0x1600] ss:$24 sps:$4 sm:$0xff]  }
 0x3f4   : > { %4756 = vmatmul.mubr.bf16.vlgmr.msra.gmra.mrb[24].mxu1 %v15065_v4  ;;  %v13402_v4 = vld [vmem:[#allocation2 + $0x15a4] ss:$24 sps:$4 sm:$0xff]  }
 0x3f5   : > { %7233 = vmatmul.mubr.bf16.vlgmr.msra.gmra.mrb[36].mxu0 %v14931_v16  ;;  %4765 = vmatprep.mubr.bf16.mxu1 %v15045_v35  ;;  %v13400_v35 = vld [vmem:[#allocation2 + $0x15a0] ss:$24 sps:$4 sm:$0xff]  }
 0x3f6   : > { %4777 = vmatpush1.bf16.msra.mxu1 %v13391_v27  ;;  %7244 = vmatpush1.bf16.msra.mxu0 %v15189_v41  ;;  %v17843_v41 = vld [vmem:[#allocation39_spill] sm:$0xff] }
 0x3f7   : > { %4778 = vmatprep.subr.bf16.mxu1 %v13396_v33  ;;  %7245 = vmatprep.subr.bf16.mxu0 %v15192_v19  ;;  %v13405_v19 = vld [vmem:[#allocation2 + $0x15d4] ss:$24 sps:$4 sm:$0xff]   ;;  %v15524_v27 = vld [vmem:[#allocation2 + $0xf04] ss:$24 sps:$4 sm:$0xff]  }
 0x3f8   : > { %7275 = vmatprep.mubr.bf16.mxu0 %v17792_v30  ;;  %v17864_v33 = vld [vmem:[#allocation57_spill] sm:$0xff] }
 0x3fa   : > { %4779 = vmatpush1.bf16.msra.mxu1 %v13394_v38  ;;  %7246 = vmatpush1.bf16.msra.mxu0 %v15198_v7  ;;  %v17844_v7 = vld [vmem:[#allocation40_spill] sm:$0xff]  ;;  %v15528_v38 = vld [vmem:[#allocation2 + $0xf00] ss:$24 sps:$4 sm:$0xff]  }
 0x3fb   : > { %4780 = vmatprep.subr.bf16.mxu1 %v13399_v44  ;;  %7247 = vmatprep.subr.bf16.mxu0 %v15201_v52  ;;  %v13408_v52 = vld [vmem:[#allocation2 + $0x1604] ss:$24 sps:$4 sm:$0xff]  }
 0x3fc   : > { %4766 = vmatmul.mubr.bf16.gmra.mrb[28].mxu1 %v15058_v59  ;;  %v17842_v59 = vld [vmem:[#allocation38_spill] sm:$0xff] }
 0x3fd   : > { %4808 = vmatprep.mubr.bf16.mxu1 %v17792_v30  ;;  %v17865_v44 = vld [vmem:[#allocation58_spill] sm:$0xff] }
 0x3fe   : > { %4781 = vmatpush1.bf16.msra.mxu1 %v13397_v50  ;;  %7248 = vmatpush1.bf16.msra.mxu0 %v15205_v13  ;;  %v13411_v13 = vld [vmem:[#allocation2 + $0x1634] ss:$24 sps:$4 sm:$0xff]  }
 0x3ff   : > { %4782 = vmatprep.subr.bf16.mxu1 %v13402_v4  ;;  %7249 = vmatprep.subr.bf16.mxu0 %v15208_v34  ;;  %v13409_v34 = vld [vmem:[#allocation2 + $0x1630] ss:$24 sps:$4 sm:$0xff]   ;;  %v15532_v50 = vld [vmem:[#allocation2 + $0xf34] ss:$24 sps:$4 sm:$0xff]   ;;  %v17866_v4 = vld [vmem:[#allocation59_spill] sm:$0xff] }
 0x402   : > { %4783 = vmatpush1.bf16.msra.mxu1 %v13400_v35  ;;  %7250 = vmatpush1.bf16.msra.mxu0 %v15213_v32  ;;  %v13414_v32 = vld [vmem:[#allocation2 + $0x1664] ss:$24 sps:$4 sm:$0xff]   ;;  %v15536_v35 = vld [vmem:[#allocation2 + $0xf30] ss:$24 sps:$4 sm:$0xff]  }
 0x403   : > { %4784 = vmatprep.subr.bf16.mxu1 %v13405_v19  ;;  %7251 = vmatprep.subr.bf16.mxu0 %v17841_v21  ;;  %v17867_v19 = vld [vmem:[#allocation60_spill] sm:$0xff]  ;;  %v17868_v21 = vld [vmem:[#allocation61_spill] sm:$0xff] }
 0x406   : > { %4785 = vmatpush1.bf16.msra.mxu1 %v13403_v49  ;;  %7252 = vmatpush1.bf16.msra.mxu0 %v17842_v59  ;;  %v15540_v49 = vld [vmem:[#allocation2 + $0xf64] ss:$24 sps:$4 sm:$0xff]  }
 0x407   : > { %4786 = vmatprep.subr.bf16.mxu1 %v13408_v52  ;;  %7253 = vmatprep.subr.bf16.mxu0 %v17843_v41  ;;  %v15544_v52 = vld [vmem:[#allocation2 + $0xf60] ss:$24 sps:$4 sm:$0xff]  }
 0x408   : > { %v17869_v59 = vld [vmem:[#allocation62_spill] sm:$0xff]  ;;  %v17870_v41 = vld [vmem:[#allocation63_spill] sm:$0xff] }
 0x40a   : > { %4787 = vmatpush1.bf16.msra.mxu1 %v13406_v61  ;;  %7254 = vmatpush1.bf16.msra.mxu0 %v17844_v7  ;;  %v15548_v61 = vld [vmem:[#allocation2 + $0xf94] ss:$24 sps:$4 sm:$0xff]  }
 0x40b   : > { %4788 = vmatprep.subr.bf16.mxu1 %v13411_v13  ;;  %7255 = vmatprep.subr.bf16.mxu0 %v17845_v8  ;;  %v15552_v13 = vld [vmem:[#allocation2 + $0xf90] ss:$24 sps:$4 sm:$0xff]  }
 0x40c   : > { %v17871_v7 = vld [vmem:[#allocation64_spill] sm:$0xff]  ;;  %v17872_v8 = vld [vmem:[#allocation65_spill] sm:$0xff] }
 0x40e   : > { %4789 = vmatpush1.bf16.msra.mxu1 %v13409_v34  ;;  %7256 = vmatpush1.bf16.msra.mxu0 %v17846_v36  ;;  %v15556_v34 = vld [vmem:[#allocation2 + $0xfc4] ss:$24 sps:$4 sm:$0xff]  }
 0x40f   : > { %4790 = vmatprep.subr.bf16.mxu1 %v13414_v32  ;;  %7257 = vmatprep.subr.bf16.mxu0 %v15234_v17  ;;  %v17849_v17 = vld [vmem:[#allocation44_spill] sm:$0xff]  ;;  %v15560_v32 = vld [vmem:[#allocation2 + $0xfc0] ss:$24 sps:$4 sm:$0xff]  }
 0x410   : > { %v17873_v36 = vld [vmem:[#allocation66_spill] sm:$0xff] }
 0x412   : > { %4791 = vmatpush1.bf16.msra.mxu1 %v13412_v45  ;;  %7258 = vmatpush1.bf16.msra.mxu0 %v17847_v28  ;;  %v15564_v45 = vld [vmem:[#allocation2 + $0xff4] ss:$24 sps:$4 sm:$0xff]   ;;  %v17874_v28 = vld [vmem:[#allocation67_spill] sm:$0xff] }
 0x413   : > { %5863 = vmatprep.subr.bf16.mxu1 %v15456_v24  ;;  %7461 = vmatprep.subr.bf16.mxu0 %v15240_v54  ;;  %v17852_v54 = vld [vmem:[#allocation46_spill] sm:$0xff] }
 0x415   : > { %4809 = vmatmul.mubr.bf16.vlgmr.msra.gmra.mrb[24].mxu1 %v15089_v56  ;;  %7276 = vmatmul.mubr.bf16.vlgmr.msra.gmra.mrb[36].mxu0 %v17848_v53  ;;  %v15479_v56 = vld [vmem:[#allocation2 + $0xde0] ss:$24 sps:$4 sm:$0xff]  }
 0x416   : > { %5864 = vmatpush1.bf16.msra.mxu1 %v15459_v11  ;;  %7462 = vmatpush1.bf16.msra.mxu0 %v17849_v17  ;;  %v15568_v17 = vld [vmem:[#allocation2 + $0xff0] ss:$24 sps:$4 sm:$0xff]  }
 0x417   : > { %7493 = vmatprep.mubr.bf16.mxu0 %v17850_v57  ;;  %5865 = vmatprep.subr.bf16.mxu1 %v15463_v1  ;;  %v15679_v57 = vld [vmem:[#allocation2 + $0xe24] ss:$24 sps:$4 sm:$0xff]  }
 0x418   : > { %7463 = vmatprep.subr.bf16.mxu0 %v17851_v23  ;;  %4818 = vmatprep.mubr.bf16.mxu1 %v17792_v30  ;;  %v17875_v23 = vld [vmem:[#allocation68_spill] sm:$0xff]  ;;  %17901 = vst [vmem:[#allocation42_spill] sm:$0xff] %v15679_v57 }
 0x41a   : > { %5866 = vmatpush1.bf16.msra.mxu1 %v15469_v60  ;;  %7464 = vmatpush1.bf16.msra.mxu0 %v17852_v54  ;;  %v15572_v54 = vld [vmem:[#allocation2 + $0x1024] ss:$24 sps:$4 sm:$0xff]  }
 0x41b   : > { %5867 = vmatprep.subr.bf16.mxu1 %v15473_v42  ;;  %7465 = vmatprep.subr.bf16.mxu0 %v17853_v3  ;;  %v17876_v3 = vld [vmem:[#allocation69_spill] sm:$0xff] }
 0x41d   : > { %4819 = vmatmul.mubr.bf16.gmra.mrb[28].mxu1 %v15077_v48  ;;  %v15500_v48 = vld [vmem:[#allocation2 + $0xe74] ss:$24 sps:$4 sm:$0xff]  }
 0x41e   : > { %5868 = vmatpush1.bf16.msra.mxu1 %v15479_v56  ;;  %5895 = vmatprep.mubr.bf16.mxu1 %v17854_v10 }
 0x41f   : > { %7466 = vmatpush1.bf16.msra.mxu0 %v17855_v12  ;;  %5869 = vmatprep.subr.bf16.mxu1 %v15483_v6  ;;  %v15576_v12 = vld [vmem:[#allocation2 + $0x1020] ss:$24 sps:$4 sm:$0xff]  }
 0x420   : > { %7467 = vmatprep.subr.bf16.mxu0 %v17856_v25  ;;  %v17877_v25 = vld [vmem:[#allocation70_spill] sm:$0xff] }
 0x422   : > { %5870 = vmatpush1.bf16.msra.mxu1 %v15488_v20 }
 0x423   : > { %7468 = vmatpush1.bf16.msra.mxu0 %v17857_v31  ;;  %5871 = vmatprep.subr.bf16.mxu1 %v15492_v22  ;;  %v15580_v31 = vld [vmem:[#allocation2 + $0x1054] ss:$24 sps:$4 sm:$0xff]  }
 0x424   : > { %7469 = vmatprep.subr.bf16.mxu0 %v17858_v37  ;;  %v17878_v37 = vld [vmem:[#allocation71_spill] sm:$0xff] }
 0x426   : > { %5872 = vmatpush1.bf16.msra.mxu1 %v15496_v29 }
 0x427   : > { %7470 = vmatpush1.bf16.msra.mxu0 %v17859_v40  ;;  %5873 = vmatprep.subr.bf16.mxu1 %v15500_v48  ;;  %v15584_v40 = vld [vmem:[#allocation2 + $0x1050] ss:$24 sps:$4 sm:$0xff]  }
 0x428   : > { %7471 = vmatprep.subr.bf16.mxu0 %v17860_v18  ;;  %v15588_v18 = vld [vmem:[#allocation2 + $0x1084] ss:$24 sps:$4 sm:$0xff]  }
 0x42a   : > { %5874 = vmatpush1.bf16.msra.mxu1 %v15504_v58 }
 0x42b   : > { %7472 = vmatpush1.bf16.msra.mxu0 %v17861_v51  ;;  %5875 = vmatprep.subr.bf16.mxu1 %v15508_v43  ;;  %v15592_v51 = vld [vmem:[#allocation2 + $0x1080] ss:$24 sps:$4 sm:$0xff]  }
 0x42c   : > { %7473 = vmatprep.subr.bf16.mxu0 %v17862_v5  ;;  %v17879_v5 = vld [vmem:[#allocation72_spill] sm:$0xff] }
 0x42e   : > { %5876 = vmatpush1.bf16.msra.mxu1 %v15512_v47 }
 0x42f   : > { %7474 = vmatpush1.bf16.msra.mxu0 %v17863_v9  ;;  %5877 = vmatprep.subr.bf16.mxu1 %v15516_v63  ;;  %v15596_v9 = vld [vmem:[#allocation2 + $0x10b4] ss:$24 sps:$4 sm:$0xff]  }
 0x430   : > { %7475 = vmatprep.subr.bf16.mxu0 %v17864_v33  ;;  %v17880_v33 = vld [vmem:[#allocation73_spill] sm:$0xff] }
 0x432   : > { %5878 = vmatpush1.bf16.msra.mxu1 %v15520_v15 }
 0x433   : > { %7476 = vmatpush1.bf16.msra.mxu0 %v17865_v44  ;;  %5879 = vmatprep.subr.bf16.mxu1 %v15524_v27  ;;  %v17881_v44 = vld [vmem:[#allocation34_spill] sm:$0xff] }
 0x434   : > { %7477 = vmatprep.subr.bf16.mxu0 %v17866_v4  ;;  %v15602_v4 = vld [vmem:[#allocation2 + $0x10b0] ss:$24 sps:$4 sm:$0xff]  }
 0x436   : > { %5880 = vmatpush1.bf16.msra.mxu1 %v15528_v38 }
 0x437   : > { %7478 = vmatpush1.bf16.msra.mxu0 %v17867_v19  ;;  %5881 = vmatprep.subr.bf16.mxu1 %v15532_v50  ;;  %v15606_v19 = vld [vmem:[#allocation2 + $0x10e4] ss:$24 sps:$4 sm:$0xff]  }
 0x438   : > { %7479 = vmatprep.subr.bf16.mxu0 %v17868_v21  ;;  %v17884_v21 = vld [vmem:[#allocation75_spill] sm:$0xff] }
 0x43a   : > { %5882 = vmatpush1.bf16.msra.mxu1 %v15536_v35 }
 0x43b   : > { %7480 = vmatpush1.bf16.msra.mxu0 %v17869_v59  ;;  %5883 = vmatprep.subr.bf16.mxu1 %v15540_v49  ;;  %v15612_v59 = vld [vmem:[#allocation2 + $0x10e0] ss:$24 sps:$4 sm:$0xff]  }
 0x43c   : > { %7481 = vmatprep.subr.bf16.mxu0 %v17870_v41  ;;  %v17885_v41 = vld [vmem:[#allocation76_spill] sm:$0xff] }
 0x43e   : > { %5884 = vmatpush1.bf16.msra.mxu1 %v15544_v52 }
 0x43f   : > { %7482 = vmatpush1.bf16.msra.mxu0 %v17871_v7  ;;  %5885 = vmatprep.subr.bf16.mxu1 %v15548_v61  ;;  %v15616_v7 = vld [vmem:[#allocation2 + $0x1114] ss:$24 sps:$4 sm:$0xff]  }
 0x440   : > { %7483 = vmatprep.subr.bf16.mxu0 %v17872_v8  ;;  %v17886_v8 = vld [vmem:[#allocation77_spill] sm:$0xff] }
 0x442   : > { %5886 = vmatpush1.bf16.msra.mxu1 %v15552_v13 }
 0x443   : > { %7484 = vmatpush1.bf16.msra.mxu0 %v17873_v36  ;;  %5887 = vmatprep.subr.bf16.mxu1 %v15556_v34  ;;  %v15620_v36 = vld [vmem:[#allocation2 + $0x1110] ss:$24 sps:$4 sm:$0xff]  }
 0x444   : > { %7485 = vmatprep.subr.bf16.mxu0 %v17874_v28  ;;  %v17887_v28 = vld [vmem:[#allocation78_spill] sm:$0xff] }
 0x446   : > { %5888 = vmatpush1.bf16.msra.mxu1 %v15560_v32 }
 0x447   : > { %7486 = vmatpush1.bf16.msra.mxu0 %v17875_v23  ;;  %5889 = vmatprep.subr.bf16.mxu1 %v15564_v45  ;;  %v15624_v23 = vld [vmem:[#allocation2 + $0x1144] ss:$24 sps:$4 sm:$0xff]  }
 0x448   : > { %7487 = vmatprep.subr.bf16.mxu0 %v17876_v3  ;;  %v17888_v3 = vld [vmem:[#allocation79_spill] sm:$0xff] }
 0x44a   : > { %5890 = vmatpush1.bf16.msra.mxu1 %v15568_v17 }
 0x44b   : > { %7488 = vmatpush1.bf16.msra.mxu0 %v17877_v25  ;;  %5891 = vmatprep.subr.bf16.mxu1 %v15572_v54  ;;  %v15628_v25 = vld [vmem:[#allocation2 + $0x1140] ss:$24 sps:$4 sm:$0xff]  }
 0x44c   : > { %7489 = vmatprep.subr.bf16.mxu0 %v17878_v37  ;;  %v17889_v37 = vld [vmem:[#allocation80_spill] sm:$0xff] }
 0x44e   : > { %5892 = vmatpush1.bf16.msra.mxu1 %v15576_v12 }
 0x44f   : > { %7490 = vmatpush1.bf16.msra.mxu0 %v15333_v62  ;;  %5893 = vmatprep.subr.bf16.mxu1 %v15580_v31  ;;  %v17882_v62 = vld [vmem:[#allocation32_spill] sm:$0xff] }
 0x450   : > { %7491 = vmatprep.subr.bf16.mxu0 %v15336_v0  ;;  %v17883_v0 = vld [vmem:[#allocation74_spill] sm:$0xff] }
 0x452   : > { %5894 = vmatpush1.bf16.msra.mxu1 %v15584_v40 }
 0x453   : > { %7492 = vmatpush1.bf16.msra.mxu0 %v17879_v5  ;;  %5906 = vmatprep.subr.bf16.mxu1 %v15588_v18  ;;  %v15632_v5 = vld [vmem:[#allocation2 + $0x1174] ss:$24 sps:$4 sm:$0xff]  }
 0x454   : > { %7504 = vmatprep.subr.bf16.mxu0 %v17880_v33  ;;  %v17890_v33 = vld [vmem:[#allocation81_spill] sm:$0xff] }
 0x455   : > { %5896 = vmatmul.mubr.bf16.vlgmr.msra.gmra.mrb[16].mxu1 %v17881_v44 }
 0x456   : > { %7494 = vmatmul.mubr.bf16.vlgmr.msra.gmra.mrb[36].mxu0 %v17882_v62  ;;  %5907 = vmatpush1.bf16.msra.mxu1 %v15592_v51  ;;  %v17897_v62 = vld [vmem:[#allocation35_spill] sm:$0xff] }
 0x457   : > { %7505 = vmatpush1.bf16.msra.mxu0 %v17883_v0  ;;  %5908 = vmatprep.subr.bf16.mxu1 %v15596_v9  ;;  %v15636_v0 = vld [vmem:[#allocation2 + $0x1170] ss:$24 sps:$4 sm:$0xff]  }
 0x458   : > { %7506 = vmatprep.subr.bf16.mxu0 %v17884_v21  ;;  %5938 = vmatprep.mubr.bf16.mxu1 %v17792_v30  ;;  %v17891_v21 = vld [vmem:[#allocation82_spill] sm:$0xff] }
 0x459   : > { %7536 = vmatprep.mubr.bf16.mxu0 %v17792_v30 }
 0x45a   : > { %5909 = vmatpush1.bf16.msra.mxu1 %v15602_v4 }
 0x45b   : > { %7507 = vmatpush1.bf16.msra.mxu0 %v17885_v41  ;;  %5910 = vmatprep.subr.bf16.mxu1 %v15606_v19  ;;  %v15640_v41 = vld [vmem:[#allocation2 + $0x11a4] ss:$24 sps:$4 sm:$0xff]  }
 0x45c   : > { %7508 = vmatprep.subr.bf16.mxu0 %v17886_v8  ;;  %v17892_v8 = vld [vmem:[#allocation83_spill] sm:$0xff] }
 0x45e   : > { %5911 = vmatpush1.bf16.msra.mxu1 %v15612_v59 }
 0x45f   : > { %7509 = vmatpush1.bf16.msra.mxu0 %v17887_v28  ;;  %5912 = vmatprep.subr.bf16.mxu1 %v15616_v7  ;;  %v15644_v28 = vld [vmem:[#allocation2 + $0x11a0] ss:$24 sps:$4 sm:$0xff]  }
 0x460   : > { %7510 = vmatprep.subr.bf16.mxu0 %v17888_v3  ;;  %v17893_v3 = vld [vmem:[#allocation84_spill] sm:$0xff] }
 0x462   : > { %5913 = vmatpush1.bf16.msra.mxu1 %v15620_v36 }
 0x463   : > { %7511 = vmatpush1.bf16.msra.mxu0 %v17889_v37  ;;  %5914 = vmatprep.subr.bf16.mxu1 %v15624_v23  ;;  %v15648_v37 = vld [vmem:[#allocation2 + $0x11d4] ss:$24 sps:$4 sm:$0xff]  }
 0x464   : > { %7512 = vmatprep.subr.bf16.mxu0 %v17890_v33  ;;  %v15652_v33 = vld [vmem:[#allocation2 + $0x11d0] ss:$24 sps:$4 sm:$0xff]  }
 0x466   : > { %5915 = vmatpush1.bf16.msra.mxu1 %v15628_v25 }
 0x467   : > { %7513 = vmatpush1.bf16.msra.mxu0 %v17891_v21  ;;  %5916 = vmatprep.subr.bf16.mxu1 %v15632_v5  ;;  %v15656_v21 = vld [vmem:[#allocation2 + $0xd94] ss:$24 sps:$4 sm:$0xff]  }
 0x468   : > { %7514 = vmatprep.subr.bf16.mxu0 %v17892_v8  ;;  %v15660_v8 = vld [vmem:[#allocation2 + $0xd90] ss:$24 sps:$4 sm:$0xff]  }
 0x469   : > { %17894 = vst [vmem:[#allocation37_spill] sm:$0xff] %v15660_v8 }
 0x46a   : > { %5917 = vmatpush1.bf16.msra.mxu1 %v15636_v0 }
 0x46b   : > { %7515 = vmatpush1.bf16.msra.mxu0 %v17893_v3  ;;  %5918 = vmatprep.subr.bf16.mxu1 %v15640_v41  ;;  %v17896_v3 = vld [vmem:[#allocation36_spill] sm:$0xff] }
 0x46c   : > { %7516 = vmatprep.subr.bf16.mxu0 %v15384_v14  ;;  %v15664_v14 = vld [vmem:[#allocation2 + $0xdc4] ss:$24 sps:$4 sm:$0xff]  }
 0x46d   : > { %17895 = vst [vmem:[#allocation38_spill] sm:$0xff] %v15664_v14 }
 0x46e   : > { %5919 = vmatpush1.bf16.msra.mxu1 %v15644_v28 }
 0x46f   : > { %7517 = vmatpush1.bf16.msra.mxu0 %v15387_v55  ;;  %5920 = vmatprep.subr.bf16.mxu1 %v15648_v37  ;;  %v15669_v55 = vld [vmem:[#allocation2 + $0xdc0] ss:$24 sps:$4 sm:$0xff]  }
 0x470   : > { %7518 = vmatprep.subr.bf16.mxu0 %v15390_v26  ;;  %17898 = vst [vmem:[#allocation39_spill] sm:$0xff] %v15669_v55  ;;  %v15673_v26 = vld [vmem:[#allocation2 + $0xdf4] ss:$24 sps:$4 sm:$0xff]  }
 0x471   : > { %17899 = vst [vmem:[#allocation40_spill] sm:$0xff] %v15673_v26 }
 0x472   : > { %5921 = vmatpush1.bf16.msra.mxu1 %v15652_v33 }
 0x473   : > { %7519 = vmatpush1.bf16.msra.mxu0 %v15393_v2  ;;  %6035 = vmatprep.subr.bf16.mxu1 %v15656_v21  ;;  %v15676_v2 = vld [vmem:[#allocation2 + $0xdf0] ss:$24 sps:$4 sm:$0xff]  }
 0x474   : > { %17900 = vst [vmem:[#allocation41_spill] sm:$0xff] %v15676_v2 }
 0x475   : > { %5939 = vmatmul.mubr.bf16.vlgmr.msra.gmra.mrb[16].mxu1 %v17896_v3 }
 0x476   : > { %7537 = vmatmul.mubr.bf16.vlgmr.msra.gmra.mrb[36].mxu0 %v17897_v62  ;;  %6036 = vmatpush1.bf16.msra.mxu1 %v15660_v8  ;;  %v15682_v62 = vld [vmem:[#allocation2 + $0xe20] ss:$24 sps:$4 sm:$0xff]   ;;  %v15685_v8 = vld [vmem:[#allocation2 + $0xe54] ss:$24 sps:$4 sm:$0xff]  }
 0x477   : > { %6067 = vmatprep.mubr.bf16.mxu1 %v17854_v10  ;;  %6037 = vmatprep.subr.bf16.mxu1 %v15664_v14  ;;  %17902 = vst [vmem:[#allocation43_spill] sm:$0xff] %v15682_v62  ;;  %17903 = vst [vmem:[#allocation44_spill] sm:$0xff] %v15685_v8  ;;  %v15688_v10 = vld [vmem:[#allocation2 + $0xe50] ss:$24 sps:$4 sm:$0xff]  }
 0x478   : > { %17904 = vst [vmem:[#allocation45_spill] sm:$0xff] %v15688_v10 }
 0x47a   : > { %6038 = vmatpush1.bf16.msra.mxu1 %v15669_v55  ;;  %v15691_v55 = vld [vmem:[#allocation2 + $0xe84] ss:$24 sps:$4 sm:$0xff]  }
 0x47b   : > { %6039 = vmatprep.subr.bf16.mxu1 %v15673_v26  ;;  %17905 = vst [vmem:[#allocation46_spill] sm:$0xff] %v15691_v55  ;;  %v15694_v26 = vld [vmem:[#allocation2 + $0xe80] ss:$24 sps:$4 sm:$0xff]  }
 0x47c   : > { %17906 = vst [vmem:[#allocation47_spill] sm:$0xff] %v15694_v26 }
 0x47e   : > { %6040 = vmatpush1.bf16.msra.mxu1 %v15676_v2  ;;  %v15699_v2 = vld [vmem:[#allocation2 + $0xeb4] ss:$24 sps:$4 sm:$0xff]  }
 0x47f   : > { %6041 = vmatprep.subr.bf16.mxu1 %v15679_v57  ;;  %17908 = vst [vmem:[#allocation48_spill] sm:$0xff] %v15699_v2 }
 0x482   : > { %6042 = vmatpush1.bf16.msra.mxu1 %v15682_v62 }
 0x483   : > { %6043 = vmatprep.subr.bf16.mxu1 %v15685_v8  ;;  %v15708_v8 = vld [vmem:[#allocation2 + $0xeb0] ss:$24 sps:$4 sm:$0xff]  }
 0x484   : > { %17911 = vst [vmem:[#allocation51_spill] sm:$0xff] %v15708_v8 }
 0x486   : > { %6044 = vmatpush1.bf16.msra.mxu1 %v15688_v10  ;;  %v15711_v10 = vld [vmem:[#allocation2 + $0xee4] ss:$24 sps:$4 sm:$0xff]  }
 0x487   : > { %v15696_v14 = vpop.f32.mrb[32].mxu0  ;;  %6045 = vmatprep.subr.bf16.mxu1 %v15691_v55  ;;  %17912 = vst [vmem:[#allocation52_spill] sm:$0xff] %v15711_v10  ;;  %v15717_v55 = vld [vmem:[#allocation2 + $0xf14] ss:$24 sps:$4 sm:$0xff]  }
 0x488   : > { %17907 = vst [vmem:[#allocation33_spill] sm:$0xff] %v15696_v14  ;;  %v15701_v57 = vpop.f32.mrb[33].mxu0  ;;  %v15714_v14 = vld [vmem:[#allocation2 + $0xee0] ss:$24 sps:$4 sm:$0xff]   ;;  %17914 = vst [vmem:[#allocation54_spill] sm:$0xff] %v15717_v55 }
 0x489   : > { %v15703_v53 = vpop.f32.mrb[34].mxu0  ;;  %17913 = vst [vmem:[#allocation53_spill] sm:$0xff] %v15714_v14 }
 0x48a   : > { %17909 = vst [vmem:[#allocation49_spill] sm:$0xff] %v15703_v53  ;;  %6046 = vmatpush1.bf16.msra.mxu1 %v15694_v26  ;;  %v15706_v62 = vpop.f32.mrb[35].mxu0  ;;  %v15720_v53 = vld [vmem:[#allocation2 + $0xf10] ss:$24 sps:$4 sm:$0xff]  }
 0x48b   : > { %17910 = vst [vmem:[#allocation50_spill] sm:$0xff] %v15706_v62  ;;  %6047 = vmatprep.subr.bf16.mxu1 %v15699_v2  ;;  %17915 = vst [vmem:[#allocation55_spill] sm:$0xff] %v15720_v53  ;;  %v15723_v62 = vld [vmem:[#allocation2 + $0xf44] ss:$24 sps:$4 sm:$0xff]   ;;  %v15726_v2 = vld [vmem:[#allocation2 + $0xf40] ss:$24 sps:$4 sm:$0xff]  }
 0x48c   : > { %17916 = vst [vmem:[#allocation56_spill] sm:$0xff] %v15723_v62  ;;  %17917 = vst [vmem:[#allocation57_spill] sm:$0xff] %v15726_v2 }
 0x48e   : > { %6048 = vmatpush1.bf16.msra.mxu1 %v15708_v8  ;;  %v15729_v8 = vld [vmem:[#allocation2 + $0xf74] ss:$24 sps:$4 sm:$0xff]  }
 0x48f   : > { %6049 = vmatprep.subr.bf16.mxu1 %v15711_v10  ;;  %17918 = vst [vmem:[#allocation58_spill] sm:$0xff] %v15729_v8  ;;  %v15732_v10 = vld [vmem:[#allocation2 + $0xf70] ss:$24 sps:$4 sm:$0xff]  }
 0x490   : > { %17919 = vst [vmem:[#allocation59_spill] sm:$0xff] %v15732_v10 }
 0x492   : > { %6050 = vmatpush1.bf16.msra.mxu1 %v15714_v14  ;;  %v15735_v14 = vld [vmem:[#allocation2 + $0xfa4] ss:$24 sps:$4 sm:$0xff]  }
 0x493   : > { %6051 = vmatprep.subr.bf16.mxu1 %v15717_v55  ;;  %17920 = vst [vmem:[#allocation60_spill] sm:$0xff] %v15735_v14  ;;  %v15738_v55 = vld [vmem:[#allocation2 + $0xfa0] ss:$24 sps:$4 sm:$0xff]  }
 0x494   : > { %17921 = vst [vmem:[#allocation61_spill] sm:$0xff] %v15738_v55 }
 0x496   : > { %6052 = vmatpush1.bf16.msra.mxu1 %v15720_v53  ;;  %v15741_v53 = vld [vmem:[#allocation2 + $0xfd4] ss:$24 sps:$4 sm:$0xff]  }
 0x497   : > { %6053 = vmatprep.subr.bf16.mxu1 %v15723_v62  ;;  %17922 = vst [vmem:[#allocation62_spill] sm:$0xff] %v15741_v53  ;;  %v15744_v62 = vld [vmem:[#allocation2 + $0xfd0] ss:$24 sps:$4 sm:$0xff]  }
 0x498   : > { %17923 = vst [vmem:[#allocation63_spill] sm:$0xff] %v15744_v62 }
 0x49a   : > { %6054 = vmatpush1.bf16.msra.mxu1 %v15726_v2  ;;  %v15747_v2 = vld [vmem:[#allocation2 + $0x1004] ss:$24 sps:$4 sm:$0xff]  }
 0x49b   : > { %6055 = vmatprep.subr.bf16.mxu1 %v15729_v8  ;;  %17924 = vst [vmem:[#allocation64_spill] sm:$0xff] %v15747_v2  ;;  %v15750_v8 = vld [vmem:[#allocation2 + $0x1000] ss:$24 sps:$4 sm:$0xff]  }
 0x49c   : > { %17925 = vst [vmem:[#allocation65_spill] sm:$0xff] %v15750_v8 }
 0x49e   : > { %6056 = vmatpush1.bf16.msra.mxu1 %v15732_v10  ;;  %v15753_v10 = vld [vmem:[#allocation2 + $0x1034] ss:$24 sps:$4 sm:$0xff]  }
 0x49f   : > { %6057 = vmatprep.subr.bf16.mxu1 %v15735_v14  ;;  %17926 = vst [vmem:[#allocation66_spill] sm:$0xff] %v15753_v10  ;;  %v15756_v14 = vld [vmem:[#allocation2 + $0x1030] ss:$24 sps:$4 sm:$0xff]  }
 0x4a0   : > { %17927 = vst [vmem:[#allocation67_spill] sm:$0xff] %v15756_v14 }
 0x4a2   : > { %6058 = vmatpush1.bf16.msra.mxu1 %v15738_v55  ;;  %v15759_v55 = vld [vmem:[#allocation2 + $0x1064] ss:$24 sps:$4 sm:$0xff]  }
 0x4a3   : > { %6059 = vmatprep.subr.bf16.mxu1 %v15741_v53  ;;  %17928 = vst [vmem:[#allocation68_spill] sm:$0xff] %v15759_v55  ;;  %v15762_v53 = vld [vmem:[#allocation2 + $0x1060] ss:$24 sps:$4 sm:$0xff]  }
 0x4a4   : > { %17929 = vst [vmem:[#allocation69_spill] sm:$0xff] %v15762_v53 }
 0x4a6   : > { %6060 = vmatpush1.bf16.msra.mxu1 %v15744_v62  ;;  %v15765_v62 = vld [vmem:[#allocation2 + $0x1094] ss:$24 sps:$4 sm:$0xff]  }
 0x4a7   : > { %6061 = vmatprep.subr.bf16.mxu1 %v15747_v2  ;;  %17930 = vst [vmem:[#allocation70_spill] sm:$0xff] %v15765_v62  ;;  %v15768_v2 = vld [vmem:[#allocation2 + $0x1090] ss:$24 sps:$4 sm:$0xff]  }
 0x4a8   : > { %17931 = vst [vmem:[#allocation71_spill] sm:$0xff] %v15768_v2 }
 0x4aa   : > { %6062 = vmatpush1.bf16.msra.mxu1 %v15750_v8  ;;  %v15771_v8 = vld [vmem:[#allocation2 + $0x10c4] ss:$24 sps:$4 sm:$0xff]  }
 0x4ab   : > { %6063 = vmatprep.subr.bf16.mxu1 %v15753_v10  ;;  %17932 = vst [vmem:[#allocation72_spill] sm:$0xff] %v15771_v8  ;;  %v15775_v10 = vld [vmem:[#allocation2 + $0x10c0] ss:$24 sps:$4 sm:$0xff]  }
 0x4ac   : > { %17933 = vst [vmem:[#allocation73_spill] sm:$0xff] %v15775_v10 }
 0x4ae   : > { %6064 = vmatpush1.bf16.msra.mxu1 %v15756_v14  ;;  %v17982_v14 = vld [vmem:[#allocation27_spill] sm:$0xff] }
 0x4af   : > { %6065 = vmatprep.subr.bf16.mxu1 %v15759_v55  ;;  %v15779_v55 = vld [vmem:[#allocation2 + $0x10f4] ss:$24 sps:$4 sm:$0xff]  }
 0x4b0   : > { %17934 = vst [vmem:[#allocation34_spill] sm:$0xff] %v15779_v55 }
 0x4b2   : > { %6066 = vmatpush1.bf16.msra.mxu1 %v15762_v53  ;;  %v15782_v53 = vld [vmem:[#allocation2 + $0x10f0] ss:$24 sps:$4 sm:$0xff]  }
 0x4b3   : > { %6078 = vmatprep.subr.bf16.mxu1 %v15765_v62  ;;  %17935 = vst [vmem:[#allocation74_spill] sm:$0xff] %v15782_v53  ;;  %v15785_v62 = vld [vmem:[#allocation2 + $0x1124] ss:$24 sps:$4 sm:$0xff]  }
 0x4b4   : > { %17936 = vst [vmem:[#allocation75_spill] sm:$0xff] %v15785_v62 }
 0x4b5   : > { %6068 = vmatmul.mubr.bf16.vlgmr.msra.gmra.mrb[24].mxu1 %v17881_v44  ;;  %v15788_v44 = vld [vmem:[#allocation2 + $0x1120] ss:$24 sps:$4 sm:$0xff]  }
 0x4b6   : > { %6079 = vmatpush1.bf16.msra.mxu1 %v15768_v2  ;;  %6110 = vmatprep.mubr.bf16.mxu1 %v17792_v30  ;;  %17937 = vst [vmem:[#allocation76_spill] sm:$0xff] %v15788_v44  ;;  %v15791_v2 = vld [vmem:[#allocation2 + $0x1154] ss:$24 sps:$4 sm:$0xff]  }
 0x4b7   : > { %6080 = vmatprep.subr.bf16.mxu1 %v15771_v8  ;;  %17938 = vst [vmem:[#allocation77_spill] sm:$0xff] %v15791_v2  ;;  %v15794_v8 = vld [vmem:[#allocation2 + $0x1150] ss:$24 sps:$4 sm:$0xff]  }
 0x4b8   : > { %17939 = vst [vmem:[#allocation78_spill] sm:$0xff] %v15794_v8 }
 0x4ba   : > { %6081 = vmatpush1.bf16.msra.mxu1 %v15775_v10  ;;  %v15797_v10 = vld [vmem:[#allocation2 + $0x1184] ss:$24 sps:$4 sm:$0xff]  }
 0x4bb   : > { %6082 = vmatprep.subr.bf16.mxu1 %v15779_v55  ;;  %17940 = vst [vmem:[#allocation79_spill] sm:$0xff] %v15797_v10  ;;  %v15800_v55 = vld [vmem:[#allocation2 + $0x1180] ss:$24 sps:$4 sm:$0xff]  }
 0x4bc   : > { %17941 = vst [vmem:[#allocation80_spill] sm:$0xff] %v15800_v55 }
 0x4be   : > { %6083 = vmatpush1.bf16.msra.mxu1 %v15782_v53  ;;  %v15803_v53 = vld [vmem:[#allocation2 + $0x11b4] ss:$24 sps:$4 sm:$0xff]  }
 0x4bf   : > { %6084 = vmatprep.subr.bf16.mxu1 %v15785_v62  ;;  %17942 = vst [vmem:[#allocation81_spill] sm:$0xff] %v15803_v53  ;;  %v15806_v62 = vld [vmem:[#allocation2 + $0x11b0] ss:$24 sps:$4 sm:$0xff]  }
 0x4c0   : > { %17943 = vst [vmem:[#allocation82_spill] sm:$0xff] %v15806_v62 }
 0x4c2   : > { %6085 = vmatpush1.bf16.msra.mxu1 %v15788_v44  ;;  %v15809_v44 = vld [vmem:[#allocation2 + $0x11e4] ss:$24 sps:$4 sm:$0xff]  }
 0x4c3   : > { %6086 = vmatprep.subr.bf16.mxu1 %v15791_v2  ;;  %17944 = vst [vmem:[#allocation83_spill] sm:$0xff] %v15809_v44  ;;  %v15812_v2 = vld [vmem:[#allocation2 + $0x11e0] ss:$24 sps:$4 sm:$0xff]  }
 0x4c4   : > { %17945 = vst [vmem:[#allocation84_spill] sm:$0xff] %v15812_v2 }
 0x4c6   : > { %6087 = vmatpush1.bf16.msra.mxu1 %v15794_v8  ;;  %v15815_v8 = vld [vmem:[#allocation2 + $0x484] ss:$24 sps:$4 sm:$0xff]  }
 0x4c7   : > { %6088 = vmatprep.subr.bf16.mxu1 %v15797_v10  ;;  %17946 = vst [vmem:[#allocation36_spill] sm:$0xff] %v15815_v8  ;;  %v15818_v10 = vld [vmem:[#allocation2 + $0x480] ss:$24 sps:$4 sm:$0xff]  }
 0x4c8   : > { %17947 = vst [vmem:[#allocation85_spill] sm:$0xff] %v15818_v10 }
 0x4ca   : > { %6089 = vmatpush1.bf16.msra.mxu1 %v15800_v55  ;;  %v15821_v55 = vld [vmem:[#allocation2 + $0x4b4] ss:$24 sps:$4 sm:$0xff]  }
 0x4cb   : > { %6090 = vmatprep.subr.bf16.mxu1 %v15803_v53  ;;  %17948 = vst [vmem:[#allocation86_spill] sm:$0xff] %v15821_v55  ;;  %v17949_v53 = vld [vmem:[#allocation29_spill] sm:$0xff] }
 0x4ce   : > { %6091 = vmatpush1.bf16.msra.mxu1 %v15806_v62  ;;  %v15826_v62 = vld [vmem:[#allocation2 + $0x4b0] ss:$24 sps:$4 sm:$0xff]  }
 0x4cf   : > { %6092 = vmatprep.subr.bf16.mxu1 %v15809_v44  ;;  %17950 = vst [vmem:[#allocation29_spill] sm:$0xff] %v15826_v62  ;;  %v15829_v44 = vld [vmem:[#allocation2 + $0x4e4] ss:$24 sps:$4 sm:$0xff]  }
 0x4d0   : > { %17951 = vst [vmem:[#allocation87_spill] sm:$0xff] %v15829_v44 }
 0x4d2   : > { %6093 = vmatpush1.bf16.msra.mxu1 %v15812_v2  ;;  %v15832_v2 = vld [vmem:[#allocation2 + $0x4e0] ss:$24 sps:$4 sm:$0xff]  }
 0x4d3   : > { %6841 = vmatprep.subr.bf16.mxu1 %v15815_v8  ;;  %17952 = vst [vmem:[#allocation88_spill] sm:$0xff] %v15832_v2  ;;  %v15835_v8 = vld [vmem:[#allocation2 + $0x514] ss:$24 sps:$4 sm:$0xff]  }
 0x4d4   : > { %17953 = vst [vmem:[#allocation89_spill] sm:$0xff] %v15835_v8 }
 0x4d5   : > { %6111 = vmatmul.mubr.bf16.vlgmr.msra.gmra.mrb[24].mxu1 %v17896_v3  ;;  %v15838_v3 = vld [vmem:[#allocation2 + $0x510] ss:$24 sps:$4 sm:$0xff]  }
 0x4d6   : > { %6842 = vmatpush1.bf16.msra.mxu1 %v15818_v10  ;;  %6873 = vmatprep.mubr.bf16.mxu1 %v17949_v53  ;;  %17954 = vst [vmem:[#allocation90_spill] sm:$0xff] %v15838_v3  ;;  %v15841_v10 = vld [vmem:[#allocation2 + $0x544] ss:$24 sps:$4 sm:$0xff]  }
 0x4d7   : > { %6843 = vmatprep.subr.bf16.mxu1 %v15821_v55  ;;  %17955 = vst [vmem:[#allocation91_spill] sm:$0xff] %v15841_v10  ;;  %v15844_v55 = vld [vmem:[#allocation2 + $0x540] ss:$24 sps:$4 sm:$0xff]  }
 0x4d8   : > { %17956 = vst [vmem:[#allocation92_spill] sm:$0xff] %v15844_v55 }
 0x4da   : > { %6844 = vmatpush1.bf16.msra.mxu1 %v15826_v62  ;;  %v15847_v62 = vld [vmem:[#allocation2 + $0x574] ss:$24 sps:$4 sm:$0xff]  }
 0x4db   : > { %6845 = vmatprep.subr.bf16.mxu1 %v15829_v44  ;;  %17957 = vst [vmem:[#allocation93_spill] sm:$0xff] %v15847_v62  ;;  %v15850_v44 = vld [vmem:[#allocation2 + $0x570] ss:$24 sps:$4 sm:$0xff]  }
 0x4dc   : > { %17958 = vst [vmem:[#allocation94_spill] sm:$0xff] %v15850_v44 }
 0x4de   : > { %6846 = vmatpush1.bf16.msra.mxu1 %v15832_v2  ;;  %v15853_v2 = vld [vmem:[#allocation2 + $0x5a4] ss:$24 sps:$4 sm:$0xff]  }
 0x4df   : > { %6847 = vmatprep.subr.bf16.mxu1 %v15835_v8  ;;  %17959 = vst [vmem:[#allocation95_spill] sm:$0xff] %v15853_v2  ;;  %v15856_v8 = vld [vmem:[#allocation2 + $0x5a0] ss:$24 sps:$4 sm:$0xff]  }
 0x4e0   : > { %17960 = vst [vmem:[#allocation96_spill] sm:$0xff] %v15856_v8 }
 0x4e2   : > { %6848 = vmatpush1.bf16.msra.mxu1 %v15838_v3  ;;  %v15859_v3 = vld [vmem:[#allocation2 + $0x5d4] ss:$24 sps:$4 sm:$0xff]  }
 0x4e3   : > { %6849 = vmatprep.subr.bf16.mxu1 %v15841_v10  ;;  %17961 = vst [vmem:[#allocation97_spill] sm:$0xff] %v15859_v3  ;;  %v15862_v10 = vld [vmem:[#allocation2 + $0x5d0] ss:$24 sps:$4 sm:$0xff]  }
 0x4e4   : > { %17962 = vst [vmem:[#allocation98_spill] sm:$0xff] %v15862_v10 }
 0x4e6   : > { %6850 = vmatpush1.bf16.msra.mxu1 %v15844_v55  ;;  %v15865_v55 = vld [vmem:[#allocation2 + $0x604] ss:$24 sps:$4 sm:$0xff]  }
 0x4e7   : > { %6851 = vmatprep.subr.bf16.mxu1 %v15847_v62  ;;  %17963 = vst [vmem:[#allocation99_spill] sm:$0xff] %v15865_v55  ;;  %v15868_v62 = vld [vmem:[#allocation2 + $0x600] ss:$24 sps:$4 sm:$0xff]  }
 0x4e8   : > { %17964 = vst [vmem:[#allocation100_spill] sm:$0xff] %v15868_v62 }
 0x4ea   : > { %6852 = vmatpush1.bf16.msra.mxu1 %v15850_v44  ;;  %v15871_v44 = vld [vmem:[#allocation2 + $0x634] ss:$24 sps:$4 sm:$0xff]  }
 0x4eb   : > { %6853 = vmatprep.subr.bf16.mxu1 %v15853_v2  ;;  %17965 = vst [vmem:[#allocation101_spill] sm:$0xff] %v15871_v44  ;;  %v15874_v2 = vld [vmem:[#allocation2 + $0x630] ss:$24 sps:$4 sm:$0xff]  }
 0x4ec   : > { %17966 = vst [vmem:[#allocation102_spill] sm:$0xff] %v15874_v2 }
 0x4ee   : > { %6854 = vmatpush1.bf16.msra.mxu1 %v15856_v8  ;;  %v15877_v8 = vld [vmem:[#allocation2 + $0x664] ss:$24 sps:$4 sm:$0xff]  }
 0x4ef   : > { %6855 = vmatprep.subr.bf16.mxu1 %v15859_v3  ;;  %17967 = vst [vmem:[#allocation103_spill] sm:$0xff] %v15877_v8  ;;  %v15880_v3 = vld [vmem:[#allocation2 + $0x660] ss:$24 sps:$4 sm:$0xff]  }
 0x4f0   : > { %17968 = vst [vmem:[#allocation104_spill] sm:$0xff] %v15880_v3 }
 0x4f2   : > { %6856 = vmatpush1.bf16.msra.mxu1 %v15862_v10  ;;  %v15883_v10 = vld [vmem:[#allocation2 + $0x694] ss:$24 sps:$4 sm:$0xff]  }
 0x4f3   : > { %6857 = vmatprep.subr.bf16.mxu1 %v15865_v55  ;;  %17969 = vst [vmem:[#allocation105_spill] sm:$0xff] %v15883_v10  ;;  %v15886_v55 = vld [vmem:[#allocation2 + $0x690] ss:$24 sps:$4 sm:$0xff]  }
 0x4f4   : > { %17970 = vst [vmem:[#allocation106_spill] sm:$0xff] %v15886_v55 }
 0x4f6   : > { %6858 = vmatpush1.bf16.msra.mxu1 %v15868_v62  ;;  %v15889_v62 = vld [vmem:[#allocation2 + $0x6c4] ss:$24 sps:$4 sm:$0xff]  }
 0x4f7   : > { %6859 = vmatprep.subr.bf16.mxu1 %v15871_v44  ;;  %17971 = vst [vmem:[#allocation107_spill] sm:$0xff] %v15889_v62  ;;  %v15892_v44 = vld [vmem:[#allocation2 + $0x6c0] ss:$24 sps:$4 sm:$0xff]  }
 0x4f8   : > { %17972 = vst [vmem:[#allocation108_spill] sm:$0xff] %v15892_v44 }
 0x4fa   : > { %6860 = vmatpush1.bf16.msra.mxu1 %v15874_v2  ;;  %v15895_v2 = vld [vmem:[#allocation2 + $0x6f4] ss:$24 sps:$4 sm:$0xff]  }
 0x4fb   : > { %6861 = vmatprep.subr.bf16.mxu1 %v15877_v8  ;;  %17973 = vst [vmem:[#allocation109_spill] sm:$0xff] %v15895_v2  ;;  %v15898_v8 = vld [vmem:[#allocation2 + $0x6f0] ss:$24 sps:$4 sm:$0xff]  }
 0x4fc   : > { %17974 = vst [vmem:[#allocation110_spill] sm:$0xff] %v15898_v8 }
 0x4fe   : > { %6862 = vmatpush1.bf16.msra.mxu1 %v15880_v3  ;;  %v15901_v3 = vld [vmem:[#allocation2 + $0x724] ss:$24 sps:$4 sm:$0xff]  }
 0x4ff   : > { %6863 = vmatprep.subr.bf16.mxu1 %v15883_v10  ;;  %17975 = vst [vmem:[#allocation111_spill] sm:$0xff] %v15901_v3  ;;  %v15904_v10 = vld [vmem:[#allocation2 + $0x720] ss:$24 sps:$4 sm:$0xff]  }
 0x500   : > { %17976 = vst [vmem:[#allocation112_spill] sm:$0xff] %v15904_v10 }
 0x502   : > { %6864 = vmatpush1.bf16.msra.mxu1 %v15886_v55  ;;  %v15907_v55 = vld [vmem:[#allocation2 + $0x754] ss:$24 sps:$4 sm:$0xff]  }
 0x503   : > { %6865 = vmatprep.subr.bf16.mxu1 %v15889_v62  ;;  %17977 = vst [vmem:[#allocation113_spill] sm:$0xff] %v15907_v55  ;;  %v15910_v62 = vld [vmem:[#allocation2 + $0x750] ss:$24 sps:$4 sm:$0xff]  }
 0x504   : > { %17978 = vst [vmem:[#allocation114_spill] sm:$0xff] %v15910_v62 }
 0x506   : > { %6866 = vmatpush1.bf16.msra.mxu1 %v15892_v44  ;;  %v15913_v44 = vld [vmem:[#allocation2 + $0x784] ss:$24 sps:$4 sm:$0xff]  }
 0x507   : > { %6867 = vmatprep.subr.bf16.mxu1 %v15895_v2  ;;  %17979 = vst [vmem:[#allocation115_spill] sm:$0xff] %v15913_v44  ;;  %v15916_v2 = vld [vmem:[#allocation2 + $0x780] ss:$24 sps:$4 sm:$0xff]  }
 0x508   : > { %17980 = vst [vmem:[#allocation116_spill] sm:$0xff] %v15916_v2 }
 0x50a   : > { %6868 = vmatpush1.bf16.msra.mxu1 %v15898_v8  ;;  %v15919_v8 = vld [vmem:[#allocation2 + $0x7b4] ss:$24 sps:$4 sm:$0xff]  }
 0x50b   : > { %6869 = vmatprep.subr.bf16.mxu1 %v15901_v3  ;;  %17981 = vst [vmem:[#allocation117_spill] sm:$0xff] %v15919_v8  ;;  %v15923_v3 = vld [vmem:[#allocation2 + $0x7b0] ss:$24 sps:$4 sm:$0xff]  }
 0x50c   : > { %17983 = vst [vmem:[#allocation27_spill] sm:$0xff] %v15923_v3 }
 0x50e   : > { %6870 = vmatpush1.bf16.msra.mxu1 %v15904_v10  ;;  %v15936_v10 = vld [vmem:[#allocation2 + $0x810] ss:$24 sps:$4 sm:$0xff]  }
 0x50f   : > { %6871 = vmatprep.subr.bf16.mxu1 %v15907_v55  ;;  %v15927_v55 = vld [vmem:[#allocation2 + $0x7e4] ss:$24 sps:$4 sm:$0xff]   ;;  %17987 = vst [vmem:[#allocation121_spill] sm:$0xff] %v15936_v10 }
 0x510   : > { %17984 = vst [vmem:[#allocation118_spill] sm:$0xff] %v15927_v55 }
 0x512   : > { %6872 = vmatpush1.bf16.msra.mxu1 %v15910_v62  ;;  %v15930_v62 = vld [vmem:[#allocation2 + $0x7e0] ss:$24 sps:$4 sm:$0xff]  }
 0x513   : > { %6884 = vmatprep.subr.bf16.mxu1 %v15913_v44  ;;  %17985 = vst [vmem:[#allocation119_spill] sm:$0xff] %v15930_v62  ;;  %v15933_v44 = vld [vmem:[#allocation2 + $0x814] ss:$24 sps:$4 sm:$0xff]  }
 0x514   : > { %17986 = vst [vmem:[#allocation120_spill] sm:$0xff] %v15933_v44 }
 0x515   : > { %6874 = vmatmul.mubr.bf16.vlgmr.msra.gmra.mrb[16].mxu1 %v17982_v14 }
 0x516   : > { %6885 = vmatpush1.bf16.msra.mxu1 %v15916_v2  ;;  %6916 = vmatprep.mubr.bf16.mxu1 %v17792_v30  ;;  %v15939_v2 = vld [vmem:[#allocation2 + $0x844] ss:$24 sps:$4 sm:$0xff]  }
 0x517   : > { %6886 = vmatprep.subr.bf16.mxu1 %v15919_v8  ;;  %17988 = vst [vmem:[#allocation122_spill] sm:$0xff] %v15939_v2  ;;  %v15942_v8 = vld [vmem:[#allocation2 + $0x840] ss:$24 sps:$4 sm:$0xff]  }
 0x518   : > { %17989 = vst [vmem:[#allocation123_spill] sm:$0xff] %v15942_v8 }
 0x51a   : > { %6887 = vmatpush1.bf16.msra.mxu1 %v15923_v3  ;;  %v15945_v3 = vld [vmem:[#allocation2 + $0x874] ss:$24 sps:$4 sm:$0xff]  }
 0x51b   : > { %6888 = vmatprep.subr.bf16.mxu1 %v15927_v55  ;;  %17990 = vst [vmem:[#allocation124_spill] sm:$0xff] %v15945_v3  ;;  %v15948_v55 = vld [vmem:[#allocation2 + $0x870] ss:$24 sps:$4 sm:$0xff]  }
 0x51c   : > { %17991 = vst [vmem:[#allocation125_spill] sm:$0xff] %v15948_v55 }
 0x51e   : > { %6889 = vmatpush1.bf16.msra.mxu1 %v15930_v62  ;;  %v15951_v62 = vld [vmem:[#allocation2 + $0x8a4] ss:$24 sps:$4 sm:$0xff]  }
 0x51f   : > { %6890 = vmatprep.subr.bf16.mxu1 %v15933_v44  ;;  %17992 = vst [vmem:[#allocation126_spill] sm:$0xff] %v15951_v62  ;;  %v15954_v44 = vld [vmem:[#allocation2 + $0x8a0] ss:$24 sps:$4 sm:$0xff]  }
 0x520   : > { %17993 = vst [vmem:[#allocation127_spill] sm:$0xff] %v15954_v44 }
 0x522   : > { %6891 = vmatpush1.bf16.msra.mxu1 %v15936_v10  ;;  %v15957_v10 = vld [vmem:[#allocation2 + $0x8d4] ss:$24 sps:$4 sm:$0xff]  }
 0x523   : > { %6892 = vmatprep.subr.bf16.mxu1 %v15939_v2  ;;  %17994 = vst [vmem:[#allocation128_spill] sm:$0xff] %v15957_v10  ;;  %v15960_v2 = vld [vmem:[#allocation2 + $0x8d0] ss:$24 sps:$4 sm:$0xff]  }
 0x524   : > { %17995 = vst [vmem:[#allocation129_spill] sm:$0xff] %v15960_v2 }
 0x526   : > { %6893 = vmatpush1.bf16.msra.mxu1 %v15942_v8  ;;  %v15963_v8 = vld [vmem:[#allocation2 + $0x494] ss:$24 sps:$4 sm:$0xff]  }
 0x527   : > { %6894 = vmatprep.subr.bf16.mxu1 %v15945_v3  ;;  %17996 = vst [vmem:[#allocation130_spill] sm:$0xff] %v15963_v8  ;;  %v15966_v3 = vld [vmem:[#allocation2 + $0x490] ss:$24 sps:$4 sm:$0xff]  }
 0x528   : > { %17997 = vst [vmem:[#allocation131_spill] sm:$0xff] %v15966_v3 }
 0x52a   : > { %6895 = vmatpush1.bf16.msra.mxu1 %v15948_v55  ;;  %v15969_v55 = vld [vmem:[#allocation2 + $0x4c4] ss:$24 sps:$4 sm:$0xff]  }
 0x52b   : > { %6896 = vmatprep.subr.bf16.mxu1 %v15951_v62  ;;  %17998 = vst [vmem:[#allocation132_spill] sm:$0xff] %v15969_v55  ;;  %v15986_v62 = vld [vmem:[#allocation2 + $0x520] ss:$24 sps:$4 sm:$0xff]  }
 0x52c   : > { %18003 = vst [vmem:[#allocation137_spill] sm:$0xff] %v15986_v62 }
 0x52e   : > { %6897 = vmatpush1.bf16.msra.mxu1 %v15954_v44  ;;  %v15974_v44 = vld [vmem:[#allocation2 + $0x4c0] ss:$24 sps:$4 sm:$0xff]  }
 0x52f   : > { %6898 = vmatprep.subr.bf16.mxu1 %v15957_v10  ;;  %17999 = vst [vmem:[#allocation133_spill] sm:$0xff] %v15974_v44  ;;  %v15977_v10 = vld [vmem:[#allocation2 + $0x4f4] ss:$24 sps:$4 sm:$0xff]  }
 0x530   : > { %18000 = vst [vmem:[#allocation134_spill] sm:$0xff] %v15977_v10 }
 0x532   : > { %6899 = vmatpush1.bf16.msra.mxu1 %v15960_v2  ;;  %v15980_v2 = vld [vmem:[#allocation2 + $0x4f0] ss:$24 sps:$4 sm:$0xff]  }
 0x533   : > { %7013 = vmatprep.subr.bf16.mxu1 %v15963_v8  ;;  %18001 = vst [vmem:[#allocation135_spill] sm:$0xff] %v15980_v2  ;;  %v15983_v8 = vld [vmem:[#allocation2 + $0x524] ss:$24 sps:$4 sm:$0xff]  }
 0x534   : > { %18002 = vst [vmem:[#allocation136_spill] sm:$0xff] %v15983_v8 }
 0x535   : > { %6917 = vmatmul.mubr.bf16.vlgmr.msra.gmra.mrb[16].mxu1 %v14967_v46 }
 0x536   : > { %7014 = vmatpush1.bf16.msra.mxu1 %v15966_v3  ;;  %7045 = vmatprep.mubr.bf16.mxu1 %v17949_v53  ;;  %v15989_v53 = vld [vmem:[#allocation2 + $0x554] ss:$24 sps:$4 sm:$0xff]  }
 0x537   : > { %7015 = vmatprep.subr.bf16.mxu1 %v15969_v55  ;;  %18004 = vst [vmem:[#allocation138_spill] sm:$0xff] %v15989_v53  ;;  %v15992_v55 = vld [vmem:[#allocation2 + $0x550] ss:$24 sps:$4 sm:$0xff]  }
 0x538   : > { %18005 = vst [vmem:[#allocation139_spill] sm:$0xff] %v15992_v55 }
 0x53a   : > { %7016 = vmatpush1.bf16.msra.mxu1 %v15974_v44  ;;  %v15995_v44 = vld [vmem:[#allocation2 + $0x584] ss:$24 sps:$4 sm:$0xff]  }
 0x53b   : > { %7017 = vmatprep.subr.bf16.mxu1 %v15977_v10  ;;  %18006 = vst [vmem:[#allocation140_spill] sm:$0xff] %v15995_v44  ;;  %v15998_v10 = vld [vmem:[#allocation2 + $0x580] ss:$24 sps:$4 sm:$0xff]  }
 0x53e   : > { %7018 = vmatpush1.bf16.msra.mxu1 %v15980_v2  ;;  %v16001_v2 = vld [vmem:[#allocation2 + $0x5b4] ss:$24 sps:$4 sm:$0xff]  }
 0x53f   : > { %7019 = vmatprep.subr.bf16.mxu1 %v15983_v8  ;;  %18007 = vst [vmem:[#allocation141_spill] sm:$0xff] %v16001_v2 }
 0x542   : > { %7020 = vmatpush1.bf16.msra.mxu1 %v15986_v62  ;;  %v16008_v62 = vld [vmem:[#allocation2 + $0x5b0] ss:$24 sps:$4 sm:$0xff]  }
 0x543   : > { %7021 = vmatprep.subr.bf16.mxu1 %v15989_v53  ;;  %v16013_v53 = vld [vmem:[#allocation2 + $0x5e4] ss:$24 sps:$4 sm:$0xff]  }
 0x544   : > { %18011 = vst [vmem:[#allocation145_spill] sm:$0xff] %v16013_v53 }
 0x546   : > { %7022 = vmatpush1.bf16.msra.mxu1 %v15992_v55 }
 0x547   : > { %7023 = vmatprep.subr.bf16.mxu1 %v15995_v44  ;;  %v16018_v44 = vld [vmem:[#allocation2 + $0x5e0] ss:$24 sps:$4 sm:$0xff]  }
 0x548   : > { %18013 = vst [vmem:[#allocation147_spill] sm:$0xff] %v16018_v44 }
 0x549   : > { %v16003_v3 = vpop.f32.mrb[36].mxu0 }
 0x54a   : > { %18008 = vst [vmem:[#allocation142_spill] sm:$0xff] %v16003_v3  ;;  %v16005_v8 = vpop.f32.mrb[37].mxu0  ;;  %7024 = vmatpush1.bf16.msra.mxu1 %v15998_v10  ;;  %v16021_v3 = vld [vmem:[#allocation2 + $0x614] ss:$24 sps:$4 sm:$0xff]  }
 0x54b   : > { %18009 = vst [vmem:[#allocation143_spill] sm:$0xff] %v16005_v8  ;;  %v16010_v26 = vpop.f32.mrb[38].mxu0  ;;  %7025 = vmatprep.subr.bf16.mxu1 %v16001_v2  ;;  %18014 = vst [vmem:[#allocation148_spill] sm:$0xff] %v16021_v3  ;;  %v16024_v8 = vld [vmem:[#allocation2 + $0x610] ss:$24 sps:$4 sm:$0xff]  }
 0x54c   : > { %18010 = vst [vmem:[#allocation144_spill] sm:$0xff] %v16010_v26  ;;  %v16015_v55 = vpop.f32.mrb[39].mxu0  ;;  %18015 = vst [vmem:[#allocation149_spill] sm:$0xff] %v16024_v8  ;;  %v16027_v26 = vld [vmem:[#allocation2 + $0x644] ss:$24 sps:$4 sm:$0xff]  }
 0x54d   : > { %18012 = vst [vmem:[#allocation146_spill] sm:$0xff] %v16015_v55  ;;  %18016 = vst [vmem:[#allocation150_spill] sm:$0xff] %v16027_v26  ;;  %v16030_v2 = vld [vmem:[#allocation2 + $0x640] ss:$24 sps:$4 sm:$0xff]   ;;  %v16033_v55 = vld [vmem:[#allocation2 + $0x674] ss:$24 sps:$4 sm:$0xff]  }
 0x54e   : > { %7026 = vmatpush1.bf16.msra.mxu1 %v16008_v62  ;;  %18017 = vst [vmem:[#allocation151_spill] sm:$0xff] %v16030_v2  ;;  %18018 = vst [vmem:[#allocation152_spill] sm:$0xff] %v16033_v55 }
 0x54f   : > { %7027 = vmatprep.subr.bf16.mxu1 %v16013_v53  ;;  %v16036_v53 = vld [vmem:[#allocation2 + $0x670] ss:$24 sps:$4 sm:$0xff]  }
 0x550   : > { %18019 = vst [vmem:[#allocation153_spill] sm:$0xff] %v16036_v53 }
 0x552   : > { %7028 = vmatpush1.bf16.msra.mxu1 %v16018_v44  ;;  %v16039_v44 = vld [vmem:[#allocation2 + $0x6a4] ss:$24 sps:$4 sm:$0xff]  }
 0x553   : > { %7029 = vmatprep.subr.bf16.mxu1 %v16021_v3  ;;  %18020 = vst [vmem:[#allocation154_spill] sm:$0xff] %v16039_v44  ;;  %v16042_v3 = vld [vmem:[#allocation2 + $0x6a0] ss:$24 sps:$4 sm:$0xff]  }
 0x554   : > { %18021 = vst [vmem:[#allocation155_spill] sm:$0xff] %v16042_v3 }
 0x556   : > { %7030 = vmatpush1.bf16.msra.mxu1 %v16024_v8  ;;  %v16045_v8 = vld [vmem:[#allocation2 + $0x6d4] ss:$24 sps:$4 sm:$0xff]  }
 0x557   : > { %7031 = vmatprep.subr.bf16.mxu1 %v16027_v26  ;;  %18022 = vst [vmem:[#allocation156_spill] sm:$0xff] %v16045_v8  ;;  %v16048_v26 = vld [vmem:[#allocation2 + $0x6d0] ss:$24 sps:$4 sm:$0xff]  }
 0x558   : > { %18023 = vst [vmem:[#allocation157_spill] sm:$0xff] %v16048_v26 }
 0x55a   : > { %7032 = vmatpush1.bf16.msra.mxu1 %v16030_v2  ;;  %v16051_v2 = vld [vmem:[#allocation2 + $0x704] ss:$24 sps:$4 sm:$0xff]  }
 0x55b   : > { %7033 = vmatprep.subr.bf16.mxu1 %v16033_v55  ;;  %18024 = vst [vmem:[#allocation158_spill] sm:$0xff] %v16051_v2  ;;  %v16054_v55 = vld [vmem:[#allocation2 + $0x700] ss:$24 sps:$4 sm:$0xff]  }
 0x55c   : > { %18025 = vst [vmem:[#allocation159_spill] sm:$0xff] %v16054_v55 }
 0x55e   : > { %7034 = vmatpush1.bf16.msra.mxu1 %v16036_v53  ;;  %v16057_v53 = vld [vmem:[#allocation2 + $0x734] ss:$24 sps:$4 sm:$0xff]  }
 0x55f   : > { %7035 = vmatprep.subr.bf16.mxu1 %v16039_v44  ;;  %18026 = vst [vmem:[#allocation160_spill] sm:$0xff] %v16057_v53  ;;  %v16060_v44 = vld [vmem:[#allocation2 + $0x730] ss:$24 sps:$4 sm:$0xff]  }
 0x562   : > { %7036 = vmatpush1.bf16.msra.mxu1 %v16042_v3  ;;  %v16063_v3 = vld [vmem:[#allocation2 + $0x764] ss:$24 sps:$4 sm:$0xff]  }
 0x563   : > { %7037 = vmatprep.subr.bf16.mxu1 %v16045_v8  ;;  %18027 = vst [vmem:[#allocation161_spill] sm:$0xff] %v16063_v3  ;;  %v16066_v8 = vld [vmem:[#allocation2 + $0x760] ss:$24 sps:$4 sm:$0xff]  }
 0x564   : > { %18028 = vst [vmem:[#allocation162_spill] sm:$0xff] %v16066_v8 }
 0x566   : > { %7038 = vmatpush1.bf16.msra.mxu1 %v16048_v26  ;;  %v16069_v26 = vld [vmem:[#allocation2 + $0x794] ss:$24 sps:$4 sm:$0xff]  }
 0x567   : > { %7039 = vmatprep.subr.bf16.mxu1 %v16051_v2  ;;  %18029 = vst [vmem:[#allocation163_spill] sm:$0xff] %v16069_v26  ;;  %v16072_v2 = vld [vmem:[#allocation2 + $0x790] ss:$24 sps:$4 sm:$0xff]  }
 0x568   : > { %18030 = vst [vmem:[#allocation164_spill] sm:$0xff] %v16072_v2 }
 0x56a   : > { %7040 = vmatpush1.bf16.msra.mxu1 %v16054_v55  ;;  %v16075_v55 = vld [vmem:[#allocation2 + $0x7c4] ss:$24 sps:$4 sm:$0xff]  }
 0x56b   : > { %7041 = vmatprep.subr.bf16.mxu1 %v16057_v53  ;;  %18031 = vst [vmem:[#allocation165_spill] sm:$0xff] %v16075_v55  ;;  %v16079_v53 = vld [vmem:[#allocation2 + $0x7c0] ss:$24 sps:$4 sm:$0xff]  }
 0x56c   : > { %18032 = vst [vmem:[#allocation166_spill] sm:$0xff] %v16079_v53 }
 0x56e   : > { %7042 = vmatpush1.bf16.msra.mxu1 %v16060_v44 }
 0x56f   : > { %7043 = vmatprep.subr.bf16.mxu1 %v16063_v3  ;;  %v16083_v3 = vld [vmem:[#allocation2 + $0x7f4] ss:$24 sps:$4 sm:$0xff]  }
 0x570   : > { %18033 = vst [vmem:[#allocation167_spill] sm:$0xff] %v16083_v3 }
 0x572   : > { %7044 = vmatpush1.bf16.msra.mxu1 %v16066_v8  ;;  %v16086_v8 = vld [vmem:[#allocation2 + $0x7f0] ss:$24 sps:$4 sm:$0xff]  }
 0x573   : > { %7056 = vmatprep.subr.bf16.mxu1 %v16069_v26  ;;  %18034 = vst [vmem:[#allocation168_spill] sm:$0xff] %v16086_v8  ;;  %v16089_v26 = vld [vmem:[#allocation2 + $0x824] ss:$24 sps:$4 sm:$0xff]  }
 0x574   : > { %18035 = vst [vmem:[#allocation169_spill] sm:$0xff] %v16089_v26 }
 0x575   : > { %7046 = vmatmul.mubr.bf16.vlgmr.msra.gmra.mrb[24].mxu1 %v17982_v14  ;;  %v16092_v14 = vld [vmem:[#allocation2 + $0x820] ss:$24 sps:$4 sm:$0xff]  }
 0x576   : > { %7057 = vmatpush1.bf16.msra.mxu1 %v16072_v2  ;;  %7088 = vmatprep.mubr.bf16.mxu1 %v17792_v30  ;;  %18036 = vst [vmem:[#allocation170_spill] sm:$0xff] %v16092_v14  ;;  %v16095_v2 = vld [vmem:[#allocation2 + $0x854] ss:$24 sps:$4 sm:$0xff]  }
 0x577   : > { %7058 = vmatprep.subr.bf16.mxu1 %v16075_v55  ;;  %18037 = vst [vmem:[#allocation171_spill] sm:$0xff] %v16095_v2  ;;  %v16098_v55 = vld [vmem:[#allocation2 + $0x850] ss:$24 sps:$4 sm:$0xff]  }
 0x57a   : > { %7059 = vmatpush1.bf16.msra.mxu1 %v16079_v53  ;;  %v16101_v53 = vld [vmem:[#allocation2 + $0x884] ss:$24 sps:$4 sm:$0xff]  }
 0x57b   : > { %7060 = vmatprep.subr.bf16.mxu1 %v16083_v3  ;;  %v16104_v3 = vld [vmem:[#allocation2 + $0x880] ss:$24 sps:$4 sm:$0xff]  }
 0x57e   : > { %7061 = vmatpush1.bf16.msra.mxu1 %v16086_v8  ;;  %v16107_v8 = vld [vmem:[#allocation2 + $0x8b4] ss:$24 sps:$4 sm:$0xff]  }
 0x57f   : > { %7062 = vmatprep.subr.bf16.mxu1 %v16089_v26  ;;  %v16110_v26 = vld [vmem:[#allocation2 + $0x8b0] ss:$24 sps:$4 sm:$0xff]  }
 0x582   : > { %7063 = vmatpush1.bf16.msra.mxu1 %v16092_v14  ;;  %v16113_v14 = vld [vmem:[#allocation2 + $0x8e4] ss:$24 sps:$4 sm:$0xff]  }
 0x583   : > { %7064 = vmatprep.subr.bf16.mxu1 %v16095_v2  ;;  %v16116_v2 = vld [vmem:[#allocation2 + $0x8e0] ss:$24 sps:$4 sm:$0xff]  }
 0x586   : > { %7065 = vmatpush1.bf16.msra.mxu1 %v16098_v55 }
 0x587   : > { %7066 = vmatprep.subr.bf16.mxu1 %v16101_v53 }
 0x58a   : > { %7067 = vmatpush1.bf16.msra.mxu1 %v16104_v3 }
 0x58b   : > { %7068 = vmatprep.subr.bf16.mxu1 %v16107_v8 }
 0x58e   : > { %7069 = vmatpush1.bf16.msra.mxu1 %v16110_v26 }
 0x58f   : > { %7070 = vmatprep.subr.bf16.mxu1 %v16113_v14 }
 0x592   : > { %7071 = vmatpush1.bf16.msra.mxu1 %v16116_v2 }
 0x593   : > { %7114 = vmatprep.subr.bf16.mxu1 %v15456_v24  ;;  %v18039_v24 = vld [vmem:[#allocation37_spill] sm:$0xff] }
 0x595   : > { %7089 = vmatmul.mubr.bf16.vlgmr.msra.gmra.mrb[24].mxu1 %v14967_v46  ;;  %v18038_v46 = vld [vmem:[#allocation31_spill] sm:$0xff] }
 0x596   : > { %7115 = vmatpush1.bf16.msra.mxu1 %v15459_v11  ;;  %7146 = vmatprep.mubr.bf16.mxu1 %v14977_v39  ;;  %v18040_v11 = vld [vmem:[#allocation38_spill] sm:$0xff] }
 0x597   : > { %7116 = vmatprep.subr.bf16.mxu1 %v15463_v1  ;;  %v18041_v1 = vld [vmem:[#allocation39_spill] sm:$0xff] }
 0x59a   : > { %7117 = vmatpush1.bf16.msra.mxu1 %v15469_v60  ;;  %v18042_v60 = vld [vmem:[#allocation40_spill] sm:$0xff] }
 0x59b   : > { %7118 = vmatprep.subr.bf16.mxu1 %v15473_v42  ;;  %v18043_v42 = vld [vmem:[#allocation41_spill] sm:$0xff] }
 0x59e   : > { %7119 = vmatpush1.bf16.msra.mxu1 %v15479_v56  ;;  %v18044_v56 = vld [vmem:[#allocation42_spill] sm:$0xff] }
 0x59f   : > { %7120 = vmatprep.subr.bf16.mxu1 %v15483_v6  ;;  %v18045_v6 = vld [vmem:[#allocation43_spill] sm:$0xff] }
 0x5a2   : > { %7121 = vmatpush1.bf16.msra.mxu1 %v15488_v20  ;;  %v18046_v20 = vld [vmem:[#allocation44_spill] sm:$0xff] }
 0x5a3   : > { %7122 = vmatprep.subr.bf16.mxu1 %v15492_v22  ;;  %v18047_v22 = vld [vmem:[#allocation45_spill] sm:$0xff] }
 0x5a6   : > { %7123 = vmatpush1.bf16.msra.mxu1 %v15496_v29  ;;  %v18048_v29 = vld [vmem:[#allocation46_spill] sm:$0xff] }
 0x5a7   : > { %7124 = vmatprep.subr.bf16.mxu1 %v15500_v48 }
 0x5aa   : > { %7125 = vmatpush1.bf16.msra.mxu1 %v15504_v58 }
 0x5ab   : > { %7126 = vmatprep.subr.bf16.mxu1 %v15508_v43 }
 0x5ae   : > { %7127 = vmatpush1.bf16.msra.mxu1 %v15512_v47  ;;  %v18049_v47 = vld [vmem:[#allocation47_spill] sm:$0xff] }
 0x5af   : > { %7128 = vmatprep.subr.bf16.mxu1 %v15516_v63  ;;  %v18050_v63 = vld [vmem:[#allocation50_spill] sm:$0xff] }
 0x5b2   : > { %7129 = vmatpush1.bf16.msra.mxu1 %v15520_v15 }
 0x5b3   : > { %7130 = vmatprep.subr.bf16.mxu1 %v15524_v27 }
 0x5b6   : > { %7131 = vmatpush1.bf16.msra.mxu1 %v15528_v38  ;;  %v18051_v38 = vld [vmem:[#allocation48_spill] sm:$0xff] }
 0x5b7   : > { %7132 = vmatprep.subr.bf16.mxu1 %v15532_v50  ;;  %v18052_v50 = vld [vmem:[#allocation51_spill] sm:$0xff] }
 0x5ba   : > { %7133 = vmatpush1.bf16.msra.mxu1 %v15536_v35  ;;  %v18053_v35 = vld [vmem:[#allocation52_spill] sm:$0xff] }
 0x5bb   : > { %7134 = vmatprep.subr.bf16.mxu1 %v15540_v49  ;;  %v18054_v49 = vld [vmem:[#allocation53_spill] sm:$0xff] }
 0x5be   : > { %7135 = vmatpush1.bf16.msra.mxu1 %v15544_v52  ;;  %v18055_v52 = vld [vmem:[#allocation54_spill] sm:$0xff] }
 0x5bf   : > { %7136 = vmatprep.subr.bf16.mxu1 %v15548_v61  ;;  %v18056_v61 = vld [vmem:[#allocation55_spill] sm:$0xff] }
 0x5c2   : > { %7137 = vmatpush1.bf16.msra.mxu1 %v15552_v13  ;;  %v18057_v13 = vld [vmem:[#allocation56_spill] sm:$0xff] }
 0x5c3   : > { %7138 = vmatprep.subr.bf16.mxu1 %v15556_v34  ;;  %v18058_v34 = vld [vmem:[#allocation57_spill] sm:$0xff] }
 0x5c6   : > { %7139 = vmatpush1.bf16.msra.mxu1 %v15560_v32  ;;  %v18059_v32 = vld [vmem:[#allocation58_spill] sm:$0xff] }
 0x5c7   : > { %7140 = vmatprep.subr.bf16.mxu1 %v15564_v45  ;;  %v18060_v45 = vld [vmem:[#allocation59_spill] sm:$0xff] }
 0x5ca   : > { %7141 = vmatpush1.bf16.msra.mxu1 %v15568_v17  ;;  %v18061_v17 = vld [vmem:[#allocation60_spill] sm:$0xff] }
 0x5cb   : > { %7142 = vmatprep.subr.bf16.mxu1 %v15572_v54  ;;  %v18062_v54 = vld [vmem:[#allocation61_spill] sm:$0xff] }
 0x5ce   : > { %7143 = vmatpush1.bf16.msra.mxu1 %v15576_v12  ;;  %v18063_v12 = vld [vmem:[#allocation62_spill] sm:$0xff] }
 0x5cf   : > { %7144 = vmatprep.subr.bf16.mxu1 %v15580_v31  ;;  %v18064_v31 = vld [vmem:[#allocation63_spill] sm:$0xff] }
 0x5d2   : > { %7145 = vmatpush1.bf16.msra.mxu1 %v15584_v40  ;;  %v18065_v40 = vld [vmem:[#allocation64_spill] sm:$0xff] }
 0x5d3   : > { %7157 = vmatprep.subr.bf16.mxu1 %v15588_v18  ;;  %v18066_v18 = vld [vmem:[#allocation65_spill] sm:$0xff] }
 0x5d5   : > { %7147 = vmatmul.mubr.bf16.vlgmr.msra.gmra.mrb[20].mxu1 %v14931_v16 }
 0x5d6   : > { %7158 = vmatpush1.bf16.msra.mxu1 %v15592_v51  ;;  %7189 = vmatprep.mubr.bf16.mxu1 %v17792_v30  ;;  %v18067_v51 = vld [vmem:[#allocation66_spill] sm:$0xff] }
 0x5d7   : > { %7159 = vmatprep.subr.bf16.mxu1 %v15596_v9  ;;  %v18068_v9 = vld [vmem:[#allocation67_spill] sm:$0xff] }
 0x5da   : > { %7160 = vmatpush1.bf16.msra.mxu1 %v15602_v4  ;;  %v18069_v4 = vld [vmem:[#allocation68_spill] sm:$0xff] }
 0x5db   : > { %7161 = vmatprep.subr.bf16.mxu1 %v15606_v19  ;;  %v18070_v19 = vld [vmem:[#allocation69_spill] sm:$0xff] }
 0x5de   : > { %7162 = vmatpush1.bf16.msra.mxu1 %v15612_v59  ;;  %v18071_v59 = vld [vmem:[#allocation70_spill] sm:$0xff] }
 0x5df   : > { %7163 = vmatprep.subr.bf16.mxu1 %v15616_v7  ;;  %v18072_v7 = vld [vmem:[#allocation71_spill] sm:$0xff] }
 0x5e2   : > { %7164 = vmatpush1.bf16.msra.mxu1 %v15620_v36  ;;  %v18073_v36 = vld [vmem:[#allocation72_spill] sm:$0xff] }
 0x5e3   : > { %7165 = vmatprep.subr.bf16.mxu1 %v15624_v23  ;;  %v18074_v23 = vld [vmem:[#allocation73_spill] sm:$0xff] }
 0x5e6   : > { %7166 = vmatpush1.bf16.msra.mxu1 %v15628_v25  ;;  %v18075_v25 = vld [vmem:[#allocation34_spill] sm:$0xff] }
 0x5e7   : > { %7167 = vmatprep.subr.bf16.mxu1 %v15632_v5  ;;  %v18076_v5 = vld [vmem:[#allocation74_spill] sm:$0xff] }
 0x5ea   : > { %7168 = vmatpush1.bf16.msra.mxu1 %v15636_v0  ;;  %v18077_v0 = vld [vmem:[#allocation75_spill] sm:$0xff] }
 0x5eb   : > { %7169 = vmatprep.subr.bf16.mxu1 %v15640_v41  ;;  %v18078_v41 = vld [vmem:[#allocation76_spill] sm:$0xff] }
 0x5ee   : > { %7170 = vmatpush1.bf16.msra.mxu1 %v15644_v28  ;;  %v18079_v28 = vld [vmem:[#allocation77_spill] sm:$0xff] }
 0x5ef   : > { %7171 = vmatprep.subr.bf16.mxu1 %v15648_v37  ;;  %v18080_v37 = vld [vmem:[#allocation78_spill] sm:$0xff] }
 0x5f2   : > { %7172 = vmatpush1.bf16.msra.mxu1 %v15652_v33  ;;  %v18082_v33 = vld [vmem:[#allocation80_spill] sm:$0xff] }
 0x5f3   : > { %7286 = vmatprep.subr.bf16.mxu1 %v15656_v21  ;;  %v18083_v21 = vld [vmem:[#allocation81_spill] sm:$0xff] }
 0x5f5   : > { %7190 = vmatmul.mubr.bf16.vlgmr.msra.gmra.mrb[20].mxu1 %v18038_v46 }
 0x5f6   : > { %7287 = vmatpush1.bf16.msra.mxu1 %v18039_v24  ;;  %7318 = vmatprep.mubr.bf16.mxu1 %v14977_v39  ;;  %v18084_v24 = vld [vmem:[#allocation82_spill] sm:$0xff] }
 0x5f7   : > { %7288 = vmatprep.subr.bf16.mxu1 %v18040_v11  ;;  %v18085_v11 = vld [vmem:[#allocation83_spill] sm:$0xff] }
 0x5fa   : > { %7289 = vmatpush1.bf16.msra.mxu1 %v18041_v1  ;;  %v18086_v1 = vld [vmem:[#allocation84_spill] sm:$0xff] }
 0x5fb   : > { %7290 = vmatprep.subr.bf16.mxu1 %v18042_v60  ;;  %v18087_v60 = vld [vmem:[#allocation36_spill] sm:$0xff] }
 0x5fe   : > { %7291 = vmatpush1.bf16.msra.mxu1 %v18043_v42  ;;  %v18088_v42 = vld [vmem:[#allocation85_spill] sm:$0xff] }
 0x5ff   : > { %7292 = vmatprep.subr.bf16.mxu1 %v18044_v56  ;;  %v18089_v56 = vld [vmem:[#allocation30_spill] sm:$0xff] }
 0x602   : > { %7293 = vmatpush1.bf16.msra.mxu1 %v18045_v6  ;;  %v18090_v6 = vld [vmem:[#allocation86_spill] sm:$0xff] }
 0x603   : > { %7294 = vmatprep.subr.bf16.mxu1 %v18046_v20  ;;  %v18091_v20 = vld [vmem:[#allocation29_spill] sm:$0xff] }
 0x606   : > { %7295 = vmatpush1.bf16.msra.mxu1 %v18047_v22  ;;  %v18092_v22 = vld [vmem:[#allocation87_spill] sm:$0xff] }
 0x607   : > { %7296 = vmatprep.subr.bf16.mxu1 %v18048_v29  ;;  %v18093_v29 = vld [vmem:[#allocation88_spill] sm:$0xff] }
 0x608   : > { %v16185_v48 = vpop.f32.mrb[16].mxu1 }
 0x609   : > { %v7657_v39 = vmax.f32 %v16185_v48, %v15701_v57  ;;  %v16189_v58 = vpop.f32.mrb[17].mxu1  ;;  %v18181_v48 = vld [vmem:[#allocation28_spill] sm:$0xff] }
 0x60a   : > { %v16191_v43 = vpop.f32.mrb[18].mxu1  ;;  %7297 = vmatpush1.bf16.msra.mxu1 %v18049_v47  ;;  %v18094_v47 = vld [vmem:[#allocation89_spill] sm:$0xff] }
 0x60b   : > { %v7660_v15 = vmax.f32 %v16191_v43, %v18050_v63  ;;  %v16196_v27 = vpop.f32.mrb[19].mxu1  ;;  %7298 = vmatprep.subr.bf16.mxu1 %v18051_v38  ;;  %v18095_v38 = vld [vmem:[#allocation90_spill] sm:$0xff] }
 0x60e   : > { %7299 = vmatpush1.bf16.msra.mxu1 %v18052_v50  ;;  %v18096_v50 = vld [vmem:[#allocation91_spill] sm:$0xff] }
 0x60f   : > { %7300 = vmatprep.subr.bf16.mxu1 %v18053_v35  ;;  %v18097_v35 = vld [vmem:[#allocation92_spill] sm:$0xff] }
 0x612   : > { %7301 = vmatpush1.bf16.msra.mxu1 %v18054_v49 }
 0x613   : > { %7302 = vmatprep.subr.bf16.mxu1 %v18055_v52 }
 0x616   : > { %7303 = vmatpush1.bf16.msra.mxu1 %v18056_v61 }
 0x617   : > { %7304 = vmatprep.subr.bf16.mxu1 %v18057_v13  ;;  %v18099_v13 = vld [vmem:[#allocation33_spill] sm:$0xff] }
 0x61a   : > { %7305 = vmatpush1.bf16.msra.mxu1 %v18058_v34 }
 0x61b   : > { %7306 = vmatprep.subr.bf16.mxu1 %v18059_v32 }
 0x61e   : > { %7307 = vmatpush1.bf16.msra.mxu1 %v18060_v45  ;;  %v18100_v45 = vld [vmem:[#allocation94_spill] sm:$0xff] }
 0x61f   : > { %7308 = vmatprep.subr.bf16.mxu1 %v18061_v17 }
 0x622   : > { %7309 = vmatpush1.bf16.msra.mxu1 %v18062_v54 }
 0x623   : > { %7310 = vmatprep.subr.bf16.mxu1 %v18063_v12  ;;  %v18101_v12 = vld [vmem:[#allocation95_spill] sm:$0xff] }
 0x626   : > { %7311 = vmatpush1.bf16.msra.mxu1 %v18064_v31  ;;  %v18102_v31 = vld [vmem:[#allocation49_spill] sm:$0xff] }
 0x627   : > { %7312 = vmatprep.subr.bf16.mxu1 %v18065_v40 }
 0x62a   : > { %7313 = vmatpush1.bf16.msra.mxu1 %v18066_v18  ;;  %v18103_v18 = vld [vmem:[#allocation96_spill] sm:$0xff] }
 0x62b   : > { %7314 = vmatprep.subr.bf16.mxu1 %v18067_v51  ;;  %v18104_v51 = vld [vmem:[#allocation97_spill] sm:$0xff] }
 0x62e   : > { %7315 = vmatpush1.bf16.msra.mxu1 %v18068_v9  ;;  %v18105_v9 = vld [vmem:[#allocation98_spill] sm:$0xff] }
 0x62f   : > { %7316 = vmatprep.subr.bf16.mxu1 %v18069_v4  ;;  %v18106_v4 = vld [vmem:[#allocation99_spill] sm:$0xff] }
 0x632   : > { %7317 = vmatpush1.bf16.msra.mxu1 %v18070_v19  ;;  %v18107_v19 = vld [vmem:[#allocation100_spill] sm:$0xff] }
 0x633   : > { %7329 = vmatprep.subr.bf16.mxu1 %v18071_v59  ;;  %v18108_v59 = vld [vmem:[#allocation101_spill] sm:$0xff] }
 0x635   : > { %7319 = vmatmul.mubr.bf16.vlgmr.msra.gmra.mrb[28].mxu1 %v14931_v16  ;;  %v18081_v16 = vld [vmem:[#allocation79_spill] sm:$0xff] }
 0x636   : > { %7330 = vmatpush1.bf16.msra.mxu1 %v18072_v7  ;;  %7361 = vmatprep.mubr.bf16.mxu1 %v17792_v30  ;;  %v18109_v7 = vld [vmem:[#allocation102_spill] sm:$0xff] }
 0x637   : > { %7331 = vmatprep.subr.bf16.mxu1 %v18073_v36  ;;  %v18110_v36 = vld [vmem:[#allocation103_spill] sm:$0xff] }
 0x63a   : > { %7332 = vmatpush1.bf16.msra.mxu1 %v18074_v23  ;;  %v18111_v23 = vld [vmem:[#allocation104_spill] sm:$0xff] }
 0x63b   : > { %7333 = vmatprep.subr.bf16.mxu1 %v18075_v25  ;;  %v18112_v25 = vld [vmem:[#allocation105_spill] sm:$0xff] }
 0x63e   : > { %7334 = vmatpush1.bf16.msra.mxu1 %v18076_v5  ;;  %v18113_v5 = vld [vmem:[#allocation106_spill] sm:$0xff] }
 0x63f   : > { %7335 = vmatprep.subr.bf16.mxu1 %v18077_v0  ;;  %v18114_v0 = vld [vmem:[#allocation107_spill] sm:$0xff] }
 0x642   : > { %7336 = vmatpush1.bf16.msra.mxu1 %v18078_v41  ;;  %v18115_v41 = vld [vmem:[#allocation108_spill] sm:$0xff] }
 0x643   : > { %7337 = vmatprep.subr.bf16.mxu1 %v18079_v28  ;;  %v18116_v28 = vld [vmem:[#allocation109_spill] sm:$0xff] }
 0x646   : > { %7338 = vmatpush1.bf16.msra.mxu1 %v18080_v37  ;;  %v18117_v37 = vld [vmem:[#allocation110_spill] sm:$0xff] }
 0x647   : > { %7339 = vmatprep.subr.bf16.mxu1 %v18081_v16  ;;  %v18118_v16 = vld [vmem:[#allocation111_spill] sm:$0xff] }
 0x64a   : > { %7340 = vmatpush1.bf16.msra.mxu1 %v18082_v33  ;;  %v18119_v33 = vld [vmem:[#allocation112_spill] sm:$0xff] }
 0x64b   : > { %7341 = vmatprep.subr.bf16.mxu1 %v18083_v21  ;;  %v18120_v21 = vld [vmem:[#allocation113_spill] sm:$0xff] }
 0x64e   : > { %7342 = vmatpush1.bf16.msra.mxu1 %v18084_v24  ;;  %v18121_v24 = vld [vmem:[#allocation114_spill] sm:$0xff] }
 0x64f   : > { %7343 = vmatprep.subr.bf16.mxu1 %v18085_v11  ;;  %v18122_v11 = vld [vmem:[#allocation115_spill] sm:$0xff] }
 0x652   : > { %7344 = vmatpush1.bf16.msra.mxu1 %v18086_v1  ;;  %v18123_v1 = vld [vmem:[#allocation32_spill] sm:$0xff] }
 0x653   : > { %7375 = vmatprep.subr.bf16.mxu1 %v18087_v60  ;;  %v18124_v60 = vld [vmem:[#allocation116_spill] sm:$0xff] }
 0x655   : > { %7362 = vmatmul.mubr.bf16.vlgmr.msra.gmra.mrb[28].mxu1 %v18038_v46  ;;  %v18098_v46 = vld [vmem:[#allocation93_spill] sm:$0xff] }
 0x656   : > { %7376 = vmatpush1.bf16.msra.mxu1 %v18088_v42  ;;  %7407 = vmatprep.mubr.bf16.mxu1 %v18089_v56  ;;  %v18125_v42 = vld [vmem:[#allocation117_spill] sm:$0xff] }
 0x657   : > { %7377 = vmatprep.subr.bf16.mxu1 %v18090_v6  ;;  %v18126_v6 = vld [vmem:[#allocation27_spill] sm:$0xff] }
 0x65a   : > { %7378 = vmatpush1.bf16.msra.mxu1 %v18091_v20  ;;  %v18127_v20 = vld [vmem:[#allocation118_spill] sm:$0xff] }
 0x65b   : > { %7379 = vmatprep.subr.bf16.mxu1 %v18092_v22  ;;  %v18128_v22 = vld [vmem:[#allocation119_spill] sm:$0xff] }
 0x65e   : > { %7380 = vmatpush1.bf16.msra.mxu1 %v18093_v29  ;;  %v18129_v29 = vld [vmem:[#allocation120_spill] sm:$0xff] }
 0x65f   : > { %7381 = vmatprep.subr.bf16.mxu1 %v18094_v47  ;;  %v18130_v47 = vld [vmem:[#allocation121_spill] sm:$0xff] }
 0x662   : > { %7382 = vmatpush1.bf16.msra.mxu1 %v18095_v38  ;;  %v18131_v38 = vld [vmem:[#allocation122_spill] sm:$0xff] }
 0x663   : > { %7383 = vmatprep.subr.bf16.mxu1 %v18096_v50  ;;  %v18132_v50 = vld [vmem:[#allocation123_spill] sm:$0xff] }
 0x666   : > { %7384 = vmatpush1.bf16.msra.mxu1 %v18097_v35  ;;  %v18133_v35 = vld [vmem:[#allocation124_spill] sm:$0xff] }
 0x667   : > { %7385 = vmatprep.subr.bf16.mxu1 %v18098_v46  ;;  %v18134_v46 = vld [vmem:[#allocation125_spill] sm:$0xff] }
 0x668   : > { %v16249_v49 = vpop.f32.mrb[24].mxu1 }
 0x669   : > { %v7658_v52 = vmax.f32 %v16189_v58, %v16249_v49  ;;  %v16253_v61 = vpop.f32.mrb[25].mxu1 }
 0x66a   : > { %v7659_v34 = vmax.f32 %v18099_v13, %v16253_v61  ;;  %v16257_v32 = vpop.f32.mrb[26].mxu1  ;;  %7386 = vmatpush1.bf16.msra.mxu1 %v18100_v45  ;;  %v18135_v45 = vld [vmem:[#allocation126_spill] sm:$0xff] }
 0x66b   : > { %v7661_v17 = vmax.f32 %v16196_v27, %v16257_v32  ;;  %v16262_v54 = vpop.f32.mrb[27].mxu1  ;;  %7387 = vmatprep.subr.bf16.mxu1 %v18101_v12  ;;  %v18136_v12 = vld [vmem:[#allocation127_spill] sm:$0xff] }
 0x66c   : > { %v7662_v40 = vmax.f32 %v18102_v31, %v16262_v54 }
 0x66e   : > { %7388 = vmatpush1.bf16.msra.mxu1 %v18103_v18  ;;  %v18137_v18 = vld [vmem:[#allocation128_spill] sm:$0xff] }
 0x66f   : > { %7389 = vmatprep.subr.bf16.mxu1 %v18104_v51  ;;  %v18138_v51 = vld [vmem:[#allocation129_spill] sm:$0xff] }
 0x672   : > { %7390 = vmatpush1.bf16.msra.mxu1 %v18105_v9  ;;  %v18139_v9 = vld [vmem:[#allocation130_spill] sm:$0xff] }
 0x673   : > { %7391 = vmatprep.subr.bf16.mxu1 %v18106_v4  ;;  %v18140_v4 = vld [vmem:[#allocation35_spill] sm:$0xff] }
 0x676   : > { %7392 = vmatpush1.bf16.msra.mxu1 %v18107_v19  ;;  %v18141_v19 = vld [vmem:[#allocation131_spill] sm:$0xff] }
 0x677   : > { %7393 = vmatprep.subr.bf16.mxu1 %v18108_v59  ;;  %v18142_v59 = vld [vmem:[#allocation132_spill] sm:$0xff] }
 0x67a   : > { %7394 = vmatpush1.bf16.msra.mxu1 %v18109_v7  ;;  %v18143_v7 = vld [vmem:[#allocation133_spill] sm:$0xff] }
 0x67b   : > { %7395 = vmatprep.subr.bf16.mxu1 %v18110_v36  ;;  %v18144_v36 = vld [vmem:[#allocation134_spill] sm:$0xff] }
 0x67e   : > { %7396 = vmatpush1.bf16.msra.mxu1 %v18111_v23  ;;  %v18145_v23 = vld [vmem:[#allocation135_spill] sm:$0xff] }
 0x67f   : > { %7397 = vmatprep.subr.bf16.mxu1 %v18112_v25  ;;  %v18146_v25 = vld [vmem:[#allocation136_spill] sm:$0xff] }
 0x682   : > { %7398 = vmatpush1.bf16.msra.mxu1 %v18113_v5  ;;  %v18147_v5 = vld [vmem:[#allocation137_spill] sm:$0xff] }
 0x683   : > { %7399 = vmatprep.subr.bf16.mxu1 %v18114_v0  ;;  %v18148_v0 = vld [vmem:[#allocation138_spill] sm:$0xff] }
 0x686   : > { %7400 = vmatpush1.bf16.msra.mxu1 %v18115_v41  ;;  %v18149_v41 = vld [vmem:[#allocation139_spill] sm:$0xff] }
 0x687   : > { %7401 = vmatprep.subr.bf16.mxu1 %v18116_v28  ;;  %v18150_v28 = vld [vmem:[#allocation140_spill] sm:$0xff] }
 0x68a   : > { %7402 = vmatpush1.bf16.msra.mxu1 %v18117_v37  ;;  %v18152_v37 = vld [vmem:[#allocation145_spill] sm:$0xff] }
 0x68b   : > { %7403 = vmatprep.subr.bf16.mxu1 %v18118_v16  ;;  %v18153_v16 = vld [vmem:[#allocation147_spill] sm:$0xff] }
 0x68e   : > { %7404 = vmatpush1.bf16.msra.mxu1 %v18119_v33  ;;  %v18154_v33 = vld [vmem:[#allocation148_spill] sm:$0xff] }
 0x68f   : > { %7405 = vmatprep.subr.bf16.mxu1 %v18120_v21  ;;  %v18155_v21 = vld [vmem:[#allocation149_spill] sm:$0xff] }
 0x692   : > { %7406 = vmatpush1.bf16.msra.mxu1 %v18121_v24  ;;  %v18156_v24 = vld [vmem:[#allocation150_spill] sm:$0xff] }
 0x693   : > { %7418 = vmatprep.subr.bf16.mxu1 %v18122_v11  ;;  %v18157_v11 = vld [vmem:[#allocation151_spill] sm:$0xff] }
 0x695   : > { %7408 = vmatmul.mubr.bf16.vlgmr.msra.gmra.mrb[20].mxu1 %v18123_v1 }
 0x696   : > { %7419 = vmatpush1.bf16.msra.mxu1 %v18124_v60  ;;  %7450 = vmatprep.mubr.bf16.mxu1 %v17792_v30  ;;  %v18158_v60 = vld [vmem:[#allocation152_spill] sm:$0xff] }
 0x697   : > { %7420 = vmatprep.subr.bf16.mxu1 %v18125_v42  ;;  %v18159_v42 = vld [vmem:[#allocation153_spill] sm:$0xff] }
 0x69a   : > { %7421 = vmatpush1.bf16.msra.mxu1 %v18126_v6  ;;  %v18161_v6 = vld [vmem:[#allocation155_spill] sm:$0xff] }
 0x69b   : > { %7422 = vmatprep.subr.bf16.mxu1 %v18127_v20  ;;  %v18163_v20 = vld [vmem:[#allocation157_spill] sm:$0xff] }
 0x69e   : > { %7423 = vmatpush1.bf16.msra.mxu1 %v18128_v22  ;;  %v18164_v22 = vld [vmem:[#allocation158_spill] sm:$0xff] }
 0x69f   : > { %7424 = vmatprep.subr.bf16.mxu1 %v18129_v29  ;;  %v18165_v29 = vld [vmem:[#allocation159_spill] sm:$0xff] }
 0x6a2   : > { %7425 = vmatpush1.bf16.msra.mxu1 %v18130_v47  ;;  %v18166_v47 = vld [vmem:[#allocation160_spill] sm:$0xff] }
 0x6a3   : > { %7426 = vmatprep.subr.bf16.mxu1 %v18131_v38  ;;  %v18167_v38 = vld [vmem:[#allocation161_spill] sm:$0xff] }
 0x6a6   : > { %7427 = vmatpush1.bf16.msra.mxu1 %v18132_v50  ;;  %v18168_v50 = vld [vmem:[#allocation162_spill] sm:$0xff] }
 0x6a7   : > { %7428 = vmatprep.subr.bf16.mxu1 %v18133_v35  ;;  %v18169_v35 = vld [vmem:[#allocation163_spill] sm:$0xff] }
 0x6aa   : > { %7429 = vmatpush1.bf16.msra.mxu1 %v18134_v46  ;;  %v18170_v46 = vld [vmem:[#allocation164_spill] sm:$0xff] }
 0x6ab   : > { %7430 = vmatprep.subr.bf16.mxu1 %v18135_v45  ;;  %v18171_v45 = vld [vmem:[#allocation165_spill] sm:$0xff] }
 0x6ae   : > { %7431 = vmatpush1.bf16.msra.mxu1 %v18136_v12  ;;  %v18172_v12 = vld [vmem:[#allocation166_spill] sm:$0xff] }
 0x6af   : > { %7432 = vmatprep.subr.bf16.mxu1 %v18137_v18  ;;  %v18173_v18 = vld [vmem:[#allocation167_spill] sm:$0xff] }
 0x6b2   : > { %7433 = vmatpush1.bf16.msra.mxu1 %v18138_v51  ;;  %v18174_v51 = vld [vmem:[#allocation168_spill] sm:$0xff] }
 0x6b3   : > { %7547 = vmatprep.subr.bf16.mxu1 %v18139_v9  ;;  %v18176_v9 = vld [vmem:[#allocation170_spill] sm:$0xff] }
 0x6b5   : > { %7451 = vmatmul.mubr.bf16.vlgmr.msra.gmra.mrb[20].mxu1 %v18140_v4 }
 0x6b6   : > { %7548 = vmatpush1.bf16.msra.mxu1 %v18141_v19  ;;  %7579 = vmatprep.mubr.bf16.mxu1 %v18089_v56  ;;  %v18151_v56 = vld [vmem:[#allocation141_spill] sm:$0xff]  ;;  %v18177_v19 = vld [vmem:[#allocation171_spill] sm:$0xff] }
 0x6b7   : > { %7549 = vmatprep.subr.bf16.mxu1 %v18142_v59  ;;  %v13715_v59 = vld [vmem:[%s17527_s3 + $0x1c0] ss:$8 sps:$4 sm:$0xff]  }
 0x6ba   : > { %7550 = vmatpush1.bf16.msra.mxu1 %v18143_v7  ;;  %v13720_v7 = vld [vmem:[%s17527_s3 + $0x1d4] ss:$8 sps:$4 sm:$0xff]  }
 0x6bb   : > { %7551 = vmatprep.subr.bf16.mxu1 %v18144_v36  ;;  %v13718_v36 = vld [vmem:[%s17527_s3 + $0x1d0] ss:$8 sps:$4 sm:$0xff]  }
 0x6be   : > { %7552 = vmatpush1.bf16.msra.mxu1 %v18145_v23  ;;  %v13723_v23 = vld [vmem:[%s17527_s3 + $0x1e4] ss:$8 sps:$4 sm:$0xff]  }
 0x6bf   : > { %7553 = vmatprep.subr.bf16.mxu1 %v18146_v25  ;;  %v13721_v25 = vld [vmem:[%s17527_s3 + $0x1e0] ss:$8 sps:$4 sm:$0xff]  }
 0x6c2   : > { %7554 = vmatpush1.bf16.msra.mxu1 %v18147_v5  ;;  %v13726_v5 = vld [vmem:[%s17527_s3 + $0x1f4] ss:$8 sps:$4 sm:$0xff]  }
 0x6c3   : > { %7555 = vmatprep.subr.bf16.mxu1 %v18148_v0  ;;  %v13724_v0 = vld [vmem:[%s17527_s3 + $0x1f0] ss:$8 sps:$4 sm:$0xff]  }
 0x6c6   : > { %7556 = vmatpush1.bf16.msra.mxu1 %v18149_v41  ;;  %v13729_v41 = vld [vmem:[%s17527_s3 + $0x204] ss:$8 sps:$4 sm:$0xff]  }
 0x6c7   : > { %7557 = vmatprep.subr.bf16.mxu1 %v18150_v28  ;;  %v13727_v28 = vld [vmem:[%s17527_s3 + $0x200] ss:$8 sps:$4 sm:$0xff]  }
 0x6ca   : > { %7558 = vmatpush1.bf16.msra.mxu1 %v15998_v10  ;;  %v18160_v10 = vld [vmem:[#allocation154_spill] sm:$0xff] }
 0x6cb   : > { %7559 = vmatprep.subr.bf16.mxu1 %v18151_v56  ;;  %v13732_v56 = vld [vmem:[%s17527_s3 + $0x214] ss:$8 sps:$4 sm:$0xff]  }
 0x6ce   : > { %7560 = vmatpush1.bf16.msra.mxu1 %v16008_v62  ;;  %v18162_v62 = vld [vmem:[#allocation156_spill] sm:$0xff] }
 0x6cf   : > { %7561 = vmatprep.subr.bf16.mxu1 %v18152_v37  ;;  %v13730_v37 = vld [vmem:[%s17527_s3 + $0x210] ss:$8 sps:$4 sm:$0xff]  }
 0x6d2   : > { %7562 = vmatpush1.bf16.msra.mxu1 %v18153_v16  ;;  %v13735_v16 = vld [vmem:[%s17527_s3 + $0x224] ss:$8 sps:$4 sm:$0xff]  }
 0x6d3   : > { %7563 = vmatprep.subr.bf16.mxu1 %v18154_v33  ;;  %v13733_v33 = vld [vmem:[%s17527_s3 + $0x220] ss:$8 sps:$4 sm:$0xff]  }
 0x6d6   : > { %7564 = vmatpush1.bf16.msra.mxu1 %v18155_v21  ;;  %v13738_v21 = vld [vmem:[%s17527_s3 + $0x234] ss:$8 sps:$4 sm:$0xff]  }
 0x6d7   : > { %7565 = vmatprep.subr.bf16.mxu1 %v18156_v24  ;;  %v13736_v24 = vld [vmem:[%s17527_s3 + $0x230] ss:$8 sps:$4 sm:$0xff]  }
 0x6da   : > { %7566 = vmatpush1.bf16.msra.mxu1 %v18157_v11  ;;  %v13741_v11 = vld [vmem:[%s17527_s3 + $0x244] ss:$8 sps:$4 sm:$0xff]  }
 0x6db   : > { %7567 = vmatprep.subr.bf16.mxu1 %v18158_v60  ;;  %v13739_v60 = vld [vmem:[%s17527_s3 + $0x240] ss:$8 sps:$4 sm:$0xff]  }
 0x6de   : > { %7568 = vmatpush1.bf16.msra.mxu1 %v18159_v42  ;;  %v13744_v42 = vld [vmem:[%s17527_s3 + $0x254] ss:$8 sps:$4 sm:$0xff]  }
 0x6df   : > { %7569 = vmatprep.subr.bf16.mxu1 %v18160_v10  ;;  %v13742_v10 = vld [vmem:[%s17527_s3 + $0x250] ss:$8 sps:$4 sm:$0xff]  }
 0x6e2   : > { %7570 = vmatpush1.bf16.msra.mxu1 %v18161_v6  ;;  %v13747_v6 = vld [vmem:[%s17527_s3 + $0x264] ss:$8 sps:$4 sm:$0xff]  }
 0x6e3   : > { %7571 = vmatprep.subr.bf16.mxu1 %v18162_v62  ;;  %v13745_v62 = vld [vmem:[%s17527_s3 + $0x260] ss:$8 sps:$4 sm:$0xff]  }
 0x6e6   : > { %7572 = vmatpush1.bf16.msra.mxu1 %v18163_v20  ;;  %v13748_v20 = vld [vmem:[%s17527_s3 + $0x270] ss:$8 sps:$4 sm:$0xff]  }
 0x6e7   : > { %7573 = vmatprep.subr.bf16.mxu1 %v18164_v22  ;;  %v13750_v22 = vld [vmem:[%s17527_s3 + $0x274] ss:$8 sps:$4 sm:$0xff]  }
 0x6ea   : > { %7574 = vmatpush1.bf16.msra.mxu1 %v18165_v29  ;;  %v13753_v29 = vld [vmem:[%s17527_s3 + $0x284] ss:$8 sps:$4 sm:$0xff]  }
 0x6eb   : > { %7575 = vmatprep.subr.bf16.mxu1 %v18166_v47  ;;  %v7675_v47 = vld [vmem:[#allocation7] sm:$0x7] }
 0x6ee   : > { %7576 = vmatpush1.bf16.msra.mxu1 %v16060_v44  ;;  %v18175_v44 = vld [vmem:[#allocation169_spill] sm:$0xff] }
 0x6ef   : > { %7577 = vmatprep.subr.bf16.mxu1 %v18167_v38 }
 0x6f2   : > { %7578 = vmatpush1.bf16.msra.mxu1 %v18168_v50  ;;  %v18178_v50 = vld [vmem:[#allocation143_spill] sm:$0xff] }
 0x6f3   : > { %7590 = vmatprep.subr.bf16.mxu1 %v18169_v35 }
 0x6f5   : > { %7580 = vmatmul.mubr.bf16.vlgmr.msra.gmra.mrb[28].mxu1 %v18123_v1  ;;  %v13703_v1 = vld [vmem:[%s17527_s3 + $0x180] ss:$8 sps:$4 sm:$0xff]  }
 0x6f6   : > { %7591 = vmatpush1.bf16.msra.mxu1 %v18170_v46  ;;  %7622 = vmatprep.mubr.bf16.mxu1 %v17792_v30  ;;  %v18179_v46 = vld [vmem:[#allocation26_spill] sm:$0xff] }
 0x6f7   : > { %7592 = vmatprep.subr.bf16.mxu1 %v18171_v45  ;;  %v7680_v45 = vrot.slane %v7675_v47, %v18179_v46 }
 0x6fa   : > { %7593 = vmatpush1.bf16.msra.mxu1 %v18172_v12 }
 0x6fb   : > { %7594 = vmatprep.subr.bf16.mxu1 %v18173_v18 }
 0x6fe   : > { %7595 = vmatpush1.bf16.msra.mxu1 %v18174_v51 }
 0x6ff   : > { %7596 = vmatprep.subr.bf16.mxu1 %v18175_v44  ;;  %v18180_v44 = vld [vmem:[#allocation146_spill] sm:$0xff] }
 0x702   : > { %7597 = vmatpush1.bf16.msra.mxu1 %v18176_v9 }
 0x703   : > { %7598 = vmatprep.subr.bf16.mxu1 %v18177_v19 }
 0x706   : > { %7599 = vmatpush1.bf16.msra.mxu1 %v16098_v55  ;;  %v13705_v55 = vld [vmem:[%s17527_s3 + $0x184] ss:$8 sps:$4 sm:$0xff]  }
 0x707   : > { %7600 = vmatprep.subr.bf16.mxu1 %v16101_v53  ;;  %8080 = vmatprep.subr.bf16.mxu0 %v13705_v55  ;;  %v13714_v53 = vld [vmem:[%s17527_s3 + $0x1b4] ss:$8 sps:$4 sm:$0xff]  }
 0x708   : > { %8081 = vmatpush1.bf16.msra.mxu0 %v13703_v1 }
 0x70a   : > { %7601 = vmatpush1.bf16.msra.mxu1 %v16104_v3  ;;  %v13709_v3 = vld [vmem:[%s17527_s3 + $0x1a0] ss:$8 sps:$4 sm:$0xff]  }
 0x70b   : > { %7602 = vmatprep.subr.bf16.mxu1 %v16107_v8  ;;  %v13708_v8 = vld [vmem:[%s17527_s3 + $0x194] ss:$8 sps:$4 sm:$0xff]  }
 0x70c   : > { %8082 = vmatprep.subr.bf16.mxu0 %v13708_v8 }
 0x70e   : > { %7603 = vmatpush1.bf16.msra.mxu1 %v16110_v26  ;;  %v13706_v26 = vld [vmem:[%s17527_s3 + $0x190] ss:$8 sps:$4 sm:$0xff]  }
 0x70f   : > { %7604 = vmatprep.subr.bf16.mxu1 %v16113_v14  ;;  %8083 = vmatpush1.bf16.msra.mxu0 %v13706_v26  ;;  %v13712_v14 = vld [vmem:[%s17527_s3 + $0x1b0] ss:$8 sps:$4 sm:$0xff]  }
 0x712   : > { %7605 = vmatpush1.bf16.msra.mxu1 %v16116_v2  ;;  %v13711_v2 = vld [vmem:[%s17527_s3 + $0x1a4] ss:$8 sps:$4 sm:$0xff]  }
 0x713   : > { %10346 = vmatprep.subr.bf16.mxu1 %v17792_v30  ;;  %8084 = vmatprep.subr.bf16.mxu0 %v13711_v2 }
 0x714   : > { %8085 = vmatpush1.bf16.msra.mxu0 %v13709_v3 }
 0x715   : > { %7623 = vmatmul.mubr.bf16.vlgmr.msra.gmra.mrb[28].mxu1 %v18140_v4  ;;  %8086 = vmatprep.subr.bf16.mxu0 %v13714_v53  ;;  %v13717_v4 = vld [vmem:[%s17527_s3 + $0x1c4] ss:$8 sps:$4 sm:$0xff]  }
 0x718   : > { %8087 = vmatpush1.bf16.msra.mxu0 %v13712_v14 }
 0x719   : > { %8088 = vmatprep.subr.bf16.mxu0 %v13717_v4 }
 0x71c   : > { %8089 = vmatpush1.bf16.msra.mxu0 %v13715_v59 }
 0x71d   : > { %8090 = vmatprep.subr.bf16.mxu0 %v13720_v7  ;;  %v18182_v7 = vld [vmem:[#allocation142_spill] sm:$0xff] }
 0x720   : > { %8091 = vmatpush1.bf16.msra.mxu0 %v13718_v36 }
 0x721   : > { %8092 = vmatprep.subr.bf16.mxu0 %v13723_v23  ;;  %v18183_v23 = vld [vmem:[#allocation25_spill] sm:$0xff] }
 0x724   : > { %8093 = vmatpush1.bf16.msra.mxu0 %v13721_v25  ;;  %v18184_v25 = vsub.s32 2, %v18183_v23  ;;  %v13783_v23 = vld [vmem:[%s17527_s3 + $0x24] ss:$8 sps:$4 sm:$0xff]  }
 0x725   : > { %8094 = vmatprep.subr.bf16.mxu0 %v13726_v5 }
 0x726   : > { %v7688_v43 = vrot.slane %v7675_v47, %v18184_v25  ;;  %v13781_v25 = vld [vmem:[%s17527_s3 + $0x20] ss:$8 sps:$4 sm:$0xff]  }
 0x728   : > { %8095 = vmatpush1.bf16.msra.mxu0 %v13724_v0 }
 0x729   : > { %8096 = vmatprep.subr.bf16.mxu0 %v13729_v41 }
 0x72c   : > { %8097 = vmatpush1.bf16.msra.mxu0 %v13727_v28 }
 0x72d   : > { %8098 = vmatprep.subr.bf16.mxu0 %v13732_v56  ;;  %v18185_v56 = vld [vmem:[#allocation144_spill] sm:$0xff] }
 0x730   : > { %8099 = vmatpush1.bf16.msra.mxu0 %v13730_v37 }
 0x731   : > { %8100 = vmatprep.subr.bf16.mxu0 %v13735_v16 }
 0x734   : > { %8101 = vmatpush1.bf16.msra.mxu0 %v13733_v33 }
 0x735   : > { %8102 = vmatprep.subr.bf16.mxu0 %v13738_v21 }
 0x738   : > { %8103 = vmatpush1.bf16.msra.mxu0 %v13736_v24 }
 0x739   : > { %8104 = vmatprep.subr.bf16.mxu0 %v13741_v11 }
 0x73c   : > { %8105 = vmatpush1.bf16.msra.mxu0 %v13739_v60 }
 0x73d   : > { %8106 = vmatprep.subr.bf16.mxu0 %v13744_v42 }
 0x740   : > { %8107 = vmatpush1.bf16.msra.mxu0 %v13742_v10 }
 0x741   : > { %8108 = vmatprep.subr.bf16.mxu0 %v13747_v6 }
 0x744   : > { %8109 = vmatpush1.bf16.msra.mxu0 %v13745_v62 }
 0x745   : > { %8110 = vmatprep.subr.bf16.mxu0 %v13750_v22 }
 0x748   : > { %8111 = vmatpush1.bf16.msra.mxu0 %v13748_v20 }
 0x749   : > { %8121 = vmatprep.subr.bf16.mxu0 %v13753_v29  ;;  %v13751_v29 = vld [vmem:[%s17527_s3 + $0x280] ss:$8 sps:$4 sm:$0xff]  }
 0x788   : > { %v7452_v38 = vpop.f32.mrb[20].mxu1 }
 0x789   : > { %v7663_v35 = vmax.f32 %v7452_v38, %v18178_v50  ;;  %v7454_v12 = vpop.f32.mrb[21].mxu1  ;;  %v13756_v38 = vld [vmem:[%s17527_s3 + $0x294] ss:$8 sps:$4 sm:$0xff]   ;;  %v13754_v50 = vld [vmem:[%s17527_s3 + $0x290] ss:$8 sps:$4 sm:$0xff]  }
 0x78a   : > { %v7456_v18 = vpop.f32.mrb[22].mxu1 }
 0x78b   : > { %v7669_v51 = vmax.f32 %v7657_v39, %v7663_v35  ;;  %v7666_v9 = vmax.f32 %v7456_v18, %v18180_v44  ;;  %v7458_v19 = vpop.f32.mrb[23].mxu1  ;;  %v7684_v39 = vrot.slane %v7675_v47, %v18181_v48  ;;  %v13759_v35 = vld [vmem:[%s17527_s3 + $0x2a4] ss:$8 sps:$4 sm:$0xff]   ;;  %v13760_v18 = vld [vmem:[%s17527_s3 + $0x2b0] ss:$8 sps:$4 sm:$0xff]  }
 0x78c   : > { %v13763_v44 = vld [vmem:[%s17527_s3 + $0x2c0] ss:$8 sps:$4 sm:$0xff]  }
 0x78d   : > { %v7692_v1 = vadd.f32 %v7680_v45, %v7669_v51  ;;  %v7672_v55 = vmax.f32 %v7660_v15, %v7666_v9  ;;  %v13765_v51 = vld [vmem:[%s17527_s3 + $0x2c4] ss:$8 sps:$4 sm:$0xff]   ;;  %v13768_v9 = vld [vmem:[%s17527_s3 + $0x2d4] ss:$8 sps:$4 sm:$0xff]  }
 0x78f   : > { %v7704_v8 = vmul.f32 0.01, %v7692_v1  ;;  %v7695_v26 = vadd.f32 %v7680_v45, %v7672_v55  ;;  %vm7698_vm0 = vcmp.ge.f32.partialorder %v7692_v1, 0.0  ;;  %v13757_v45 = vld [vmem:[%s17527_s3 + $0x2a0] ss:$8 sps:$4 sm:$0xff]  }
 0x790   : > { %v13771_v55 = vld [vmem:[%s17527_s3 + $0x2e4] ss:$8 sps:$4 sm:$0xff]  }
 0x791   : > { %vm7701_vm1 = vcmp.ge.f32.partialorder %v7695_v26, 0.0  ;;  %v7707_v2 = vmul.f32 0.01, %v7695_v26  ;;  %v7710_v3 = vsel %vm7698_vm0, %v7692_v1, %v7704_v8  ;;  %v13769_v8 = vld [vmem:[%s17527_s3 + $0x2e0] ss:$8 sps:$4 sm:$0xff]  }
 0x792   : > { %v16475_v41 = vpack.c.bf16 %v7710_v3, %v7710_v3 }
 0x793   : > { %v7713_v53 = vsel %vm7701_vm1, %v7695_v26, %v7707_v2  ;;  %v13774_v26 = vld [vmem:[%s17527_s3 + $0x2f4] ss:$8 sps:$4 sm:$0xff]  }
 0x794   : > { %v16466_v14 = vpack.c.bf16 %v7713_v53, %v7710_v3  ;;  %v7819_v61 = vshll.u32 %v16475_v41, 16  ;;  %v7817_v20 = vshrl.u32 %v16475_v41, 16  ;;  %v13772_v3 = vld [vmem:[%s17527_s3 + $0x2f0] ss:$8 sps:$4 sm:$0xff]  }
 0x796   : > { %v7821_v10 = vrot.slane %v7819_v61, 1  ;;  %v13810_v61 = vld [vmem:[%s17527_s3 + $0xb4] ss:$8 sps:$4 sm:$0xff]  }
 0x798   : > { %v7822_v47 = vor.u32 %v7821_v10, %v7817_v20  ;;  %v13822_v10 = vld [vmem:[%s17527_s3 + $0xf4] ss:$8 sps:$4 sm:$0xff]   ;;  %v13823_v20 = vld [vmem:[%s17527_s3 + $0x100] ss:$8 sps:$4 sm:$0xff]  }
 0x7e8   : > { %v7624_v4 = vpop.f32.mrb[28].mxu1 }
 0x7e9   : > { %v7664_v57 = vmax.f32 %v7454_v12, %v7624_v4  ;;  %v7626_v59 = vpop.f32.mrb[29].mxu1  ;;  %v13762_v12 = vld [vmem:[%s17527_s3 + $0x2b4] ss:$8 sps:$4 sm:$0xff]   ;;  %v13777_v4 = vld [vmem:[%s17527_s3 + $0x4] ss:$8 sps:$4 sm:$0xff]  }
 0x7ea   : > { %v7665_v36 = vmax.f32 %v18182_v7, %v7626_v59  ;;  %v7628_v63 = vpop.f32.mrb[30].mxu1  ;;  %v13780_v7 = vld [vmem:[%s17527_s3 + $0x14] ss:$8 sps:$4 sm:$0xff]  }
 0x7eb   : > { %v7670_v15 = vmax.f32 %v7658_v52, %v7664_v57  ;;  %v7667_v5 = vmax.f32 %v7458_v19, %v7628_v63  ;;  %v7630_v0 = vpop.f32.mrb[31].mxu1  ;;  %v13766_v19 = vld [vmem:[%s17527_s3 + $0x2d0] ss:$8 sps:$4 sm:$0xff]  }
 0x7ec   : > { %v7671_v28 = vmax.f32 %v7659_v34, %v7665_v36  ;;  %v7668_v37 = vmax.f32 %v18185_v56, %v7630_v0  ;;  %v13778_v36 = vld [vmem:[%s17527_s3 + $0x10] ss:$8 sps:$4 sm:$0xff]   ;;  %v13792_v0 = vld [vmem:[%s17527_s3 + $0x54] ss:$8 sps:$4 sm:$0xff]   ;;  %v13795_v56 = vld [vmem:[%s17527_s3 + $0x64] ss:$8 sps:$4 sm:$0xff]  }
 0x7ed   : > { %v7693_v16 = vadd.f32 %v7684_v39, %v7670_v15  ;;  %v7673_v33 = vmax.f32 %v7661_v17, %v7667_v5  ;;  %v13784_v63 = vld [vmem:[%s17527_s3 + $0x30] ss:$8 sps:$4 sm:$0xff]   ;;  %v13789_v15 = vld [vmem:[%s17527_s3 + $0x44] ss:$8 sps:$4 sm:$0xff]   ;;  %v13787_v5 = vld [vmem:[%s17527_s3 + $0x40] ss:$8 sps:$4 sm:$0xff]  }
 0x7ee   : > { %v7694_v21 = vadd.f32 %v7688_v43, %v7671_v28  ;;  %v7674_v58 = vmax.f32 %v7662_v40, %v7668_v37  ;;  %v13790_v28 = vld [vmem:[%s17527_s3 + $0x50] ss:$8 sps:$4 sm:$0xff]   ;;  %v13793_v37 = vld [vmem:[%s17527_s3 + $0x60] ss:$8 sps:$4 sm:$0xff]  }
 0x7ef   : > { %vm7699_vm2 = vcmp.ge.f32.partialorder %v7693_v16, 0.0  ;;  %v7705_v49 = vmul.f32 0.01, %v7693_v16  ;;  %v7696_v52 = vadd.f32 %v7684_v39, %v7673_v33  ;;  %v13775_v39 = vld [vmem:[%s17527_s3] ss:$8 sps:$4 sm:$0xff]  }
 0x7f0   : > { %v7706_v24 = vmul.f32 0.01, %v7694_v21  ;;  %v7697_v11 = vadd.f32 %v7688_v43, %v7674_v58  ;;  %vm7700_vm3 = vcmp.ge.f32.partialorder %v7694_v21, 0.0  ;;  %v13786_v43 = vld [vmem:[%s17527_s3 + $0x34] ss:$8 sps:$4 sm:$0xff]  }
 0x7f1   : > { %v7711_v13 = vsel %vm7699_vm2, %v7693_v16, %v7705_v49  ;;  %vm7702_vm4 = vcmp.ge.f32.partialorder %v7696_v52, 0.0  ;;  %v7708_v34 = vmul.f32 0.01, %v7696_v52  ;;  %v13798_v16 = vld [vmem:[%s17527_s3 + $0x74] ss:$8 sps:$4 sm:$0xff]  }
 0x7f2   : > { %v16488_v60 = vpack.c.bf16 %v7711_v13, %v7711_v13  ;;  %vm7703_vm5 = vcmp.ge.f32.partialorder %v7697_v11, 0.0  ;;  %v7709_v27 = vmul.f32 0.01, %v7697_v11  ;;  %v7712_v17 = vsel %vm7700_vm3, %v7694_v21, %v7706_v24  ;;  %v13796_v33 = vld [vmem:[%s17527_s3 + $0x70] ss:$8 sps:$4 sm:$0xff]  }
 0x7f3   : > { %v7714_v32 = vsel %vm7702_vm4, %v7696_v52, %v7708_v34  ;;  %v16531_v1 = vpack.c.bf16 %v7712_v17, %v7712_v17  ;;  %v13801_v21 = vld [vmem:[%s17527_s3 + $0x84] ss:$8 sps:$4 sm:$0xff]   ;;  %v13799_v58 = vld [vmem:[%s17527_s3 + $0x80] ss:$8 sps:$4 sm:$0xff]   ;;  %v13804_v49 = vld [vmem:[%s17527_s3 + $0x94] ss:$8 sps:$4 sm:$0xff]  }
 0x7f4   : > { %v16490_v42 = vpack.c.bf16 %v7714_v32, %v7711_v13  ;;  %v7715_v54 = vsel %vm7703_vm5, %v7697_v11, %v7709_v27  ;;  %v7826_v31 = vshll.u32 %v16488_v60, 16  ;;  %v7824_v6 = vshrl.u32 %v16488_v60, 16  ;;  %v13802_v52 = vld [vmem:[%s17527_s3 + $0x90] ss:$8 sps:$4 sm:$0xff]   ;;  %v13807_v24 = vld [vmem:[%s17527_s3 + $0xa4] ss:$8 sps:$4 sm:$0xff]  }
 0x7f5   : > { %v16493_v40 = vpack.c.bf16 %v7715_v54, %v7712_v17  ;;  %v7833_v2 = vshll.u32 %v16531_v1, 16  ;;  %v7831_v57 = vshrl.u32 %v16531_v1, 16  ;;  %v13805_v11 = vld [vmem:[%s17527_s3 + $0xa0] ss:$8 sps:$4 sm:$0xff]   ;;  %v13808_v13 = vld [vmem:[%s17527_s3 + $0xb0] ss:$8 sps:$4 sm:$0xff]  }
 0x7f6   : > { %v7828_v62 = vrot.slane %v7826_v31, 1  ;;  %v13813_v34 = vld [vmem:[%s17527_s3 + $0xc4] ss:$8 sps:$4 sm:$0xff]   ;;  %v13811_v27 = vld [vmem:[%s17527_s3 + $0xc0] ss:$8 sps:$4 sm:$0xff]  }
 0x7f7   : > { %v7835_v53 = vrot.slane %v7833_v2, 1  ;;  %v13816_v32 = vld [vmem:[%s17527_s3 + $0xd4] ss:$8 sps:$4 sm:$0xff]   ;;  %v13814_v17 = vld [vmem:[%s17527_s3 + $0xd0] ss:$8 sps:$4 sm:$0xff]  }
 0x7f8   : > { %v7829_v22 = vor.u32 %v7828_v62, %v7824_v6  ;;  %v13819_v54 = vld [vmem:[%s17527_s3 + $0xe4] ss:$8 sps:$4 sm:$0xff]   ;;  %v13817_v31 = vld [vmem:[%s17527_s3 + $0xe0] ss:$8 sps:$4 sm:$0xff]   ;;  %v13820_v6 = vld [vmem:[%s17527_s3 + $0xf0] ss:$8 sps:$4 sm:$0xff]  }
 0x7f9   : > { %v7836_v59 = vor.u32 %v7835_v53, %v7831_v57  ;;  %v13825_v62 = vld [vmem:[%s17527_s3 + $0x104] ss:$8 sps:$4 sm:$0xff]   ;;  %v13852_v2 = vld [vmem:[%s17527_s3 + $0x314] ss:$8 sps:$4 sm:$0xff]   ;;  %v13850_v53 = vld [vmem:[%s17527_s3 + $0x310] ss:$8 sps:$4 sm:$0xff]  }
 0x7fa   : > { %8112 = vmatprep.mubr.bf16.mxu0 %v7829_v22  ;;  %v13828_v22 = vld [vmem:[%s17527_s3 + $0x114] ss:$8 sps:$4 sm:$0xff]   ;;  %v13853_v57 = vld [vmem:[%s17527_s3 + $0x320] ss:$8 sps:$4 sm:$0xff]  }
 0x7fb   : > { %8113 = vmatmul.mubr.bf16.vlgmr.msra.gmra.mrb[40].mxu0 %v7822_v47  ;;  %v13831_v47 = vld [vmem:[%s17527_s3 + $0x124] ss:$8 sps:$4 sm:$0xff]  }
 0x7fc   : > { %8122 = vmatpush1.bf16.msra.mxu0 %v13751_v29  ;;  %8153 = vmatprep.mubr.bf16.mxu0 %v17792_v30  ;;  %v13826_v29 = vld [vmem:[%s17527_s3 + $0x110] ss:$8 sps:$4 sm:$0xff]  }
 0x7fd   : > { %8123 = vmatprep.subr.bf16.mxu0 %v13756_v38  ;;  %v13829_v38 = vld [vmem:[%s17527_s3 + $0x120] ss:$8 sps:$4 sm:$0xff]  }
 0x800   : > { %8124 = vmatpush1.bf16.msra.mxu0 %v13754_v50  ;;  %v13834_v50 = vld [vmem:[%s17527_s3 + $0x134] ss:$8 sps:$4 sm:$0xff]  }
 0x801   : > { %8125 = vmatprep.subr.bf16.mxu0 %v13759_v35  ;;  %v13832_v35 = vld [vmem:[%s17527_s3 + $0x130] ss:$8 sps:$4 sm:$0xff]  }
 0x804   : > { %8126 = vmatpush1.bf16.msra.mxu0 %v13757_v45  ;;  %v13837_v45 = vld [vmem:[%s17527_s3 + $0x144] ss:$8 sps:$4 sm:$0xff]  }
 0x805   : > { %8127 = vmatprep.subr.bf16.mxu0 %v13762_v12  ;;  %v13835_v12 = vld [vmem:[%s17527_s3 + $0x140] ss:$8 sps:$4 sm:$0xff]  }
 0x808   : > { %8128 = vmatpush1.bf16.msra.mxu0 %v13760_v18  ;;  %v13840_v18 = vld [vmem:[%s17527_s3 + $0x154] ss:$8 sps:$4 sm:$0xff]  }
 0x809   : > { %8129 = vmatprep.subr.bf16.mxu0 %v13765_v51  ;;  %v13838_v51 = vld [vmem:[%s17527_s3 + $0x150] ss:$8 sps:$4 sm:$0xff]  }
 0x80c   : > { %8130 = vmatpush1.bf16.msra.mxu0 %v13763_v44  ;;  %v13843_v44 = vld [vmem:[%s17527_s3 + $0x164] ss:$8 sps:$4 sm:$0xff]  }
 0x80d   : > { %8131 = vmatprep.subr.bf16.mxu0 %v13768_v9  ;;  %v13841_v9 = vld [vmem:[%s17527_s3 + $0x160] ss:$8 sps:$4 sm:$0xff]  }
 0x810   : > { %8132 = vmatpush1.bf16.msra.mxu0 %v13766_v19  ;;  %v13846_v19 = vld [vmem:[%s17527_s3 + $0x174] ss:$8 sps:$4 sm:$0xff]  }
 0x811   : > { %8133 = vmatprep.subr.bf16.mxu0 %v13771_v55  ;;  %v13844_v55 = vld [vmem:[%s17527_s3 + $0x170] ss:$8 sps:$4 sm:$0xff]  }
 0x814   : > { %8134 = vmatpush1.bf16.msra.mxu0 %v13769_v8  ;;  %v13849_v8 = vld [vmem:[%s17527_s3 + $0x304] ss:$8 sps:$4 sm:$0xff]  }
 0x815   : > { %8135 = vmatprep.subr.bf16.mxu0 %v13774_v26  ;;  %v13847_v26 = vld [vmem:[%s17527_s3 + $0x300] ss:$8 sps:$4 sm:$0xff]  }
 0x818   : > { %8136 = vmatpush1.bf16.msra.mxu0 %v13772_v3  ;;  %v8537_v3 = vrot.slane %v16488_v60, 1 }
 0x819   : > { %8402 = vmatprep.subr.bf16.mxu0 %v13777_v4  ;;  %v13855_v4 = vld [vmem:[%s17527_s3 + $0x324] ss:$8 sps:$4 sm:$0xff]  }
 0x81b   : > { %8154 = vmatmul.mubr.bf16.vlgmr.msra.gmra.mrb[44].mxu0 %v7836_v59  ;;  %v13861_v59 = vld [vmem:[%s17527_s3 + $0x344] ss:$8 sps:$4 sm:$0xff]  }
 0x81c   : > { %8403 = vmatpush1.bf16.msra.mxu0 %v13775_v39  ;;  %8434 = vmatprep.mubr.bf16.mxu0 %v16488_v60  ;;  %v13858_v60 = vld [vmem:[%s17527_s3 + $0x334] ss:$8 sps:$4 sm:$0xff]   ;;  %v13856_v39 = vld [vmem:[%s17527_s3 + $0x330] ss:$8 sps:$4 sm:$0xff]  }
 0x81d   : > { %8404 = vmatprep.subr.bf16.mxu0 %v13780_v7  ;;  %v13859_v7 = vld [vmem:[%s17527_s3 + $0x340] ss:$8 sps:$4 sm:$0xff]  }
 0x820   : > { %8405 = vmatpush1.bf16.msra.mxu0 %v13778_v36  ;;  %v13864_v36 = vld [vmem:[%s17527_s3 + $0x354] ss:$8 sps:$4 sm:$0xff]  }
 0x821   : > { %8406 = vmatprep.subr.bf16.mxu0 %v13783_v23  ;;  %v13862_v23 = vld [vmem:[%s17527_s3 + $0x350] ss:$8 sps:$4 sm:$0xff]  }
 0x824   : > { %8407 = vmatpush1.bf16.msra.mxu0 %v13781_v25  ;;  %v13867_v25 = vld [vmem:[%s17527_s3 + $0x364] ss:$8 sps:$4 sm:$0xff]  }
 0x825   : > { %8408 = vmatprep.subr.bf16.mxu0 %v13786_v43  ;;  %v13865_v43 = vld [vmem:[%s17527_s3 + $0x360] ss:$8 sps:$4 sm:$0xff]  }
 0x828   : > { %8409 = vmatpush1.bf16.msra.mxu0 %v13784_v63  ;;  %v13870_v63 = vld [vmem:[%s17527_s3 + $0x374] ss:$8 sps:$4 sm:$0xff]  }
 0x829   : > { %8410 = vmatprep.subr.bf16.mxu0 %v13789_v15  ;;  %v13868_v15 = vld [vmem:[%s17527_s3 + $0x370] ss:$8 sps:$4 sm:$0xff]  }
 0x82c   : > { %8411 = vmatpush1.bf16.msra.mxu0 %v13787_v5  ;;  %v13873_v5 = vld [vmem:[%s17527_s3 + $0x384] ss:$8 sps:$4 sm:$0xff]  }
 0x82d   : > { %8412 = vmatprep.subr.bf16.mxu0 %v13792_v0  ;;  %v13871_v0 = vld [vmem:[%s17527_s3 + $0x380] ss:$8 sps:$4 sm:$0xff]  }
 0x830   : > { %8413 = vmatpush1.bf16.msra.mxu0 %v13790_v28  ;;  %v13876_v28 = vld [vmem:[%s17527_s3 + $0x394] ss:$8 sps:$4 sm:$0xff]  }
 0x831   : > { %8414 = vmatprep.subr.bf16.mxu0 %v13795_v56  ;;  %v13874_v56 = vld [vmem:[%s17527_s3 + $0x390] ss:$8 sps:$4 sm:$0xff]  }
 0x834   : > { %8415 = vmatpush1.bf16.msra.mxu0 %v13793_v37  ;;  %v13879_v37 = vld [vmem:[%s17527_s3 + $0x3a4] ss:$8 sps:$4 sm:$0xff]  }
 0x835   : > { %8416 = vmatprep.subr.bf16.mxu0 %v13798_v16  ;;  %v13877_v16 = vld [vmem:[%s17527_s3 + $0x3a0] ss:$8 sps:$4 sm:$0xff]  }
 0x838   : > { %8417 = vmatpush1.bf16.msra.mxu0 %v13796_v33  ;;  %v13882_v33 = vld [vmem:[%s17527_s3 + $0x3b4] ss:$8 sps:$4 sm:$0xff]  }
 0x839   : > { %8418 = vmatprep.subr.bf16.mxu0 %v13801_v21  ;;  %v13880_v21 = vld [vmem:[%s17527_s3 + $0x3b0] ss:$8 sps:$4 sm:$0xff]  }
 0x83c   : > { %8419 = vmatpush1.bf16.msra.mxu0 %v13799_v58  ;;  %v13885_v58 = vld [vmem:[%s17527_s3 + $0x3c4] ss:$8 sps:$4 sm:$0xff]  }
 0x83d   : > { %8420 = vmatprep.subr.bf16.mxu0 %v13804_v49  ;;  %v13883_v49 = vld [vmem:[%s17527_s3 + $0x3c0] ss:$8 sps:$4 sm:$0xff]  }
 0x840   : > { %8421 = vmatpush1.bf16.msra.mxu0 %v13802_v52  ;;  %v13888_v52 = vld [vmem:[%s17527_s3 + $0x3d4] ss:$8 sps:$4 sm:$0xff]  }
 0x841   : > { %8422 = vmatprep.subr.bf16.mxu0 %v13807_v24  ;;  %v13886_v24 = vld [vmem:[%s17527_s3 + $0x3d0] ss:$8 sps:$4 sm:$0xff]  }
 0x844   : > { %8423 = vmatpush1.bf16.msra.mxu0 %v13805_v11  ;;  %v13891_v11 = vld [vmem:[%s17527_s3 + $0x3e4] ss:$8 sps:$4 sm:$0xff]  }
 0x845   : > { %8424 = vmatprep.subr.bf16.mxu0 %v13810_v61  ;;  %v13889_v61 = vld [vmem:[%s17527_s3 + $0x3e0] ss:$8 sps:$4 sm:$0xff]  }
 0x848   : > { %8425 = vmatpush1.bf16.msra.mxu0 %v13808_v13  ;;  %v13894_v13 = vld [vmem:[%s17527_s3 + $0x3f4] ss:$8 sps:$4 sm:$0xff]  }
 0x849   : > { %8426 = vmatprep.subr.bf16.mxu0 %v13813_v34  ;;  %v13892_v34 = vld [vmem:[%s17527_s3 + $0x3f0] ss:$8 sps:$4 sm:$0xff]  }
 0x84c   : > { %8427 = vmatpush1.bf16.msra.mxu0 %v13811_v27  ;;  %v13897_v27 = vld [vmem:[%s17527_s3 + $0x404] ss:$8 sps:$4 sm:$0xff]  }
 0x84d   : > { %8428 = vmatprep.subr.bf16.mxu0 %v13816_v32  ;;  %v13895_v32 = vld [vmem:[%s17527_s3 + $0x400] ss:$8 sps:$4 sm:$0xff]  }
 0x850   : > { %8429 = vmatpush1.bf16.msra.mxu0 %v13814_v17  ;;  %v8536_v17 = vrot.slane %v16475_v41, 1 }
 0x851   : > { %8430 = vmatprep.subr.bf16.mxu0 %v13819_v54  ;;  %v13900_v54 = vld [vmem:[%s17527_s3 + $0x414] ss:$8 sps:$4 sm:$0xff]  }
 0x854   : > { %8431 = vmatpush1.bf16.msra.mxu0 %v13817_v31  ;;  %v13898_v31 = vld [vmem:[%s17527_s3 + $0x410] ss:$8 sps:$4 sm:$0xff]  }
 0x855   : > { %8432 = vmatprep.subr.bf16.mxu0 %v13822_v10  ;;  %v13903_v10 = vld [vmem:[%s17527_s3 + $0x424] ss:$8 sps:$4 sm:$0xff]  }
 0x858   : > { %8433 = vmatpush1.bf16.msra.mxu0 %v13820_v6  ;;  %v13906_v6 = vld [vmem:[%s17527_s3 + $0x434] ss:$8 sps:$4 sm:$0xff]  }
 0x859   : > { %8443 = vmatprep.subr.bf16.mxu0 %v13825_v62  ;;  %v13904_v62 = vld [vmem:[%s17527_s3 + $0x430] ss:$8 sps:$4 sm:$0xff]  }
 0x85b   : > { %8435 = vmatmul.mubr.bf16.vlgmr.msra.gmra.mrb[48].mxu0 %v16475_v41  ;;  %v13901_v41 = vld [vmem:[%s17527_s3 + $0x420] ss:$8 sps:$4 sm:$0xff]  }
 0x85c   : > { %8444 = vmatpush1.bf16.msra.mxu0 %v13823_v20  ;;  %8475 = vmatprep.mubr.bf16.mxu0 %v17792_v30  ;;  %v13909_v20 = vld [vmem:[%s17527_s3 + $0x444] ss:$8 sps:$4 sm:$0xff]  }
 0x85d   : > { %8445 = vmatprep.subr.bf16.mxu0 %v13828_v22  ;;  %v13907_v22 = vld [vmem:[%s17527_s3 + $0x440] ss:$8 sps:$4 sm:$0xff]  }
 0x860   : > { %8446 = vmatpush1.bf16.msra.mxu0 %v13826_v29  ;;  %v13912_v29 = vld [vmem:[%s17527_s3 + $0x454] ss:$8 sps:$4 sm:$0xff]  }
 0x861   : > { %8447 = vmatprep.subr.bf16.mxu0 %v13831_v47  ;;  %v13910_v47 = vld [vmem:[%s17527_s3 + $0x450] ss:$8 sps:$4 sm:$0xff]  }
 0x864   : > { %8448 = vmatpush1.bf16.msra.mxu0 %v13829_v38  ;;  %v13915_v38 = vld [vmem:[%s17527_s3 + $0x464] ss:$8 sps:$4 sm:$0xff]  }
 0x865   : > { %8449 = vmatprep.subr.bf16.mxu0 %v13834_v50 }
 0x868   : > { %8450 = vmatpush1.bf16.msra.mxu0 %v13832_v35 }
 0x869   : > { %8451 = vmatprep.subr.bf16.mxu0 %v13837_v45 }
 0x86c   : > { %8452 = vmatpush1.bf16.msra.mxu0 %v13835_v12  ;;  %v13913_v12 = vld [vmem:[%s17527_s3 + $0x460] ss:$8 sps:$4 sm:$0xff]  }
 0x86d   : > { %8453 = vmatprep.subr.bf16.mxu0 %v13840_v18 }
 0x870   : > { %8454 = vmatpush1.bf16.msra.mxu0 %v13838_v51  ;;  %v13918_v51 = vld [vmem:[%s17527_s3 + $0x474] ss:$8 sps:$4 sm:$0xff]  }
 0x871   : > { %8455 = vmatprep.subr.bf16.mxu0 %v13843_v44  ;;  %v8927_v44 = vshrl.u32 %v16490_v42, 16 }
 0x874   : > { %8456 = vmatpush1.bf16.msra.mxu0 %v13841_v9  ;;  %v8930_v9 = vshll.u32 %v16490_v42, 16 }
 0x875   : > { %8457 = vmatprep.subr.bf16.mxu0 %v13846_v19  ;;  %v13916_v19 = vld [vmem:[%s17527_s3 + $0x470] ss:$8 sps:$4 sm:$0xff]  }
 0x878   : > { %8458 = vmatpush1.bf16.msra.mxu0 %v13844_v55  ;;  %v13921_v55 = vld [vmem:[%s17527_s3 + $0x484] ss:$8 sps:$4 sm:$0xff]  }
 0x879   : > { %8782 = vmatprep.subr.bf16.mxu0 %v13849_v8  ;;  %v8929_v8 = vrot.slane %v8927_v44, 1  ;;  %v13981_v44 = vld [vmem:[%s17527_s3 + $0x5c4] ss:$8 sps:$4 sm:$0xff]  }
 0x87b   : > { %8476 = vmatmul.mubr.bf16.vlgmr.msra.gmra.mrb[52].mxu0 %v16531_v1 }
 0x87c   : > { %8783 = vmatpush1.bf16.msra.mxu0 %v13847_v26  ;;  %8814 = vmatprep.mubr.bf16.mxu0 %v8537_v3  ;;  %v8932_v26 = vrot.slane %v8930_v9, 2  ;;  %v8538_v3 = vrot.slane %v16531_v1, 1  ;;  %v13925_v1 = vld [vmem:[%s17527_s3 + $0x4a0] ss:$8 sps:$4 sm:$0xff]  }
 0x87d   : > { %8784 = vmatprep.subr.bf16.mxu0 %v13852_v2  ;;  %v13919_v2 = vld [vmem:[%s17527_s3 + $0x480] ss:$8 sps:$4 sm:$0xff]  }
 0x87e   : > { %v13979_v9 = vld [vmem:[%s17527_s3 + $0x5c0] ss:$8 sps:$4 sm:$0xff]  }
 0x880   : > { %8785 = vmatpush1.bf16.msra.mxu0 %v13850_v53  ;;  %v13924_v53 = vld [vmem:[%s17527_s3 + $0x494] ss:$8 sps:$4 sm:$0xff]  }
 0x881   : > { %8786 = vmatprep.subr.bf16.mxu0 %v13855_v4  ;;  %v8933_v4 = vor.u32 %v8932_v26, %v8929_v8  ;;  %v13987_v8 = vld [vmem:[%s17527_s3 + $0x5e4] ss:$8 sps:$4 sm:$0xff]  }
 0x884   : > { %8787 = vmatpush1.bf16.msra.mxu0 %v13853_v57  ;;  %v13922_v57 = vld [vmem:[%s17527_s3 + $0x490] ss:$8 sps:$4 sm:$0xff]  }
 0x885   : > { %8788 = vmatprep.subr.bf16.mxu0 %v13858_v60  ;;  %v13927_v60 = vld [vmem:[%s17527_s3 + $0x4a4] ss:$8 sps:$4 sm:$0xff]  }
 0x888   : > { %8789 = vmatpush1.bf16.msra.mxu0 %v13856_v39  ;;  %v13930_v39 = vld [vmem:[%s17527_s3 + $0x4b4] ss:$8 sps:$4 sm:$0xff]  }
 0x889   : > { %8790 = vmatprep.subr.bf16.mxu0 %v13861_v59  ;;  %v13928_v59 = vld [vmem:[%s17527_s3 + $0x4b0] ss:$8 sps:$4 sm:$0xff]  }
 0x88c   : > { %8791 = vmatpush1.bf16.msra.mxu0 %v13859_v7  ;;  %v13933_v7 = vld [vmem:[%s17527_s3 + $0x4c4] ss:$8 sps:$4 sm:$0xff]  }
 0x88d   : > { %8792 = vmatprep.subr.bf16.mxu0 %v13864_v36  ;;  %v13931_v36 = vld [vmem:[%s17527_s3 + $0x4c0] ss:$8 sps:$4 sm:$0xff]  }
 0x890   : > { %8793 = vmatpush1.bf16.msra.mxu0 %v13862_v23  ;;  %v13936_v23 = vld [vmem:[%s17527_s3 + $0x4d4] ss:$8 sps:$4 sm:$0xff]  }
 0x891   : > { %8794 = vmatprep.subr.bf16.mxu0 %v13867_v25  ;;  %v13934_v25 = vld [vmem:[%s17527_s3 + $0x4d0] ss:$8 sps:$4 sm:$0xff]  }
 0x894   : > { %8795 = vmatpush1.bf16.msra.mxu0 %v13865_v43  ;;  %v13939_v43 = vld [vmem:[%s17527_s3 + $0x4e4] ss:$8 sps:$4 sm:$0xff]  }
 0x895   : > { %8796 = vmatprep.subr.bf16.mxu0 %v13870_v63 }
 0x898   : > { %8797 = vmatpush1.bf16.msra.mxu0 %v13868_v15 }
 0x899   : > { %8798 = vmatprep.subr.bf16.mxu0 %v13873_v5 }
 0x89c   : > { %8799 = vmatpush1.bf16.msra.mxu0 %v13871_v0 }
 0x89d   : > { %8800 = vmatprep.subr.bf16.mxu0 %v13876_v28 }
 0x8a0   : > { %8801 = vmatpush1.bf16.msra.mxu0 %v13874_v56  ;;  %v13937_v56 = vld [vmem:[%s17527_s3 + $0x4e0] ss:$8 sps:$4 sm:$0xff]  }
 0x8a1   : > { %8802 = vmatprep.subr.bf16.mxu0 %v13879_v37 }
 0x8a4   : > { %8803 = vmatpush1.bf16.msra.mxu0 %v13877_v16  ;;  %v13942_v16 = vld [vmem:[%s17527_s3 + $0x4f4] ss:$8 sps:$4 sm:$0xff]  }
 0x8a5   : > { %8804 = vmatprep.subr.bf16.mxu0 %v13882_v33  ;;  %v13940_v33 = vld [vmem:[%s17527_s3 + $0x4f0] ss:$8 sps:$4 sm:$0xff]  }
 0x8a8   : > { %8805 = vmatpush1.bf16.msra.mxu0 %v13880_v21  ;;  %v13945_v21 = vld [vmem:[%s17527_s3 + $0x504] ss:$8 sps:$4 sm:$0xff]  }
 0x8a9   : > { %8806 = vmatprep.subr.bf16.mxu0 %v13885_v58  ;;  %v13943_v58 = vld [vmem:[%s17527_s3 + $0x500] ss:$8 sps:$4 sm:$0xff]  }
 0x8ac   : > { %8807 = vmatpush1.bf16.msra.mxu0 %v13883_v49  ;;  %v13948_v49 = vld [vmem:[%s17527_s3 + $0x514] ss:$8 sps:$4 sm:$0xff]  }
 0x8ad   : > { %8808 = vmatprep.subr.bf16.mxu0 %v13888_v52  ;;  %v13946_v52 = vld [vmem:[%s17527_s3 + $0x510] ss:$8 sps:$4 sm:$0xff]  }
 0x8b0   : > { %8809 = vmatpush1.bf16.msra.mxu0 %v13886_v24  ;;  %v13951_v24 = vld [vmem:[%s17527_s3 + $0x524] ss:$8 sps:$4 sm:$0xff]  }
 0x8b1   : > { %8810 = vmatprep.subr.bf16.mxu0 %v13891_v11  ;;  %v13949_v11 = vld [vmem:[%s17527_s3 + $0x520] ss:$8 sps:$4 sm:$0xff]  }
 0x8b4   : > { %8811 = vmatpush1.bf16.msra.mxu0 %v13889_v61  ;;  %v13954_v61 = vld [vmem:[%s17527_s3 + $0x534] ss:$8 sps:$4 sm:$0xff]  }
 0x8b5   : > { %8812 = vmatprep.subr.bf16.mxu0 %v13894_v13  ;;  %v13952_v13 = vld [vmem:[%s17527_s3 + $0x530] ss:$8 sps:$4 sm:$0xff]  }
 0x8b8   : > { %8813 = vmatpush1.bf16.msra.mxu0 %v13892_v34  ;;  %v13957_v34 = vld [vmem:[%s17527_s3 + $0x544] ss:$8 sps:$4 sm:$0xff]  }
 0x8b9   : > { %8823 = vmatprep.subr.bf16.mxu0 %v13897_v27  ;;  %v13955_v27 = vld [vmem:[%s17527_s3 + $0x540] ss:$8 sps:$4 sm:$0xff]  }
 0x8bb   : > { %8815 = vmatmul.mubr.bf16.vlgmr.msra.gmra.mrb[56].mxu0 %v8536_v17  ;;  %v13958_v17 = vld [vmem:[%s17527_s3 + $0x550] ss:$8 sps:$4 sm:$0xff]  }
 0x8bc   : > { %8824 = vmatpush1.bf16.msra.mxu0 %v13895_v32  ;;  %8855 = vmatprep.mubr.bf16.mxu0 %v17792_v30  ;;  %v13960_v32 = vld [vmem:[%s17527_s3 + $0x554] ss:$8 sps:$4 sm:$0xff]  }
 0x8bd   : > { %8825 = vmatprep.subr.bf16.mxu0 %v13900_v54  ;;  %v13963_v54 = vld [vmem:[%s17527_s3 + $0x564] ss:$8 sps:$4 sm:$0xff]  }
 0x8c0   : > { %8826 = vmatpush1.bf16.msra.mxu0 %v13898_v31  ;;  %v13961_v31 = vld [vmem:[%s17527_s3 + $0x560] ss:$8 sps:$4 sm:$0xff]  }
 0x8c1   : > { %8827 = vmatprep.subr.bf16.mxu0 %v13903_v10  ;;  %v13966_v10 = vld [vmem:[%s17527_s3 + $0x574] ss:$8 sps:$4 sm:$0xff]  }
 0x8c4   : > { %8828 = vmatpush1.bf16.msra.mxu0 %v13901_v41  ;;  %v8919_v41 = vshrl.u32 %v16466_v14, 16 }
 0x8c5   : > { %8829 = vmatprep.subr.bf16.mxu0 %v13906_v6  ;;  %v8922_v6 = vshll.u32 %v16466_v14, 16 }
 0x8c8   : > { %8830 = vmatpush1.bf16.msra.mxu0 %v13904_v62  ;;  %v13964_v62 = vld [vmem:[%s17527_s3 + $0x570] ss:$8 sps:$4 sm:$0xff]  }
 0x8c9   : > { %8831 = vmatprep.subr.bf16.mxu0 %v13909_v20  ;;  %v8921_v20 = vrot.slane %v8919_v41, 1  ;;  %v14018_v41 = vld [vmem:[%s17527_s3 + $0x690] ss:$8 sps:$4 sm:$0xff]  }
 0x8cc   : > { %8832 = vmatpush1.bf16.msra.mxu0 %v13907_v22  ;;  %v8924_v22 = vrot.slane %v8922_v6, 2  ;;  %v14023_v6 = vld [vmem:[%s17527_s3 + $0x6a4] ss:$8 sps:$4 sm:$0xff]  }
 0x8cd   : > { %8833 = vmatprep.subr.bf16.mxu0 %v13912_v29  ;;  %v13969_v29 = vld [vmem:[%s17527_s3 + $0x584] ss:$8 sps:$4 sm:$0xff]  }
 0x8ce   : > { %v8114_v50 = vpop.f32.mrb[40].mxu0 }
 0x8cf   : > { %v8116_v35 = vpop.f32.mrb[41].mxu0 }
 0x8d0   : > { %8834 = vmatpush1.bf16.msra.mxu0 %v13910_v47  ;;  %v8118_v45 = vpop.f32.mrb[42].mxu0  ;;  %v13967_v47 = vld [vmem:[%s17527_s3 + $0x580] ss:$8 sps:$4 sm:$0xff]  }
 0x8d1   : > { %v8119_v18 = vpop.f32.mrb[43].mxu0  ;;  %8835 = vmatprep.subr.bf16.mxu0 %v13915_v38  ;;  %v8925_v38 = vor.u32 %v8924_v22, %v8921_v20  ;;  %v13975_v45 = vld [vmem:[%s17527_s3 + $0x5a4] ss:$8 sps:$4 sm:$0xff]   ;;  %v14026_v20 = vld [vmem:[%s17527_s3 + $0x6b4] ss:$8 sps:$4 sm:$0xff]  }
 0x8d2   : > { %v13978_v18 = vld [vmem:[%s17527_s3 + $0x5b4] ss:$8 sps:$4 sm:$0xff]   ;;  %v14024_v22 = vld [vmem:[%s17527_s3 + $0x6b0] ss:$8 sps:$4 sm:$0xff]  }
 0x8d4   : > { %8836 = vmatpush1.bf16.msra.mxu0 %v13913_v12  ;;  %v13973_v12 = vld [vmem:[%s17527_s3 + $0x5a0] ss:$8 sps:$4 sm:$0xff]  }
 0x8d5   : > { %8837 = vmatprep.subr.bf16.mxu0 %v13918_v51  ;;  %v13976_v51 = vld [vmem:[%s17527_s3 + $0x5b0] ss:$8 sps:$4 sm:$0xff]  }
 0x8d8   : > { %8838 = vmatpush1.bf16.msra.mxu0 %v13916_v19  ;;  %v13984_v19 = vld [vmem:[%s17527_s3 + $0x5d4] ss:$8 sps:$4 sm:$0xff]  }
 0x8d9   : > { %9185 = vmatprep.subr.bf16.mxu0 %v13921_v55  ;;  %v13982_v55 = vld [vmem:[%s17527_s3 + $0x5d0] ss:$8 sps:$4 sm:$0xff]  }
 0x8db   : > { %8856 = vmatmul.mubr.bf16.vlgmr.msra.gmra.mrb[60].mxu0 %v8538_v3 }
 0x8dc   : > { %9186 = vmatpush1.bf16.msra.mxu0 %v13919_v2  ;;  %9217 = vmatprep.mubr.bf16.mxu0 %v8933_v4 }
 0x8dd   : > { %9187 = vmatprep.subr.bf16.mxu0 %v13924_v53 }
 0x8e0   : > { %9188 = vmatpush1.bf16.msra.mxu0 %v13922_v57  ;;  %v13985_v57 = vld [vmem:[%s17527_s3 + $0x5e0] ss:$8 sps:$4 sm:$0xff]  }
 0x8e1   : > { %9189 = vmatprep.subr.bf16.mxu0 %v13927_v60 }
 0x8e4   : > { %9190 = vmatpush1.bf16.msra.mxu0 %v13925_v1  ;;  %v13990_v1 = vld [vmem:[%s17527_s3 + $0x5f4] ss:$8 sps:$4 sm:$0xff]  }
 0x8e5   : > { %9191 = vmatprep.subr.bf16.mxu0 %v13930_v39  ;;  %v8935_v39 = vshrl.u32 %v16493_v40, 16 }
 0x8e8   : > { %9192 = vmatpush1.bf16.msra.mxu0 %v13928_v59  ;;  %v8938_v59 = vshll.u32 %v16493_v40, 16 }
 0x8e9   : > { %9193 = vmatprep.subr.bf16.mxu0 %v13933_v7  ;;  %v13988_v7 = vld [vmem:[%s17527_s3 + $0x5f0] ss:$8 sps:$4 sm:$0xff]  }
 0x8ec   : > { %9194 = vmatpush1.bf16.msra.mxu0 %v13931_v36  ;;  %v8937_v36 = vrot.slane %v8935_v39, 1 }
 0x8ed   : > { %9195 = vmatprep.subr.bf16.mxu0 %v13936_v23  ;;  %v8940_v23 = vrot.slane %v8938_v59, 2 }
 0x8ee   : > { %v8155_v63 = vpop.f32.mrb[44].mxu0 }
 0x8ef   : > { %v16884_v15 = vadd.f32 %v8155_v63, %v8114_v50  ;;  %v8157_v5 = vpop.f32.mrb[45].mxu0  ;;  %v13972_v50 = vld [vmem:[%s17527_s3 + $0x594] ss:$8 sps:$4 sm:$0xff]   ;;  %v8941_v63 = vor.u32 %v8940_v23, %v8937_v36 }
 0x8f0   : > { %v16886_v0 = vadd.f32 %v8157_v5, %v8116_v35  ;;  %v8159_v28 = vpop.f32.mrb[46].mxu0  ;;  %9196 = vmatpush1.bf16.msra.mxu0 %v13934_v25  ;;  %v13970_v35 = vld [vmem:[%s17527_s3 + $0x590] ss:$8 sps:$4 sm:$0xff]   ;;  %v13993_v25 = vld [vmem:[%s17527_s3 + $0x604] ss:$8 sps:$4 sm:$0xff]   ;;  %v9322_v5 = vrot.slane %v16490_v42, 2 }
 0x8f1   : > { %v8160_v37 = vpop.f32.mrb[47].mxu0  ;;  %9197 = vmatprep.subr.bf16.mxu0 %v13939_v43  ;;  %v13991_v43 = vld [vmem:[%s17527_s3 + $0x600] ss:$8 sps:$4 sm:$0xff]   ;;  %v13999_v28 = vld [vmem:[%s17527_s3 + $0x624] ss:$8 sps:$4 sm:$0xff]  }
 0x8f2   : > { %v14002_v42 = vld [vmem:[%s17527_s3 + $0x634] ss:$8 sps:$4 sm:$0xff]   ;;  %v14000_v37 = vld [vmem:[%s17527_s3 + $0x630] ss:$8 sps:$4 sm:$0xff]  }
 0x8f3   : > { %v14062_v23 = vld [vmem:[%s17527_s3 + $0x774] ss:$8 sps:$4 sm:$0xff]  }
 0x8f4   : > { %9198 = vmatpush1.bf16.msra.mxu0 %v13937_v56  ;;  %v13997_v56 = vld [vmem:[%s17527_s3 + $0x620] ss:$8 sps:$4 sm:$0xff]  }
 0x8f5   : > { %9199 = vmatprep.subr.bf16.mxu0 %v13942_v16  ;;  %v14005_v16 = vld [vmem:[%s17527_s3 + $0x644] ss:$8 sps:$4 sm:$0xff]  }
 0x8f8   : > { %9200 = vmatpush1.bf16.msra.mxu0 %v13940_v33  ;;  %v14003_v33 = vld [vmem:[%s17527_s3 + $0x640] ss:$8 sps:$4 sm:$0xff]  }
 0x8f9   : > { %9201 = vmatprep.subr.bf16.mxu0 %v13945_v21  ;;  %v14008_v21 = vld [vmem:[%s17527_s3 + $0x654] ss:$8 sps:$4 sm:$0xff]  }
 0x8fc   : > { %9202 = vmatpush1.bf16.msra.mxu0 %v13943_v58  ;;  %v14006_v58 = vld [vmem:[%s17527_s3 + $0x650] ss:$8 sps:$4 sm:$0xff]  }
 0x8fd   : > { %9203 = vmatprep.subr.bf16.mxu0 %v13948_v49  ;;  %v14011_v49 = vld [vmem:[%s17527_s3 + $0x664] ss:$8 sps:$4 sm:$0xff]  }
 0x900   : > { %9204 = vmatpush1.bf16.msra.mxu0 %v13946_v52 }
 0x901   : > { %9205 = vmatprep.subr.bf16.mxu0 %v13951_v24 }
 0x904   : > { %9206 = vmatpush1.bf16.msra.mxu0 %v13949_v11 }
 0x905   : > { %9207 = vmatprep.subr.bf16.mxu0 %v13954_v61 }
 0x908   : > { %9208 = vmatpush1.bf16.msra.mxu0 %v13952_v13 }
 0x909   : > { %9209 = vmatprep.subr.bf16.mxu0 %v13957_v34  ;;  %v14009_v34 = vld [vmem:[%s17527_s3 + $0x660] ss:$8 sps:$4 sm:$0xff]  }
 0x90c   : > { %9210 = vmatpush1.bf16.msra.mxu0 %v13955_v27 }
 0x90d   : > { %9211 = vmatprep.subr.bf16.mxu0 %v13960_v32  ;;  %v14014_v32 = vld [vmem:[%s17527_s3 + $0x674] ss:$8 sps:$4 sm:$0xff]  }
 0x910   : > { %9212 = vmatpush1.bf16.msra.mxu0 %v13958_v17  ;;  %v14012_v17 = vld [vmem:[%s17527_s3 + $0x670] ss:$8 sps:$4 sm:$0xff]  }
 0x911   : > { %9213 = vmatprep.subr.bf16.mxu0 %v13963_v54  ;;  %v14017_v54 = vld [vmem:[%s17527_s3 + $0x684] ss:$8 sps:$4 sm:$0xff]  }
 0x914   : > { %9214 = vmatpush1.bf16.msra.mxu0 %v13961_v31  ;;  %v14015_v31 = vld [vmem:[%s17527_s3 + $0x680] ss:$8 sps:$4 sm:$0xff]  }
 0x915   : > { %9215 = vmatprep.subr.bf16.mxu0 %v13966_v10  ;;  %v14020_v10 = vld [vmem:[%s17527_s3 + $0x694] ss:$8 sps:$4 sm:$0xff]  }
 0x918   : > { %9216 = vmatpush1.bf16.msra.mxu0 %v13964_v62  ;;  %v14021_v62 = vld [vmem:[%s17527_s3 + $0x6a0] ss:$8 sps:$4 sm:$0xff]  }
 0x919   : > { %9226 = vmatprep.subr.bf16.mxu0 %v13969_v29  ;;  %v14029_v29 = vld [vmem:[%s17527_s3 + $0x6c4] ss:$8 sps:$4 sm:$0xff]  }
 0x91b   : > { %9218 = vmatmul.mubr.bf16.vlgmr.msra.gmra.mrb[64].mxu0 %v8925_v38  ;;  %v14032_v38 = vld [vmem:[%s17527_s3 + $0x6d4] ss:$8 sps:$4 sm:$0xff]  }
 0x91c   : > { %9227 = vmatpush1.bf16.msra.mxu0 %v13967_v47  ;;  %9258 = vmatprep.mubr.bf16.mxu0 %v17792_v30  ;;  %v14027_v47 = vld [vmem:[%s17527_s3 + $0x6c0] ss:$8 sps:$4 sm:$0xff]  }
 0x91d   : > { %9228 = vmatprep.subr.bf16.mxu0 %v13972_v50  ;;  %v14030_v50 = vld [vmem:[%s17527_s3 + $0x6d0] ss:$8 sps:$4 sm:$0xff]  }
 0x920   : > { %9229 = vmatpush1.bf16.msra.mxu0 %v13970_v35  ;;  %v14035_v35 = vld [vmem:[%s17527_s3 + $0x6e4] ss:$8 sps:$4 sm:$0xff]  }
 0x921   : > { %9230 = vmatprep.subr.bf16.mxu0 %v13975_v45  ;;  %v14033_v45 = vld [vmem:[%s17527_s3 + $0x6e0] ss:$8 sps:$4 sm:$0xff]  }
 0x924   : > { %9231 = vmatpush1.bf16.msra.mxu0 %v13973_v12  ;;  %v14038_v12 = vld [vmem:[%s17527_s3 + $0x6f4] ss:$8 sps:$4 sm:$0xff]  }
 0x925   : > { %9232 = vmatprep.subr.bf16.mxu0 %v13978_v18  ;;  %v14036_v18 = vld [vmem:[%s17527_s3 + $0x6f0] ss:$8 sps:$4 sm:$0xff]  }
 0x928   : > { %9233 = vmatpush1.bf16.msra.mxu0 %v13976_v51  ;;  %v14041_v51 = vld [vmem:[%s17527_s3 + $0x704] ss:$8 sps:$4 sm:$0xff]  }
 0x929   : > { %9234 = vmatprep.subr.bf16.mxu0 %v13981_v44  ;;  %v14039_v44 = vld [vmem:[%s17527_s3 + $0x700] ss:$8 sps:$4 sm:$0xff]  }
 0x92c   : > { %9235 = vmatpush1.bf16.msra.mxu0 %v13979_v9  ;;  %v9321_v9 = vrot.slane %v16466_v14, 2  ;;  %v14045_v14 = vld [vmem:[%s17527_s3 + $0x720] ss:$8 sps:$4 sm:$0xff]  }
 0x92d   : > { %9236 = vmatprep.subr.bf16.mxu0 %v13984_v19  ;;  %v14044_v19 = vld [vmem:[%s17527_s3 + $0x714] ss:$8 sps:$4 sm:$0xff]  }
 0x92e   : > { %v8436_v26 = vpop.f32.mrb[48].mxu0 }
 0x92f   : > { %v8437_v2 = vadd.f32 %v8436_v26, %v16884_v15  ;;  %v8438_v3 = vpop.f32.mrb[49].mxu0  ;;  %v13996_v15 = vld [vmem:[%s17527_s3 + $0x614] ss:$8 sps:$4 sm:$0xff]  }
 0x930   : > { %v8439_v53 = vadd.f32 %v8438_v3, %v16886_v0  ;;  %v8440_v4 = vpop.f32.mrb[50].mxu0  ;;  %9237 = vmatpush1.bf16.msra.mxu0 %v13982_v55  ;;  %v13994_v0 = vld [vmem:[%s17527_s3 + $0x610] ss:$8 sps:$4 sm:$0xff]   ;;  %v14050_v26 = vld [vmem:[%s17527_s3 + $0x734] ss:$8 sps:$4 sm:$0xff]  }
 0x931   : > { %v8441_v60 = vpop.f32.mrb[51].mxu0  ;;  %9238 = vmatprep.subr.bf16.mxu0 %v13987_v8  ;;  %v14042_v55 = vld [vmem:[%s17527_s3 + $0x710] ss:$8 sps:$4 sm:$0xff]   ;;  %v14047_v8 = vld [vmem:[%s17527_s3 + $0x724] ss:$8 sps:$4 sm:$0xff]  }
 0x932   : > { %v14053_v3 = vld [vmem:[%s17527_s3 + $0x744] ss:$8 sps:$4 sm:$0xff]   ;;  %v14056_v4 = vld [vmem:[%s17527_s3 + $0x754] ss:$8 sps:$4 sm:$0xff]  }
 0x933   : > { %v14059_v60 = vld [vmem:[%s17527_s3 + $0x764] ss:$8 sps:$4 sm:$0xff]  }
 0x934   : > { %9239 = vmatpush1.bf16.msra.mxu0 %v13985_v57  ;;  %v14054_v57 = vld [vmem:[%s17527_s3 + $0x750] ss:$8 sps:$4 sm:$0xff]  }
 0x935   : > { %9240 = vmatprep.subr.bf16.mxu0 %v13990_v1 }
 0x938   : > { %9241 = vmatpush1.bf16.msra.mxu0 %v13988_v7  ;;  %v14057_v7 = vld [vmem:[%s17527_s3 + $0x760] ss:$8 sps:$4 sm:$0xff]  }
 0x939   : > { %9567 = vmatprep.subr.bf16.mxu0 %v13993_v25  ;;  %v14064_v25 = vld [vmem:[%s17528_s4 + $0x180] sm:$0xff]  }
 0x93a   : > { %10347 = vmatpush1.bf16.msra.mxu1 %v14064_v25 }
 0x93b   : > { %9259 = vmatmul.mubr.bf16.vlgmr.msra.gmra.mrb[68].mxu0 %v8941_v63  ;;  %10348 = vmatprep.subr.bf16.mxu1 %v17792_v30  ;;  %v14063_v63 = vld [vmem:[%s17528_s4 + $0x60] sm:$0xff]  }
 0x93c   : > { %9568 = vmatpush1.bf16.msra.mxu0 %v13991_v43  ;;  %9599 = vmatprep.mubr.bf16.mxu0 %v9322_v5  ;;  %v14060_v43 = vld [vmem:[%s17527_s3 + $0x770] ss:$8 sps:$4 sm:$0xff]  }
 0x93d   : > { %9569 = vmatprep.subr.bf16.mxu0 %v13996_v15  ;;  %v9323_v15 = vrot.slane %v16493_v40, 2  ;;  %v14065_v40 = vld [vmem:[%s17528_s4 + $0x68] sm:$0xff]  }
 0x940   : > { %9570 = vmatpush1.bf16.msra.mxu0 %v13994_v0 }
 0x941   : > { %9571 = vmatprep.subr.bf16.mxu0 %v13999_v28 }
 0x944   : > { %9572 = vmatpush1.bf16.msra.mxu0 %v13997_v56 }
 0x945   : > { %9573 = vmatprep.subr.bf16.mxu0 %v14002_v42 }
 0x948   : > { %9574 = vmatpush1.bf16.msra.mxu0 %v14000_v37 }
 0x949   : > { %9575 = vmatprep.subr.bf16.mxu0 %v14005_v16 }
 0x94c   : > { %9576 = vmatpush1.bf16.msra.mxu0 %v14003_v33 }
 0x94d   : > { %9577 = vmatprep.subr.bf16.mxu0 %v14008_v21  ;;  %v14066_v21 = vld [vmem:[%s17528_s4 + $0x188] sm:$0xff]  }
 0x94e   : > { %v8477_v52 = vpop.f32.mrb[52].mxu0  ;;  %10349 = vmatpush1.bf16.msra.mxu1 %v14066_v21  ;;  %v14094_v21 = vld [vmem:[%s17528_s4 + $0x38] sm:$0xff]  }
 0x94f   : > { %v17040_v24 = vadd.f32 %v8477_v52, %v8437_v2  ;;  %v8479_v11 = vpop.f32.mrb[53].mxu0  ;;  %v14048_v2 = vld [vmem:[%s17527_s3 + $0x730] ss:$8 sps:$4 sm:$0xff]   ;;  %10350 = vmatprep.subr.bf16.mxu1 %v17792_v30 }
 0x950   : > { %v17042_v61 = vadd.f32 %v8479_v11, %v8439_v53  ;;  %v8481_v13 = vpop.f32.mrb[54].mxu0  ;;  %9578 = vmatpush1.bf16.msra.mxu0 %v14006_v58  ;;  %v14051_v53 = vld [vmem:[%s17527_s3 + $0x740] ss:$8 sps:$4 sm:$0xff]   ;;  %v14067_v58 = vld [vmem:[%s17528_s4 + $0x70] sm:$0xff]   ;;  %v14069_v52 = vld [vmem:[%s17528_s4 + $0x78] sm:$0xff]  }
 0x951   : > { %v8482_v27 = vpop.f32.mrb[55].mxu0  ;;  %9579 = vmatprep.subr.bf16.mxu0 %v14011_v49  ;;  %v14068_v49 = vld [vmem:[%s17528_s4 + $0x190] sm:$0xff]   ;;  %v14071_v11 = vld [vmem:[%s17528_s4 + $0x80] sm:$0xff]   ;;  %v14073_v13 = vld [vmem:[%s17528_s4 + $0x88] sm:$0xff]  }
 0x952   : > { %10351 = vmatpush1.bf16.msra.mxu1 %v14068_v49  ;;  %v14075_v27 = vld [vmem:[%s17528_s4 + $0x90] sm:$0xff]   ;;  %v14096_v49 = vld [vmem:[%s17528_s4 + $0x48] sm:$0xff]  }
 0x953   : > { %10352 = vmatprep.subr.bf16.mxu1 %v17792_v30 }
 0x954   : > { %9580 = vmatpush1.bf16.msra.mxu0 %v14009_v34  ;;  %v14074_v34 = vld [vmem:[%s17528_s4 + $0x1a8] sm:$0xff]  }
 0x955   : > { %9581 = vmatprep.subr.bf16.mxu0 %v14014_v32  ;;  %v14076_v32 = vld [vmem:[%s17528_s4 + $0x1b0] sm:$0xff]  }
 0x958   : > { %9582 = vmatpush1.bf16.msra.mxu0 %v14012_v17  ;;  %v14077_v17 = vld [vmem:[%s17528_s4 + $0x98] sm:$0xff]  }
 0x959   : > { %9583 = vmatprep.subr.bf16.mxu0 %v14017_v54  ;;  %v14078_v54 = vld [vmem:[%s17528_s4 + $0x1b8] sm:$0xff]  }
 0x95c   : > { %9584 = vmatpush1.bf16.msra.mxu0 %v14015_v31  ;;  %v14079_v31 = vld [vmem:[%s17528_s4 + $0xa0] sm:$0xff]  }
 0x95d   : > { %9585 = vmatprep.subr.bf16.mxu0 %v14020_v10  ;;  %v14080_v10 = vld [vmem:[%s17528_s4 + $0x1c0] sm:$0xff]  }
 0x960   : > { %9586 = vmatpush1.bf16.msra.mxu0 %v14018_v41  ;;  %v14081_v41 = vld [vmem:[%s17528_s4 + $0xa8] sm:$0xff]  }
 0x961   : > { %9587 = vmatprep.subr.bf16.mxu0 %v14023_v6 }
 0x964   : > { %9588 = vmatpush1.bf16.msra.mxu0 %v14021_v62  ;;  %v14082_v62 = vld [vmem:[%s17528_s4 + $0x1c8] sm:$0xff]  }
 0x965   : > { %9589 = vmatprep.subr.bf16.mxu0 %v14026_v20 }
 0x968   : > { %9590 = vmatpush1.bf16.msra.mxu0 %v14024_v22 }
 0x969   : > { %9591 = vmatprep.subr.bf16.mxu0 %v14029_v29 }
 0x96c   : > { %9592 = vmatpush1.bf16.msra.mxu0 %v14027_v47  ;;  %v14083_v47 = vld [vmem:[%s17528_s4 + $0xb0] sm:$0xff]  }
 0x96d   : > { %9593 = vmatprep.subr.bf16.mxu0 %v14032_v38  ;;  %v14084_v38 = vld [vmem:[%s17528_s4 + $0x1d0] sm:$0xff]  }
 0x970   : > { %9594 = vmatpush1.bf16.msra.mxu0 %v14030_v50  ;;  %v14085_v50 = vld [vmem:[%s17528_s4 + $0xb8] sm:$0xff]  }
 0x971   : > { %9595 = vmatprep.subr.bf16.mxu0 %v14035_v35  ;;  %v14086_v35 = vld [vmem:[%s17528_s4 + $0x1d8] sm:$0xff]  }
 0x974   : > { %9596 = vmatpush1.bf16.msra.mxu0 %v14033_v45 }
 0x975   : > { %9597 = vmatprep.subr.bf16.mxu0 %v14038_v12 }
 0x978   : > { %9598 = vmatpush1.bf16.msra.mxu0 %v14036_v18 }
 0x979   : > { %9608 = vmatprep.subr.bf16.mxu0 %v14041_v51 }
 0x97b   : > { %9600 = vmatmul.mubr.bf16.vlgmr.msra.gmra.mrb[72].mxu0 %v9321_v9 }
 0x97c   : > { %9609 = vmatpush1.bf16.msra.mxu0 %v14039_v44  ;;  %9640 = vmatprep.mubr.bf16.mxu0 %v17792_v30 }
 0x97d   : > { %9610 = vmatprep.subr.bf16.mxu0 %v14044_v19 }
 0x980   : > { %9611 = vmatpush1.bf16.msra.mxu0 %v14042_v55 }
 0x981   : > { %9612 = vmatprep.subr.bf16.mxu0 %v14047_v8 }
 0x984   : > { %9613 = vmatpush1.bf16.msra.mxu0 %v14045_v14 }
 0x985   : > { %9614 = vmatprep.subr.bf16.mxu0 %v14050_v26 }
 0x988   : > { %9615 = vmatpush1.bf16.msra.mxu0 %v14048_v2 }
 0x989   : > { %9616 = vmatprep.subr.bf16.mxu0 %v14053_v3  ;;  %v9651_v3 = vld [vmem:[#allocation8] sm:$0x3] }
 0x98c   : > { %9617 = vmatpush1.bf16.msra.mxu0 %v14051_v53 }
 0x98d   : > { %9618 = vmatprep.subr.bf16.mxu0 %v14056_v4 }
 0x98e   : > { %v8816_v1 = vpop.f32.mrb[56].mxu0 }
 0x98f   : > { %v8818_v39 = vpop.f32.mrb[57].mxu0 }
 0x990   : > { %v8820_v59 = vpop.f32.mrb[58].mxu0  ;;  %9619 = vmatpush1.bf16.msra.mxu0 %v14054_v57  ;;  %v9656_v57 = vrot.slane %v9651_v3, %v18179_v46  ;;  %v14087_v46 = vld [vmem:[%s17528_s4] sm:$0xff]  }
 0x991   : > { %v8821_v36 = vpop.f32.mrb[59].mxu0  ;;  %9620 = vmatprep.subr.bf16.mxu0 %v14059_v60 }
 0x994   : > { %9621 = vmatpush1.bf16.msra.mxu0 %v14057_v7 }
 0x995   : > { %9622 = vmatprep.subr.bf16.mxu0 %v14062_v23 }
 0x998   : > { %9623 = vmatpush1.bf16.msra.mxu0 %v14060_v43 }
 0x999   : > { %9799 = vmatprep.subr.bf16.mxu0 %v17792_v30 }
 0x99b   : > { %9641 = vmatmul.mubr.bf16.vlgmr.msra.gmra.mrb[76].mxu0 %v9323_v15 }
 0x99c   : > { %9800 = vmatpush1.bf16.msra.mxu0 %v14063_v63 }
 0x99d   : > { %9801 = vmatprep.subr.bf16.mxu0 %v17792_v30 }
 0x9a0   : > { %9802 = vmatpush1.bf16.msra.mxu0 %v14065_v40  ;;  %v14093_v40 = vld [vmem:[%s17528_s4 + $0x30] sm:$0xff]  }
 0x9a1   : > { %9803 = vmatprep.subr.bf16.mxu0 %v17792_v30 }
 0x9a4   : > { %9804 = vmatpush1.bf16.msra.mxu0 %v14067_v58  ;;  %v14095_v58 = vld [vmem:[%s17528_s4 + $0x40] sm:$0xff]  }
 0x9a5   : > { %9805 = vmatprep.subr.bf16.mxu0 %v17792_v30 }
 0x9a8   : > { %9806 = vmatpush1.bf16.msra.mxu0 %v14069_v52  ;;  %v14097_v52 = vld [vmem:[%s17528_s4 + $0x50] sm:$0xff]  }
 0x9a9   : > { %9807 = vmatprep.subr.bf16.mxu0 %v17792_v30 }
 0x9ac   : > { %9808 = vmatpush1.bf16.msra.mxu0 %v14071_v11  ;;  %v14099_v11 = vld [vmem:[%s17528_s4 + $0xc0] sm:$0xff]  }
 0x9ad   : > { %9809 = vmatprep.subr.bf16.mxu0 %v17792_v30 }
 0x9ae   : > { %v8857_v5 = vpop.f32.mrb[60].mxu0 }
 0x9af   : > { %v8858_v0 = vadd.f32 %v8857_v5, %v8816_v1  ;;  %v8859_v28 = vpop.f32.mrb[61].mxu0 }
 0x9b0   : > { %v8860_v56 = vadd.f32 %v8859_v28, %v8818_v39  ;;  %v8861_v42 = vpop.f32.mrb[62].mxu0  ;;  %9810 = vmatpush1.bf16.msra.mxu0 %v14073_v13  ;;  %v9660_v39 = vrot.slane %v9651_v3, %v18181_v48  ;;  %v14100_v13 = vld [vmem:[%s17528_s4 + $0xc8] sm:$0xff]   ;;  %v14126_v3 = vld [vmem:[%s17528_s4 + $0x1f8] sm:$0xff]  }
 0x9b1   : > { %v17162_v37 = vadd.f32 %v8858_v0, %v17040_v24  ;;  %v8862_v16 = vpop.f32.mrb[63].mxu0  ;;  %v14070_v24 = vld [vmem:[%s17528_s4 + $0x198] sm:$0xff]   ;;  %9811 = vmatprep.subr.bf16.mxu0 %v17792_v30  ;;  %v14089_v42 = vld [vmem:[%s17528_s4 + $0x10] sm:$0xff]  }
 0x9b2   : > { %v17165_v33 = vadd.f32 %v8860_v56, %v17042_v61  ;;  %10353 = vmatpush1.bf16.msra.mxu1 %v14070_v24  ;;  %v14072_v61 = vld [vmem:[%s17528_s4 + $0x1a0] sm:$0xff]   ;;  %v14088_v56 = vld [vmem:[%s17528_s4 + $0x8] sm:$0xff]   ;;  %v14098_v24 = vld [vmem:[%s17528_s4 + $0x58] sm:$0xff]  }
 0x9b3   : > { %10354 = vmatprep.subr.bf16.mxu1 %v17792_v30  ;;  %v14091_v16 = vld [vmem:[%s17528_s4 + $0x20] sm:$0xff]  }
 0x9b4   : > { %9812 = vmatpush1.bf16.msra.mxu0 %v14075_v27  ;;  %v14102_v27 = vld [vmem:[%s17528_s4 + $0xd8] sm:$0xff]  }
 0x9b5   : > { %9813 = vmatprep.subr.bf16.mxu0 %v17792_v30 }
 0x9b6   : > { %10355 = vmatpush1.bf16.msra.mxu1 %v14072_v61 }
 0x9b7   : > { %10356 = vmatprep.subr.bf16.mxu1 %v17792_v30 }
 0x9b8   : > { %9814 = vmatpush1.bf16.msra.mxu0 %v14077_v17  ;;  %v14104_v17 = vld [vmem:[%s17528_s4 + $0xe8] sm:$0xff]  }
 0x9b9   : > { %9815 = vmatprep.subr.bf16.mxu0 %v17792_v30 }
 0x9ba   : > { %10357 = vmatpush1.bf16.msra.mxu1 %v14074_v34  ;;  %v14101_v34 = vld [vmem:[%s17528_s4 + $0xd0] sm:$0xff]  }
 0x9bb   : > { %10358 = vmatprep.subr.bf16.mxu1 %v17792_v30 }
 0x9bc   : > { %9816 = vmatpush1.bf16.msra.mxu0 %v14079_v31  ;;  %v14106_v31 = vld [vmem:[%s17528_s4 + $0xf8] sm:$0xff]  }
 0x9bd   : > { %9817 = vmatprep.subr.bf16.mxu0 %v17792_v30 }
 0x9be   : > { %10359 = vmatpush1.bf16.msra.mxu1 %v14076_v32  ;;  %v14103_v32 = vld [vmem:[%s17528_s4 + $0xe0] sm:$0xff]  }
 0x9bf   : > { %10360 = vmatprep.subr.bf16.mxu1 %v17792_v30 }
 0x9c0   : > { %9818 = vmatpush1.bf16.msra.mxu0 %v14081_v41  ;;  %v14108_v41 = vld [vmem:[%s17528_s4 + $0x108] sm:$0xff]  }
 0x9c1   : > { %9819 = vmatprep.subr.bf16.mxu0 %v17792_v30 }
 0x9c2   : > { %10361 = vmatpush1.bf16.msra.mxu1 %v14078_v54  ;;  %v14105_v54 = vld [vmem:[%s17528_s4 + $0xf0] sm:$0xff]  }
 0x9c3   : > { %10362 = vmatprep.subr.bf16.mxu1 %v17792_v30 }
 0x9c4   : > { %9820 = vmatpush1.bf16.msra.mxu0 %v14083_v47  ;;  %v14112_v47 = vld [vmem:[%s17528_s4 + $0x128] sm:$0xff]  }
 0x9c5   : > { %9821 = vmatprep.subr.bf16.mxu0 %v17792_v30 }
 0x9c6   : > { %10363 = vmatpush1.bf16.msra.mxu1 %v14080_v10  ;;  %v14107_v10 = vld [vmem:[%s17528_s4 + $0x100] sm:$0xff]  }
 0x9c7   : > { %10364 = vmatprep.subr.bf16.mxu1 %v17792_v30 }
 0x9c8   : > { %9822 = vmatpush1.bf16.msra.mxu0 %v14085_v50  ;;  %v14114_v50 = vld [vmem:[%s17528_s4 + $0x138] sm:$0xff]  }
 0x9c9   : > { %9913 = vmatprep.subr.bf16.mxu0 %v17792_v30 }
 0x9ca   : > { %10365 = vmatpush1.bf16.msra.mxu1 %v14082_v62  ;;  %v14110_v62 = vld [vmem:[%s17528_s4 + $0x118] sm:$0xff]  }
 0x9cb   : > { %10366 = vmatprep.subr.bf16.mxu1 %v17792_v30 }
 0x9ce   : > { %10367 = vmatpush1.bf16.msra.mxu1 %v14084_v38  ;;  %v14113_v38 = vld [vmem:[%s17528_s4 + $0x130] sm:$0xff]  }
 0x9cf   : > { %10368 = vmatprep.subr.bf16.mxu1 %v17792_v30 }
 0x9d2   : > { %10369 = vmatpush1.bf16.msra.mxu1 %v14086_v35  ;;  %v14115_v35 = vld [vmem:[%s17528_s4 + $0x140] sm:$0xff]  }
 0x9ee   : > { %v9219_v6 = vpop.f32.mrb[64].mxu0 }
 0x9ef   : > { %v9221_v20 = vpop.f32.mrb[65].mxu0 }
 0x9f0   : > { %v9223_v22 = vpop.f32.mrb[66].mxu0 }
 0x9f1   : > { %v9224_v29 = vpop.f32.mrb[67].mxu0 }
 0xa0e   : > { %v9260_v45 = vpop.f32.mrb[68].mxu0 }
 0xa0f   : > { %v9261_v12 = vadd.f32 %v9260_v45, %v9219_v6  ;;  %v9262_v18 = vpop.f32.mrb[69].mxu0  ;;  %v14109_v6 = vld [vmem:[%s17528_s4 + $0x110] sm:$0xff]   ;;  %v14116_v45 = vld [vmem:[%s17528_s4 + $0x148] sm:$0xff]  }
 0xa10   : > { %v9263_v51 = vadd.f32 %v9262_v18, %v9221_v20  ;;  %v9264_v44 = vpop.f32.mrb[70].mxu0  ;;  %v14111_v20 = vld [vmem:[%s17528_s4 + $0x120] sm:$0xff]   ;;  %v14118_v18 = vld [vmem:[%s17528_s4 + $0x158] sm:$0xff]  }
 0xa11   : > { %v9267_v9 = vadd.f32 %v9261_v12, %v17162_v37  ;;  %v9265_v19 = vpop.f32.mrb[71].mxu0  ;;  %v14090_v37 = vld [vmem:[%s17528_s4 + $0x18] sm:$0xff]   ;;  %v14117_v12 = vld [vmem:[%s17528_s4 + $0x150] sm:$0xff]   ;;  %v14120_v44 = vld [vmem:[%s17528_s4 + $0x168] sm:$0xff]  }
 0xa12   : > { %v9268_v55 = vadd.f32 %v9263_v51, %v17165_v33  ;;  %v14092_v33 = vld [vmem:[%s17528_s4 + $0x28] sm:$0xff]   ;;  %v14119_v51 = vld [vmem:[%s17528_s4 + $0x160] sm:$0xff]   ;;  %v14122_v19 = vld [vmem:[%s17528_s4 + $0x178] sm:$0xff]  }
 0xa4e   : > { %v9601_v8 = vpop.f32.mrb[72].mxu0 }
 0xa4f   : > { %v9603_v14 = vpop.f32.mrb[73].mxu0 }
 0xa50   : > { %v9605_v26 = vpop.f32.mrb[74].mxu0 }
 0xa51   : > { %v9606_v2 = vpop.f32.mrb[75].mxu0  ;;  %v14124_v26 = vld [vmem:[%s17528_s4 + $0x1e8] sm:$0xff]  }
 0xa52   : > { %v14125_v2 = vld [vmem:[%s17528_s4 + $0x1f0] sm:$0xff]  }
 0xa6e   : > { %v9642_v53 = vpop.f32.mrb[76].mxu0 }
 0xa6f   : > { %v9643_v4 = vadd.f32 %v9642_v53, %v9601_v8  ;;  %v9644_v60 = vpop.f32.mrb[77].mxu0  ;;  %v14127_v53 = vld [vmem:[%s17528_s4 + $0x200] sm:$0xff]  }
 0xa70   : > { %v9645_v1 = vadd.f32 %v9644_v60, %v9603_v14  ;;  %v9646_v59 = vpop.f32.mrb[78].mxu0  ;;  %v14130_v60 = vld [vmem:[%s17528_s4 + $0x218] sm:$0xff]  }
 0xa71   : > { %v9649_v7 = vadd.f32 %v9643_v4, %v9267_v9  ;;  %v9647_v36 = vpop.f32.mrb[79].mxu0  ;;  %v14121_v9 = vld [vmem:[%s17528_s4 + $0x170] sm:$0xff]   ;;  %v14128_v4 = vld [vmem:[%s17528_s4 + $0x208] sm:$0xff]  }
 0xa72   : > { %v9650_v23 = vadd.f32 %v9645_v1, %v9268_v55  ;;  %v14123_v55 = vld [vmem:[%s17528_s4 + $0x1e0] sm:$0xff]   ;;  %v14133_v59 = vld [vmem:[%s17528_s4 + $0x230] sm:$0xff]  }
 0xa73   : > { %v9663_v25 = vadd.f32 %v9656_v57, %v9649_v7  ;;  %v14129_v57 = vld [vmem:[%s17528_s4 + $0x210] sm:$0xff]   ;;  %v14131_v1 = vld [vmem:[%s17528_s4 + $0x220] sm:$0xff]   ;;  %v14134_v7 = vld [vmem:[%s17528_s4 + $0x238] sm:$0xff]  }
 0xa74   : > { %v9664_v43 = vadd.f32 %v9660_v39, %v9650_v23  ;;  %v14132_v39 = vld [vmem:[%s17528_s4 + $0x228] sm:$0xff]  }
 0xa75   : > { %v17258_v63 = vpack.c.bf16 %v9663_v25, %v9663_v25 }
 0xa76   : > { %v9690_v15 = vpack.c.bf16 %v9664_v43, %v9664_v43 }
 0xa77   : > { %v17266_v28 = vshrl.u32 %v17258_v63, 16  ;;  %v10268_v48 = vrot.slane %v17258_v63, 2  ;;  %v9980_v22 = vrot.slane %v17258_v63, 1 }
 0xa78   : > { %v17260_v5 = vshrl.u32 %v9690_v15, 16  ;;  %v10269_v0 = vrot.slane %v9690_v15, 2  ;;  %v9981_v61 = vrot.slane %v9690_v15, 1 }
 0xa79   : > { %v10124_v8 = vrot.slane %v17266_v28, 1  ;;  %v10412_v36 = vrot.slane %v17266_v28, 2 }
 0xa7a   : > { %12023 = vmatprep.mubr.msk.bf16.mxu0 %vm9795_vm6, %v17260_v5  ;;  %12147 = vmatprep.mubr.msk.bf16.mxu1 %vm9795_vm6, %v10269_v0  ;;  %v10125_v29 = vrot.slane %v17260_v5, 1  ;;  %v10413_v14 = vrot.slane %v17260_v5, 2 }
 0xa7b   : > { %9832 = vmatmul.mubr.bf16.vlgmr.msra.gmra.mrb[80].mxu0 %v17266_v28  ;;  %10379 = vmatmul.mubr.bf16.vlgmr.msra.gmra.mrb[32].mxu1 %v10268_v48  ;;  %v14136_v28 = vld [vmem:[%s17529_s5 + $0x8] ss:$0 sps:$4 sm:$0xff]  }
 0xa7c   : > { %9914 = vmatpush1.bf16.msra.mxu0 %v14087_v46  ;;  %12036 = vmatprep.mubr.msk.bf16.mxu0 %vm9795_vm6, %v9690_v15 }
 0xa7d   : > { %9915 = vmatprep.subr.bf16.mxu0 %v17792_v30 }
 0xa80   : > { %9916 = vmatpush1.bf16.msra.mxu0 %v14088_v56 }
 0xa81   : > { %9917 = vmatprep.subr.bf16.mxu0 %v17792_v30 }
 0xa84   : > { %9918 = vmatpush1.bf16.msra.mxu0 %v14089_v42 }
 0xa85   : > { %9919 = vmatprep.subr.bf16.mxu0 %v17792_v30 }
 0xa88   : > { %9920 = vmatpush1.bf16.msra.mxu0 %v14090_v37 }
 0xa89   : > { %9921 = vmatprep.subr.bf16.mxu0 %v17792_v30 }
 0xa8c   : > { %9922 = vmatpush1.bf16.msra.mxu0 %v14091_v16 }
 0xa8d   : > { %9923 = vmatprep.subr.bf16.mxu0 %v17792_v30 }
 0xa90   : > { %9924 = vmatpush1.bf16.msra.mxu0 %v14092_v33  ;;  %v14398_v33 = vmov 0.0  }
 0xa91   : > { %9925 = vmatprep.subr.bf16.mxu0 %v17792_v30  ;;  %12195 = vmatprep.subr.bf16.mxu1 %v14398_v33 }
 0xa92   : > { %12199 = vmatprep.mubr.msk.bf16.mxu1 %vm14399_vm8, %v14398_v33 }
 0xa94   : > { %9926 = vmatpush1.bf16.msra.mxu0 %v14093_v40  ;;  %v10556_v40 = vsel %vm10554_vm7, %v14136_v28, 0 }
 0xa95   : > { %9927 = vmatprep.subr.bf16.mxu0 %v17792_v30 }
 0xa98   : > { %9928 = vmatpush1.bf16.msra.mxu0 %v14094_v21 }
 0xa99   : > { %9929 = vmatprep.subr.bf16.mxu0 %v17792_v30 }
 0xa9c   : > { %9930 = vmatpush1.bf16.msra.mxu0 %v14095_v58 }
 0xa9d   : > { %9931 = vmatprep.subr.bf16.mxu0 %v17792_v30 }
 0xaa0   : > { %9932 = vmatpush1.bf16.msra.mxu0 %v14096_v49 }
 0xaa1   : > { %9933 = vmatprep.subr.bf16.mxu0 %v17792_v30 }
 0xaa4   : > { %9934 = vmatpush1.bf16.msra.mxu0 %v14097_v52 }
 0xaa5   : > { %9935 = vmatprep.subr.bf16.mxu0 %v17792_v30 }
 0xaa8   : > { %9936 = vmatpush1.bf16.msra.mxu0 %v14098_v24 }
 0xaa9   : > { %10058 = vmatprep.subr.bf16.mxu0 %v17792_v30 }
 0xaab   : > { %9946 = vmatmul.mubr.bf16.vlgmr.msra.gmra.mrb[84].mxu0 %v17258_v63 }
 0xaac   : > { %10059 = vmatpush1.bf16.msra.mxu0 %v14099_v11  ;;  %12073 = vmatprep.mubr.msk.bf16.mxu0 %vm9795_vm6, %v9981_v61 }
 0xaad   : > { %10060 = vmatprep.subr.bf16.mxu0 %v17792_v30 }
 0xab0   : > { %10061 = vmatpush1.bf16.msra.mxu0 %v14100_v13 }
 0xab1   : > { %10062 = vmatprep.subr.bf16.mxu0 %v17792_v30 }
 0xab4   : > { %10063 = vmatpush1.bf16.msra.mxu0 %v14101_v34 }
 0xab5   : > { %10064 = vmatprep.subr.bf16.mxu0 %v17792_v30 }
 0xab8   : > { %10065 = vmatpush1.bf16.msra.mxu0 %v14102_v27 }
 0xab9   : > { %10066 = vmatprep.subr.bf16.mxu0 %v17792_v30 }
 0xabc   : > { %10067 = vmatpush1.bf16.msra.mxu0 %v14103_v32 }
 0xabd   : > { %10068 = vmatprep.subr.bf16.mxu0 %v17792_v30 }
 0xac0   : > { %10069 = vmatpush1.bf16.msra.mxu0 %v14104_v17 }
 0xac1   : > { %10070 = vmatprep.subr.bf16.mxu0 %v17792_v30 }
 0xac4   : > { %10071 = vmatpush1.bf16.msra.mxu0 %v14105_v54  ;;  %v10531_v54 = vld [vmem:[#allocation10] sm:$0x1] }
 0xac5   : > { %10072 = vmatprep.subr.bf16.mxu0 %v17792_v30 }
 0xac8   : > { %10073 = vmatpush1.bf16.msra.mxu0 %v14106_v31 }
 0xac9   : > { %10074 = vmatprep.subr.bf16.mxu0 %v17792_v30 }
 0xacc   : > { %10075 = vmatpush1.bf16.msra.mxu0 %v14107_v10 }
 0xacd   : > { %10076 = vmatprep.subr.bf16.mxu0 %v17792_v30 }
 0xad0   : > { %10077 = vmatpush1.bf16.msra.mxu0 %v14108_v41 }
 0xad1   : > { %10078 = vmatprep.subr.bf16.mxu0 %v17792_v30 }
 0xad4   : > { %10079 = vmatpush1.bf16.msra.mxu0 %v14109_v6 }
 0xad5   : > { %10080 = vmatprep.subr.bf16.mxu0 %v17792_v30 }
 0xad8   : > { %10081 = vmatpush1.bf16.msra.mxu0 %v14110_v62 }
 0xad9   : > { %10202 = vmatprep.subr.bf16.mxu0 %v17792_v30 }
 0xadb   : > { %10091 = vmatmul.mubr.bf16.vlgmr.msra.gmra.mrb[88].mxu0 %v9980_v22 }
 0xadc   : > { %10203 = vmatpush1.bf16.msra.mxu0 %v14111_v20  ;;  %12110 = vmatprep.mubr.msk.bf16.mxu0 %vm9795_vm6, %v10125_v29 }
 0xadd   : > { %10204 = vmatprep.subr.bf16.mxu0 %v17792_v30 }
 0xae0   : > { %10205 = vmatpush1.bf16.msra.mxu0 %v14112_v47  ;;  %v10540_v47 = vld [vmem:[#allocation11] sm:$0x1] }
 0xae1   : > { %10206 = vmatprep.subr.bf16.mxu0 %v17792_v30 }
 0xae4   : > { %10207 = vmatpush1.bf16.msra.mxu0 %v14113_v38 }
 0xae5   : > { %10208 = vmatprep.subr.bf16.mxu0 %v17792_v30 }
 0xae8   : > { %10209 = vmatpush1.bf16.msra.mxu0 %v14114_v50 }
 0xae9   : > { %10210 = vmatprep.subr.bf16.mxu0 %v17792_v30 }
 0xaec   : > { %10211 = vmatpush1.bf16.msra.mxu0 %v14115_v35 }
 0xaed   : > { %10212 = vmatprep.subr.bf16.mxu0 %v17792_v30 }
 0xaf0   : > { %10213 = vmatpush1.bf16.msra.mxu0 %v14116_v45 }
 0xaf1   : > { %10214 = vmatprep.subr.bf16.mxu0 %v17792_v30 }
 0xaf4   : > { %10215 = vmatpush1.bf16.msra.mxu0 %v14117_v12 }
 0xaf5   : > { %10216 = vmatprep.subr.bf16.mxu0 %v17792_v30 }
 0xaf8   : > { %10217 = vmatpush1.bf16.msra.mxu0 %v14118_v18 }
 0xaf9   : > { %10218 = vmatprep.subr.bf16.mxu0 %v17792_v30 }
 0xafc   : > { %10219 = vmatpush1.bf16.msra.mxu0 %v14119_v51 }
 0xafd   : > { %10220 = vmatprep.subr.bf16.mxu0 %v17792_v30 }
 0xb00   : > { %10221 = vmatpush1.bf16.msra.mxu0 %v14120_v44 }
 0xb01   : > { %10222 = vmatprep.subr.bf16.mxu0 %v17792_v30 }
 0xb04   : > { %10223 = vmatpush1.bf16.msra.mxu0 %v14121_v9 }
 0xb05   : > { %10224 = vmatprep.subr.bf16.mxu0 %v17792_v30 }
 0xb08   : > { %10225 = vmatpush1.bf16.msra.mxu0 %v14122_v19 }
 0xb09   : > { %10490 = vmatprep.subr.bf16.mxu0 %v17792_v30 }
 0xb0b   : > { %10235 = vmatmul.mubr.bf16.vlgmr.msra.gmra.mrb[92].mxu0 %v10124_v8 }
 0xb0c   : > { %10491 = vmatpush1.bf16.msra.mxu0 %v14123_v55  ;;  %12184 = vmatprep.mubr.msk.bf16.mxu0 %vm9795_vm6, %v10413_v14 }
 0xb0d   : > { %10492 = vmatprep.subr.bf16.mxu0 %v17792_v30 }
 0xb10   : > { %10493 = vmatpush1.bf16.msra.mxu0 %v14124_v26 }
 0xb11   : > { %10494 = vmatprep.subr.bf16.mxu0 %v17792_v30 }
 0xb14   : > { %10495 = vmatpush1.bf16.msra.mxu0 %v14125_v2 }
 0xb15   : > { %10496 = vmatprep.subr.bf16.mxu0 %v17792_v30 }
 0xb18   : > { %10497 = vmatpush1.bf16.msra.mxu0 %v14126_v3 }
 0xb19   : > { %10498 = vmatprep.subr.bf16.mxu0 %v17792_v30 }
 0xb1c   : > { %10499 = vmatpush1.bf16.msra.mxu0 %v14127_v53 }
 0xb1d   : > { %10500 = vmatprep.subr.bf16.mxu0 %v17792_v30 }
 0xb20   : > { %10501 = vmatpush1.bf16.msra.mxu0 %v14128_v4 }
 0xb21   : > { %10502 = vmatprep.subr.bf16.mxu0 %v17792_v30 }
 0xb24   : > { %10503 = vmatpush1.bf16.msra.mxu0 %v14129_v57 }
 0xb25   : > { %10504 = vmatprep.subr.bf16.mxu0 %v17792_v30 }
 0xb28   : > { %10505 = vmatpush1.bf16.msra.mxu0 %v14130_v60 }
 0xb29   : > { %10506 = vmatprep.subr.bf16.mxu0 %v17792_v30 }
 0xb2c   : > { %10507 = vmatpush1.bf16.msra.mxu0 %v14131_v1 }
 0xb2d   : > { %10508 = vmatprep.subr.bf16.mxu0 %v17792_v30 }
 0xb30   : > { %10509 = vmatpush1.bf16.msra.mxu0 %v14132_v39 }
 0xb31   : > { %10510 = vmatprep.subr.bf16.mxu0 %v17792_v30 }
 0xb34   : > { %10511 = vmatpush1.bf16.msra.mxu0 %v14133_v59 }
 0xb35   : > { %10512 = vmatprep.subr.bf16.mxu0 %v17792_v30  ;;  %v14135_v30 = vld [vmem:[%s17529_s5] sm:$0xff]  }
 0xb36   : > { %12196 = vmatpush3.bf16.msra.mxu1 %v14135_v30 }
 0xb37   : > { %12197 = vmatprep.subr.bf16.mxu1 %v14398_v33 }
 0xb38   : > { %10513 = vmatpush1.bf16.msra.mxu0 %v14134_v7 }
 0xb3a   : > { %12198 = vmatpush3.bf16.msra.mxu1 %v10556_v40 }
 0xb3b   : > { %10523 = vmatmul.mubr.bf16.vlgmr.msra.gmra.mrb[96].mxu0 %v10412_v36 }
 0xb4e   : > { %v9833_v23 = vpop.f32.mrb[80].mxu0  ;;  %v10380_v25 = vpop.f32.mrb[32].mxu1 }
 0xb4f   : > { %v9835_v43 = vpop.f32.mrb[81].mxu0  ;;  %v10382_v63 = vpop.f32.mrb[33].mxu1 }
 0xb50   : > { %v9836_v15 = vpop.f32.mrb[82].mxu0  ;;  %v10383_v5 = vpop.f32.mrb[34].mxu1 }
 0xb51   : > { %v9837_v0 = vpop.f32.mrb[83].mxu0  ;;  %v10384_v46 = vpop.f32.mrb[35].mxu1 }
 0xb7e   : > { %v9947_v48 = vpop.f32.mrb[84].mxu0 }
 0xb7f   : > { %v9948_v56 = vadd.f32 %v9947_v48, %v9833_v23  ;;  %v9949_v42 = vpop.f32.mrb[85].mxu0 }
 0xb80   : > { %v9950_v37 = vpop.f32.mrb[86].mxu0 }
 0xb81   : > { %v9951_v16 = vpop.f32.mrb[87].mxu0 }
 0xbae   : > { %v10092_v21 = vpop.f32.mrb[88].mxu0 }
 0xbaf   : > { %v10098_v58 = vadd.f32 %v10092_v21, %v9948_v56  ;;  %v10094_v49 = vpop.f32.mrb[89].mxu0 }
 0xbb0   : > { %v10095_v52 = vpop.f32.mrb[90].mxu0 }
 0xbb1   : > { %v10096_v24 = vpop.f32.mrb[91].mxu0 }
 0xbde   : > { %v10236_v11 = vpop.f32.mrb[92].mxu0 }
 0xbdf   : > { %v10242_v61 = vadd.f32 %v10236_v11, %v10098_v58  ;;  %v10238_v13 = vpop.f32.mrb[93].mxu0 }
 0xbe0   : > { %v10239_v34 = vpop.f32.mrb[94].mxu0 }
 0xbe1   : > { %v10240_v27 = vpop.f32.mrb[95].mxu0  ;;  %v10386_v32 = vadd.f32 %v10380_v25, %v10242_v61 }
 0xc0e   : > { %v10524_v17 = vpop.f32.mrb[96].mxu0 }
 0xc0f   : > { %v10530_v31 = vadd.f32 %v10524_v17, %v10386_v32  ;;  %v10526_v10 = vpop.f32.mrb[97].mxu0 }
 0xc10   : > { %v10527_v41 = vpop.f32.mrb[98].mxu0 }
 0xc11   : > { %v10532_v6 = vadd.f32 %v10531_v54, %v10530_v31  ;;  %v10528_v62 = vpop.f32.mrb[99].mxu0 }
 0xc13   : > { %vm10533_vm9 = vcmp.ge.f32.partialorder %v10532_v6, 0.0  ;;  %v10534_v20 = vmul.f32 0.01, %v10532_v6 }
 0xc15   : > { %v10535_v22 = vsel %vm10533_vm9, %v10532_v6, %v10534_v20 }
 0xc16   : > { %v10539_v29 = vpack.c.bf16 %v10535_v22, %v10535_v22 }
 0xc18   : > { %12200 = vmatmul.mubr.msk.bf16.vlgmr.msra.gmra.mrb[36].mxu1 %vm10550_vm10, %v10539_v29 }
 0xceb   : > { %v10592_v38 = vpop.f32.mrb[36].mxu1 }
 0xcec   : > { %v10593_v50 = vadd.f32 %v10592_v38, %v10540_v47  ;;  %v12201_v35 = vpop.f32.mrb[37].mxu1 }
 0xced   : > { %v10595_v45 = vpop.f32.mrb[38].mxu1 }
 0xcee   : > { %v10598_v12 = vsub.f32 0.0, %v10593_v50  ;;  %v12202_v18 = vpop.f32.mrb[39].mxu1 }
 0xcf0   : > { %v10599_v51 = vmul.f32 1.442695, %v10598_v12 }
 0xcf2   : > { %14137 = vpow2.f32 %v10599_v51 }
 0xcfc   : > { %v14138_v44 = vpop.eup %14137 }
 0xcfd   : > { %v10601_v9 = vadd.f32 1.0, %v14138_v44 }
 0xcff   : > { %14139 = vrcp.f32 %v10601_v9 }
 0xd09   : > { %v14140_v19 = vpop.eup %14139 }
 0xd0a   : > { %10605 = vst.msk [vmem:[%s456_s11] sm:$0x1] %vm10604_vm11, %v14140_v19 }
 0xd0b   : > { %14322 = shalt.err (!%p14319_p6)
}
 0xd0c   : > { %s14323_s13 = scalar_lea.hbm %s17482_s16, 16  ;;  %s14327_s19 = scalar_lea.hbm %s18186_s26, 32 }
 0xd0d   : > { %p14324_p5 = scmp.ne.s32.totalorder %s17482_s16, %s14323_s13  ;;  %p14328_p10 = scmp.lt.u32.totalorder %s17482_s16, %s18186_s26 }
 0xd0e   : > { %p14329_p2 = scmp.lt.u32.totalorder %s14327_s19, %s14323_s13  ;;  %p14331_p4 = scmp.lt.u32.totalorder %s14323_s13, %s17482_s16 }
 0xd0f   : > { %p14325_p9 = pnand %p14324_p5, %p18187_p7 }
 0xd10   : > { %p14330_p3 = por %p14329_p2, %p14328_p10 }
 0xd11   : > { %p14326_p12 = pneg %p14325_p9 }
 0xd12   : > { %p14332_p8 = por %p14331_p4, %p14330_p3 }
 0xd14   : > { %p14333_p11 = pnand %p14332_p8, %p14326_p12 }
 0xd16   : > { %14336 = shalt.err (!%p14333_p11)
}
 0xd17   : > { %12443 = dma.vmem_to_hbm [thread:$0]  (%p18187_p7), %s17484_s20, 16, %s17482_s16, %s10607_s25  }
 0xd18 PF: > { %s18188_s12 = sld [smem:[#allocation21_spill]]  ;;  %s18189_s6 = sld [smem:[#allocation19_spill]] }
 0xd19   : > { %s18190_s8 = sld [smem:[#allocation24_spill]] }
 0xd1e   : > { %p12480_p13 = scmp.ge.s32.totalorder %s18188_s12, 2  ;;  %s10631_s11 = sand.u32 1, %s18189_s6  }
 0xd1f   : > { %p18191_p1 = scmp.ne.s32.totalorder %s18190_s8, 0  ;;  %s10632_s17 = scalar_lea.sflag [#allocation4], %s10631_s11 }
 0xd21   : > { %p12465_p0 = pnand %p12480_p13, %p18191_p1 }
 0xd23   : > { %14370 = dma.done.wait (!%p12465_p0), %s10632_s17, 16  }
 0xd24   : > { %14372 = vsyncadd (!%p12465_p0), %s10632_s17, 4294967280  ;;  %s18192_s20 = sld [smem:[#allocation22_spill]]  ;;  %s18193_s28 = sld [smem:[#allocation20_spill]] }
 0xd25   : > { %s18194_s19 = sld [smem:[#allocation23_spill]]  ;;  %s18195_s17 = smov %s14379_s18 }
 0xd2a   : > { %p25_p6 = scmp.ge.s32.totalorder %s18192_s20, 4   ;;  %s18196_s18 = smov %s18193_s28 }
 0xd2c   :  { %27 = sbr.rel (!%p25_p6) target bundleno = 11 (0xb), region = 137 }
 0xd33   :  { %10636 = vsyncpa [#allocation3], 1 }
 0xd34   :  { %10638 = vsyncpa [#allocation3 + $0x1], 1 }
 0xd35   :  { %10639 = vsyncpa [#allocation6], 1 }
 0xd36   :  { %10640 = vsyncpa [#allocation9], 1 }
 0xd37   :  { %10641 = vsyncpa [#allocation12], 1 }
 0xd38   :  { %10642 = vsyncpa [#allocation4], 1 }
 0xd39   :  { %10644 = vsyncpa [#allocation4 + $0x1], 1 }

</bundles_post_ra>
